<compile_context>
chip_gen: v7x
topology: tpu7x:2x2x1
jax: 0.10.0
libtpu: 0.0.40
codegen_flags: <defaults>
</compile_context>

<pallas_src>
import functools

import jax
import jax.numpy as jnp
from jax.experimental import pallas as pl
from jax.experimental.pallas import tpu as pltpu

LANE = 128
TM_MAX = 256          # fixed M tile (rows of the im2col matrix)
TK_MAX = 2048         # max K tile -> bounded VMEM even for K=4608 layers


def _round_up(v, m):
    return ((v + m - 1) // m) * m


def _k_tiling(K):
    """Pick (TK, Kp, num_k_tiles) so that TK | Kp, TK % 128 == 0, TK <= TK_MAX."""
    kp0 = _round_up(K, LANE)
    nk = -(-kp0 // TK_MAX)
    tk = _round_up(-(-kp0 // nk), LANE)
    return tk, tk * nk, nk


# ----------------------------------------------------------------------------
# Static conv-layer container (weights pre-padded/cast once at init time).
# Metadata lives in pytree aux_data so it stays a Python int under jit.
# ----------------------------------------------------------------------------
class ConvLayer:
    def __init__(self, w, b, kh, kw, cin, n, k):
        self.w, self.b = w, b
        self.kh, self.kw, self.cin, self.n, self.k = kh, kw, cin, n, k


jax.tree_util.register_pytree_node(
    ConvLayer,
    lambda l: ((l.w, l.b), (l.kh, l.kw, l.cin, l.n, l.k)),
    lambda aux, ch: ConvLayer(ch[0], ch[1], *aux),
)


def _prep_conv(w, b):
    """w: (KH,KW,Cin,Cout) f32, b: (Cout,) f32 -> ConvLayer with bf16 (Kp,Np) weight."""
    kh, kw, cin, cout = w.shape
    K = kh * kw * cin
    _, Kp, _ = _k_tiling(K)
    Np = _round_up(cout, LANE)
    wp = jnp.pad(w.reshape(K, cout), ((0, Kp - K), (0, Np - cout))).astype(jnp.bfloat16)
    bp = jnp.pad(b.reshape(1, cout), ((0, 0), (0, Np - cout))).astype(jnp.float32)
    return ConvLayer(wp, bp, kh, kw, cin, cout, K)


# ----------------------------------------------------------------------------
# Pallas kernels:  act(x @ w + b [+ res])  with f32 epilogue
#   _mm_kernel_direct : single K tile, no scratch, 1-D parallel grid (fast path)
#   _mm_kernel_acc    : K-tiled reduction with f32 VMEM accumulator
# ----------------------------------------------------------------------------
def _epilogue(y, res_ref, act, res_mode):
    if res_mode == "pre":
        y = y + res_ref[...].astype(jnp.float32)
    if act == "leaky":
        y = jnp.where(y >= 0.0, y, 0.2 * y)
    if res_mode == "post":
        y = y + res_ref[...].astype(jnp.float32)
    return y


def _mm_kernel_direct(*refs, act, res_mode):
    if res_mode is None:
        x_ref, w_ref, b_ref, o_ref = refs
        res_ref = None
    else:
        x_ref, w_ref, b_ref, res_ref, o_ref = refs

    y = jnp.dot(x_ref[...], w_ref[...], preferred_element_type=jnp.float32)
    y = y + b_ref[...]
    y = _epilogue(y, res_ref, act, res_mode)
    o_ref[...] = y.astype(o_ref.dtype)


def _mm_kernel_acc(*refs, act, res_mode):
    if res_mode is None:
        x_ref, w_ref, b_ref, o_ref, acc_ref = refs
        res_ref = None
    else:
        x_ref, w_ref, b_ref, res_ref, o_ref, acc_ref = refs

    k = pl.program_id(1)

    @pl.when(k == 0)
    def _():
        acc_ref[...] = jnp.zeros_like(acc_ref)

    acc_ref[...] += jnp.dot(x_ref[...], w_ref[...],
                            preferred_element_type=jnp.float32)

    @pl.when(k == pl.num_programs(1) - 1)
    def _():
        y = acc_ref[...] + b_ref[...]                    # f32 epilogue
        y = _epilogue(y, res_ref, act, res_mode)
        o_ref[...] = y.astype(o_ref.dtype)


def fused_matmul(x, layer, act=None, residual=None, res_mode=None,
                 out_dtype=jnp.bfloat16):
    """y = [act](x @ W + b [+ residual]).  x:(M,K); layer holds padded bf16 W/(1,Np) b."""
    M, K = x.shape
    assert K == layer.k, (K, layer.k)
    n = layer.n
    wp, bp = layer.w, layer.b
    Kp, Np = wp.shape
    TK, Kp_chk, nk = _k_tiling(K)
    assert Kp_chk == Kp

    Mp0 = _round_up(M, 8)
    TM = TM_MAX if Mp0 >= TM_MAX else Mp0       # bounded tiles; no TM=Mp blow-up
    Mp = _round_up(M, TM)

    xp = x.astype(jnp.bfloat16)
    if Mp != M or Kp != K:
        xp = jnp.pad(xp, ((0, Mp - M), (0, Kp - K)))

    if residual is not None and res_mode is None:
        res_mode = "post"
    if residual is None:
        res_mode = None

    res_in, rbytes = [], 0
    res_spec_1d, res_spec_2d = [], []
    if residual is not None:
        rp = residual
        if rp.shape != (Mp, Np):
            rp = jnp.pad(rp, ((0, Mp - rp.shape[0]), (0, Np - rp.shape[1])))
        res_in = [rp]
        res_spec_1d = [pl.BlockSpec((TM, Np), lambda i: (i, 0))]
        res_spec_2d = [pl.BlockSpec((TM, Np), lambda i, k: (i, 0))]
        rbytes = Mp * Np * rp.dtype.itemsize

    cost = pl.CostEstimate(
        flops=2 * M * K * n,
        transcendentals=0,
        bytes_accessed=(xp.size * 2 + wp.size * 2 + bp.size * 4 + rbytes
                        + Mp * Np * jnp.dtype(out_dtype).itemsize),
    )

    if nk == 1:
        # Fast path: single K block, no accumulator scratch, weight resident
        # (constant index_map -> fetched once across all M steps).
        out = pl.pallas_call(
            functools.partial(_mm_kernel_direct, act=act, res_mode=res_mode),
            out_shape=jax.ShapeDtypeStruct((Mp, Np), out_dtype),
            grid=(Mp // TM,),
            in_specs=[pl.BlockSpec((TM, Kp), lambda i: (i, 0)),
                      pl.BlockSpec((Kp, Np), lambda i: (0, 0)),
                      pl.BlockSpec((1, Np), lambda i: (0, 0))] + res_spec_1d,
            out_specs=pl.BlockSpec((TM, Np), lambda i: (i, 0)),
            compiler_params=pltpu.CompilerParams(
                dimension_semantics=("parallel",),
                vmem_limit_bytes=32 * 1024 * 1024),
            cost_estimate=cost,
        )(xp, wp, bp, *res_in)
    else:
        out = pl.pallas_call(
            functools.partial(_mm_kernel_acc, act=act, res_mode=res_mode),
            out_shape=jax.ShapeDtypeStruct((Mp, Np), out_dtype),
            grid=(Mp // TM, nk),
            in_specs=[pl.BlockSpec((TM, TK), lambda i, k: (i, k)),
                      pl.BlockSpec((TK, Np), lambda i, k: (k, 0)),
                      pl.BlockSpec((1, Np), lambda i, k: (0, 0))] + res_spec_2d,
            out_specs=pl.BlockSpec((TM, Np), lambda i, k: (i, 0)),
            scratch_shapes=[pltpu.VMEM((TM, Np), jnp.float32)],
            compiler_params=pltpu.CompilerParams(
                dimension_semantics=("parallel", "arbitrary"),
                vmem_limit_bytes=32 * 1024 * 1024),
            cost_estimate=cost,
        )(xp, wp, bp, *res_in)

    if Mp != M or Np != n:
        out = out[:M, :n]
    return out


# ----------------------------------------------------------------------------
# Conv2d = im2col (glue) + fused Pallas matmul (+ fused residual/skip add)
# ----------------------------------------------------------------------------
def conv2d(x, layer, stride=1, padding=0, act=None, residual=None, res_mode=None,
           out_dtype=jnp.bfloat16):
    """x: (N,H,W,Cin) NHWC.  residual (if given): (N,Ho,Wo,Cout), fused in epilogue."""
    N, H, W, Cin = x.shape
    kh, kw, cout = layer.kh, layer.kw, layer.n
    if padding:
        x = jnp.pad(x, ((0, 0), (padding, padding), (padding, padding), (0, 0)))
    Hp, Wp = x.shape[1], x.shape[2]
    Ho = (Hp - kh) // stride + 1
    Wo = (Wp - kw) // stride + 1
    # TODO(synk): im2col still materializes a KH*KW-amplified patch tensor in HBM;
    # a direct in-kernel tap-reduction conv (manual shifted-window DMA) would remove it.
    cols = []
    for ki in range(kh):
        for kj in range(kw):
            cols.append(x[:, ki:ki + stride * (Ho - 1) + 1:stride,
                          kj:kj + stride * (Wo - 1) + 1:stride, :])
    patches = cols[0] if len(cols) == 1 else jnp.concatenate(cols, axis=-1)
    res2d = residual.reshape(N * Ho * Wo, cout) if residual is not None else None
    y = fused_matmul(patches.reshape(N * Ho * Wo, kh * kw * Cin), layer,
                     act=act, residual=res2d, res_mode=res_mode, out_dtype=out_dtype)
    return y.reshape(N, Ho, Wo, cout)


# ----------------------------------------------------------------------------
# Bilinear 2x upsample (align_corners=False) via static strided slices + fixed
# 0.25/0.75 lerp weights (no gathers).  Pure VPU glue, kept in plain JAX.
# ----------------------------------------------------------------------------
def upsample_bilinear_2x(x):
    dt = x.dtype
    xf = x.astype(jnp.float32)

    def interleave(a, b, axis):
        s = jnp.stack([a, b], axis=axis + 1)
        shp = list(a.shape)
        shp[axis] *= 2
        return s.reshape(shp)

    prev = jnp.concatenate([xf[:, :1], xf[:, :-1]], axis=1)
    nxt = jnp.concatenate([xf[:, 1:], xf[:, -1:]], axis=1)
    xr = interleave(0.25 * prev + 0.75 * xf, 0.75 * xf + 0.25 * nxt, axis=1)

    prev = jnp.concatenate([xr[:, :, :1], xr[:, :, :-1]], axis=2)
    nxt = jnp.concatenate([xr[:, :, 1:], xr[:, :, -1:]], axis=2)
    out = interleave(0.25 * prev + 0.75 * xr, 0.75 * xr + 0.25 * nxt, axis=2)
    return out.astype(dt)


def _pad_hw_to(x, th, tw):
    dh = th - x.shape[1]
    dw = tw - x.shape[2]
    if dh == 0 and dw == 0:
        return x
    return jnp.pad(x, ((0, 0), (dh // 2, dh - dh // 2), (dw // 2, dw - dw // 2), (0, 0)))


# ----------------------------------------------------------------------------
# Parameter construction (deterministic, synthetic) — weights pre-padded to
# matmul form and cast to bf16 once here (no per-call pads).
# ----------------------------------------------------------------------------
def init_unet_params(key, repeat_num=3, conv_dim=16, in_channels=1):
    counter = [0]

    def nk():
        counter[0] += 1
        return jax.random.fold_in(key, counter[0])

    def raw_conv(kh, kw, cin, cout):
        w = jax.random.normal(nk(), (kh, kw, cin, cout), jnp.float32) / jnp.sqrt(kh * kw * cin)
        b = jax.random.normal(nk(), (cout,), jnp.float32) * 0.01
        return w, b

    def conv(kh, kw, cin, cout):
        return _prep_conv(*raw_conv(kh, kw, cin, cout))

    filters = [in_channels] + [min(conv_dim * 2 ** i, 512) for i in range(repeat_num + 1)]
    filters[-1] = filters[-2]
    cio = list(zip(filters[:-1], filters[1:]))

    down = []
    for i, (cin, cout) in enumerate(cio):
        ds = i != len(cio) - 1
        down.append({
            "res": conv(1, 1, cin, cout),
            "c1": conv(3, 3, cin, cout),
            "c2": conv(3, 3, cout, cout),
            "down": conv(4, 4, cout, cout) if ds else None,
        })

    up = []
    for (cin, cout) in cio[:-1][::-1]:                 # UpBlock(cout*2, cin)
        w1, b1 = raw_conv(3, 3, 2 * cout, cin)
        up.append({
            # conv(cat([xu, res])) split:  xu-half carries the bias, res-half is bias-free
            "c1a": _prep_conv(w1[:, :, :cout, :], b1),
            "c1b": _prep_conv(w1[:, :, cout:, :], jnp.zeros((cin,), jnp.float32)),
            "c2": conv(3, 3, cin, cin),
            "sc": conv(1, 1, cout, cin),
        })

    last = filters[-1]
    lw = jax.random.normal(nk(), (last, 1), jnp.float32) / jnp.sqrt(last)
    lb = jax.random.normal(nk(), (1,), jnp.float32) * 0.01
    return {
        "down": down,
        "up": up,
        "mid_c1": conv(3, 3, last, last),
        "mid_c2": conv(3, 3, last, last),
        "out": conv(1, 1, in_channels, 1),
        "logit": _prep_conv(lw.reshape(1, 1, last, 1), lb),
    }


# ----------------------------------------------------------------------------
# Forward pass (use_discriminator=True, use_sigmoid=False, use_tanh=False)
# ----------------------------------------------------------------------------
def unet_forward(params, x_nchw):
    x = jnp.transpose(x_nchw, (0, 2, 3, 1)).astype(jnp.bfloat16)   # NCHW -> NHWC bf16

    # --- down path -----------------------------------------------------------
    residuals = []
    n_down = len(params["down"])
    for i, blk in enumerate(params["down"]):
        ds = i != n_down - 1
        res = conv2d(x, blk["res"], stride=2 if ds else 1, padding=0)
        h = conv2d(x, blk["c1"], stride=1, padding=1, act="leaky")
        if ds:
            h = conv2d(h, blk["c2"], stride=1, padding=1, act="leaky")
            residuals.append(h)                        # unet_res (pre-add), used by up path
            hd = (h.shape[1] + 2 - 4) // 2 + 1
            wd = (h.shape[2] + 2 - 4) // 2 + 1
            if (hd, wd) == (res.shape[1], res.shape[2]):
                x = conv2d(h, blk["down"], stride=2, padding=1,
                           residual=res, res_mode="post")      # fused residual add
            else:
                d = conv2d(h, blk["down"], stride=2, padding=1)
                x = _pad_hw_to(d, res.shape[1], res.shape[2]) + res
        else:
            # last block: its unet_res is never consumed -> fuse `+ res` into c2 epilogue
            h = conv2d(h, blk["c2"], stride=1, padding=1, act="leaky",
                       residual=res, res_mode="post")
            residuals.append(h)
            x = h

    # --- bottleneck:  bottom = double_conv(x) + x  (skip fused into mid_c2) ---
    h = conv2d(x, params["mid_c1"], 1, 1, act="leaky")
    bottom = conv2d(h, params["mid_c2"], 1, 1, act="leaky",
                    residual=x, res_mode="post")
    x = bottom

    # --- up path --------------------------------------------------------------
    for blk, res in zip(params["up"], residuals[:-1][::-1]):
        xu = upsample_bilinear_2x(x)
        xu = _pad_hw_to(xu, res.shape[1], res.shape[2])
        # conv(cat([xu, res])) == conv(xu, W_a) + conv(res, W_b): no cat materialized,
        # second half fused as a pre-activation residual.
        part = conv2d(res, blk["c1b"], 1, 1)
        p = conv2d(xu, blk["c1a"], 1, 1, act="leaky", residual=part, res_mode="pre")
        sc = conv2d(xu, blk["sc"], 1, 0)
        x = conv2d(p, blk["c2"], 1, 1, act="leaky", residual=sc, res_mode="post")

    # --- decoder output -------------------------------------------------------
    dec = conv2d(x, params["out"], 1, 0, out_dtype=jnp.float32)
    dec_nchw = jnp.transpose(dec, (0, 3, 1, 2))        # back to NCHW (N,1,H,W)

    # --- encoder logit: LeakyReLU -> GAP -> Flatten -> Linear (f32 epilogue) ---
    lb = bottom.astype(jnp.float32)
    lb = jnp.where(lb >= 0.0, lb, 0.2 * lb)
    pooled = jnp.mean(lb, axis=(1, 2))                 # (N, C)
    enc = fused_matmul(pooled, params["logit"], out_dtype=jnp.float32)   # (N, 1)
    enc = jnp.squeeze(enc)                             # matches enc_out.squeeze()

    return enc, dec_nchw


if __name__ == "__main__":
    key = jax.random.PRNGKey(0)
    # UNet(repeat_num=3, conv_dim=16, in_channels=1) at small shapes.
    params = init_unet_params(key, repeat_num=3, conv_dim=16, in_channels=1)
    x = jax.random.normal(jax.random.fold_in(key, 12345), (2, 1, 16, 16), jnp.float32)

    fwd = jax.jit(unet_forward)
    enc_out, dec_out = fwd(params, x)
    jax.block_until_ready((enc_out, dec_out))

    assert enc_out.shape == (2,), enc_out.shape
    assert dec_out.shape == (2, 1, 16, 16), dec_out.shape
    assert jnp.all(jnp.isfinite(enc_out)) and jnp.all(jnp.isfinite(dec_out))
    print("KERNEL_OK")
</pallas_src>

<mosaic_0001>
module attributes {stable_mosaic.version = 11 : i64} {
  func.func @_mm_kernel_direct(%arg0: i32, %arg1: memref<256x128xbf16, #tpu.memory_space<vmem>>, %arg2: memref<128x128xbf16, #tpu.memory_space<vmem>>, %arg3: memref<1x128xf32, #tpu.memory_space<vmem>>, %arg4: memref<256x128xbf16, #tpu.memory_space<vmem>>) attributes {dimension_semantics = [#tpu.dimension_semantics<parallel>], iteration_bounds = array<i64: 2>, scalar_prefetch = 0 : i64, scratch_operands = 0 : i64, tpu.core_type = #tpu.core_type<tc>, window_params = [{transform_indices = @transform_0, window_bounds = array<i64: 256, 128>}, {pipeline_mode = #tpu.pipeline_mode<synchronous>, transform_indices = @transform_1, window_bounds = array<i64: 128, 128>}, {pipeline_mode = #tpu.pipeline_mode<synchronous>, transform_indices = @transform_2, window_bounds = array<i64: 1, 128>}, {transform_indices = @transform_3, window_bounds = array<i64: 256, 128>}]} {
    %c0 = arith.constant 0 : index
    %c0_0 = arith.constant 0 : index
    %0 = vector.load %arg1[%c0, %c0_0] : memref<256x128xbf16, #tpu.memory_space<vmem>>, vector<256x128xbf16>
    %c0_1 = arith.constant 0 : index
    %c0_2 = arith.constant 0 : index
    %1 = vector.load %arg2[%c0_1, %c0_2] : memref<128x128xbf16, #tpu.memory_space<vmem>>, vector<128x128xbf16>
    %cst = arith.constant dense<0.000000e+00> : vector<256x128xf32>
    %2 = tpu.matmul %0, %1, %cst {dimension_numbers = #tpu.dot_dimension_numbers<[1], [0], [0], [1], [0, 0, 1, 1], [], []>} : vector<256x128xbf16>, vector<128x128xbf16>, vector<256x128xf32> -> vector<256x128xf32>
    %c0_3 = arith.constant 0 : index
    %c0_4 = arith.constant 0 : index
    %3 = vector.load %arg3[%c0_3, %c0_4] : memref<1x128xf32, #tpu.memory_space<vmem>>, vector<1x128xf32>
    %4 = vector.broadcast %3 : vector<1x128xf32> to vector<256x128xf32>
    %5 = arith.addf %2, %4 : vector<256x128xf32>
    %cst_5 = arith.constant 0.000000e+00 : f32
    %6 = vector.broadcast %cst_5 : f32 to vector<256x128xf32>
    %7 = arith.cmpf oge, %5, %6 : vector<256x128xf32>
    %cst_6 = arith.constant 2.000000e-01 : f32
    %8 = vector.broadcast %cst_6 : f32 to vector<256x128xf32>
    %9 = arith.mulf %8, %5 : vector<256x128xf32>
    %10 = arith.select %7, %5, %9 : vector<256x128xi1>, vector<256x128xf32>
    %11 = arith.truncf %10 : vector<256x128xf32> to vector<256x128xbf16>
    %c0_7 = arith.constant 0 : index
    %c0_8 = arith.constant 0 : index
    %12 = vector.load %arg4[%c0_7, %c0_8] : memref<256x128xbf16, #tpu.memory_space<vmem>>, vector<256x128xbf16>
    tpu.vector_store %arg4[%c0_7, %c0_8], %11 {strides = array<i32>} : memref<256x128xbf16, #tpu.memory_space<vmem>>, vector<256x128xbf16>,
    return
  }
  func.func @transform_0(%arg0: i32) -> (i32, i32) {
    %c0_i32 = arith.constant 0 : i32
    %c0_i32_0 = arith.constant 0 : i32
    return %arg0, %c0_i32 : i32, i32
  }
  func.func @transform_1(%arg0: i32) -> (i32, i32) {
    %c0_i32 = arith.constant 0 : i32
    %c0_i32_0 = arith.constant 0 : i32
    %c0_i32_1 = arith.constant 0 : i32
    return %c0_i32, %c0_i32_0 : i32, i32
  }
  func.func @transform_2(%arg0: i32) -> (i32, i32) {
    %c0_i32 = arith.constant 0 : i32
    %c0_i32_0 = arith.constant 0 : i32
    %c0_i32_1 = arith.constant 0 : i32
    return %c0_i32, %c0_i32_0 : i32, i32
  }
  func.func @transform_3(%arg0: i32) -> (i32, i32) {
    %c0_i32 = arith.constant 0 : i32
    %c0_i32_0 = arith.constant 0 : i32
    return %arg0, %c0_i32 : i32, i32
  }
}

module attributes {stable_mosaic.version = 11 : i64} {
  func.func @_mm_kernel_direct(%arg0: i32, %arg1: memref<256x256xbf16, #tpu.memory_space<vmem>>, %arg2: memref<256x128xbf16, #tpu.memory_space<vmem>>, %arg3: memref<1x128xf32, #tpu.memory_space<vmem>>, %arg4: memref<256x128xbf16, #tpu.memory_space<vmem>>) attributes {dimension_semantics = [#tpu.dimension_semantics<parallel>], iteration_bounds = array<i64: 2>, scalar_prefetch = 0 : i64, scratch_operands = 0 : i64, tpu.core_type = #tpu.core_type<tc>, window_params = [{transform_indices = @transform_0, window_bounds = array<i64: 256, 256>}, {pipeline_mode = #tpu.pipeline_mode<synchronous>, transform_indices = @transform_1, window_bounds = array<i64: 256, 128>}, {pipeline_mode = #tpu.pipeline_mode<synchronous>, transform_indices = @transform_2, window_bounds = array<i64: 1, 128>}, {transform_indices = @transform_3, window_bounds = array<i64: 256, 128>}]} {
    %c0 = arith.constant 0 : index
    %c0_0 = arith.constant 0 : index
    %0 = vector.load %arg1[%c0, %c0_0] : memref<256x256xbf16, #tpu.memory_space<vmem>>, vector<256x256xbf16>
    %c0_1 = arith.constant 0 : index
    %c0_2 = arith.constant 0 : index
    %1 = vector.load %arg2[%c0_1, %c0_2] : memref<256x128xbf16, #tpu.memory_space<vmem>>, vector<256x128xbf16>
    %cst = arith.constant dense<0.000000e+00> : vector<256x128xf32>
    %2 = tpu.matmul %0, %1, %cst {dimension_numbers = #tpu.dot_dimension_numbers<[1], [0], [0], [1], [0, 0, 1, 1], [], []>} : vector<256x256xbf16>, vector<256x128xbf16>, vector<256x128xf32> -> vector<256x128xf32>
    %c0_3 = arith.constant 0 : index
    %c0_4 = arith.constant 0 : index
    %3 = vector.load %arg3[%c0_3, %c0_4] : memref<1x128xf32, #tpu.memory_space<vmem>>, vector<1x128xf32>
    %4 = vector.broadcast %3 : vector<1x128xf32> to vector<256x128xf32>
    %5 = arith.addf %2, %4 : vector<256x128xf32>
    %cst_5 = arith.constant 0.000000e+00 : f32
    %6 = vector.broadcast %cst_5 : f32 to vector<256x128xf32>
    %7 = arith.cmpf oge, %5, %6 : vector<256x128xf32>
    %cst_6 = arith.constant 2.000000e-01 : f32
    %8 = vector.broadcast %cst_6 : f32 to vector<256x128xf32>
    %9 = arith.mulf %8, %5 : vector<256x128xf32>
    %10 = arith.select %7, %5, %9 : vector<256x128xi1>, vector<256x128xf32>
    %11 = arith.truncf %10 : vector<256x128xf32> to vector<256x128xbf16>
    %c0_7 = arith.constant 0 : index
    %c0_8 = arith.constant 0 : index
    %12 = vector.load %arg4[%c0_7, %c0_8] : memref<256x128xbf16, #tpu.memory_space<vmem>>, vector<256x128xbf16>
    tpu.vector_store %arg4[%c0_7, %c0_8], %11 {strides = array<i32>} : memref<256x128xbf16, #tpu.memory_space<vmem>>, vector<256x128xbf16>,
    return
  }
  func.func @transform_0(%arg0: i32) -> (i32, i32) {
    %c0_i32 = arith.constant 0 : i32
    %c0_i32_0 = arith.constant 0 : i32
    return %arg0, %c0_i32 : i32, i32
  }
  func.func @transform_1(%arg0: i32) -> (i32, i32) {
    %c0_i32 = arith.constant 0 : i32
    %c0_i32_0 = arith.constant 0 : i32
    %c0_i32_1 = arith.constant 0 : i32
    return %c0_i32, %c0_i32_0 : i32, i32
  }
  func.func @transform_2(%arg0: i32) -> (i32, i32) {
    %c0_i32 = arith.constant 0 : i32
    %c0_i32_0 = arith.constant 0 : i32
    %c0_i32_1 = arith.constant 0 : i32
    return %c0_i32, %c0_i32_0 : i32, i32
  }
  func.func @transform_3(%arg0: i32) -> (i32, i32) {
    %c0_i32 = arith.constant 0 : i32
    %c0_i32_0 = arith.constant 0 : i32
    return %arg0, %c0_i32 : i32, i32
  }
}

module attributes {stable_mosaic.version = 11 : i64} {
  func.func @_mm_kernel_direct(%arg0: i32, %arg1: memref<256x256xbf16, #tpu.memory_space<vmem>>, %arg2: memref<256x128xbf16, #tpu.memory_space<vmem>>, %arg3: memref<1x128xf32, #tpu.memory_space<vmem>>, %arg4: memref<256x128xbf16, #tpu.memory_space<vmem>>) attributes {dimension_semantics = [#tpu.dimension_semantics<parallel>], iteration_bounds = array<i64: 2>, scalar_prefetch = 0 : i64, scratch_operands = 0 : i64, tpu.core_type = #tpu.core_type<tc>, window_params = [{transform_indices = @transform_0, window_bounds = array<i64: 256, 256>}, {pipeline_mode = #tpu.pipeline_mode<synchronous>, transform_indices = @transform_1, window_bounds = array<i64: 256, 128>}, {pipeline_mode = #tpu.pipeline_mode<synchronous>, transform_indices = @transform_2, window_bounds = array<i64: 1, 128>}, {transform_indices = @transform_3, window_bounds = array<i64: 256, 128>}]} {
    %c0 = arith.constant 0 : index
    %c0_0 = arith.constant 0 : index
    %0 = vector.load %arg1[%c0, %c0_0] : memref<256x256xbf16, #tpu.memory_space<vmem>>, vector<256x256xbf16>
    %c0_1 = arith.constant 0 : index
    %c0_2 = arith.constant 0 : index
    %1 = vector.load %arg2[%c0_1, %c0_2] : memref<256x128xbf16, #tpu.memory_space<vmem>>, vector<256x128xbf16>
    %cst = arith.constant dense<0.000000e+00> : vector<256x128xf32>
    %2 = tpu.matmul %0, %1, %cst {dimension_numbers = #tpu.dot_dimension_numbers<[1], [0], [0], [1], [0, 0, 1, 1], [], []>} : vector<256x256xbf16>, vector<256x128xbf16>, vector<256x128xf32> -> vector<256x128xf32>
    %c0_3 = arith.constant 0 : index
    %c0_4 = arith.constant 0 : index
    %3 = vector.load %arg3[%c0_3, %c0_4] : memref<1x128xf32, #tpu.memory_space<vmem>>, vector<1x128xf32>
    %4 = vector.broadcast %3 : vector<1x128xf32> to vector<256x128xf32>
    %5 = arith.addf %2, %4 : vector<256x128xf32>
    %6 = arith.truncf %5 : vector<256x128xf32> to vector<256x128xbf16>
    %c0_5 = arith.constant 0 : index
    %c0_6 = arith.constant 0 : index
    %7 = vector.load %arg4[%c0_5, %c0_6] : memref<256x128xbf16, #tpu.memory_space<vmem>>, vector<256x128xbf16>
    tpu.vector_store %arg4[%c0_5, %c0_6], %6 {strides = array<i32>} : memref<256x128xbf16, #tpu.memory_space<vmem>>, vector<256x128xbf16>,
    return
  }
  func.func @transform_0(%arg0: i32) -> (i32, i32) {
    %c0_i32 = arith.constant 0 : i32
    %c0_i32_0 = arith.constant 0 : i32
    return %arg0, %c0_i32 : i32, i32
  }
  func.func @transform_1(%arg0: i32) -> (i32, i32) {
    %c0_i32 = arith.constant 0 : i32
    %c0_i32_0 = arith.constant 0 : i32
    %c0_i32_1 = arith.constant 0 : i32
    return %c0_i32, %c0_i32_0 : i32, i32
  }
  func.func @transform_2(%arg0: i32) -> (i32, i32) {
    %c0_i32 = arith.constant 0 : i32
    %c0_i32_0 = arith.constant 0 : i32
    %c0_i32_1 = arith.constant 0 : i32
    return %c0_i32, %c0_i32_0 : i32, i32
  }
  func.func @transform_3(%arg0: i32) -> (i32, i32) {
    %c0_i32 = arith.constant 0 : i32
    %c0_i32_0 = arith.constant 0 : i32
    return %arg0, %c0_i32 : i32, i32
  }
}

module attributes {stable_mosaic.version = 11 : i64} {
  func.func @_mm_kernel_direct(%arg0: i32, %arg1: memref<128x128xbf16, #tpu.memory_space<vmem>>, %arg2: memref<128x128xbf16, #tpu.memory_space<vmem>>, %arg3: memref<1x128xf32, #tpu.memory_space<vmem>>, %arg4: memref<128x128xbf16, #tpu.memory_space<vmem>>) attributes {dimension_semantics = [#tpu.dimension_semantics<parallel>], iteration_bounds = array<i64: 1>, scalar_prefetch = 0 : i64, scratch_operands = 0 : i64, tpu.core_type = #tpu.core_type<tc>, window_params = [{transform_indices = @transform_0, window_bounds = array<i64: 128, 128>}, {pipeline_mode = #tpu.pipeline_mode<synchronous>, transform_indices = @transform_1, window_bounds = array<i64: 128, 128>}, {pipeline_mode = #tpu.pipeline_mode<synchronous>, transform_indices = @transform_2, window_bounds = array<i64: 1, 128>}, {transform_indices = @transform_3, window_bounds = array<i64: 128, 128>}]} {
    %c0 = arith.constant 0 : index
    %c0_0 = arith.constant 0 : index
    %0 = vector.load %arg1[%c0, %c0_0] : memref<128x128xbf16, #tpu.memory_space<vmem>>, vector<128x128xbf16>
    %c0_1 = arith.constant 0 : index
    %c0_2 = arith.constant 0 : index
    %1 = vector.load %arg2[%c0_1, %c0_2] : memref<128x128xbf16, #tpu.memory_space<vmem>>, vector<128x128xbf16>
    %cst = arith.constant dense<0.000000e+00> : vector<128x128xf32>
    %2 = tpu.matmul %0, %1, %cst {dimension_numbers = #tpu.dot_dimension_numbers<[1], [0], [0], [1], [0, 0, 1, 1], [], []>} : vector<128x128xbf16>, vector<128x128xbf16>, vector<128x128xf32> -> vector<128x128xf32>
    %c0_3 = arith.constant 0 : index
    %c0_4 = arith.constant 0 : index
    %3 = vector.load %arg3[%c0_3, %c0_4] : memref<1x128xf32, #tpu.memory_space<vmem>>, vector<1x128xf32>
    %4 = vector.broadcast %3 : vector<1x128xf32> to vector<128x128xf32>
    %5 = arith.addf %2, %4 : vector<128x128xf32>
    %6 = arith.truncf %5 : vector<128x128xf32> to vector<128x128xbf16>
    %c0_5 = arith.constant 0 : index
    %c0_6 = arith.constant 0 : index
    %7 = vector.load %arg4[%c0_5, %c0_6] : memref<128x128xbf16, #tpu.memory_space<vmem>>, vector<128x128xbf16>
    tpu.vector_store %arg4[%c0_5, %c0_6], %6 {strides = array<i32>} : memref<128x128xbf16, #tpu.memory_space<vmem>>, vector<128x128xbf16>,
    return
  }
  func.func @transform_0(%arg0: i32) -> (i32, i32) {
    %c0_i32 = arith.constant 0 : i32
    %c0_i32_0 = arith.constant 0 : i32
    return %arg0, %c0_i32 : i32, i32
  }
  func.func @transform_1(%arg0: i32) -> (i32, i32) {
    %c0_i32 = arith.constant 0 : i32
    %c0_i32_0 = arith.constant 0 : i32
    %c0_i32_1 = arith.constant 0 : i32
    return %c0_i32, %c0_i32_0 : i32, i32
  }
  func.func @transform_2(%arg0: i32) -> (i32, i32) {
    %c0_i32 = arith.constant 0 : i32
    %c0_i32_0 = arith.constant 0 : i32
    %c0_i32_1 = arith.constant 0 : i32
    return %c0_i32, %c0_i32_0 : i32, i32
  }
  func.func @transform_3(%arg0: i32) -> (i32, i32) {
    %c0_i32 = arith.constant 0 : i32
    %c0_i32_0 = arith.constant 0 : i32
    return %arg0, %c0_i32 : i32, i32
  }
}

module attributes {stable_mosaic.version = 11 : i64} {
  func.func @_mm_kernel_direct(%arg0: i32, %arg1: memref<128x256xbf16, #tpu.memory_space<vmem>>, %arg2: memref<256x128xbf16, #tpu.memory_space<vmem>>, %arg3: memref<1x128xf32, #tpu.memory_space<vmem>>, %arg4: memref<128x128xbf16, #tpu.memory_space<vmem>>, %arg5: memref<128x128xbf16, #tpu.memory_space<vmem>>) attributes {dimension_semantics = [#tpu.dimension_semantics<parallel>], iteration_bounds = array<i64: 1>, scalar_prefetch = 0 : i64, scratch_operands = 0 : i64, tpu.core_type = #tpu.core_type<tc>, window_params = [{transform_indices = @transform_0, window_bounds = array<i64: 128, 256>}, {pipeline_mode = #tpu.pipeline_mode<synchronous>, transform_indices = @transform_1, window_bounds = array<i64: 256, 128>}, {pipeline_mode = #tpu.pipeline_mode<synchronous>, transform_indices = @transform_2, window_bounds = array<i64: 1, 128>}, {transform_indices = @transform_3, window_bounds = array<i64: 128, 128>}, {transform_indices = @transform_4, window_bounds = array<i64: 128, 128>}]} {
    %c0 = arith.constant 0 : index
    %c0_0 = arith.constant 0 : index
    %0 = vector.load %arg1[%c0, %c0_0] : memref<128x256xbf16, #tpu.memory_space<vmem>>, vector<128x256xbf16>
    %c0_1 = arith.constant 0 : index
    %c0_2 = arith.constant 0 : index
    %1 = vector.load %arg2[%c0_1, %c0_2] : memref<256x128xbf16, #tpu.memory_space<vmem>>, vector<256x128xbf16>
    %cst = arith.constant dense<0.000000e+00> : vector<128x128xf32>
    %2 = tpu.matmul %0, %1, %cst {dimension_numbers = #tpu.dot_dimension_numbers<[1], [0], [0], [1], [0, 0, 1, 1], [], []>} : vector<128x256xbf16>, vector<256x128xbf16>, vector<128x128xf32> -> vector<128x128xf32>
    %c0_3 = arith.constant 0 : index
    %c0_4 = arith.constant 0 : index
    %3 = vector.load %arg3[%c0_3, %c0_4] : memref<1x128xf32, #tpu.memory_space<vmem>>, vector<1x128xf32>
    %4 = vector.broadcast %3 : vector<1x128xf32> to vector<128x128xf32>
    %5 = arith.addf %2, %4 : vector<128x128xf32>
    %c0_5 = arith.constant 0 : index
    %c0_6 = arith.constant 0 : index
    %6 = vector.load %arg4[%c0_5, %c0_6] : memref<128x128xbf16, #tpu.memory_space<vmem>>, vector<128x128xbf16>
    %7 = arith.extf %6 : vector<128x128xbf16> to vector<128x128xf32>
    %8 = arith.addf %5, %7 : vector<128x128xf32>
    %9 = arith.truncf %8 : vector<128x128xf32> to vector<128x128xbf16>
    %c0_7 = arith.constant 0 : index
    %c0_8 = arith.constant 0 : index
    %10 = vector.load %arg5[%c0_7, %c0_8] : memref<128x128xbf16, #tpu.memory_space<vmem>>, vector<128x128xbf16>
    tpu.vector_store %arg5[%c0_7, %c0_8], %9 {strides = array<i32>} : memref<128x128xbf16, #tpu.memory_space<vmem>>, vector<128x128xbf16>,
    return
  }
  func.func @transform_0(%arg0: i32) -> (i32, i32) {
    %c0_i32 = arith.constant 0 : i32
    %c0_i32_0 = arith.constant 0 : i32
    return %arg0, %c0_i32 : i32, i32
  }
  func.func @transform_1(%arg0: i32) -> (i32, i32) {
    %c0_i32 = arith.constant 0 : i32
    %c0_i32_0 = arith.constant 0 : i32
    %c0_i32_1 = arith.constant 0 : i32
    return %c0_i32, %c0_i32_0 : i32, i32
  }
  func.func @transform_2(%arg0: i32) -> (i32, i32) {
    %c0_i32 = arith.constant 0 : i32
    %c0_i32_0 = arith.constant 0 : i32
    %c0_i32_1 = arith.constant 0 : i32
    return %c0_i32, %c0_i32_0 : i32, i32
  }
  func.func @transform_3(%arg0: i32) -> (i32, i32) {
    %c0_i32 = arith.constant 0 : i32
    %c0_i32_0 = arith.constant 0 : i32
    return %arg0, %c0_i32 : i32, i32
  }
  func.func @transform_4(%arg0: i32) -> (i32, i32) {
    %c0_i32 = arith.constant 0 : i32
    %c0_i32_0 = arith.constant 0 : i32
    return %arg0, %c0_i32 : i32, i32
  }
}

module attributes {stable_mosaic.version = 11 : i64} {
  func.func @_mm_kernel_direct(%arg0: i32, %arg1: memref<128x256xbf16, #tpu.memory_space<vmem>>, %arg2: memref<256x128xbf16, #tpu.memory_space<vmem>>, %arg3: memref<1x128xf32, #tpu.memory_space<vmem>>, %arg4: memref<128x128xbf16, #tpu.memory_space<vmem>>) attributes {dimension_semantics = [#tpu.dimension_semantics<parallel>], iteration_bounds = array<i64: 1>, scalar_prefetch = 0 : i64, scratch_operands = 0 : i64, tpu.core_type = #tpu.core_type<tc>, window_params = [{transform_indices = @transform_0, window_bounds = array<i64: 128, 256>}, {pipeline_mode = #tpu.pipeline_mode<synchronous>, transform_indices = @transform_1, window_bounds = array<i64: 256, 128>}, {pipeline_mode = #tpu.pipeline_mode<synchronous>, transform_indices = @transform_2, window_bounds = array<i64: 1, 128>}, {transform_indices = @transform_3, window_bounds = array<i64: 128, 128>}]} {
    %c0 = arith.constant 0 : index
    %c0_0 = arith.constant 0 : index
    %0 = vector.load %arg1[%c0, %c0_0] : memref<128x256xbf16, #tpu.memory_space<vmem>>, vector<128x256xbf16>
    %c0_1 = arith.constant 0 : index
    %c0_2 = arith.constant 0 : index
    %1 = vector.load %arg2[%c0_1, %c0_2] : memref<256x128xbf16, #tpu.memory_space<vmem>>, vector<256x128xbf16>
    %cst = arith.constant dense<0.000000e+00> : vector<128x128xf32>
    %2 = tpu.matmul %0, %1, %cst {dimension_numbers = #tpu.dot_dimension_numbers<[1], [0], [0], [1], [0, 0, 1, 1], [], []>} : vector<128x256xbf16>, vector<256x128xbf16>, vector<128x128xf32> -> vector<128x128xf32>
    %c0_3 = arith.constant 0 : index
    %c0_4 = arith.constant 0 : index
    %3 = vector.load %arg3[%c0_3, %c0_4] : memref<1x128xf32, #tpu.memory_space<vmem>>, vector<1x128xf32>
    %4 = vector.broadcast %3 : vector<1x128xf32> to vector<128x128xf32>
    %5 = arith.addf %2, %4 : vector<128x128xf32>
    %cst_5 = arith.constant 0.000000e+00 : f32
    %6 = vector.broadcast %cst_5 : f32 to vector<128x128xf32>
    %7 = arith.cmpf oge, %5, %6 : vector<128x128xf32>
    %cst_6 = arith.constant 2.000000e-01 : f32
    %8 = vector.broadcast %cst_6 : f32 to vector<128x128xf32>
    %9 = arith.mulf %8, %5 : vector<128x128xf32>
    %10 = arith.select %7, %5, %9 : vector<128x128xi1>, vector<128x128xf32>
    %11 = arith.truncf %10 : vector<128x128xf32> to vector<128x128xbf16>
    %c0_7 = arith.constant 0 : index
    %c0_8 = arith.constant 0 : index
    %12 = vector.load %arg4[%c0_7, %c0_8] : memref<128x128xbf16, #tpu.memory_space<vmem>>, vector<128x128xbf16>
    tpu.vector_store %arg4[%c0_7, %c0_8], %11 {strides = array<i32>} : memref<128x128xbf16, #tpu.memory_space<vmem>>, vector<128x128xbf16>,
    return
  }
  func.func @transform_0(%arg0: i32) -> (i32, i32) {
    %c0_i32 = arith.constant 0 : i32
    %c0_i32_0 = arith.constant 0 : i32
    return %arg0, %c0_i32 : i32, i32
  }
  func.func @transform_1(%arg0: i32) -> (i32, i32) {
    %c0_i32 = arith.constant 0 : i32
    %c0_i32_0 = arith.constant 0 : i32
    %c0_i32_1 = arith.constant 0 : i32
    return %c0_i32, %c0_i32_0 : i32, i32
  }
  func.func @transform_2(%arg0: i32) -> (i32, i32) {
    %c0_i32 = arith.constant 0 : i32
    %c0_i32_0 = arith.constant 0 : i32
    %c0_i32_1 = arith.constant 0 : i32
    return %c0_i32, %c0_i32_0 : i32, i32
  }
  func.func @transform_3(%arg0: i32) -> (i32, i32) {
    %c0_i32 = arith.constant 0 : i32
    %c0_i32_0 = arith.constant 0 : i32
    return %arg0, %c0_i32 : i32, i32
  }
}

module attributes {stable_mosaic.version = 11 : i64} {
  func.func @_mm_kernel_direct(%arg0: i32, %arg1: memref<128x384xbf16, #tpu.memory_space<vmem>>, %arg2: memref<384x128xbf16, #tpu.memory_space<vmem>>, %arg3: memref<1x128xf32, #tpu.memory_space<vmem>>, %arg4: memref<128x128xbf16, #tpu.memory_space<vmem>>) attributes {dimension_semantics = [#tpu.dimension_semantics<parallel>], iteration_bounds = array<i64: 1>, scalar_prefetch = 0 : i64, scratch_operands = 0 : i64, tpu.core_type = #tpu.core_type<tc>, window_params = [{transform_indices = @transform_0, window_bounds = array<i64: 128, 384>}, {pipeline_mode = #tpu.pipeline_mode<synchronous>, transform_indices = @transform_1, window_bounds = array<i64: 384, 128>}, {pipeline_mode = #tpu.pipeline_mode<synchronous>, transform_indices = @transform_2, window_bounds = array<i64: 1, 128>}, {transform_indices = @transform_3, window_bounds = array<i64: 128, 128>}]} {
    %c0 = arith.constant 0 : index
    %c0_0 = arith.constant 0 : index
    %0 = vector.load %arg1[%c0, %c0_0] : memref<128x384xbf16, #tpu.memory_space<vmem>>, vector<128x384xbf16>
    %c0_1 = arith.constant 0 : index
    %c0_2 = arith.constant 0 : index
    %1 = vector.load %arg2[%c0_1, %c0_2] : memref<384x128xbf16, #tpu.memory_space<vmem>>, vector<384x128xbf16>
    %cst = arith.constant dense<0.000000e+00> : vector<128x128xf32>
    %2 = tpu.matmul %0, %1, %cst {dimension_numbers = #tpu.dot_dimension_numbers<[1], [0], [0], [1], [0, 0, 1, 1], [], []>} : vector<128x384xbf16>, vector<384x128xbf16>, vector<128x128xf32> -> vector<128x128xf32>
    %c0_3 = arith.constant 0 : index
    %c0_4 = arith.constant 0 : index
    %3 = vector.load %arg3[%c0_3, %c0_4] : memref<1x128xf32, #tpu.memory_space<vmem>>, vector<1x128xf32>
    %4 = vector.broadcast %3 : vector<1x128xf32> to vector<128x128xf32>
    %5 = arith.addf %2, %4 : vector<128x128xf32>
    %cst_5 = arith.constant 0.000000e+00 : f32
    %6 = vector.broadcast %cst_5 : f32 to vector<128x128xf32>
    %7 = arith.cmpf oge, %5, %6 : vector<128x128xf32>
    %cst_6 = arith.constant 2.000000e-01 : f32
    %8 = vector.broadcast %cst_6 : f32 to vector<128x128xf32>
    %9 = arith.mulf %8, %5 : vector<128x128xf32>
    %10 = arith.select %7, %5, %9 : vector<128x128xi1>, vector<128x128xf32>
    %11 = arith.truncf %10 : vector<128x128xf32> to vector<128x128xbf16>
    %c0_7 = arith.constant 0 : index
    %c0_8 = arith.constant 0 : index
    %12 = vector.load %arg4[%c0_7, %c0_8] : memref<128x128xbf16, #tpu.memory_space<vmem>>, vector<128x128xbf16>
    tpu.vector_store %arg4[%c0_7, %c0_8], %11 {strides = array<i32>} : memref<128x128xbf16, #tpu.memory_space<vmem>>, vector<128x128xbf16>,
    return
  }
  func.func @transform_0(%arg0: i32) -> (i32, i32) {
    %c0_i32 = arith.constant 0 : i32
    %c0_i32_0 = arith.constant 0 : i32
    return %arg0, %c0_i32 : i32, i32
  }
  func.func @transform_1(%arg0: i32) -> (i32, i32) {
    %c0_i32 = arith.constant 0 : i32
    %c0_i32_0 = arith.constant 0 : i32
    %c0_i32_1 = arith.constant 0 : i32
    return %c0_i32, %c0_i32_0 : i32, i32
  }
  func.func @transform_2(%arg0: i32) -> (i32, i32) {
    %c0_i32 = arith.constant 0 : i32
    %c0_i32_0 = arith.constant 0 : i32
    %c0_i32_1 = arith.constant 0 : i32
    return %c0_i32, %c0_i32_0 : i32, i32
  }
  func.func @transform_3(%arg0: i32) -> (i32, i32) {
    %c0_i32 = arith.constant 0 : i32
    %c0_i32_0 = arith.constant 0 : i32
    return %arg0, %c0_i32 : i32, i32
  }
}

module attributes {stable_mosaic.version = 11 : i64} {
  func.func @_mm_kernel_direct(%arg0: i32, %arg1: memref<128x384xbf16, #tpu.memory_space<vmem>>, %arg2: memref<384x128xbf16, #tpu.memory_space<vmem>>, %arg3: memref<1x128xf32, #tpu.memory_space<vmem>>, %arg4: memref<128x128xbf16, #tpu.memory_space<vmem>>) attributes {dimension_semantics = [#tpu.dimension_semantics<parallel>], iteration_bounds = array<i64: 1>, scalar_prefetch = 0 : i64, scratch_operands = 0 : i64, tpu.core_type = #tpu.core_type<tc>, window_params = [{transform_indices = @transform_0, window_bounds = array<i64: 128, 384>}, {pipeline_mode = #tpu.pipeline_mode<synchronous>, transform_indices = @transform_1, window_bounds = array<i64: 384, 128>}, {pipeline_mode = #tpu.pipeline_mode<synchronous>, transform_indices = @transform_2, window_bounds = array<i64: 1, 128>}, {transform_indices = @transform_3, window_bounds = array<i64: 128, 128>}]} {
    %c0 = arith.constant 0 : index
    %c0_0 = arith.constant 0 : index
    %0 = vector.load %arg1[%c0, %c0_0] : memref<128x384xbf16, #tpu.memory_space<vmem>>, vector<128x384xbf16>
    %c0_1 = arith.constant 0 : index
    %c0_2 = arith.constant 0 : index
    %1 = vector.load %arg2[%c0_1, %c0_2] : memref<384x128xbf16, #tpu.memory_space<vmem>>, vector<384x128xbf16>
    %cst = arith.constant dense<0.000000e+00> : vector<128x128xf32>
    %2 = tpu.matmul %0, %1, %cst {dimension_numbers = #tpu.dot_dimension_numbers<[1], [0], [0], [1], [0, 0, 1, 1], [], []>} : vector<128x384xbf16>, vector<384x128xbf16>, vector<128x128xf32> -> vector<128x128xf32>
    %c0_3 = arith.constant 0 : index
    %c0_4 = arith.constant 0 : index
    %3 = vector.load %arg3[%c0_3, %c0_4] : memref<1x128xf32, #tpu.memory_space<vmem>>, vector<1x128xf32>
    %4 = vector.broadcast %3 : vector<1x128xf32> to vector<128x128xf32>
    %5 = arith.addf %2, %4 : vector<128x128xf32>
    %6 = arith.truncf %5 : vector<128x128xf32> to vector<128x128xbf16>
    %c0_5 = arith.constant 0 : index
    %c0_6 = arith.constant 0 : index
    %7 = vector.load %arg4[%c0_5, %c0_6] : memref<128x128xbf16, #tpu.memory_space<vmem>>, vector<128x128xbf16>
    tpu.vector_store %arg4[%c0_5, %c0_6], %6 {strides = array<i32>} : memref<128x128xbf16, #tpu.memory_space<vmem>>, vector<128x128xbf16>,
    return
  }
  func.func @transform_0(%arg0: i32) -> (i32, i32) {
    %c0_i32 = arith.constant 0 : i32
    %c0_i32_0 = arith.constant 0 : i32
    return %arg0, %c0_i32 : i32, i32
  }
  func.func @transform_1(%arg0: i32) -> (i32, i32) {
    %c0_i32 = arith.constant 0 : i32
    %c0_i32_0 = arith.constant 0 : i32
    %c0_i32_1 = arith.constant 0 : i32
    return %c0_i32, %c0_i32_0 : i32, i32
  }
  func.func @transform_2(%arg0: i32) -> (i32, i32) {
    %c0_i32 = arith.constant 0 : i32
    %c0_i32_0 = arith.constant 0 : i32
    %c0_i32_1 = arith.constant 0 : i32
    return %c0_i32, %c0_i32_0 : i32, i32
  }
  func.func @transform_3(%arg0: i32) -> (i32, i32) {
    %c0_i32 = arith.constant 0 : i32
    %c0_i32_0 = arith.constant 0 : i32
    return %arg0, %c0_i32 : i32, i32
  }
}

module attributes {stable_mosaic.version = 11 : i64} {
  func.func @_mm_kernel_direct(%arg0: i32, %arg1: memref<32x128xbf16, #tpu.memory_space<vmem>>, %arg2: memref<128x128xbf16, #tpu.memory_space<vmem>>, %arg3: memref<1x128xf32, #tpu.memory_space<vmem>>, %arg4: memref<32x128xbf16, #tpu.memory_space<vmem>>) attributes {dimension_semantics = [#tpu.dimension_semantics<parallel>], iteration_bounds = array<i64: 1>, scalar_prefetch = 0 : i64, scratch_operands = 0 : i64, tpu.core_type = #tpu.core_type<tc>, window_params = [{transform_indices = @transform_0, window_bounds = array<i64: 32, 128>}, {pipeline_mode = #tpu.pipeline_mode<synchronous>, transform_indices = @transform_1, window_bounds = array<i64: 128, 128>}, {pipeline_mode = #tpu.pipeline_mode<synchronous>, transform_indices = @transform_2, window_bounds = array<i64: 1, 128>}, {transform_indices = @transform_3, window_bounds = array<i64: 32, 128>}]} {
    %c0 = arith.constant 0 : index
    %c0_0 = arith.constant 0 : index
    %0 = vector.load %arg1[%c0, %c0_0] : memref<32x128xbf16, #tpu.memory_space<vmem>>, vector<32x128xbf16>
    %c0_1 = arith.constant 0 : index
    %c0_2 = arith.constant 0 : index
    %1 = vector.load %arg2[%c0_1, %c0_2] : memref<128x128xbf16, #tpu.memory_space<vmem>>, vector<128x128xbf16>
    %cst = arith.constant dense<0.000000e+00> : vector<32x128xf32>
    %2 = tpu.matmul %0, %1, %cst {dimension_numbers = #tpu.dot_dimension_numbers<[1], [0], [0], [1], [0, 0, 1, 1], [], []>} : vector<32x128xbf16>, vector<128x128xbf16>, vector<32x128xf32> -> vector<32x128xf32>
    %c0_3 = arith.constant 0 : index
    %c0_4 = arith.constant 0 : index
    %3 = vector.load %arg3[%c0_3, %c0_4] : memref<1x128xf32, #tpu.memory_space<vmem>>, vector<1x128xf32>
    %4 = vector.broadcast %3 : vector<1x128xf32> to vector<32x128xf32>
    %5 = arith.addf %2, %4 : vector<32x128xf32>
    %6 = arith.truncf %5 : vector<32x128xf32> to vector<32x128xbf16>
    %c0_5 = arith.constant 0 : index
    %c0_6 = arith.constant 0 : index
    %7 = vector.load %arg4[%c0_5, %c0_6] : memref<32x128xbf16, #tpu.memory_space<vmem>>, vector<32x128xbf16>
    tpu.vector_store %arg4[%c0_5, %c0_6], %6 {strides = array<i32>} : memref<32x128xbf16, #tpu.memory_space<vmem>>, vector<32x128xbf16>,
    return
  }
  func.func @transform_0(%arg0: i32) -> (i32, i32) {
    %c0_i32 = arith.constant 0 : i32
    %c0_i32_0 = arith.constant 0 : i32
    return %arg0, %c0_i32 : i32, i32
  }
  func.func @transform_1(%arg0: i32) -> (i32, i32) {
    %c0_i32 = arith.constant 0 : i32
    %c0_i32_0 = arith.constant 0 : i32
    %c0_i32_1 = arith.constant 0 : i32
    return %c0_i32, %c0_i32_0 : i32, i32
  }
  func.func @transform_2(%arg0: i32) -> (i32, i32) {
    %c0_i32 = arith.constant 0 : i32
    %c0_i32_0 = arith.constant 0 : i32
    %c0_i32_1 = arith.constant 0 : i32
    return %c0_i32, %c0_i32_0 : i32, i32
  }
  func.func @transform_3(%arg0: i32) -> (i32, i32) {
    %c0_i32 = arith.constant 0 : i32
    %c0_i32_0 = arith.constant 0 : i32
    return %arg0, %c0_i32 : i32, i32
  }
}

module attributes {stable_mosaic.version = 11 : i64} {
  func.func @_mm_kernel_direct(%arg0: i32, %arg1: memref<32x512xbf16, #tpu.memory_space<vmem>>, %arg2: memref<512x128xbf16, #tpu.memory_space<vmem>>, %arg3: memref<1x128xf32, #tpu.memory_space<vmem>>, %arg4: memref<32x128xbf16, #tpu.memory_space<vmem>>, %arg5: memref<32x128xbf16, #tpu.memory_space<vmem>>) attributes {dimension_semantics = [#tpu.dimension_semantics<parallel>], iteration_bounds = array<i64: 1>, scalar_prefetch = 0 : i64, scratch_operands = 0 : i64, tpu.core_type = #tpu.core_type<tc>, window_params = [{transform_indices = @transform_0, window_bounds = array<i64: 32, 512>}, {pipeline_mode = #tpu.pipeline_mode<synchronous>, transform_indices = @transform_1, window_bounds = array<i64: 512, 128>}, {pipeline_mode = #tpu.pipeline_mode<synchronous>, transform_indices = @transform_2, window_bounds = array<i64: 1, 128>}, {transform_indices = @transform_3, window_bounds = array<i64: 32, 128>}, {transform_indices = @transform_4, window_bounds = array<i64: 32, 128>}]} {
    %c0 = arith.constant 0 : index
    %c0_0 = arith.constant 0 : index
    %0 = vector.load %arg1[%c0, %c0_0] : memref<32x512xbf16, #tpu.memory_space<vmem>>, vector<32x512xbf16>
    %c0_1 = arith.constant 0 : index
    %c0_2 = arith.constant 0 : index
    %1 = vector.load %arg2[%c0_1, %c0_2] : memref<512x128xbf16, #tpu.memory_space<vmem>>, vector<512x128xbf16>
    %cst = arith.constant dense<0.000000e+00> : vector<32x128xf32>
    %2 = tpu.matmul %0, %1, %cst {dimension_numbers = #tpu.dot_dimension_numbers<[1], [0], [0], [1], [0, 0, 1, 1], [], []>} : vector<32x512xbf16>, vector<512x128xbf16>, vector<32x128xf32> -> vector<32x128xf32>
    %c0_3 = arith.constant 0 : index
    %c0_4 = arith.constant 0 : index
    %3 = vector.load %arg3[%c0_3, %c0_4] : memref<1x128xf32, #tpu.memory_space<vmem>>, vector<1x128xf32>
    %4 = vector.broadcast %3 : vector<1x128xf32> to vector<32x128xf32>
    %5 = arith.addf %2, %4 : vector<32x128xf32>
    %c0_5 = arith.constant 0 : index
    %c0_6 = arith.constant 0 : index
    %6 = vector.load %arg4[%c0_5, %c0_6] : memref<32x128xbf16, #tpu.memory_space<vmem>>, vector<32x128xbf16>
    %7 = arith.extf %6 : vector<32x128xbf16> to vector<32x128xf32>
    %8 = arith.addf %5, %7 : vector<32x128xf32>
    %9 = arith.truncf %8 : vector<32x128xf32> to vector<32x128xbf16>
    %c0_7 = arith.constant 0 : index
    %c0_8 = arith.constant 0 : index
    %10 = vector.load %arg5[%c0_7, %c0_8] : memref<32x128xbf16, #tpu.memory_space<vmem>>, vector<32x128xbf16>
    tpu.vector_store %arg5[%c0_7, %c0_8], %9 {strides = array<i32>} : memref<32x128xbf16, #tpu.memory_space<vmem>>, vector<32x128xbf16>,
    return
  }
  func.func @transform_0(%arg0: i32) -> (i32, i32) {
    %c0_i32 = arith.constant 0 : i32
    %c0_i32_0 = arith.constant 0 : i32
    return %arg0, %c0_i32 : i32, i32
  }
  func.func @transform_1(%arg0: i32) -> (i32, i32) {
    %c0_i32 = arith.constant 0 : i32
    %c0_i32_0 = arith.constant 0 : i32
    %c0_i32_1 = arith.constant 0 : i32
    return %c0_i32, %c0_i32_0 : i32, i32
  }
  func.func @transform_2(%arg0: i32) -> (i32, i32) {
    %c0_i32 = arith.constant 0 : i32
    %c0_i32_0 = arith.constant 0 : i32
    %c0_i32_1 = arith.constant 0 : i32
    return %c0_i32, %c0_i32_0 : i32, i32
  }
  func.func @transform_3(%arg0: i32) -> (i32, i32) {
    %c0_i32 = arith.constant 0 : i32
    %c0_i32_0 = arith.constant 0 : i32
    return %arg0, %c0_i32 : i32, i32
  }
  func.func @transform_4(%arg0: i32) -> (i32, i32) {
    %c0_i32 = arith.constant 0 : i32
    %c0_i32_0 = arith.constant 0 : i32
    return %arg0, %c0_i32 : i32, i32
  }
}

module attributes {stable_mosaic.version = 11 : i64} {
  func.func @_mm_kernel_direct(%arg0: i32, %arg1: memref<32x384xbf16, #tpu.memory_space<vmem>>, %arg2: memref<384x128xbf16, #tpu.memory_space<vmem>>, %arg3: memref<1x128xf32, #tpu.memory_space<vmem>>, %arg4: memref<32x128xbf16, #tpu.memory_space<vmem>>) attributes {dimension_semantics = [#tpu.dimension_semantics<parallel>], iteration_bounds = array<i64: 1>, scalar_prefetch = 0 : i64, scratch_operands = 0 : i64, tpu.core_type = #tpu.core_type<tc>, window_params = [{transform_indices = @transform_0, window_bounds = array<i64: 32, 384>}, {pipeline_mode = #tpu.pipeline_mode<synchronous>, transform_indices = @transform_1, window_bounds = array<i64: 384, 128>}, {pipeline_mode = #tpu.pipeline_mode<synchronous>, transform_indices = @transform_2, window_bounds = array<i64: 1, 128>}, {transform_indices = @transform_3, window_bounds = array<i64: 32, 128>}]} {
    %c0 = arith.constant 0 : index
    %c0_0 = arith.constant 0 : index
    %0 = vector.load %arg1[%c0, %c0_0] : memref<32x384xbf16, #tpu.memory_space<vmem>>, vector<32x384xbf16>
    %c0_1 = arith.constant 0 : index
    %c0_2 = arith.constant 0 : index
    %1 = vector.load %arg2[%c0_1, %c0_2] : memref<384x128xbf16, #tpu.memory_space<vmem>>, vector<384x128xbf16>
    %cst = arith.constant dense<0.000000e+00> : vector<32x128xf32>
    %2 = tpu.matmul %0, %1, %cst {dimension_numbers = #tpu.dot_dimension_numbers<[1], [0], [0], [1], [0, 0, 1, 1], [], []>} : vector<32x384xbf16>, vector<384x128xbf16>, vector<32x128xf32> -> vector<32x128xf32>
    %c0_3 = arith.constant 0 : index
    %c0_4 = arith.constant 0 : index
    %3 = vector.load %arg3[%c0_3, %c0_4] : memref<1x128xf32, #tpu.memory_space<vmem>>, vector<1x128xf32>
    %4 = vector.broadcast %3 : vector<1x128xf32> to vector<32x128xf32>
    %5 = arith.addf %2, %4 : vector<32x128xf32>
    %cst_5 = arith.constant 0.000000e+00 : f32
    %6 = vector.broadcast %cst_5 : f32 to vector<32x128xf32>
    %7 = arith.cmpf oge, %5, %6 : vector<32x128xf32>
    %cst_6 = arith.constant 2.000000e-01 : f32
    %8 = vector.broadcast %cst_6 : f32 to vector<32x128xf32>
    %9 = arith.mulf %8, %5 : vector<32x128xf32>
    %10 = arith.select %7, %5, %9 : vector<32x128xi1>, vector<32x128xf32>
    %11 = arith.truncf %10 : vector<32x128xf32> to vector<32x128xbf16>
    %c0_7 = arith.constant 0 : index
    %c0_8 = arith.constant 0 : index
    %12 = vector.load %arg4[%c0_7, %c0_8] : memref<32x128xbf16, #tpu.memory_space<vmem>>, vector<32x128xbf16>
    tpu.vector_store %arg4[%c0_7, %c0_8], %11 {strides = array<i32>} : memref<32x128xbf16, #tpu.memory_space<vmem>>, vector<32x128xbf16>,
    return
  }
  func.func @transform_0(%arg0: i32) -> (i32, i32) {
    %c0_i32 = arith.constant 0 : i32
    %c0_i32_0 = arith.constant 0 : i32
    return %arg0, %c0_i32 : i32, i32
  }
  func.func @transform_1(%arg0: i32) -> (i32, i32) {
    %c0_i32 = arith.constant 0 : i32
    %c0_i32_0 = arith.constant 0 : i32
    %c0_i32_1 = arith.constant 0 : i32
    return %c0_i32, %c0_i32_0 : i32, i32
  }
  func.func @transform_2(%arg0: i32) -> (i32, i32) {
    %c0_i32 = arith.constant 0 : i32
    %c0_i32_0 = arith.constant 0 : i32
    %c0_i32_1 = arith.constant 0 : i32
    return %c0_i32, %c0_i32_0 : i32, i32
  }
  func.func @transform_3(%arg0: i32) -> (i32, i32) {
    %c0_i32 = arith.constant 0 : i32
    %c0_i32_0 = arith.constant 0 : i32
    return %arg0, %c0_i32 : i32, i32
  }
}

module attributes {stable_mosaic.version = 11 : i64} {
  func.func @_mm_kernel_direct(%arg0: i32, %arg1: memref<32x640xbf16, #tpu.memory_space<vmem>>, %arg2: memref<640x128xbf16, #tpu.memory_space<vmem>>, %arg3: memref<1x128xf32, #tpu.memory_space<vmem>>, %arg4: memref<32x128xbf16, #tpu.memory_space<vmem>>) attributes {dimension_semantics = [#tpu.dimension_semantics<parallel>], iteration_bounds = array<i64: 1>, scalar_prefetch = 0 : i64, scratch_operands = 0 : i64, tpu.core_type = #tpu.core_type<tc>, window_params = [{transform_indices = @transform_0, window_bounds = array<i64: 32, 640>}, {pipeline_mode = #tpu.pipeline_mode<synchronous>, transform_indices = @transform_1, window_bounds = array<i64: 640, 128>}, {pipeline_mode = #tpu.pipeline_mode<synchronous>, transform_indices = @transform_2, window_bounds = array<i64: 1, 128>}, {transform_indices = @transform_3, window_bounds = array<i64: 32, 128>}]} {
    %c0 = arith.constant 0 : index
    %c0_0 = arith.constant 0 : index
    %0 = vector.load %arg1[%c0, %c0_0] : memref<32x640xbf16, #tpu.memory_space<vmem>>, vector<32x640xbf16>
    %c0_1 = arith.constant 0 : index
    %c0_2 = arith.constant 0 : index
    %1 = vector.load %arg2[%c0_1, %c0_2] : memref<640x128xbf16, #tpu.memory_space<vmem>>, vector<640x128xbf16>
    %cst = arith.constant dense<0.000000e+00> : vector<32x128xf32>
    %2 = tpu.matmul %0, %1, %cst {dimension_numbers = #tpu.dot_dimension_numbers<[1], [0], [0], [1], [0, 0, 1, 1], [], []>} : vector<32x640xbf16>, vector<640x128xbf16>, vector<32x128xf32> -> vector<32x128xf32>
    %c0_3 = arith.constant 0 : index
    %c0_4 = arith.constant 0 : index
    %3 = vector.load %arg3[%c0_3, %c0_4] : memref<1x128xf32, #tpu.memory_space<vmem>>, vector<1x128xf32>
    %4 = vector.broadcast %3 : vector<1x128xf32> to vector<32x128xf32>
    %5 = arith.addf %2, %4 : vector<32x128xf32>
    %cst_5 = arith.constant 0.000000e+00 : f32
    %6 = vector.broadcast %cst_5 : f32 to vector<32x128xf32>
    %7 = arith.cmpf oge, %5, %6 : vector<32x128xf32>
    %cst_6 = arith.constant 2.000000e-01 : f32
    %8 = vector.broadcast %cst_6 : f32 to vector<32x128xf32>
    %9 = arith.mulf %8, %5 : vector<32x128xf32>
    %10 = arith.select %7, %5, %9 : vector<32x128xi1>, vector<32x128xf32>
    %11 = arith.truncf %10 : vector<32x128xf32> to vector<32x128xbf16>
    %c0_7 = arith.constant 0 : index
    %c0_8 = arith.constant 0 : index
    %12 = vector.load %arg4[%c0_7, %c0_8] : memref<32x128xbf16, #tpu.memory_space<vmem>>, vector<32x128xbf16>
    tpu.vector_store %arg4[%c0_7, %c0_8], %11 {strides = array<i32>} : memref<32x128xbf16, #tpu.memory_space<vmem>>, vector<32x128xbf16>,
    return
  }
  func.func @transform_0(%arg0: i32) -> (i32, i32) {
    %c0_i32 = arith.constant 0 : i32
    %c0_i32_0 = arith.constant 0 : i32
    return %arg0, %c0_i32 : i32, i32
  }
  func.func @transform_1(%arg0: i32) -> (i32, i32) {
    %c0_i32 = arith.constant 0 : i32
    %c0_i32_0 = arith.constant 0 : i32
    %c0_i32_1 = arith.constant 0 : i32
    return %c0_i32, %c0_i32_0 : i32, i32
  }
  func.func @transform_2(%arg0: i32) -> (i32, i32) {
    %c0_i32 = arith.constant 0 : i32
    %c0_i32_0 = arith.constant 0 : i32
    %c0_i32_1 = arith.constant 0 : i32
    return %c0_i32, %c0_i32_0 : i32, i32
  }
  func.func @transform_3(%arg0: i32) -> (i32, i32) {
    %c0_i32 = arith.constant 0 : i32
    %c0_i32_0 = arith.constant 0 : i32
    return %arg0, %c0_i32 : i32, i32
  }
}

module attributes {stable_mosaic.version = 11 : i64} {
  func.func @_mm_kernel_direct(%arg0: i32, %arg1: memref<32x640xbf16, #tpu.memory_space<vmem>>, %arg2: memref<640x128xbf16, #tpu.memory_space<vmem>>, %arg3: memref<1x128xf32, #tpu.memory_space<vmem>>, %arg4: memref<32x128xbf16, #tpu.memory_space<vmem>>) attributes {dimension_semantics = [#tpu.dimension_semantics<parallel>], iteration_bounds = array<i64: 1>, scalar_prefetch = 0 : i64, scratch_operands = 0 : i64, tpu.core_type = #tpu.core_type<tc>, window_params = [{transform_indices = @transform_0, window_bounds = array<i64: 32, 640>}, {pipeline_mode = #tpu.pipeline_mode<synchronous>, transform_indices = @transform_1, window_bounds = array<i64: 640, 128>}, {pipeline_mode = #tpu.pipeline_mode<synchronous>, transform_indices = @transform_2, window_bounds = array<i64: 1, 128>}, {transform_indices = @transform_3, window_bounds = array<i64: 32, 128>}]} {
    %c0 = arith.constant 0 : index
    %c0_0 = arith.constant 0 : index
    %0 = vector.load %arg1[%c0, %c0_0] : memref<32x640xbf16, #tpu.memory_space<vmem>>, vector<32x640xbf16>
    %c0_1 = arith.constant 0 : index
    %c0_2 = arith.constant 0 : index
    %1 = vector.load %arg2[%c0_1, %c0_2] : memref<640x128xbf16, #tpu.memory_space<vmem>>, vector<640x128xbf16>
    %cst = arith.constant dense<0.000000e+00> : vector<32x128xf32>
    %2 = tpu.matmul %0, %1, %cst {dimension_numbers = #tpu.dot_dimension_numbers<[1], [0], [0], [1], [0, 0, 1, 1], [], []>} : vector<32x640xbf16>, vector<640x128xbf16>, vector<32x128xf32> -> vector<32x128xf32>
    %c0_3 = arith.constant 0 : index
    %c0_4 = arith.constant 0 : index
    %3 = vector.load %arg3[%c0_3, %c0_4] : memref<1x128xf32, #tpu.memory_space<vmem>>, vector<1x128xf32>
    %4 = vector.broadcast %3 : vector<1x128xf32> to vector<32x128xf32>
    %5 = arith.addf %2, %4 : vector<32x128xf32>
    %6 = arith.truncf %5 : vector<32x128xf32> to vector<32x128xbf16>
    %c0_5 = arith.constant 0 : index
    %c0_6 = arith.constant 0 : index
    %7 = vector.load %arg4[%c0_5, %c0_6] : memref<32x128xbf16, #tpu.memory_space<vmem>>, vector<32x128xbf16>
    tpu.vector_store %arg4[%c0_5, %c0_6], %6 {strides = array<i32>} : memref<32x128xbf16, #tpu.memory_space<vmem>>, vector<32x128xbf16>,
    return
  }
  func.func @transform_0(%arg0: i32) -> (i32, i32) {
    %c0_i32 = arith.constant 0 : i32
    %c0_i32_0 = arith.constant 0 : i32
    return %arg0, %c0_i32 : i32, i32
  }
  func.func @transform_1(%arg0: i32) -> (i32, i32) {
    %c0_i32 = arith.constant 0 : i32
    %c0_i32_0 = arith.constant 0 : i32
    %c0_i32_1 = arith.constant 0 : i32
    return %c0_i32, %c0_i32_0 : i32, i32
  }
  func.func @transform_2(%arg0: i32) -> (i32, i32) {
    %c0_i32 = arith.constant 0 : i32
    %c0_i32_0 = arith.constant 0 : i32
    %c0_i32_1 = arith.constant 0 : i32
    return %c0_i32, %c0_i32_0 : i32, i32
  }
  func.func @transform_3(%arg0: i32) -> (i32, i32) {
    %c0_i32 = arith.constant 0 : i32
    %c0_i32_0 = arith.constant 0 : i32
    return %arg0, %c0_i32 : i32, i32
  }
}

module attributes {stable_mosaic.version = 11 : i64} {
  func.func @_mm_kernel_direct(%arg0: i32, %arg1: memref<8x1024xbf16, #tpu.memory_space<vmem>>, %arg2: memref<1024x128xbf16, #tpu.memory_space<vmem>>, %arg3: memref<1x128xf32, #tpu.memory_space<vmem>>, %arg4: memref<8x128xbf16, #tpu.memory_space<vmem>>, %arg5: memref<8x128xbf16, #tpu.memory_space<vmem>>) attributes {dimension_semantics = [#tpu.dimension_semantics<parallel>], iteration_bounds = array<i64: 1>, scalar_prefetch = 0 : i64, scratch_operands = 0 : i64, tpu.core_type = #tpu.core_type<tc>, window_params = [{transform_indices = @transform_0, window_bounds = array<i64: 8, 1024>}, {pipeline_mode = #tpu.pipeline_mode<synchronous>, transform_indices = @transform_1, window_bounds = array<i64: 1024, 128>}, {pipeline_mode = #tpu.pipeline_mode<synchronous>, transform_indices = @transform_2, window_bounds = array<i64: 1, 128>}, {transform_indices = @transform_3, window_bounds = array<i64: 8, 128>}, {transform_indices = @transform_4, window_bounds = array<i64: 8, 128>}]} {
    %c0 = arith.constant 0 : index
    %c0_0 = arith.constant 0 : index
    %0 = vector.load %arg1[%c0, %c0_0] : memref<8x1024xbf16, #tpu.memory_space<vmem>>, vector<8x1024xbf16>
    %c0_1 = arith.constant 0 : index
    %c0_2 = arith.constant 0 : index
    %1 = vector.load %arg2[%c0_1, %c0_2] : memref<1024x128xbf16, #tpu.memory_space<vmem>>, vector<1024x128xbf16>
    %cst = arith.constant dense<0.000000e+00> : vector<8x128xf32>
    %2 = tpu.matmul %0, %1, %cst {dimension_numbers = #tpu.dot_dimension_numbers<[1], [0], [0], [1], [0, 0, 1, 1], [], []>} : vector<8x1024xbf16>, vector<1024x128xbf16>, vector<8x128xf32> -> vector<8x128xf32>
    %c0_3 = arith.constant 0 : index
    %c0_4 = arith.constant 0 : index
    %3 = vector.load %arg3[%c0_3, %c0_4] : memref<1x128xf32, #tpu.memory_space<vmem>>, vector<1x128xf32>
    %4 = vector.broadcast %3 : vector<1x128xf32> to vector<8x128xf32>
    %5 = arith.addf %2, %4 : vector<8x128xf32>
    %c0_5 = arith.constant 0 : index
    %c0_6 = arith.constant 0 : index
    %6 = vector.load %arg4[%c0_5, %c0_6] : memref<8x128xbf16, #tpu.memory_space<vmem>>, vector<8x128xbf16>
    %7 = arith.extf %6 : vector<8x128xbf16> to vector<8x128xf32>
    %8 = arith.addf %5, %7 : vector<8x128xf32>
    %9 = arith.truncf %8 : vector<8x128xf32> to vector<8x128xbf16>
    %c0_7 = arith.constant 0 : index
    %c0_8 = arith.constant 0 : index
    %10 = vector.load %arg5[%c0_7, %c0_8] : memref<8x128xbf16, #tpu.memory_space<vmem>>, vector<8x128xbf16>
    tpu.vector_store %arg5[%c0_7, %c0_8], %9 {strides = array<i32>} : memref<8x128xbf16, #tpu.memory_space<vmem>>, vector<8x128xbf16>,
    return
  }
  func.func @transform_0(%arg0: i32) -> (i32, i32) {
    %c0_i32 = arith.constant 0 : i32
    %c0_i32_0 = arith.constant 0 : i32
    return %arg0, %c0_i32 : i32, i32
  }
  func.func @transform_1(%arg0: i32) -> (i32, i32) {
    %c0_i32 = arith.constant 0 : i32
    %c0_i32_0 = arith.constant 0 : i32
    %c0_i32_1 = arith.constant 0 : i32
    return %c0_i32, %c0_i32_0 : i32, i32
  }
  func.func @transform_2(%arg0: i32) -> (i32, i32) {
    %c0_i32 = arith.constant 0 : i32
    %c0_i32_0 = arith.constant 0 : i32
    %c0_i32_1 = arith.constant 0 : i32
    return %c0_i32, %c0_i32_0 : i32, i32
  }
  func.func @transform_3(%arg0: i32) -> (i32, i32) {
    %c0_i32 = arith.constant 0 : i32
    %c0_i32_0 = arith.constant 0 : i32
    return %arg0, %c0_i32 : i32, i32
  }
  func.func @transform_4(%arg0: i32) -> (i32, i32) {
    %c0_i32 = arith.constant 0 : i32
    %c0_i32_0 = arith.constant 0 : i32
    return %arg0, %c0_i32 : i32, i32
  }
}

module attributes {stable_mosaic.version = 11 : i64} {
  func.func @_mm_kernel_direct(%arg0: i32, %arg1: memref<8x128xbf16, #tpu.memory_space<vmem>>, %arg2: memref<128x128xbf16, #tpu.memory_space<vmem>>, %arg3: memref<1x128xf32, #tpu.memory_space<vmem>>, %arg4: memref<8x128xbf16, #tpu.memory_space<vmem>>) attributes {dimension_semantics = [#tpu.dimension_semantics<parallel>], iteration_bounds = array<i64: 1>, scalar_prefetch = 0 : i64, scratch_operands = 0 : i64, tpu.core_type = #tpu.core_type<tc>, window_params = [{transform_indices = @transform_0, window_bounds = array<i64: 8, 128>}, {pipeline_mode = #tpu.pipeline_mode<synchronous>, transform_indices = @transform_1, window_bounds = array<i64: 128, 128>}, {pipeline_mode = #tpu.pipeline_mode<synchronous>, transform_indices = @transform_2, window_bounds = array<i64: 1, 128>}, {transform_indices = @transform_3, window_bounds = array<i64: 8, 128>}]} {
    %c0 = arith.constant 0 : index
    %c0_0 = arith.constant 0 : index
    %0 = vector.load %arg1[%c0, %c0_0] : memref<8x128xbf16, #tpu.memory_space<vmem>>, vector<8x128xbf16>
    %c0_1 = arith.constant 0 : index
    %c0_2 = arith.constant 0 : index
    %1 = vector.load %arg2[%c0_1, %c0_2] : memref<128x128xbf16, #tpu.memory_space<vmem>>, vector<128x128xbf16>
    %cst = arith.constant dense<0.000000e+00> : vector<8x128xf32>
    %2 = tpu.matmul %0, %1, %cst {dimension_numbers = #tpu.dot_dimension_numbers<[1], [0], [0], [1], [0, 0, 1, 1], [], []>} : vector<8x128xbf16>, vector<128x128xbf16>, vector<8x128xf32> -> vector<8x128xf32>
    %c0_3 = arith.constant 0 : index
    %c0_4 = arith.constant 0 : index
    %3 = vector.load %arg3[%c0_3, %c0_4] : memref<1x128xf32, #tpu.memory_space<vmem>>, vector<1x128xf32>
    %4 = vector.broadcast %3 : vector<1x128xf32> to vector<8x128xf32>
    %5 = arith.addf %2, %4 : vector<8x128xf32>
    %6 = arith.truncf %5 : vector<8x128xf32> to vector<8x128xbf16>
    %c0_5 = arith.constant 0 : index
    %c0_6 = arith.constant 0 : index
    %7 = vector.load %arg4[%c0_5, %c0_6] : memref<8x128xbf16, #tpu.memory_space<vmem>>, vector<8x128xbf16>
    tpu.vector_store %arg4[%c0_5, %c0_6], %6 {strides = array<i32>} : memref<8x128xbf16, #tpu.memory_space<vmem>>, vector<8x128xbf16>,
    return
  }
  func.func @transform_0(%arg0: i32) -> (i32, i32) {
    %c0_i32 = arith.constant 0 : i32
    %c0_i32_0 = arith.constant 0 : i32
    return %arg0, %c0_i32 : i32, i32
  }
  func.func @transform_1(%arg0: i32) -> (i32, i32) {
    %c0_i32 = arith.constant 0 : i32
    %c0_i32_0 = arith.constant 0 : i32
    %c0_i32_1 = arith.constant 0 : i32
    return %c0_i32, %c0_i32_0 : i32, i32
  }
  func.func @transform_2(%arg0: i32) -> (i32, i32) {
    %c0_i32 = arith.constant 0 : i32
    %c0_i32_0 = arith.constant 0 : i32
    %c0_i32_1 = arith.constant 0 : i32
    return %c0_i32, %c0_i32_0 : i32, i32
  }
  func.func @transform_3(%arg0: i32) -> (i32, i32) {
    %c0_i32 = arith.constant 0 : i32
    %c0_i32_0 = arith.constant 0 : i32
    return %arg0, %c0_i32 : i32, i32
  }
}

module attributes {stable_mosaic.version = 11 : i64} {
  func.func @_mm_kernel_direct(%arg0: i32, %arg1: memref<8x640xbf16, #tpu.memory_space<vmem>>, %arg2: memref<640x128xbf16, #tpu.memory_space<vmem>>, %arg3: memref<1x128xf32, #tpu.memory_space<vmem>>, %arg4: memref<8x128xbf16, #tpu.memory_space<vmem>>) attributes {dimension_semantics = [#tpu.dimension_semantics<parallel>], iteration_bounds = array<i64: 1>, scalar_prefetch = 0 : i64, scratch_operands = 0 : i64, tpu.core_type = #tpu.core_type<tc>, window_params = [{transform_indices = @transform_0, window_bounds = array<i64: 8, 640>}, {pipeline_mode = #tpu.pipeline_mode<synchronous>, transform_indices = @transform_1, window_bounds = array<i64: 640, 128>}, {pipeline_mode = #tpu.pipeline_mode<synchronous>, transform_indices = @transform_2, window_bounds = array<i64: 1, 128>}, {transform_indices = @transform_3, window_bounds = array<i64: 8, 128>}]} {
    %c0 = arith.constant 0 : index
    %c0_0 = arith.constant 0 : index
    %0 = vector.load %arg1[%c0, %c0_0] : memref<8x640xbf16, #tpu.memory_space<vmem>>, vector<8x640xbf16>
    %c0_1 = arith.constant 0 : index
    %c0_2 = arith.constant 0 : index
    %1 = vector.load %arg2[%c0_1, %c0_2] : memref<640x128xbf16, #tpu.memory_space<vmem>>, vector<640x128xbf16>
    %cst = arith.constant dense<0.000000e+00> : vector<8x128xf32>
    %2 = tpu.matmul %0, %1, %cst {dimension_numbers = #tpu.dot_dimension_numbers<[1], [0], [0], [1], [0, 0, 1, 1], [], []>} : vector<8x640xbf16>, vector<640x128xbf16>, vector<8x128xf32> -> vector<8x128xf32>
    %c0_3 = arith.constant 0 : index
    %c0_4 = arith.constant 0 : index
    %3 = vector.load %arg3[%c0_3, %c0_4] : memref<1x128xf32, #tpu.memory_space<vmem>>, vector<1x128xf32>
    %4 = vector.broadcast %3 : vector<1x128xf32> to vector<8x128xf32>
    %5 = arith.addf %2, %4 : vector<8x128xf32>
    %cst_5 = arith.constant 0.000000e+00 : f32
    %6 = vector.broadcast %cst_5 : f32 to vector<8x128xf32>
    %7 = arith.cmpf oge, %5, %6 : vector<8x128xf32>
    %cst_6 = arith.constant 2.000000e-01 : f32
    %8 = vector.broadcast %cst_6 : f32 to vector<8x128xf32>
    %9 = arith.mulf %8, %5 : vector<8x128xf32>
    %10 = arith.select %7, %5, %9 : vector<8x128xi1>, vector<8x128xf32>
    %11 = arith.truncf %10 : vector<8x128xf32> to vector<8x128xbf16>
    %c0_7 = arith.constant 0 : index
    %c0_8 = arith.constant 0 : index
    %12 = vector.load %arg4[%c0_7, %c0_8] : memref<8x128xbf16, #tpu.memory_space<vmem>>, vector<8x128xbf16>
    tpu.vector_store %arg4[%c0_7, %c0_8], %11 {strides = array<i32>} : memref<8x128xbf16, #tpu.memory_space<vmem>>, vector<8x128xbf16>,
    return
  }
  func.func @transform_0(%arg0: i32) -> (i32, i32) {
    %c0_i32 = arith.constant 0 : i32
    %c0_i32_0 = arith.constant 0 : i32
    return %arg0, %c0_i32 : i32, i32
  }
  func.func @transform_1(%arg0: i32) -> (i32, i32) {
    %c0_i32 = arith.constant 0 : i32
    %c0_i32_0 = arith.constant 0 : i32
    %c0_i32_1 = arith.constant 0 : i32
    return %c0_i32, %c0_i32_0 : i32, i32
  }
  func.func @transform_2(%arg0: i32) -> (i32, i32) {
    %c0_i32 = arith.constant 0 : i32
    %c0_i32_0 = arith.constant 0 : i32
    %c0_i32_1 = arith.constant 0 : i32
    return %c0_i32, %c0_i32_0 : i32, i32
  }
  func.func @transform_3(%arg0: i32) -> (i32, i32) {
    %c0_i32 = arith.constant 0 : i32
    %c0_i32_0 = arith.constant 0 : i32
    return %arg0, %c0_i32 : i32, i32
  }
}

module attributes {stable_mosaic.version = 11 : i64} {
  func.func @_mm_kernel_direct(%arg0: i32, %arg1: memref<8x128xbf16, #tpu.memory_space<vmem>>, %arg2: memref<128x128xbf16, #tpu.memory_space<vmem>>, %arg3: memref<1x128xf32, #tpu.memory_space<vmem>>, %arg4: memref<8x128xbf16, #tpu.memory_space<vmem>>) attributes {dimension_semantics = [#tpu.dimension_semantics<parallel>], iteration_bounds = array<i64: 1>, scalar_prefetch = 0 : i64, scratch_operands = 0 : i64, tpu.core_type = #tpu.core_type<tc>, window_params = [{transform_indices = @transform_0, window_bounds = array<i64: 8, 128>}, {pipeline_mode = #tpu.pipeline_mode<synchronous>, transform_indices = @transform_1, window_bounds = array<i64: 128, 128>}, {pipeline_mode = #tpu.pipeline_mode<synchronous>, transform_indices = @transform_2, window_bounds = array<i64: 1, 128>}, {transform_indices = @transform_3, window_bounds = array<i64: 8, 128>}]} {
    %c0 = arith.constant 0 : index
    %c0_0 = arith.constant 0 : index
    %0 = vector.load %arg1[%c0, %c0_0] : memref<8x128xbf16, #tpu.memory_space<vmem>>, vector<8x128xbf16>
    %c0_1 = arith.constant 0 : index
    %c0_2 = arith.constant 0 : index
    %1 = vector.load %arg2[%c0_1, %c0_2] : memref<128x128xbf16, #tpu.memory_space<vmem>>, vector<128x128xbf16>
    %cst = arith.constant dense<0.000000e+00> : vector<8x128xf32>
    %2 = tpu.matmul %0, %1, %cst {dimension_numbers = #tpu.dot_dimension_numbers<[1], [0], [0], [1], [0, 0, 1, 1], [], []>} : vector<8x128xbf16>, vector<128x128xbf16>, vector<8x128xf32> -> vector<8x128xf32>
    %c0_3 = arith.constant 0 : index
    %c0_4 = arith.constant 0 : index
    %3 = vector.load %arg3[%c0_3, %c0_4] : memref<1x128xf32, #tpu.memory_space<vmem>>, vector<1x128xf32>
    %4 = vector.broadcast %3 : vector<1x128xf32> to vector<8x128xf32>
    %5 = arith.addf %2, %4 : vector<8x128xf32>
    %6 = arith.truncf %5 : vector<8x128xf32> to vector<8x128xbf16>
    %c0_5 = arith.constant 0 : index
    %c0_6 = arith.constant 0 : index
    %7 = vector.load %arg4[%c0_5, %c0_6] : memref<8x128xbf16, #tpu.memory_space<vmem>>, vector<8x128xbf16>
    tpu.vector_store %arg4[%c0_5, %c0_6], %6 {strides = array<i32>} : memref<8x128xbf16, #tpu.memory_space<vmem>>, vector<8x128xbf16>,
    return
  }
  func.func @transform_0(%arg0: i32) -> (i32, i32) {
    %c0_i32 = arith.constant 0 : i32
    %c0_i32_0 = arith.constant 0 : i32
    return %arg0, %c0_i32 : i32, i32
  }
  func.func @transform_1(%arg0: i32) -> (i32, i32) {
    %c0_i32 = arith.constant 0 : i32
    %c0_i32_0 = arith.constant 0 : i32
    %c0_i32_1 = arith.constant 0 : i32
    return %c0_i32, %c0_i32_0 : i32, i32
  }
  func.func @transform_2(%arg0: i32) -> (i32, i32) {
    %c0_i32 = arith.constant 0 : i32
    %c0_i32_0 = arith.constant 0 : i32
    %c0_i32_1 = arith.constant 0 : i32
    return %c0_i32, %c0_i32_0 : i32, i32
  }
  func.func @transform_3(%arg0: i32) -> (i32, i32) {
    %c0_i32 = arith.constant 0 : i32
    %c0_i32_0 = arith.constant 0 : i32
    return %arg0, %c0_i32 : i32, i32
  }
}

module attributes {stable_mosaic.version = 11 : i64} {
  func.func @_mm_kernel_direct(%arg0: i32, %arg1: memref<8x640xbf16, #tpu.memory_space<vmem>>, %arg2: memref<640x128xbf16, #tpu.memory_space<vmem>>, %arg3: memref<1x128xf32, #tpu.memory_space<vmem>>, %arg4: memref<8x128xbf16, #tpu.memory_space<vmem>>, %arg5: memref<8x128xbf16, #tpu.memory_space<vmem>>) attributes {dimension_semantics = [#tpu.dimension_semantics<parallel>], iteration_bounds = array<i64: 1>, scalar_prefetch = 0 : i64, scratch_operands = 0 : i64, tpu.core_type = #tpu.core_type<tc>, window_params = [{transform_indices = @transform_0, window_bounds = array<i64: 8, 640>}, {pipeline_mode = #tpu.pipeline_mode<synchronous>, transform_indices = @transform_1, window_bounds = array<i64: 640, 128>}, {pipeline_mode = #tpu.pipeline_mode<synchronous>, transform_indices = @transform_2, window_bounds = array<i64: 1, 128>}, {transform_indices = @transform_3, window_bounds = array<i64: 8, 128>}, {transform_indices = @transform_4, window_bounds = array<i64: 8, 128>}]} {
    %c0 = arith.constant 0 : index
    %c0_0 = arith.constant 0 : index
    %0 = vector.load %arg1[%c0, %c0_0] : memref<8x640xbf16, #tpu.memory_space<vmem>>, vector<8x640xbf16>
    %c0_1 = arith.constant 0 : index
    %c0_2 = arith.constant 0 : index
    %1 = vector.load %arg2[%c0_1, %c0_2] : memref<640x128xbf16, #tpu.memory_space<vmem>>, vector<640x128xbf16>
    %cst = arith.constant dense<0.000000e+00> : vector<8x128xf32>
    %2 = tpu.matmul %0, %1, %cst {dimension_numbers = #tpu.dot_dimension_numbers<[1], [0], [0], [1], [0, 0, 1, 1], [], []>} : vector<8x640xbf16>, vector<640x128xbf16>, vector<8x128xf32> -> vector<8x128xf32>
    %c0_3 = arith.constant 0 : index
    %c0_4 = arith.constant 0 : index
    %3 = vector.load %arg3[%c0_3, %c0_4] : memref<1x128xf32, #tpu.memory_space<vmem>>, vector<1x128xf32>
    %4 = vector.broadcast %3 : vector<1x128xf32> to vector<8x128xf32>
    %5 = arith.addf %2, %4 : vector<8x128xf32>
    %cst_5 = arith.constant 0.000000e+00 : f32
    %6 = vector.broadcast %cst_5 : f32 to vector<8x128xf32>
    %7 = arith.cmpf oge, %5, %6 : vector<8x128xf32>
    %cst_6 = arith.constant 2.000000e-01 : f32
    %8 = vector.broadcast %cst_6 : f32 to vector<8x128xf32>
    %9 = arith.mulf %8, %5 : vector<8x128xf32>
    %10 = arith.select %7, %5, %9 : vector<8x128xi1>, vector<8x128xf32>
    %c0_7 = arith.constant 0 : index
    %c0_8 = arith.constant 0 : index
    %11 = vector.load %arg4[%c0_7, %c0_8] : memref<8x128xbf16, #tpu.memory_space<vmem>>, vector<8x128xbf16>
    %12 = arith.extf %11 : vector<8x128xbf16> to vector<8x128xf32>
    %13 = arith.addf %10, %12 : vector<8x128xf32>
    %14 = arith.truncf %13 : vector<8x128xf32> to vector<8x128xbf16>
    %c0_9 = arith.constant 0 : index
    %c0_10 = arith.constant 0 : index
    %15 = vector.load %arg5[%c0_9, %c0_10] : memref<8x128xbf16, #tpu.memory_space<vmem>>, vector<8x128xbf16>
    tpu.vector_store %arg5[%c0_9, %c0_10], %14 {strides = array<i32>} : memref<8x128xbf16, #tpu.memory_space<vmem>>, vector<8x128xbf16>,
    return
  }
  func.func @transform_0(%arg0: i32) -> (i32, i32) {
    %c0_i32 = arith.constant 0 : i32
    %c0_i32_0 = arith.constant 0 : i32
    return %arg0, %c0_i32 : i32, i32
  }
  func.func @transform_1(%arg0: i32) -> (i32, i32) {
    %c0_i32 = arith.constant 0 : i32
    %c0_i32_0 = arith.constant 0 : i32
    %c0_i32_1 = arith.constant 0 : i32
    return %c0_i32, %c0_i32_0 : i32, i32
  }
  func.func @transform_2(%arg0: i32) -> (i32, i32) {
    %c0_i32 = arith.constant 0 : i32
    %c0_i32_0 = arith.constant 0 : i32
    %c0_i32_1 = arith.constant 0 : i32
    return %c0_i32, %c0_i32_0 : i32, i32
  }
  func.func @transform_3(%arg0: i32) -> (i32, i32) {
    %c0_i32 = arith.constant 0 : i32
    %c0_i32_0 = arith.constant 0 : i32
    return %arg0, %c0_i32 : i32, i32
  }
  func.func @transform_4(%arg0: i32) -> (i32, i32) {
    %c0_i32 = arith.constant 0 : i32
    %c0_i32_0 = arith.constant 0 : i32
    return %arg0, %c0_i32 : i32, i32
  }
}

module attributes {stable_mosaic.version = 11 : i64} {
  func.func @_mm_kernel_direct(%arg0: i32, %arg1: memref<32x128xbf16, #tpu.memory_space<vmem>>, %arg2: memref<128x128xbf16, #tpu.memory_space<vmem>>, %arg3: memref<1x128xf32, #tpu.memory_space<vmem>>, %arg4: memref<32x128xbf16, #tpu.memory_space<vmem>>) attributes {dimension_semantics = [#tpu.dimension_semantics<parallel>], iteration_bounds = array<i64: 1>, scalar_prefetch = 0 : i64, scratch_operands = 0 : i64, tpu.core_type = #tpu.core_type<tc>, window_params = [{transform_indices = @transform_0, window_bounds = array<i64: 32, 128>}, {pipeline_mode = #tpu.pipeline_mode<synchronous>, transform_indices = @transform_1, window_bounds = array<i64: 128, 128>}, {pipeline_mode = #tpu.pipeline_mode<synchronous>, transform_indices = @transform_2, window_bounds = array<i64: 1, 128>}, {transform_indices = @transform_3, window_bounds = array<i64: 32, 128>}]} {
    %c0 = arith.constant 0 : index
    %c0_0 = arith.constant 0 : index
    %0 = vector.load %arg1[%c0, %c0_0] : memref<32x128xbf16, #tpu.memory_space<vmem>>, vector<32x128xbf16>
    %c0_1 = arith.constant 0 : index
    %c0_2 = arith.constant 0 : index
    %1 = vector.load %arg2[%c0_1, %c0_2] : memref<128x128xbf16, #tpu.memory_space<vmem>>, vector<128x128xbf16>
    %cst = arith.constant dense<0.000000e+00> : vector<32x128xf32>
    %2 = tpu.matmul %0, %1, %cst {dimension_numbers = #tpu.dot_dimension_numbers<[1], [0], [0], [1], [0, 0, 1, 1], [], []>} : vector<32x128xbf16>, vector<128x128xbf16>, vector<32x128xf32> -> vector<32x128xf32>
    %c0_3 = arith.constant 0 : index
    %c0_4 = arith.constant 0 : index
    %3 = vector.load %arg3[%c0_3, %c0_4] : memref<1x128xf32, #tpu.memory_space<vmem>>, vector<1x128xf32>
    %4 = vector.broadcast %3 : vector<1x128xf32> to vector<32x128xf32>
    %5 = arith.addf %2, %4 : vector<32x128xf32>
    %6 = arith.truncf %5 : vector<32x128xf32> to vector<32x128xbf16>
    %c0_5 = arith.constant 0 : index
    %c0_6 = arith.constant 0 : index
    %7 = vector.load %arg4[%c0_5, %c0_6] : memref<32x128xbf16, #tpu.memory_space<vmem>>, vector<32x128xbf16>
    tpu.vector_store %arg4[%c0_5, %c0_6], %6 {strides = array<i32>} : memref<32x128xbf16, #tpu.memory_space<vmem>>, vector<32x128xbf16>,
    return
  }
  func.func @transform_0(%arg0: i32) -> (i32, i32) {
    %c0_i32 = arith.constant 0 : i32
    %c0_i32_0 = arith.constant 0 : i32
    return %arg0, %c0_i32 : i32, i32
  }
  func.func @transform_1(%arg0: i32) -> (i32, i32) {
    %c0_i32 = arith.constant 0 : i32
    %c0_i32_0 = arith.constant 0 : i32
    %c0_i32_1 = arith.constant 0 : i32
    return %c0_i32, %c0_i32_0 : i32, i32
  }
  func.func @transform_2(%arg0: i32) -> (i32, i32) {
    %c0_i32 = arith.constant 0 : i32
    %c0_i32_0 = arith.constant 0 : i32
    %c0_i32_1 = arith.constant 0 : i32
    return %c0_i32, %c0_i32_0 : i32, i32
  }
  func.func @transform_3(%arg0: i32) -> (i32, i32) {
    %c0_i32 = arith.constant 0 : i32
    %c0_i32_0 = arith.constant 0 : i32
    return %arg0, %c0_i32 : i32, i32
  }
}

module attributes {stable_mosaic.version = 11 : i64} {
  func.func @_mm_kernel_direct(%arg0: i32, %arg1: memref<32x640xbf16, #tpu.memory_space<vmem>>, %arg2: memref<640x128xbf16, #tpu.memory_space<vmem>>, %arg3: memref<1x128xf32, #tpu.memory_space<vmem>>, %arg4: memref<32x128xbf16, #tpu.memory_space<vmem>>, %arg5: memref<32x128xbf16, #tpu.memory_space<vmem>>) attributes {dimension_semantics = [#tpu.dimension_semantics<parallel>], iteration_bounds = array<i64: 1>, scalar_prefetch = 0 : i64, scratch_operands = 0 : i64, tpu.core_type = #tpu.core_type<tc>, window_params = [{transform_indices = @transform_0, window_bounds = array<i64: 32, 640>}, {pipeline_mode = #tpu.pipeline_mode<synchronous>, transform_indices = @transform_1, window_bounds = array<i64: 640, 128>}, {pipeline_mode = #tpu.pipeline_mode<synchronous>, transform_indices = @transform_2, window_bounds = array<i64: 1, 128>}, {transform_indices = @transform_3, window_bounds = array<i64: 32, 128>}, {transform_indices = @transform_4, window_bounds = array<i64: 32, 128>}]} {
    %c0 = arith.constant 0 : index
    %c0_0 = arith.constant 0 : index
    %0 = vector.load %arg1[%c0, %c0_0] : memref<32x640xbf16, #tpu.memory_space<vmem>>, vector<32x640xbf16>
    %c0_1 = arith.constant 0 : index
    %c0_2 = arith.constant 0 : index
    %1 = vector.load %arg2[%c0_1, %c0_2] : memref<640x128xbf16, #tpu.memory_space<vmem>>, vector<640x128xbf16>
    %cst = arith.constant dense<0.000000e+00> : vector<32x128xf32>
    %2 = tpu.matmul %0, %1, %cst {dimension_numbers = #tpu.dot_dimension_numbers<[1], [0], [0], [1], [0, 0, 1, 1], [], []>} : vector<32x640xbf16>, vector<640x128xbf16>, vector<32x128xf32> -> vector<32x128xf32>
    %c0_3 = arith.constant 0 : index
    %c0_4 = arith.constant 0 : index
    %3 = vector.load %arg3[%c0_3, %c0_4] : memref<1x128xf32, #tpu.memory_space<vmem>>, vector<1x128xf32>
    %4 = vector.broadcast %3 : vector<1x128xf32> to vector<32x128xf32>
    %5 = arith.addf %2, %4 : vector<32x128xf32>
    %c0_5 = arith.constant 0 : index
    %c0_6 = arith.constant 0 : index
    %6 = vector.load %arg4[%c0_5, %c0_6] : memref<32x128xbf16, #tpu.memory_space<vmem>>, vector<32x128xbf16>
    %7 = arith.extf %6 : vector<32x128xbf16> to vector<32x128xf32>
    %8 = arith.addf %5, %7 : vector<32x128xf32>
    %cst_7 = arith.constant 0.000000e+00 : f32
    %9 = vector.broadcast %cst_7 : f32 to vector<32x128xf32>
    %10 = arith.cmpf oge, %8, %9 : vector<32x128xf32>
    %cst_8 = arith.constant 2.000000e-01 : f32
    %11 = vector.broadcast %cst_8 : f32 to vector<32x128xf32>
    %12 = arith.mulf %11, %8 : vector<32x128xf32>
    %13 = arith.select %10, %8, %12 : vector<32x128xi1>, vector<32x128xf32>
    %14 = arith.truncf %13 : vector<32x128xf32> to vector<32x128xbf16>
    %c0_9 = arith.constant 0 : index
    %c0_10 = arith.constant 0 : index
    %15 = vector.load %arg5[%c0_9, %c0_10] : memref<32x128xbf16, #tpu.memory_space<vmem>>, vector<32x128xbf16>
    tpu.vector_store %arg5[%c0_9, %c0_10], %14 {strides = array<i32>} : memref<32x128xbf16, #tpu.memory_space<vmem>>, vector<32x128xbf16>,
    return
  }
  func.func @transform_0(%arg0: i32) -> (i32, i32) {
    %c0_i32 = arith.constant 0 : i32
    %c0_i32_0 = arith.constant 0 : i32
    return %arg0, %c0_i32 : i32, i32
  }
  func.func @transform_1(%arg0: i32) -> (i32, i32) {
    %c0_i32 = arith.constant 0 : i32
    %c0_i32_0 = arith.constant 0 : i32
    %c0_i32_1 = arith.constant 0 : i32
    return %c0_i32, %c0_i32_0 : i32, i32
  }
  func.func @transform_2(%arg0: i32) -> (i32, i32) {
    %c0_i32 = arith.constant 0 : i32
    %c0_i32_0 = arith.constant 0 : i32
    %c0_i32_1 = arith.constant 0 : i32
    return %c0_i32, %c0_i32_0 : i32, i32
  }
  func.func @transform_3(%arg0: i32) -> (i32, i32) {
    %c0_i32 = arith.constant 0 : i32
    %c0_i32_0 = arith.constant 0 : i32
    return %arg0, %c0_i32 : i32, i32
  }
  func.func @transform_4(%arg0: i32) -> (i32, i32) {
    %c0_i32 = arith.constant 0 : i32
    %c0_i32_0 = arith.constant 0 : i32
    return %arg0, %c0_i32 : i32, i32
  }
}

module attributes {stable_mosaic.version = 11 : i64} {
  func.func @_mm_kernel_direct(%arg0: i32, %arg1: memref<32x384xbf16, #tpu.memory_space<vmem>>, %arg2: memref<384x128xbf16, #tpu.memory_space<vmem>>, %arg3: memref<1x128xf32, #tpu.memory_space<vmem>>, %arg4: memref<32x128xbf16, #tpu.memory_space<vmem>>, %arg5: memref<32x128xbf16, #tpu.memory_space<vmem>>) attributes {dimension_semantics = [#tpu.dimension_semantics<parallel>], iteration_bounds = array<i64: 1>, scalar_prefetch = 0 : i64, scratch_operands = 0 : i64, tpu.core_type = #tpu.core_type<tc>, window_params = [{transform_indices = @transform_0, window_bounds = array<i64: 32, 384>}, {pipeline_mode = #tpu.pipeline_mode<synchronous>, transform_indices = @transform_1, window_bounds = array<i64: 384, 128>}, {pipeline_mode = #tpu.pipeline_mode<synchronous>, transform_indices = @transform_2, window_bounds = array<i64: 1, 128>}, {transform_indices = @transform_3, window_bounds = array<i64: 32, 128>}, {transform_indices = @transform_4, window_bounds = array<i64: 32, 128>}]} {
    %c0 = arith.constant 0 : index
    %c0_0 = arith.constant 0 : index
    %0 = vector.load %arg1[%c0, %c0_0] : memref<32x384xbf16, #tpu.memory_space<vmem>>, vector<32x384xbf16>
    %c0_1 = arith.constant 0 : index
    %c0_2 = arith.constant 0 : index
    %1 = vector.load %arg2[%c0_1, %c0_2] : memref<384x128xbf16, #tpu.memory_space<vmem>>, vector<384x128xbf16>
    %cst = arith.constant dense<0.000000e+00> : vector<32x128xf32>
    %2 = tpu.matmul %0, %1, %cst {dimension_numbers = #tpu.dot_dimension_numbers<[1], [0], [0], [1], [0, 0, 1, 1], [], []>} : vector<32x384xbf16>, vector<384x128xbf16>, vector<32x128xf32> -> vector<32x128xf32>
    %c0_3 = arith.constant 0 : index
    %c0_4 = arith.constant 0 : index
    %3 = vector.load %arg3[%c0_3, %c0_4] : memref<1x128xf32, #tpu.memory_space<vmem>>, vector<1x128xf32>
    %4 = vector.broadcast %3 : vector<1x128xf32> to vector<32x128xf32>
    %5 = arith.addf %2, %4 : vector<32x128xf32>
    %cst_5 = arith.constant 0.000000e+00 : f32
    %6 = vector.broadcast %cst_5 : f32 to vector<32x128xf32>
    %7 = arith.cmpf oge, %5, %6 : vector<32x128xf32>
    %cst_6 = arith.constant 2.000000e-01 : f32
    %8 = vector.broadcast %cst_6 : f32 to vector<32x128xf32>
    %9 = arith.mulf %8, %5 : vector<32x128xf32>
    %10 = arith.select %7, %5, %9 : vector<32x128xi1>, vector<32x128xf32>
    %c0_7 = arith.constant 0 : index
    %c0_8 = arith.constant 0 : index
    %11 = vector.load %arg4[%c0_7, %c0_8] : memref<32x128xbf16, #tpu.memory_space<vmem>>, vector<32x128xbf16>
    %12 = arith.extf %11 : vector<32x128xbf16> to vector<32x128xf32>
    %13 = arith.addf %10, %12 : vector<32x128xf32>
    %14 = arith.truncf %13 : vector<32x128xf32> to vector<32x128xbf16>
    %c0_9 = arith.constant 0 : index
    %c0_10 = arith.constant 0 : index
    %15 = vector.load %arg5[%c0_9, %c0_10] : memref<32x128xbf16, #tpu.memory_space<vmem>>, vector<32x128xbf16>
    tpu.vector_store %arg5[%c0_9, %c0_10], %14 {strides = array<i32>} : memref<32x128xbf16, #tpu.memory_space<vmem>>, vector<32x128xbf16>,
    return
  }
  func.func @transform_0(%arg0: i32) -> (i32, i32) {
    %c0_i32 = arith.constant 0 : i32
    %c0_i32_0 = arith.constant 0 : i32
    return %arg0, %c0_i32 : i32, i32
  }
  func.func @transform_1(%arg0: i32) -> (i32, i32) {
    %c0_i32 = arith.constant 0 : i32
    %c0_i32_0 = arith.constant 0 : i32
    %c0_i32_1 = arith.constant 0 : i32
    return %c0_i32, %c0_i32_0 : i32, i32
  }
  func.func @transform_2(%arg0: i32) -> (i32, i32) {
    %c0_i32 = arith.constant 0 : i32
    %c0_i32_0 = arith.constant 0 : i32
    %c0_i32_1 = arith.constant 0 : i32
    return %c0_i32, %c0_i32_0 : i32, i32
  }
  func.func @transform_3(%arg0: i32) -> (i32, i32) {
    %c0_i32 = arith.constant 0 : i32
    %c0_i32_0 = arith.constant 0 : i32
    return %arg0, %c0_i32 : i32, i32
  }
  func.func @transform_4(%arg0: i32) -> (i32, i32) {
    %c0_i32 = arith.constant 0 : i32
    %c0_i32_0 = arith.constant 0 : i32
    return %arg0, %c0_i32 : i32, i32
  }
}

module attributes {stable_mosaic.version = 11 : i64} {
  func.func @_mm_kernel_direct(%arg0: i32, %arg1: memref<128x128xbf16, #tpu.memory_space<vmem>>, %arg2: memref<128x128xbf16, #tpu.memory_space<vmem>>, %arg3: memref<1x128xf32, #tpu.memory_space<vmem>>, %arg4: memref<128x128xbf16, #tpu.memory_space<vmem>>) attributes {dimension_semantics = [#tpu.dimension_semantics<parallel>], iteration_bounds = array<i64: 1>, scalar_prefetch = 0 : i64, scratch_operands = 0 : i64, tpu.core_type = #tpu.core_type<tc>, window_params = [{transform_indices = @transform_0, window_bounds = array<i64: 128, 128>}, {pipeline_mode = #tpu.pipeline_mode<synchronous>, transform_indices = @transform_1, window_bounds = array<i64: 128, 128>}, {pipeline_mode = #tpu.pipeline_mode<synchronous>, transform_indices = @transform_2, window_bounds = array<i64: 1, 128>}, {transform_indices = @transform_3, window_bounds = array<i64: 128, 128>}]} {
    %c0 = arith.constant 0 : index
    %c0_0 = arith.constant 0 : index
    %0 = vector.load %arg1[%c0, %c0_0] : memref<128x128xbf16, #tpu.memory_space<vmem>>, vector<128x128xbf16>
    %c0_1 = arith.constant 0 : index
    %c0_2 = arith.constant 0 : index
    %1 = vector.load %arg2[%c0_1, %c0_2] : memref<128x128xbf16, #tpu.memory_space<vmem>>, vector<128x128xbf16>
    %cst = arith.constant dense<0.000000e+00> : vector<128x128xf32>
    %2 = tpu.matmul %0, %1, %cst {dimension_numbers = #tpu.dot_dimension_numbers<[1], [0], [0], [1], [0, 0, 1, 1], [], []>} : vector<128x128xbf16>, vector<128x128xbf16>, vector<128x128xf32> -> vector<128x128xf32>
    %c0_3 = arith.constant 0 : index
    %c0_4 = arith.constant 0 : index
    %3 = vector.load %arg3[%c0_3, %c0_4] : memref<1x128xf32, #tpu.memory_space<vmem>>, vector<1x128xf32>
    %4 = vector.broadcast %3 : vector<1x128xf32> to vector<128x128xf32>
    %5 = arith.addf %2, %4 : vector<128x128xf32>
    %6 = arith.truncf %5 : vector<128x128xf32> to vector<128x128xbf16>
    %c0_5 = arith.constant 0 : index
    %c0_6 = arith.constant 0 : index
    %7 = vector.load %arg4[%c0_5, %c0_6] : memref<128x128xbf16, #tpu.memory_space<vmem>>, vector<128x128xbf16>
    tpu.vector_store %arg4[%c0_5, %c0_6], %6 {strides = array<i32>} : memref<128x128xbf16, #tpu.memory_space<vmem>>, vector<128x128xbf16>,
    return
  }
  func.func @transform_0(%arg0: i32) -> (i32, i32) {
    %c0_i32 = arith.constant 0 : i32
    %c0_i32_0 = arith.constant 0 : i32
    return %arg0, %c0_i32 : i32, i32
  }
  func.func @transform_1(%arg0: i32) -> (i32, i32) {
    %c0_i32 = arith.constant 0 : i32
    %c0_i32_0 = arith.constant 0 : i32
    %c0_i32_1 = arith.constant 0 : i32
    return %c0_i32, %c0_i32_0 : i32, i32
  }
  func.func @transform_2(%arg0: i32) -> (i32, i32) {
    %c0_i32 = arith.constant 0 : i32
    %c0_i32_0 = arith.constant 0 : i32
    %c0_i32_1 = arith.constant 0 : i32
    return %c0_i32, %c0_i32_0 : i32, i32
  }
  func.func @transform_3(%arg0: i32) -> (i32, i32) {
    %c0_i32 = arith.constant 0 : i32
    %c0_i32_0 = arith.constant 0 : i32
    return %arg0, %c0_i32 : i32, i32
  }
}

module attributes {stable_mosaic.version = 11 : i64} {
  func.func @_mm_kernel_direct(%arg0: i32, %arg1: memref<128x384xbf16, #tpu.memory_space<vmem>>, %arg2: memref<384x128xbf16, #tpu.memory_space<vmem>>, %arg3: memref<1x128xf32, #tpu.memory_space<vmem>>, %arg4: memref<128x128xbf16, #tpu.memory_space<vmem>>, %arg5: memref<128x128xbf16, #tpu.memory_space<vmem>>) attributes {dimension_semantics = [#tpu.dimension_semantics<parallel>], iteration_bounds = array<i64: 1>, scalar_prefetch = 0 : i64, scratch_operands = 0 : i64, tpu.core_type = #tpu.core_type<tc>, window_params = [{transform_indices = @transform_0, window_bounds = array<i64: 128, 384>}, {pipeline_mode = #tpu.pipeline_mode<synchronous>, transform_indices = @transform_1, window_bounds = array<i64: 384, 128>}, {pipeline_mode = #tpu.pipeline_mode<synchronous>, transform_indices = @transform_2, window_bounds = array<i64: 1, 128>}, {transform_indices = @transform_3, window_bounds = array<i64: 128, 128>}, {transform_indices = @transform_4, window_bounds = array<i64: 128, 128>}]} {
    %c0 = arith.constant 0 : index
    %c0_0 = arith.constant 0 : index
    %0 = vector.load %arg1[%c0, %c0_0] : memref<128x384xbf16, #tpu.memory_space<vmem>>, vector<128x384xbf16>
    %c0_1 = arith.constant 0 : index
    %c0_2 = arith.constant 0 : index
    %1 = vector.load %arg2[%c0_1, %c0_2] : memref<384x128xbf16, #tpu.memory_space<vmem>>, vector<384x128xbf16>
    %cst = arith.constant dense<0.000000e+00> : vector<128x128xf32>
    %2 = tpu.matmul %0, %1, %cst {dimension_numbers = #tpu.dot_dimension_numbers<[1], [0], [0], [1], [0, 0, 1, 1], [], []>} : vector<128x384xbf16>, vector<384x128xbf16>, vector<128x128xf32> -> vector<128x128xf32>
    %c0_3 = arith.constant 0 : index
    %c0_4 = arith.constant 0 : index
    %3 = vector.load %arg3[%c0_3, %c0_4] : memref<1x128xf32, #tpu.memory_space<vmem>>, vector<1x128xf32>
    %4 = vector.broadcast %3 : vector<1x128xf32> to vector<128x128xf32>
    %5 = arith.addf %2, %4 : vector<128x128xf32>
    %c0_5 = arith.constant 0 : index
    %c0_6 = arith.constant 0 : index
    %6 = vector.load %arg4[%c0_5, %c0_6] : memref<128x128xbf16, #tpu.memory_space<vmem>>, vector<128x128xbf16>
    %7 = arith.extf %6 : vector<128x128xbf16> to vector<128x128xf32>
    %8 = arith.addf %5, %7 : vector<128x128xf32>
    %cst_7 = arith.constant 0.000000e+00 : f32
    %9 = vector.broadcast %cst_7 : f32 to vector<128x128xf32>
    %10 = arith.cmpf oge, %8, %9 : vector<128x128xf32>
    %cst_8 = arith.constant 2.000000e-01 : f32
    %11 = vector.broadcast %cst_8 : f32 to vector<128x128xf32>
    %12 = arith.mulf %11, %8 : vector<128x128xf32>
    %13 = arith.select %10, %8, %12 : vector<128x128xi1>, vector<128x128xf32>
    %14 = arith.truncf %13 : vector<128x128xf32> to vector<128x128xbf16>
    %c0_9 = arith.constant 0 : index
    %c0_10 = arith.constant 0 : index
    %15 = vector.load %arg5[%c0_9, %c0_10] : memref<128x128xbf16, #tpu.memory_space<vmem>>, vector<128x128xbf16>
    tpu.vector_store %arg5[%c0_9, %c0_10], %14 {strides = array<i32>} : memref<128x128xbf16, #tpu.memory_space<vmem>>, vector<128x128xbf16>,
    return
  }
  func.func @transform_0(%arg0: i32) -> (i32, i32) {
    %c0_i32 = arith.constant 0 : i32
    %c0_i32_0 = arith.constant 0 : i32
    return %arg0, %c0_i32 : i32, i32
  }
  func.func @transform_1(%arg0: i32) -> (i32, i32) {
    %c0_i32 = arith.constant 0 : i32
    %c0_i32_0 = arith.constant 0 : i32
    %c0_i32_1 = arith.constant 0 : i32
    return %c0_i32, %c0_i32_0 : i32, i32
  }
  func.func @transform_2(%arg0: i32) -> (i32, i32) {
    %c0_i32 = arith.constant 0 : i32
    %c0_i32_0 = arith.constant 0 : i32
    %c0_i32_1 = arith.constant 0 : i32
    return %c0_i32, %c0_i32_0 : i32, i32
  }
  func.func @transform_3(%arg0: i32) -> (i32, i32) {
    %c0_i32 = arith.constant 0 : i32
    %c0_i32_0 = arith.constant 0 : i32
    return %arg0, %c0_i32 : i32, i32
  }
  func.func @transform_4(%arg0: i32) -> (i32, i32) {
    %c0_i32 = arith.constant 0 : i32
    %c0_i32_0 = arith.constant 0 : i32
    return %arg0, %c0_i32 : i32, i32
  }
}

module attributes {stable_mosaic.version = 11 : i64} {
  func.func @_mm_kernel_direct(%arg0: i32, %arg1: memref<128x256xbf16, #tpu.memory_space<vmem>>, %arg2: memref<256x128xbf16, #tpu.memory_space<vmem>>, %arg3: memref<1x128xf32, #tpu.memory_space<vmem>>, %arg4: memref<128x128xbf16, #tpu.memory_space<vmem>>, %arg5: memref<128x128xbf16, #tpu.memory_space<vmem>>) attributes {dimension_semantics = [#tpu.dimension_semantics<parallel>], iteration_bounds = array<i64: 1>, scalar_prefetch = 0 : i64, scratch_operands = 0 : i64, tpu.core_type = #tpu.core_type<tc>, window_params = [{transform_indices = @transform_0, window_bounds = array<i64: 128, 256>}, {pipeline_mode = #tpu.pipeline_mode<synchronous>, transform_indices = @transform_1, window_bounds = array<i64: 256, 128>}, {pipeline_mode = #tpu.pipeline_mode<synchronous>, transform_indices = @transform_2, window_bounds = array<i64: 1, 128>}, {transform_indices = @transform_3, window_bounds = array<i64: 128, 128>}, {transform_indices = @transform_4, window_bounds = array<i64: 128, 128>}]} {
    %c0 = arith.constant 0 : index
    %c0_0 = arith.constant 0 : index
    %0 = vector.load %arg1[%c0, %c0_0] : memref<128x256xbf16, #tpu.memory_space<vmem>>, vector<128x256xbf16>
    %c0_1 = arith.constant 0 : index
    %c0_2 = arith.constant 0 : index
    %1 = vector.load %arg2[%c0_1, %c0_2] : memref<256x128xbf16, #tpu.memory_space<vmem>>, vector<256x128xbf16>
    %cst = arith.constant dense<0.000000e+00> : vector<128x128xf32>
    %2 = tpu.matmul %0, %1, %cst {dimension_numbers = #tpu.dot_dimension_numbers<[1], [0], [0], [1], [0, 0, 1, 1], [], []>} : vector<128x256xbf16>, vector<256x128xbf16>, vector<128x128xf32> -> vector<128x128xf32>
    %c0_3 = arith.constant 0 : index
    %c0_4 = arith.constant 0 : index
    %3 = vector.load %arg3[%c0_3, %c0_4] : memref<1x128xf32, #tpu.memory_space<vmem>>, vector<1x128xf32>
    %4 = vector.broadcast %3 : vector<1x128xf32> to vector<128x128xf32>
    %5 = arith.addf %2, %4 : vector<128x128xf32>
    %cst_5 = arith.constant 0.000000e+00 : f32
    %6 = vector.broadcast %cst_5 : f32 to vector<128x128xf32>
    %7 = arith.cmpf oge, %5, %6 : vector<128x128xf32>
    %cst_6 = arith.constant 2.000000e-01 : f32
    %8 = vector.broadcast %cst_6 : f32 to vector<128x128xf32>
    %9 = arith.mulf %8, %5 : vector<128x128xf32>
    %10 = arith.select %7, %5, %9 : vector<128x128xi1>, vector<128x128xf32>
    %c0_7 = arith.constant 0 : index
    %c0_8 = arith.constant 0 : index
    %11 = vector.load %arg4[%c0_7, %c0_8] : memref<128x128xbf16, #tpu.memory_space<vmem>>, vector<128x128xbf16>
    %12 = arith.extf %11 : vector<128x128xbf16> to vector<128x128xf32>
    %13 = arith.addf %10, %12 : vector<128x128xf32>
    %14 = arith.truncf %13 : vector<128x128xf32> to vector<128x128xbf16>
    %c0_9 = arith.constant 0 : index
    %c0_10 = arith.constant 0 : index
    %15 = vector.load %arg5[%c0_9, %c0_10] : memref<128x128xbf16, #tpu.memory_space<vmem>>, vector<128x128xbf16>
    tpu.vector_store %arg5[%c0_9, %c0_10], %14 {strides = array<i32>} : memref<128x128xbf16, #tpu.memory_space<vmem>>, vector<128x128xbf16>,
    return
  }
  func.func @transform_0(%arg0: i32) -> (i32, i32) {
    %c0_i32 = arith.constant 0 : i32
    %c0_i32_0 = arith.constant 0 : i32
    return %arg0, %c0_i32 : i32, i32
  }
  func.func @transform_1(%arg0: i32) -> (i32, i32) {
    %c0_i32 = arith.constant 0 : i32
    %c0_i32_0 = arith.constant 0 : i32
    %c0_i32_1 = arith.constant 0 : i32
    return %c0_i32, %c0_i32_0 : i32, i32
  }
  func.func @transform_2(%arg0: i32) -> (i32, i32) {
    %c0_i32 = arith.constant 0 : i32
    %c0_i32_0 = arith.constant 0 : i32
    %c0_i32_1 = arith.constant 0 : i32
    return %c0_i32, %c0_i32_0 : i32, i32
  }
  func.func @transform_3(%arg0: i32) -> (i32, i32) {
    %c0_i32 = arith.constant 0 : i32
    %c0_i32_0 = arith.constant 0 : i32
    return %arg0, %c0_i32 : i32, i32
  }
  func.func @transform_4(%arg0: i32) -> (i32, i32) {
    %c0_i32 = arith.constant 0 : i32
    %c0_i32_0 = arith.constant 0 : i32
    return %arg0, %c0_i32 : i32, i32
  }
}

module attributes {stable_mosaic.version = 11 : i64} {
  func.func @_mm_kernel_direct(%arg0: i32, %arg1: memref<256x128xbf16, #tpu.memory_space<vmem>>, %arg2: memref<128x128xbf16, #tpu.memory_space<vmem>>, %arg3: memref<1x128xf32, #tpu.memory_space<vmem>>, %arg4: memref<256x128xbf16, #tpu.memory_space<vmem>>) attributes {dimension_semantics = [#tpu.dimension_semantics<parallel>], iteration_bounds = array<i64: 2>, scalar_prefetch = 0 : i64, scratch_operands = 0 : i64, tpu.core_type = #tpu.core_type<tc>, window_params = [{transform_indices = @transform_0, window_bounds = array<i64: 256, 128>}, {pipeline_mode = #tpu.pipeline_mode<synchronous>, transform_indices = @transform_1, window_bounds = array<i64: 128, 128>}, {pipeline_mode = #tpu.pipeline_mode<synchronous>, transform_indices = @transform_2, window_bounds = array<i64: 1, 128>}, {transform_indices = @transform_3, window_bounds = array<i64: 256, 128>}]} {
    %c0 = arith.constant 0 : index
    %c0_0 = arith.constant 0 : index
    %0 = vector.load %arg1[%c0, %c0_0] : memref<256x128xbf16, #tpu.memory_space<vmem>>, vector<256x128xbf16>
    %c0_1 = arith.constant 0 : index
    %c0_2 = arith.constant 0 : index
    %1 = vector.load %arg2[%c0_1, %c0_2] : memref<128x128xbf16, #tpu.memory_space<vmem>>, vector<128x128xbf16>
    %cst = arith.constant dense<0.000000e+00> : vector<256x128xf32>
    %2 = tpu.matmul %0, %1, %cst {dimension_numbers = #tpu.dot_dimension_numbers<[1], [0], [0], [1], [0, 0, 1, 1], [], []>} : vector<256x128xbf16>, vector<128x128xbf16>, vector<256x128xf32> -> vector<256x128xf32>
    %c0_3 = arith.constant 0 : index
    %c0_4 = arith.constant 0 : index
    %3 = vector.load %arg3[%c0_3, %c0_4] : memref<1x128xf32, #tpu.memory_space<vmem>>, vector<1x128xf32>
    %4 = vector.broadcast %3 : vector<1x128xf32> to vector<256x128xf32>
    %5 = arith.addf %2, %4 : vector<256x128xf32>
    %6 = arith.truncf %5 : vector<256x128xf32> to vector<256x128xbf16>
    %c0_5 = arith.constant 0 : index
    %c0_6 = arith.constant 0 : index
    %7 = vector.load %arg4[%c0_5, %c0_6] : memref<256x128xbf16, #tpu.memory_space<vmem>>, vector<256x128xbf16>
    tpu.vector_store %arg4[%c0_5, %c0_6], %6 {strides = array<i32>} : memref<256x128xbf16, #tpu.memory_space<vmem>>, vector<256x128xbf16>,
    return
  }
  func.func @transform_0(%arg0: i32) -> (i32, i32) {
    %c0_i32 = arith.constant 0 : i32
    %c0_i32_0 = arith.constant 0 : i32
    return %arg0, %c0_i32 : i32, i32
  }
  func.func @transform_1(%arg0: i32) -> (i32, i32) {
    %c0_i32 = arith.constant 0 : i32
    %c0_i32_0 = arith.constant 0 : i32
    %c0_i32_1 = arith.constant 0 : i32
    return %c0_i32, %c0_i32_0 : i32, i32
  }
  func.func @transform_2(%arg0: i32) -> (i32, i32) {
    %c0_i32 = arith.constant 0 : i32
    %c0_i32_0 = arith.constant 0 : i32
    %c0_i32_1 = arith.constant 0 : i32
    return %c0_i32, %c0_i32_0 : i32, i32
  }
  func.func @transform_3(%arg0: i32) -> (i32, i32) {
    %c0_i32 = arith.constant 0 : i32
    %c0_i32_0 = arith.constant 0 : i32
    return %arg0, %c0_i32 : i32, i32
  }
}

module attributes {stable_mosaic.version = 11 : i64} {
  func.func @_mm_kernel_direct(%arg0: i32, %arg1: memref<256x256xbf16, #tpu.memory_space<vmem>>, %arg2: memref<256x128xbf16, #tpu.memory_space<vmem>>, %arg3: memref<1x128xf32, #tpu.memory_space<vmem>>, %arg4: memref<256x128xbf16, #tpu.memory_space<vmem>>, %arg5: memref<256x128xbf16, #tpu.memory_space<vmem>>) attributes {dimension_semantics = [#tpu.dimension_semantics<parallel>], iteration_bounds = array<i64: 2>, scalar_prefetch = 0 : i64, scratch_operands = 0 : i64, tpu.core_type = #tpu.core_type<tc>, window_params = [{transform_indices = @transform_0, window_bounds = array<i64: 256, 256>}, {pipeline_mode = #tpu.pipeline_mode<synchronous>, transform_indices = @transform_1, window_bounds = array<i64: 256, 128>}, {pipeline_mode = #tpu.pipeline_mode<synchronous>, transform_indices = @transform_2, window_bounds = array<i64: 1, 128>}, {transform_indices = @transform_3, window_bounds = array<i64: 256, 128>}, {transform_indices = @transform_4, window_bounds = array<i64: 256, 128>}]} {
    %c0 = arith.constant 0 : index
    %c0_0 = arith.constant 0 : index
    %0 = vector.load %arg1[%c0, %c0_0] : memref<256x256xbf16, #tpu.memory_space<vmem>>, vector<256x256xbf16>
    %c0_1 = arith.constant 0 : index
    %c0_2 = arith.constant 0 : index
    %1 = vector.load %arg2[%c0_1, %c0_2] : memref<256x128xbf16, #tpu.memory_space<vmem>>, vector<256x128xbf16>
    %cst = arith.constant dense<0.000000e+00> : vector<256x128xf32>
    %2 = tpu.matmul %0, %1, %cst {dimension_numbers = #tpu.dot_dimension_numbers<[1], [0], [0], [1], [0, 0, 1, 1], [], []>} : vector<256x256xbf16>, vector<256x128xbf16>, vector<256x128xf32> -> vector<256x128xf32>
    %c0_3 = arith.constant 0 : index
    %c0_4 = arith.constant 0 : index
    %3 = vector.load %arg3[%c0_3, %c0_4] : memref<1x128xf32, #tpu.memory_space<vmem>>, vector<1x128xf32>
    %4 = vector.broadcast %3 : vector<1x128xf32> to vector<256x128xf32>
    %5 = arith.addf %2, %4 : vector<256x128xf32>
    %c0_5 = arith.constant 0 : index
    %c0_6 = arith.constant 0 : index
    %6 = vector.load %arg4[%c0_5, %c0_6] : memref<256x128xbf16, #tpu.memory_space<vmem>>, vector<256x128xbf16>
    %7 = arith.extf %6 : vector<256x128xbf16> to vector<256x128xf32>
    %8 = arith.addf %5, %7 : vector<256x128xf32>
    %cst_7 = arith.constant 0.000000e+00 : f32
    %9 = vector.broadcast %cst_7 : f32 to vector<256x128xf32>
    %10 = arith.cmpf oge, %8, %9 : vector<256x128xf32>
    %cst_8 = arith.constant 2.000000e-01 : f32
    %11 = vector.broadcast %cst_8 : f32 to vector<256x128xf32>
    %12 = arith.mulf %11, %8 : vector<256x128xf32>
    %13 = arith.select %10, %8, %12 : vector<256x128xi1>, vector<256x128xf32>
    %14 = arith.truncf %13 : vector<256x128xf32> to vector<256x128xbf16>
    %c0_9 = arith.constant 0 : index
    %c0_10 = arith.constant 0 : index
    %15 = vector.load %arg5[%c0_9, %c0_10] : memref<256x128xbf16, #tpu.memory_space<vmem>>, vector<256x128xbf16>
    tpu.vector_store %arg5[%c0_9, %c0_10], %14 {strides = array<i32>} : memref<256x128xbf16, #tpu.memory_space<vmem>>, vector<256x128xbf16>,
    return
  }
  func.func @transform_0(%arg0: i32) -> (i32, i32) {
    %c0_i32 = arith.constant 0 : i32
    %c0_i32_0 = arith.constant 0 : i32
    return %arg0, %c0_i32 : i32, i32
  }
  func.func @transform_1(%arg0: i32) -> (i32, i32) {
    %c0_i32 = arith.constant 0 : i32
    %c0_i32_0 = arith.constant 0 : i32
    %c0_i32_1 = arith.constant 0 : i32
    return %c0_i32, %c0_i32_0 : i32, i32
  }
  func.func @transform_2(%arg0: i32) -> (i32, i32) {
    %c0_i32 = arith.constant 0 : i32
    %c0_i32_0 = arith.constant 0 : i32
    %c0_i32_1 = arith.constant 0 : i32
    return %c0_i32, %c0_i32_0 : i32, i32
  }
  func.func @transform_3(%arg0: i32) -> (i32, i32) {
    %c0_i32 = arith.constant 0 : i32
    %c0_i32_0 = arith.constant 0 : i32
    return %arg0, %c0_i32 : i32, i32
  }
  func.func @transform_4(%arg0: i32) -> (i32, i32) {
    %c0_i32 = arith.constant 0 : i32
    %c0_i32_0 = arith.constant 0 : i32
    return %arg0, %c0_i32 : i32, i32
  }
}

module attributes {stable_mosaic.version = 11 : i64} {
  func.func @_mm_kernel_direct(%arg0: i32, %arg1: memref<256x128xbf16, #tpu.memory_space<vmem>>, %arg2: memref<128x128xbf16, #tpu.memory_space<vmem>>, %arg3: memref<1x128xf32, #tpu.memory_space<vmem>>, %arg4: memref<256x128xbf16, #tpu.memory_space<vmem>>, %arg5: memref<256x128xbf16, #tpu.memory_space<vmem>>) attributes {dimension_semantics = [#tpu.dimension_semantics<parallel>], iteration_bounds = array<i64: 2>, scalar_prefetch = 0 : i64, scratch_operands = 0 : i64, tpu.core_type = #tpu.core_type<tc>, window_params = [{transform_indices = @transform_0, window_bounds = array<i64: 256, 128>}, {pipeline_mode = #tpu.pipeline_mode<synchronous>, transform_indices = @transform_1, window_bounds = array<i64: 128, 128>}, {pipeline_mode = #tpu.pipeline_mode<synchronous>, transform_indices = @transform_2, window_bounds = array<i64: 1, 128>}, {transform_indices = @transform_3, window_bounds = array<i64: 256, 128>}, {transform_indices = @transform_4, window_bounds = array<i64: 256, 128>}]} {
    %c0 = arith.constant 0 : index
    %c0_0 = arith.constant 0 : index
    %0 = vector.load %arg1[%c0, %c0_0] : memref<256x128xbf16, #tpu.memory_space<vmem>>, vector<256x128xbf16>
    %c0_1 = arith.constant 0 : index
    %c0_2 = arith.constant 0 : index
    %1 = vector.load %arg2[%c0_1, %c0_2] : memref<128x128xbf16, #tpu.memory_space<vmem>>, vector<128x128xbf16>
    %cst = arith.constant dense<0.000000e+00> : vector<256x128xf32>
    %2 = tpu.matmul %0, %1, %cst {dimension_numbers = #tpu.dot_dimension_numbers<[1], [0], [0], [1], [0, 0, 1, 1], [], []>} : vector<256x128xbf16>, vector<128x128xbf16>, vector<256x128xf32> -> vector<256x128xf32>
    %c0_3 = arith.constant 0 : index
    %c0_4 = arith.constant 0 : index
    %3 = vector.load %arg3[%c0_3, %c0_4] : memref<1x128xf32, #tpu.memory_space<vmem>>, vector<1x128xf32>
    %4 = vector.broadcast %3 : vector<1x128xf32> to vector<256x128xf32>
    %5 = arith.addf %2, %4 : vector<256x128xf32>
    %cst_5 = arith.constant 0.000000e+00 : f32
    %6 = vector.broadcast %cst_5 : f32 to vector<256x128xf32>
    %7 = arith.cmpf oge, %5, %6 : vector<256x128xf32>
    %cst_6 = arith.constant 2.000000e-01 : f32
    %8 = vector.broadcast %cst_6 : f32 to vector<256x128xf32>
    %9 = arith.mulf %8, %5 : vector<256x128xf32>
    %10 = arith.select %7, %5, %9 : vector<256x128xi1>, vector<256x128xf32>
    %c0_7 = arith.constant 0 : index
    %c0_8 = arith.constant 0 : index
    %11 = vector.load %arg4[%c0_7, %c0_8] : memref<256x128xbf16, #tpu.memory_space<vmem>>, vector<256x128xbf16>
    %12 = arith.extf %11 : vector<256x128xbf16> to vector<256x128xf32>
    %13 = arith.addf %10, %12 : vector<256x128xf32>
    %14 = arith.truncf %13 : vector<256x128xf32> to vector<256x128xbf16>
    %c0_9 = arith.constant 0 : index
    %c0_10 = arith.constant 0 : index
    %15 = vector.load %arg5[%c0_9, %c0_10] : memref<256x128xbf16, #tpu.memory_space<vmem>>, vector<256x128xbf16>
    tpu.vector_store %arg5[%c0_9, %c0_10], %14 {strides = array<i32>} : memref<256x128xbf16, #tpu.memory_space<vmem>>, vector<256x128xbf16>,
    return
  }
  func.func @transform_0(%arg0: i32) -> (i32, i32) {
    %c0_i32 = arith.constant 0 : i32
    %c0_i32_0 = arith.constant 0 : i32
    return %arg0, %c0_i32 : i32, i32
  }
  func.func @transform_1(%arg0: i32) -> (i32, i32) {
    %c0_i32 = arith.constant 0 : i32
    %c0_i32_0 = arith.constant 0 : i32
    %c0_i32_1 = arith.constant 0 : i32
    return %c0_i32, %c0_i32_0 : i32, i32
  }
  func.func @transform_2(%arg0: i32) -> (i32, i32) {
    %c0_i32 = arith.constant 0 : i32
    %c0_i32_0 = arith.constant 0 : i32
    %c0_i32_1 = arith.constant 0 : i32
    return %c0_i32, %c0_i32_0 : i32, i32
  }
  func.func @transform_3(%arg0: i32) -> (i32, i32) {
    %c0_i32 = arith.constant 0 : i32
    %c0_i32_0 = arith.constant 0 : i32
    return %arg0, %c0_i32 : i32, i32
  }
  func.func @transform_4(%arg0: i32) -> (i32, i32) {
    %c0_i32 = arith.constant 0 : i32
    %c0_i32_0 = arith.constant 0 : i32
    return %arg0, %c0_i32 : i32, i32
  }
}

module attributes {stable_mosaic.version = 11 : i64} {
  func.func @_mm_kernel_direct(%arg0: i32, %arg1: memref<256x128xbf16, #tpu.memory_space<vmem>>, %arg2: memref<128x128xbf16, #tpu.memory_space<vmem>>, %arg3: memref<1x128xf32, #tpu.memory_space<vmem>>, %arg4: memref<256x128xf32, #tpu.memory_space<vmem>>) attributes {dimension_semantics = [#tpu.dimension_semantics<parallel>], iteration_bounds = array<i64: 2>, scalar_prefetch = 0 : i64, scratch_operands = 0 : i64, tpu.core_type = #tpu.core_type<tc>, window_params = [{transform_indices = @transform_0, window_bounds = array<i64: 256, 128>}, {pipeline_mode = #tpu.pipeline_mode<synchronous>, transform_indices = @transform_1, window_bounds = array<i64: 128, 128>}, {pipeline_mode = #tpu.pipeline_mode<synchronous>, transform_indices = @transform_2, window_bounds = array<i64: 1, 128>}, {transform_indices = @transform_3, window_bounds = array<i64: 256, 128>}]} {
    %c0 = arith.constant 0 : index
    %c0_0 = arith.constant 0 : index
    %0 = vector.load %arg1[%c0, %c0_0] : memref<256x128xbf16, #tpu.memory_space<vmem>>, vector<256x128xbf16>
    %c0_1 = arith.constant 0 : index
    %c0_2 = arith.constant 0 : index
    %1 = vector.load %arg2[%c0_1, %c0_2] : memref<128x128xbf16, #tpu.memory_space<vmem>>, vector<128x128xbf16>
    %cst = arith.constant dense<0.000000e+00> : vector<256x128xf32>
    %2 = tpu.matmul %0, %1, %cst {dimension_numbers = #tpu.dot_dimension_numbers<[1], [0], [0], [1], [0, 0, 1, 1], [], []>} : vector<256x128xbf16>, vector<128x128xbf16>, vector<256x128xf32> -> vector<256x128xf32>
    %c0_3 = arith.constant 0 : index
    %c0_4 = arith.constant 0 : index
    %3 = vector.load %arg3[%c0_3, %c0_4] : memref<1x128xf32, #tpu.memory_space<vmem>>, vector<1x128xf32>
    %4 = vector.broadcast %3 : vector<1x128xf32> to vector<256x128xf32>
    %5 = arith.addf %2, %4 : vector<256x128xf32>
    %c0_5 = arith.constant 0 : index
    %c0_6 = arith.constant 0 : index
    %6 = vector.load %arg4[%c0_5, %c0_6] : memref<256x128xf32, #tpu.memory_space<vmem>>, vector<256x128xf32>
    tpu.vector_store %arg4[%c0_5, %c0_6], %5 {strides = array<i32>} : memref<256x128xf32, #tpu.memory_space<vmem>>, vector<256x128xf32>,
    return
  }
  func.func @transform_0(%arg0: i32) -> (i32, i32) {
    %c0_i32 = arith.constant 0 : i32
    %c0_i32_0 = arith.constant 0 : i32
    return %arg0, %c0_i32 : i32, i32
  }
  func.func @transform_1(%arg0: i32) -> (i32, i32) {
    %c0_i32 = arith.constant 0 : i32
    %c0_i32_0 = arith.constant 0 : i32
    %c0_i32_1 = arith.constant 0 : i32
    return %c0_i32, %c0_i32_0 : i32, i32
  }
  func.func @transform_2(%arg0: i32) -> (i32, i32) {
    %c0_i32 = arith.constant 0 : i32
    %c0_i32_0 = arith.constant 0 : i32
    %c0_i32_1 = arith.constant 0 : i32
    return %c0_i32, %c0_i32_0 : i32, i32
  }
  func.func @transform_3(%arg0: i32) -> (i32, i32) {
    %c0_i32 = arith.constant 0 : i32
    %c0_i32_0 = arith.constant 0 : i32
    return %arg0, %c0_i32 : i32, i32
  }
}

module attributes {stable_mosaic.version = 11 : i64} {
  func.func @_mm_kernel_direct(%arg0: i32, %arg1: memref<8x128xbf16, #tpu.memory_space<vmem>>, %arg2: memref<128x128xbf16, #tpu.memory_space<vmem>>, %arg3: memref<1x128xf32, #tpu.memory_space<vmem>>, %arg4: memref<8x128xf32, #tpu.memory_space<vmem>>) attributes {dimension_semantics = [#tpu.dimension_semantics<parallel>], iteration_bounds = array<i64: 1>, scalar_prefetch = 0 : i64, scratch_operands = 0 : i64, tpu.core_type = #tpu.core_type<tc>, window_params = [{transform_indices = @transform_0, window_bounds = array<i64: 8, 128>}, {pipeline_mode = #tpu.pipeline_mode<synchronous>, transform_indices = @transform_1, window_bounds = array<i64: 128, 128>}, {pipeline_mode = #tpu.pipeline_mode<synchronous>, transform_indices = @transform_2, window_bounds = array<i64: 1, 128>}, {transform_indices = @transform_3, window_bounds = array<i64: 8, 128>}]} {
    %c0 = arith.constant 0 : index
    %c0_0 = arith.constant 0 : index
    %0 = vector.load %arg1[%c0, %c0_0] : memref<8x128xbf16, #tpu.memory_space<vmem>>, vector<8x128xbf16>
    %c0_1 = arith.constant 0 : index
    %c0_2 = arith.constant 0 : index
    %1 = vector.load %arg2[%c0_1, %c0_2] : memref<128x128xbf16, #tpu.memory_space<vmem>>, vector<128x128xbf16>
    %cst = arith.constant dense<0.000000e+00> : vector<8x128xf32>
    %2 = tpu.matmul %0, %1, %cst {dimension_numbers = #tpu.dot_dimension_numbers<[1], [0], [0], [1], [0, 0, 1, 1], [], []>} : vector<8x128xbf16>, vector<128x128xbf16>, vector<8x128xf32> -> vector<8x128xf32>
    %c0_3 = arith.constant 0 : index
    %c0_4 = arith.constant 0 : index
    %3 = vector.load %arg3[%c0_3, %c0_4] : memref<1x128xf32, #tpu.memory_space<vmem>>, vector<1x128xf32>
    %4 = vector.broadcast %3 : vector<1x128xf32> to vector<8x128xf32>
    %5 = arith.addf %2, %4 : vector<8x128xf32>
    %c0_5 = arith.constant 0 : index
    %c0_6 = arith.constant 0 : index
    %6 = vector.load %arg4[%c0_5, %c0_6] : memref<8x128xf32, #tpu.memory_space<vmem>>, vector<8x128xf32>
    tpu.vector_store %arg4[%c0_5, %c0_6], %5 {strides = array<i32>} : memref<8x128xf32, #tpu.memory_space<vmem>>, vector<8x128xf32>,
    return
  }
  func.func @transform_0(%arg0: i32) -> (i32, i32) {
    %c0_i32 = arith.constant 0 : i32
    %c0_i32_0 = arith.constant 0 : i32
    return %arg0, %c0_i32 : i32, i32
  }
  func.func @transform_1(%arg0: i32) -> (i32, i32) {
    %c0_i32 = arith.constant 0 : i32
    %c0_i32_0 = arith.constant 0 : i32
    %c0_i32_1 = arith.constant 0 : i32
    return %c0_i32, %c0_i32_0 : i32, i32
  }
  func.func @transform_2(%arg0: i32) -> (i32, i32) {
    %c0_i32 = arith.constant 0 : i32
    %c0_i32_0 = arith.constant 0 : i32
    %c0_i32_1 = arith.constant 0 : i32
    return %c0_i32, %c0_i32_0 : i32, i32
  }
  func.func @transform_3(%arg0: i32) -> (i32, i32) {
    %c0_i32 = arith.constant 0 : i32
    %c0_i32_0 = arith.constant 0 : i32
    return %arg0, %c0_i32 : i32, i32
  }
}

</mosaic_0001>

<bundles_post_ra>
// kernel: unet_forward.32
= control target key start
LH: loop header
LB: loop body
LE: loop exit
PB: predicated region body
PF: predicated region fallthrough
CT: control target
= control target key end

     0   :  { %s1190_s12 = smov 0   ;;  %s1317_s0 = inlined_call_operand.vmem [shape: bf16[512,128], index: 0, kind: input, shape index: {}]   ;;  %s1318_s1 = inlined_call_operand.vmem [shape: bf16[128,128], index: 1, kind: input, shape index: {}]   ;;  %s1319_s2 = inlined_call_operand.vmem [shape: f32[1,128], index: 2, kind: input, shape index: {}]   ;;  %s1320_s3 = inlined_call_operand.vmem [shape: bf16[512,128], index: 3, kind: output, shape index: {}]  }
   0x1 LB: > { %s847_s13 = sadd.s32 4294967295, %s1168_s12   ;;  %p851_p0 = scmp.ge.s32.totalorder %s1168_s12, 1  ;;  %s1168_s12 = sphi %s1190_s12, %s13_s12  }
   0x2   : > { %p138_p1 = scmp.lt.s32.totalorder %s1168_s12, 3 }
   0x4   : > { %p139_p2 = pnand %p851_p0, %p138_p1 }
   0x5   : > { %v1138_v0 = vld [vmem:[%s1318_s1] sm:$0xff] (!%p139_p2)   ;;  %s852_s16 = sshll.u32 (!%p139_p2), %s847_s13, 5  ;;  %v1139_v1 = vld [vmem:[%s1318_s1 + $0x8] sm:$0xff] (!%p139_p2)   ;;  %v1140_v2 = vld [vmem:[%s1318_s1 + $0x10] sm:$0xff] (!%p139_p2)  }
   0x6   : > { %142 = sbr.rel (%p139_p2) target bundleno = 293 (0x125), region = 32  ;;  %p163_p3 = scmp.lt.s32.totalorder (!%p139_p2), %s852_s16, 63  ;;  %1066 = vmatprep.subr.bf16.mxu0 (!%p139_p2), %v1138_v0  ;;  %1114 = vmatprep.subr.bf16.mxu1 (!%p139_p2), %v1138_v0  ;;  %v1141_v3 = vld [vmem:[%s1318_s1 + $0x18] sm:$0xff] (!%p139_p2)   ;;  %v1142_v6 = vld [vmem:[%s1318_s1 + $0x20] sm:$0xff] (!%p139_p2)   ;;  %v1143_v7 = vld [vmem:[%s1318_s1 + $0x28] sm:$0xff] (!%p139_p2)  }
   0x7   : > { %1067 = vmatpush3.bf16.msra.mxu0 (!%p139_p2), %v1138_v0  ;;  %1122 = vmatpush3.bf16.msra.mxu1 (!%p139_p2), %v1138_v0  ;;  %v1144_v8 = vld [vmem:[%s1318_s1 + $0x30] sm:$0xff] (!%p139_p2)   ;;  %v1145_v9 = vld [vmem:[%s1318_s1 + $0x38] sm:$0xff] (!%p139_p2)   ;;  %v1251_v24 = vld [vmem:[%s1319_s2] ss:$0 sm:$0xff] (!%p139_p2) }
   0x8   : > { %1068 = vmatprep.subr.bf16.mxu0 (!%p139_p2), %v1139_v1  ;;  %1115 = vmatprep.subr.bf16.mxu1 (!%p139_p2), %v1139_v1 }
   0xb   : > { %1069 = vmatpush3.bf16.msra.mxu0 (!%p139_p2), %v1139_v1  ;;  %1123 = vmatpush3.bf16.msra.mxu1 (!%p139_p2), %v1139_v1 }
   0xc   : > { %1070 = vmatprep.subr.bf16.mxu0 (!%p139_p2), %v1140_v2  ;;  %1116 = vmatprep.subr.bf16.mxu1 (!%p139_p2), %v1140_v2 }
   0xd   : > { %s1322_s16 = smov (!%p163_p3, %s852_s16), 63 }
   0xe   : > { %s853_s21 = sshll.u32 %s1322_s16, 2 }
   0xf   : > { %s1215_s24 = scalar_lea.vmem %s1317_s0, %s853_s21  ;;  %1071 = vmatpush3.bf16.msra.mxu0 %v1140_v2  ;;  %1124 = vmatpush3.bf16.msra.mxu1 %v1140_v2  ;;  %s1268_s13 = scalar_lea.vmem %s1320_s3, %s853_s21 }
  0x10   : > { %v1146_v4 = vld [vmem:[%s1215_s24] sm:$0xff]   ;;  %1072 = vmatprep.subr.bf16.mxu0 %v1141_v3  ;;  %1117 = vmatprep.subr.bf16.mxu1 %v1141_v3  ;;  %v1148_v10 = vld [vmem:[%s1215_s24 + $0x8] sm:$0xff]   ;;  %v1150_v12 = vld [vmem:[%s1215_s24 + $0x10] sm:$0xff]  }
  0x11   : > { %v1147_v5 = vld [vmem:[%s1215_s24 + $0x40] sm:$0xff]   ;;  %1082 = vmatprep.mubr.bf16.mxu0 %v1146_v4  ;;  %v1149_v11 = vld [vmem:[%s1215_s24 + $0x48] sm:$0xff]   ;;  %v1151_v13 = vld [vmem:[%s1215_s24 + $0x50] sm:$0xff]  }
  0x12   : > { %1098 = vmatprep.mubr.bf16.mxu1 %v1147_v5  ;;  %v1152_v14 = vld [vmem:[%s1215_s24 + $0x18] sm:$0xff]   ;;  %v1154_v16 = vld [vmem:[%s1215_s24 + $0x20] sm:$0xff]   ;;  %v1156_v18 = vld [vmem:[%s1215_s24 + $0x28] sm:$0xff]  }
  0x13   : > { %1073 = vmatpush3.bf16.msra.mxu0 %v1141_v3  ;;  %1125 = vmatpush3.bf16.msra.mxu1 %v1141_v3  ;;  %v1153_v15 = vld [vmem:[%s1215_s24 + $0x58] sm:$0xff]   ;;  %v1155_v17 = vld [vmem:[%s1215_s24 + $0x60] sm:$0xff]   ;;  %v1157_v19 = vld [vmem:[%s1215_s24 + $0x68] sm:$0xff]  }
  0x14   : > { %1074 = vmatprep.subr.bf16.mxu0 %v1142_v6  ;;  %1118 = vmatprep.subr.bf16.mxu1 %v1142_v6  ;;  %v1158_v20 = vld [vmem:[%s1215_s24 + $0x30] sm:$0xff]   ;;  %v1160_v22 = vld [vmem:[%s1215_s24 + $0x38] sm:$0xff]  }
  0x15   : > { %v1159_v21 = vld [vmem:[%s1215_s24 + $0x70] sm:$0xff]   ;;  %v1161_v23 = vld [vmem:[%s1215_s24 + $0x78] sm:$0xff]  }
  0x17   : > { %1075 = vmatpush3.bf16.msra.mxu0 %v1142_v6  ;;  %1126 = vmatpush3.bf16.msra.mxu1 %v1142_v6 }
  0x18   : > { %1076 = vmatprep.subr.bf16.mxu0 %v1143_v7  ;;  %1119 = vmatprep.subr.bf16.mxu1 %v1143_v7 }
  0x1b   : > { %1077 = vmatpush3.bf16.msra.mxu0 %v1143_v7  ;;  %1127 = vmatpush3.bf16.msra.mxu1 %v1143_v7 }
  0x1c   : > { %1078 = vmatprep.subr.bf16.mxu0 %v1144_v8  ;;  %1120 = vmatprep.subr.bf16.mxu1 %v1144_v8 }
  0x1f   : > { %1079 = vmatpush3.bf16.msra.mxu0 %v1144_v8  ;;  %1128 = vmatpush3.bf16.msra.mxu1 %v1144_v8 }
  0x20   : > { %1080 = vmatprep.subr.bf16.mxu0 %v1145_v9  ;;  %1121 = vmatprep.subr.bf16.mxu1 %v1145_v9 }
  0x23   : > { %1081 = vmatpush3.bf16.msra.mxu0 %v1145_v9  ;;  %1129 = vmatpush3.bf16.msra.mxu1 %v1145_v9 }
  0x26   : > { %1083 = vmatmul.mubr.bf16.vlgmr.msra.gmra.mrb[0].mxu0 %v1148_v10  ;;  %1099 = vmatmul.mubr.bf16.vlgmr.msra.gmra.mrb[0].mxu1 %v1149_v11 }
  0x27   : > { %1086 = vmatprep.mubr.bf16.mxu0 %v1150_v12  ;;  %1102 = vmatprep.mubr.bf16.mxu1 %v1151_v13 }
  0x2e   : > { %1087 = vmatmul.mubr.bf16.gmra.mrb[4].mxu0 %v1152_v14  ;;  %1103 = vmatmul.mubr.bf16.gmra.mrb[4].mxu1 %v1153_v15 }
  0x2f   : > { %1090 = vmatprep.mubr.bf16.mxu0 %v1154_v16  ;;  %1106 = vmatprep.mubr.bf16.mxu1 %v1155_v17 }
  0x36   : > { %1091 = vmatmul.mubr.bf16.gmra.mrb[8].mxu0 %v1156_v18  ;;  %1107 = vmatmul.mubr.bf16.gmra.mrb[8].mxu1 %v1157_v19 }
  0x37   : > { %1094 = vmatprep.mubr.bf16.mxu0 %v1158_v20  ;;  %1110 = vmatprep.mubr.bf16.mxu1 %v1159_v21 }
  0x3e   : > { %1095 = vmatmul.mubr.bf16.gmra.mrb[12].mxu0 %v1160_v22  ;;  %1111 = vmatmul.mubr.bf16.gmra.mrb[12].mxu1 %v1161_v23 }
  0xf9   : > { %v1084_v25 = vpop.f32.mrb[0].mxu0  ;;  %v1100_v26 = vpop.f32.mrb[0].mxu1 }
  0xfa   : > { %v417_v27 = vadd.f32 %v1084_v25, %v1251_v24  ;;  %v481_v28 = vadd.f32 %v1100_v26, %v1251_v24  ;;  %v408_v29 = vpop.f32.mrb[1].mxu0  ;;  %v472_v30 = vpop.f32.mrb[1].mxu1 }
  0xfb   : > { %v409_v31 = vadd.f32 %v1251_v24, %v408_v29  ;;  %v473_v32 = vadd.f32 %v1251_v24, %v472_v30  ;;  %v1085_v33 = vpop.f32.mrb[2].mxu0  ;;  %v1101_v34 = vpop.f32.mrb[2].mxu1 }
  0xfc   : > { %vm537_vm0 = vcmp.ge.f32.partialorder %v417_v27, 0.0  ;;  %v569_v35 = vmul.f32 0.2, %v417_v27  ;;  %vm553_vm1 = vcmp.ge.f32.partialorder %v481_v28, 0.0  ;;  %v585_v36 = vmul.f32 0.2, %v481_v28 }
  0xfd   : > { %vm535_vm2 = vcmp.ge.f32.partialorder %v409_v31, 0.0  ;;  %v567_v37 = vmul.f32 0.2, %v409_v31  ;;  %vm551_vm3 = vcmp.ge.f32.partialorder %v473_v32, 0.0  ;;  %v583_v38 = vmul.f32 0.2, %v473_v32 }
  0xfe   : > { %v420_v39 = vadd.f32 %v1085_v33, %v1251_v24  ;;  %v484_v40 = vadd.f32 %v1101_v34, %v1251_v24  ;;  %v411_v41 = vpop.f32.mrb[3].mxu0  ;;  %v475_v42 = vpop.f32.mrb[3].mxu1  ;;  %v601_v43 = vsel %vm537_vm0, %v417_v27, %v569_v35  ;;  %v617_v44 = vsel %vm553_vm1, %v481_v28, %v585_v36 }
  0xff   : > { %v412_v45 = vadd.f32 %v1251_v24, %v411_v41  ;;  %v476_v46 = vadd.f32 %v1251_v24, %v475_v42  ;;  %v599_v51 = vsel %vm535_vm2, %v409_v31, %v567_v37  ;;  %v615_v52 = vsel %vm551_vm3, %v473_v32, %v583_v38 }
 0x100   : > { %vm538_vm4 = vcmp.ge.f32.partialorder %v420_v39, 0.0  ;;  %v570_v47 = vmul.f32 0.2, %v420_v39  ;;  %vm554_vm5 = vcmp.ge.f32.partialorder %v484_v40, 0.0  ;;  %v586_v48 = vmul.f32 0.2, %v484_v40 }
 0x101   : > { %vm536_vm6 = vcmp.ge.f32.partialorder %v412_v45, 0.0  ;;  %v568_v49 = vmul.f32 0.2, %v412_v45  ;;  %vm552_vm7 = vcmp.ge.f32.partialorder %v476_v46, 0.0  ;;  %v584_v50 = vmul.f32 0.2, %v476_v46 }
 0x102   : > { %v602_v53 = vsel %vm538_vm4, %v420_v39, %v570_v47  ;;  %v618_v54 = vsel %vm554_vm5, %v484_v40, %v586_v48  ;;  %v1088_v55 = vpop.f32.mrb[4].mxu0  ;;  %v1104_v56 = vpop.f32.mrb[4].mxu1 }
 0x103   : > { %v955_v57 = vpack.c.bf16 %v602_v53, %v601_v43  ;;  %v995_v58 = vpack.c.bf16 %v618_v54, %v617_v44  ;;  %v600_v59 = vsel %vm536_vm6, %v412_v45, %v568_v49  ;;  %v616_v60 = vsel %vm552_vm7, %v476_v46, %v584_v50  ;;  %v424_v61 = vpop.f32.mrb[5].mxu0  ;;  %v488_v62 = vpop.f32.mrb[5].mxu1 }
 0x104   : > { %v950_v63 = vpack.c.bf16 %v600_v59, %v599_v51  ;;  %v990_v0 = vpack.c.bf16 %v616_v60, %v615_v52  ;;  %v433_v1 = vadd.f32 %v1088_v55, %v1251_v24  ;;  %v497_v2 = vadd.f32 %v1104_v56, %v1251_v24  ;;  %v1089_v3 = vpop.f32.mrb[6].mxu0  ;;  %v1105_v4 = vpop.f32.mrb[6].mxu1 }
 0x105   : > { %1027 = vst [vmem:[%s1268_s13 + $0x8] sm:$0xff] %v955_v57   ;;  %1035 = vst [vmem:[%s1268_s13 + $0x48] sm:$0xff] %v995_v58   ;;  %v425_v5 = vadd.f32 %v1251_v24, %v424_v61  ;;  %v489_v6 = vadd.f32 %v1251_v24, %v488_v62  ;;  %v436_v7 = vadd.f32 %v1089_v3, %v1251_v24  ;;  %v427_v9 = vpop.f32.mrb[7].mxu0  ;;  %v491_v10 = vpop.f32.mrb[7].mxu1 }
 0x106   : > { %v500_v8 = vadd.f32 %v1105_v4, %v1251_v24  ;;  %951 = vst [vmem:[%s1268_s13] sm:$0xff] %v950_v63   ;;  %1034 = vst [vmem:[%s1268_s13 + $0x40] sm:$0xff] %v990_v0   ;;  %vm541_vm8 = vcmp.ge.f32.partialorder %v433_v1, 0.0  ;;  %v573_v11 = vmul.f32 0.2, %v433_v1  ;;  %vm557_vm9 = vcmp.ge.f32.partialorder %v497_v2, 0.0 }
 0x107   : > { %v589_v12 = vmul.f32 0.2, %v497_v2  ;;  %vm539_vm10 = vcmp.ge.f32.partialorder %v425_v5, 0.0  ;;  %v571_v13 = vmul.f32 0.2, %v425_v5  ;;  %vm555_vm11 = vcmp.ge.f32.partialorder %v489_v6, 0.0 }
 0x108   : > { %v605_v14 = vsel %vm541_vm8, %v433_v1, %v573_v11  ;;  %v587_v15 = vmul.f32 0.2, %v489_v6  ;;  %vm542_vm12 = vcmp.ge.f32.partialorder %v436_v7, 0.0  ;;  %v574_v16 = vmul.f32 0.2, %v436_v7 }
 0x109   : > { %v621_v17 = vsel %vm557_vm9, %v497_v2, %v589_v12  ;;  %v603_v18 = vsel %vm539_vm10, %v425_v5, %v571_v13  ;;  %vm558_vm13 = vcmp.ge.f32.partialorder %v500_v8, 0.0  ;;  %v590_v19 = vmul.f32 0.2, %v500_v8  ;;  %v1092_v20 = vpop.f32.mrb[8].mxu0  ;;  %v1108_v21 = vpop.f32.mrb[8].mxu1 }
 0x10a   : > { %v606_v22 = vsel %vm542_vm12, %v436_v7, %v574_v16  ;;  %v428_v23 = vadd.f32 %v1251_v24, %v427_v9  ;;  %v492_v25 = vadd.f32 %v1251_v24, %v491_v10  ;;  %v449_v26 = vadd.f32 %v1092_v20, %v1251_v24  ;;  %v440_v27 = vpop.f32.mrb[9].mxu0  ;;  %v504_v28 = vpop.f32.mrb[9].mxu1 }
 0x10b   : > { %v965_v29 = vpack.c.bf16 %v606_v22, %v605_v14  ;;  %v622_v30 = vsel %vm558_vm13, %v500_v8, %v590_v19  ;;  %v513_v31 = vadd.f32 %v1108_v21, %v1251_v24  ;;  %v441_v32 = vadd.f32 %v1251_v24, %v440_v27  ;;  %v1093_v33 = vpop.f32.mrb[10].mxu0  ;;  %v1109_v34 = vpop.f32.mrb[10].mxu1 }
 0x10c   : > { %v1005_v35 = vpack.c.bf16 %v622_v30, %v621_v17  ;;  %vm540_vm14 = vcmp.ge.f32.partialorder %v428_v23, 0.0  ;;  %v572_v36 = vmul.f32 0.2, %v428_v23  ;;  %vm556_vm15 = vcmp.ge.f32.partialorder %v492_v25, 0.0  ;;  %v443_v37 = vpop.f32.mrb[11].mxu0  ;;  %v507_v38 = vpop.f32.mrb[11].mxu1 }
 0x10d   : > { %1029 = vst [vmem:[%s1268_s13 + $0x18] sm:$0xff] %v965_v29   ;;  %v588_v39 = vmul.f32 0.2, %v492_v25  ;;  %vm545_vm0 = vcmp.ge.f32.partialorder %v449_v26, 0.0  ;;  %v577_v40 = vmul.f32 0.2, %v449_v26  ;;  %v619_v41 = vsel %vm555_vm11, %v489_v6, %v587_v15 }
 0x10e   : > { %vm561_vm1 = vcmp.ge.f32.partialorder %v513_v31, 0.0  ;;  %1037 = vst [vmem:[%s1268_s13 + $0x58] sm:$0xff] %v1005_v35   ;;  %v604_v42 = vsel %vm540_vm14, %v428_v23, %v572_v36  ;;  %v593_v43 = vmul.f32 0.2, %v513_v31  ;;  %vm543_vm2 = vcmp.ge.f32.partialorder %v441_v32, 0.0 }
 0x10f   : > { %v960_v44 = vpack.c.bf16 %v604_v42, %v603_v18  ;;  %v620_v45 = vsel %vm556_vm15, %v492_v25, %v588_v39  ;;  %v575_v46 = vmul.f32 0.2, %v441_v32  ;;  %v505_v47 = vadd.f32 %v1251_v24, %v504_v28 }
 0x110   : > { %v1000_v48 = vpack.c.bf16 %v620_v45, %v619_v41  ;;  %v609_v49 = vsel %vm545_vm0, %v449_v26, %v577_v40  ;;  %v625_v50 = vsel %vm561_vm1, %v513_v31, %v593_v43  ;;  %v452_v51 = vadd.f32 %v1093_v33, %v1251_v24 }
 0x111   : > { %1028 = vst [vmem:[%s1268_s13 + $0x10] sm:$0xff] %v960_v44   ;;  %vm559_vm3 = vcmp.ge.f32.partialorder %v505_v47, 0.0  ;;  %v591_v52 = vmul.f32 0.2, %v505_v47  ;;  %v516_v53 = vadd.f32 %v1109_v34, %v1251_v24  ;;  %v444_v54 = vadd.f32 %v1251_v24, %v443_v37  ;;  %v1096_v55 = vpop.f32.mrb[12].mxu0  ;;  %v1112_v56 = vpop.f32.mrb[12].mxu1 }
 0x112   : > { %1036 = vst [vmem:[%s1268_s13 + $0x50] sm:$0xff] %v1000_v48   ;;  %vm546_vm4 = vcmp.ge.f32.partialorder %v452_v51, 0.0  ;;  %v578_v57 = vmul.f32 0.2, %v452_v51  ;;  %v508_v58 = vadd.f32 %v1251_v24, %v507_v38  ;;  %v465_v59 = vadd.f32 %v1096_v55, %v1251_v24  ;;  %v456_v60 = vpop.f32.mrb[13].mxu0  ;;  %v520_v61 = vpop.f32.mrb[13].mxu1 }
 0x113   : > { %v607_v62 = vsel %vm543_vm2, %v441_v32, %v575_v46  ;;  %vm562_vm5 = vcmp.ge.f32.partialorder %v516_v53, 0.0  ;;  %v594_v63 = vmul.f32 0.2, %v516_v53  ;;  %vm544_vm6 = vcmp.ge.f32.partialorder %v444_v54, 0.0  ;;  %v1097_v0 = vpop.f32.mrb[14].mxu0  ;;  %v1113_v1 = vpop.f32.mrb[14].mxu1 }
 0x114   : > { %v610_v2 = vsel %vm546_vm4, %v452_v51, %v578_v57  ;;  %v576_v3 = vmul.f32 0.2, %v444_v54  ;;  %vm560_vm7 = vcmp.ge.f32.partialorder %v508_v58, 0.0  ;;  %v592_v4 = vmul.f32 0.2, %v508_v58  ;;  %v459_v5 = vpop.f32.mrb[15].mxu0 }
 0x115   : > { %v623_v6 = vsel %vm559_vm3, %v505_v47, %v591_v52  ;;  %v975_v7 = vpack.c.bf16 %v610_v2, %v609_v49  ;;  %v626_v8 = vsel %vm562_vm5, %v516_v53, %v594_v63  ;;  %v581_v9 = vmul.f32 0.2, %v465_v59  ;;  %v523_v10 = vpop.f32.mrb[15].mxu1 }
 0x116   : > { %v1015_v11 = vpack.c.bf16 %v626_v8, %v625_v50  ;;  %v608_v12 = vsel %vm544_vm6, %v444_v54, %v576_v3  ;;  %v624_v13 = vsel %vm560_vm7, %v508_v58, %v592_v4  ;;  %v529_v14 = vadd.f32 %v1112_v56, %v1251_v24 }
 0x117   : > { %1031 = vst [vmem:[%s1268_s13 + $0x28] sm:$0xff] %v975_v7   ;;  %v970_v15 = vpack.c.bf16 %v608_v12, %v607_v62  ;;  %v1010_v16 = vpack.c.bf16 %v624_v13, %v623_v6  ;;  %vm549_vm8 = vcmp.ge.f32.partialorder %v465_v59, 0.0  ;;  %v457_v17 = vadd.f32 %v1251_v24, %v456_v60 }
 0x118   : > { %1039 = vst [vmem:[%s1268_s13 + $0x68] sm:$0xff] %v1015_v11   ;;  %vm565_vm9 = vcmp.ge.f32.partialorder %v529_v14, 0.0  ;;  %v597_v18 = vmul.f32 0.2, %v529_v14  ;;  %v521_v19 = vadd.f32 %v1251_v24, %v520_v61  ;;  %v468_v20 = vadd.f32 %v1097_v0, %v1251_v24 }
 0x119   : > { %1030 = vst [vmem:[%s1268_s13 + $0x20] sm:$0xff] %v970_v15   ;;  %1038 = vst [vmem:[%s1268_s13 + $0x60] sm:$0xff] %v1010_v16   ;;  %v579_v21 = vmul.f32 0.2, %v457_v17  ;;  %v532_v22 = vadd.f32 %v1113_v1, %v1251_v24  ;;  %v460_v23 = vadd.f32 %v1251_v24, %v459_v5  ;;  %v613_v25 = vsel %vm549_vm8, %v465_v59, %v581_v9 }
 0x11a   : > { %vm547_vm10 = vcmp.ge.f32.partialorder %v457_v17, 0.0  ;;  %vm550_vm11 = vcmp.ge.f32.partialorder %v468_v20, 0.0  ;;  %v629_v26 = vsel %vm565_vm9, %v529_v14, %v597_v18  ;;  %v582_v27 = vmul.f32 0.2, %v468_v20 }
 0x11b   : > { %vm566_vm12 = vcmp.ge.f32.partialorder %v532_v22, 0.0  ;;  %v598_v28 = vmul.f32 0.2, %v532_v22  ;;  %vm563_vm13 = vcmp.ge.f32.partialorder %v521_v19, 0.0  ;;  %vm548_vm14 = vcmp.ge.f32.partialorder %v460_v23, 0.0 }
 0x11c   : > { %v580_v29 = vmul.f32 0.2, %v460_v23  ;;  %v524_v30 = vadd.f32 %v1251_v24, %v523_v10  ;;  %v611_v31 = vsel %vm547_vm10, %v457_v17, %v579_v21  ;;  %v595_v32 = vmul.f32 0.2, %v521_v19 }
 0x11d   : > { %v614_v33 = vsel %vm550_vm11, %v468_v20, %v582_v27  ;;  %v630_v34 = vsel %vm566_vm12, %v532_v22, %v598_v28 }
 0x11e   : > { %v985_v35 = vpack.c.bf16 %v614_v33, %v613_v25  ;;  %v1025_v36 = vpack.c.bf16 %v630_v34, %v629_v26  ;;  %v612_v37 = vsel %vm548_vm14, %v460_v23, %v580_v29  ;;  %vm564_vm15 = vcmp.ge.f32.partialorder %v524_v30, 0.0 }
 0x11f   : > { %v980_v38 = vpack.c.bf16 %v612_v37, %v611_v31  ;;  %v596_v39 = vmul.f32 0.2, %v524_v30  ;;  %v627_v40 = vsel %vm563_vm13, %v521_v19, %v595_v32 }
 0x120   : > { %1033 = vst [vmem:[%s1268_s13 + $0x38] sm:$0xff] %v985_v35   ;;  %1041 = vst [vmem:[%s1268_s13 + $0x78] sm:$0xff] %v1025_v36  }
 0x121   : > { %1032 = vst [vmem:[%s1268_s13 + $0x30] sm:$0xff] %v980_v38   ;;  %v628_v41 = vsel %vm564_vm15, %v524_v30, %v596_v39 }
 0x122   : > { %v1020_v42 = vpack.c.bf16 %v628_v41, %v627_v40 }
 0x124   : > { %1040 = vst [vmem:[%s1268_s13 + $0x70] sm:$0xff] %v1020_v42  }
 0x125 PF: > { %s13_s12 = sadd.s32 1, %s1168_s12  }
 0x126   : > { %p10_p4 = scmp.ge.s32.totalorder %s13_s12, 4  }
 0x128   :  { %12 = sbr.rel (!%p10_p4) target bundleno = 1 (0x1), region = 62 }

// kernel: unet_forward.33
= control target key start
LH: loop header
LB: loop body
LE: loop exit
PB: predicated region body
PF: predicated region fallthrough
CT: control target
= control target key end

     0   :  { %s1427_s12 = smov 0   ;;  %s1585_s0 = inlined_call_operand.vmem [shape: bf16[512,256], index: 0, kind: input, shape index: {}]   ;;  %s1586_s1 = inlined_call_operand.vmem [shape: bf16[256,128], index: 1, kind: input, shape index: {}]   ;;  %s1587_s2 = inlined_call_operand.vmem [shape: f32[1,128], index: 2, kind: input, shape index: {}]   ;;  %s1588_s3 = inlined_call_operand.vmem [shape: bf16[512,128], index: 3, kind: output, shape index: {}]  }
   0x1 LB: > { %s978_s13 = sadd.s32 4294967295, %s1405_s12   ;;  %p982_p0 = scmp.ge.s32.totalorder %s1405_s12, 1  ;;  %s1405_s12 = sphi %s1427_s12, %s13_s12  }
   0x2   : > { %p139_p1 = scmp.lt.s32.totalorder %s1405_s12, 3 }
   0x4   : > { %p140_p2 = pnand %p982_p0, %p139_p1 }
   0x5   : > { %v1335_v0 = vld [vmem:[%s1586_s1 + $0x40] sm:$0xff] (!%p140_p2)   ;;  %s983_s16 = sshll.u32 (!%p140_p2), %s978_s13, 5  ;;  %v1337_v2 = vld [vmem:[%s1586_s1 + $0x48] sm:$0xff] (!%p140_p2)   ;;  %v1339_v4 = vld [vmem:[%s1586_s1 + $0x50] sm:$0xff] (!%p140_p2)  }
   0x6   : > { %143 = sbr.rel (%p140_p2) target bundleno = 320 (0x140), region = 32  ;;  %v1336_v1 = vld [vmem:[%s1586_s1] sm:$0xff] (!%p140_p2)   ;;  %1199 = vmatprep.subr.bf16.mxu0 (!%p140_p2), %v1335_v0  ;;  %1311 = vmatprep.subr.bf16.mxu1 (!%p140_p2), %v1335_v0  ;;  %v1338_v3 = vld [vmem:[%s1586_s1 + $0x8] sm:$0xff] (!%p140_p2)   ;;  %p165_p3 = scmp.lt.s32.totalorder (!%p140_p2), %s983_s16, 63  ;;  %v1340_v5 = vld [vmem:[%s1586_s1 + $0x10] sm:$0xff] (!%p140_p2)  }
   0x7   : > { %1200 = vmatpush3.bf16.msra.mxu0 (!%p140_p2), %v1336_v1  ;;  %1319 = vmatpush3.bf16.msra.mxu1 (!%p140_p2), %v1336_v1  ;;  %v1341_v6 = vld [vmem:[%s1586_s1 + $0x58] sm:$0xff] (!%p140_p2)   ;;  %v1343_v8 = vld [vmem:[%s1586_s1 + $0x60] sm:$0xff] (!%p140_p2)   ;;  %v1345_v10 = vld [vmem:[%s1586_s1 + $0x68] sm:$0xff] (!%p140_p2)  }
   0x8   : > { %1201 = vmatprep.subr.bf16.mxu0 (!%p140_p2), %v1337_v2  ;;  %1312 = vmatprep.subr.bf16.mxu1 (!%p140_p2), %v1337_v2  ;;  %v1342_v7 = vld [vmem:[%s1586_s1 + $0x18] sm:$0xff] (!%p140_p2)   ;;  %v1344_v9 = vld [vmem:[%s1586_s1 + $0x20] sm:$0xff] (!%p140_p2)   ;;  %v1346_v13 = vld [vmem:[%s1586_s1 + $0x28] sm:$0xff] (!%p140_p2)  }
   0x9   : > { %v1347_v14 = vld [vmem:[%s1586_s1 + $0x70] sm:$0xff] (!%p140_p2)   ;;  %v1349_v16 = vld [vmem:[%s1586_s1 + $0x78] sm:$0xff] (!%p140_p2)   ;;  %v1526_v50 = vld [vmem:[%s1587_s2] ss:$0 sm:$0xff] (!%p140_p2) }
   0xa   : > { %v1348_v15 = vld [vmem:[%s1586_s1 + $0x30] sm:$0xff] (!%p140_p2)   ;;  %v1350_v17 = vld [vmem:[%s1586_s1 + $0x38] sm:$0xff] (!%p140_p2)  }
   0xb   : > { %1202 = vmatpush3.bf16.msra.mxu0 (!%p140_p2), %v1338_v3  ;;  %1320 = vmatpush3.bf16.msra.mxu1 (!%p140_p2), %v1338_v3 }
   0xc   : > { %1203 = vmatprep.subr.bf16.mxu0 (!%p140_p2), %v1339_v4  ;;  %1313 = vmatprep.subr.bf16.mxu1 (!%p140_p2), %v1339_v4 }
   0xd   : > { %s1590_s16 = smov (!%p165_p3, %s983_s16), 63 }
   0xe   : > { %s1071_s4 = sshll.u32 %s1590_s16, 3  ;;  %s987_s28 = sshll.u32 %s1590_s16, 2 }
   0xf   : > { %1204 = vmatpush3.bf16.msra.mxu0 %v1340_v5  ;;  %1321 = vmatpush3.bf16.msra.mxu1 %v1340_v5  ;;  %s1468_s9 = scalar_lea.vmem %s1585_s0, %s1071_s4  ;;  %s1536_s4 = scalar_lea.vmem %s1588_s3, %s987_s28 }
  0x10   : > { %1205 = vmatprep.subr.bf16.mxu0 %v1341_v6  ;;  %1314 = vmatprep.subr.bf16.mxu1 %v1341_v6  ;;  %v1353_v11 = vld [vmem:[%s1468_s9 + $0x4] ss:$8 sps:$4 sm:$0xff]   ;;  %v1351_v18 = vld [vmem:[%s1468_s9] ss:$8 sps:$4 sm:$0xff]   ;;  %v1357_v20 = vld [vmem:[%s1468_s9 + $0x14] ss:$8 sps:$4 sm:$0xff]  }
  0x11   : > { %v1356_v12 = vld [vmem:[%s1468_s9 + $0x84] ss:$8 sps:$4 sm:$0xff]   ;;  %537 = vmatprep.mubr.bf16.mxu0 %v1353_v11  ;;  %v1354_v19 = vld [vmem:[%s1468_s9 + $0x80] ss:$8 sps:$4 sm:$0xff]   ;;  %v1359_v21 = vld [vmem:[%s1468_s9 + $0x94] ss:$8 sps:$4 sm:$0xff]  }
  0x12   : > { %601 = vmatprep.mubr.bf16.mxu1 %v1356_v12  ;;  %v1361_v22 = vld [vmem:[%s1468_s9 + $0x10] ss:$8 sps:$4 sm:$0xff]   ;;  %v1363_v24 = vld [vmem:[%s1468_s9 + $0x24] ss:$8 sps:$4 sm:$0xff]   ;;  %v1367_v26 = vld [vmem:[%s1468_s9 + $0x20] ss:$8 sps:$4 sm:$0xff]  }
  0x13   : > { %1206 = vmatpush3.bf16.msra.mxu0 %v1342_v7  ;;  %1322 = vmatpush3.bf16.msra.mxu1 %v1342_v7  ;;  %v1362_v23 = vld [vmem:[%s1468_s9 + $0x90] ss:$8 sps:$4 sm:$0xff]   ;;  %v1365_v25 = vld [vmem:[%s1468_s9 + $0xa4] ss:$8 sps:$4 sm:$0xff]   ;;  %v1368_v27 = vld [vmem:[%s1468_s9 + $0xa0] ss:$8 sps:$4 sm:$0xff]  }
  0x14   : > { %1207 = vmatprep.subr.bf16.mxu0 %v1343_v8  ;;  %1315 = vmatprep.subr.bf16.mxu1 %v1343_v8  ;;  %v1369_v28 = vld [vmem:[%s1468_s9 + $0x34] ss:$8 sps:$4 sm:$0xff]   ;;  %v1373_v30 = vld [vmem:[%s1468_s9 + $0x30] ss:$8 sps:$4 sm:$0xff]   ;;  %v1375_v32 = vld [vmem:[%s1468_s9 + $0x44] ss:$8 sps:$4 sm:$0xff]  }
  0x15   : > { %v1371_v29 = vld [vmem:[%s1468_s9 + $0xb4] ss:$8 sps:$4 sm:$0xff]   ;;  %v1374_v31 = vld [vmem:[%s1468_s9 + $0xb0] ss:$8 sps:$4 sm:$0xff]   ;;  %v1377_v33 = vld [vmem:[%s1468_s9 + $0xc4] ss:$8 sps:$4 sm:$0xff]  }
  0x16   : > { %v1379_v34 = vld [vmem:[%s1468_s9 + $0x40] ss:$8 sps:$4 sm:$0xff]   ;;  %v1381_v36 = vld [vmem:[%s1468_s9 + $0x54] ss:$8 sps:$4 sm:$0xff]   ;;  %v1385_v38 = vld [vmem:[%s1468_s9 + $0x50] ss:$8 sps:$4 sm:$0xff]  }
  0x17   : > { %1208 = vmatpush3.bf16.msra.mxu0 %v1344_v9  ;;  %1323 = vmatpush3.bf16.msra.mxu1 %v1344_v9  ;;  %v1380_v35 = vld [vmem:[%s1468_s9 + $0xc0] ss:$8 sps:$4 sm:$0xff]   ;;  %v1383_v37 = vld [vmem:[%s1468_s9 + $0xd4] ss:$8 sps:$4 sm:$0xff]   ;;  %v1386_v39 = vld [vmem:[%s1468_s9 + $0xd0] ss:$8 sps:$4 sm:$0xff]  }
  0x18   : > { %1209 = vmatprep.subr.bf16.mxu0 %v1345_v10  ;;  %1316 = vmatprep.subr.bf16.mxu1 %v1345_v10  ;;  %v1387_v40 = vld [vmem:[%s1468_s9 + $0x64] ss:$8 sps:$4 sm:$0xff]   ;;  %v1391_v42 = vld [vmem:[%s1468_s9 + $0x60] ss:$8 sps:$4 sm:$0xff]   ;;  %v1393_v44 = vld [vmem:[%s1468_s9 + $0x74] ss:$8 sps:$4 sm:$0xff]  }
  0x19   : > { %v1389_v41 = vld [vmem:[%s1468_s9 + $0xe4] ss:$8 sps:$4 sm:$0xff]   ;;  %v1392_v43 = vld [vmem:[%s1468_s9 + $0xe0] ss:$8 sps:$4 sm:$0xff]   ;;  %v1395_v45 = vld [vmem:[%s1468_s9 + $0xf4] ss:$8 sps:$4 sm:$0xff]  }
  0x1a   : > { %v1397_v46 = vld [vmem:[%s1468_s9 + $0x70] ss:$8 sps:$4 sm:$0xff]  }
  0x1b   : > { %1210 = vmatpush3.bf16.msra.mxu0 %v1346_v13  ;;  %1324 = vmatpush3.bf16.msra.mxu1 %v1346_v13  ;;  %v1398_v47 = vld [vmem:[%s1468_s9 + $0xf0] ss:$8 sps:$4 sm:$0xff]  }
  0x1c   : > { %1211 = vmatprep.subr.bf16.mxu0 %v1347_v14  ;;  %1317 = vmatprep.subr.bf16.mxu1 %v1347_v14 }
  0x1f   : > { %1212 = vmatpush3.bf16.msra.mxu0 %v1348_v15  ;;  %1325 = vmatpush3.bf16.msra.mxu1 %v1348_v15 }
  0x20   : > { %1213 = vmatprep.subr.bf16.mxu0 %v1349_v16  ;;  %1318 = vmatprep.subr.bf16.mxu1 %v1349_v16 }
  0x23   : > { %1214 = vmatpush3.bf16.msra.mxu0 %v1350_v17  ;;  %1326 = vmatpush3.bf16.msra.mxu1 %v1350_v17 }
  0x26   : > { %538 = vmatmul.mubr.bf16.vlgmr.msra.gmra.mrb[0].mxu0 %v1351_v18  ;;  %602 = vmatmul.mubr.bf16.vlgmr.msra.gmra.mrb[0].mxu1 %v1354_v19 }
  0x27   : > { %545 = vmatprep.mubr.bf16.mxu0 %v1357_v20  ;;  %609 = vmatprep.mubr.bf16.mxu1 %v1359_v21 }
  0x2e   : > { %546 = vmatmul.mubr.bf16.gmra.mrb[4].mxu0 %v1361_v22  ;;  %610 = vmatmul.mubr.bf16.gmra.mrb[4].mxu1 %v1362_v23 }
  0x2f   : > { %553 = vmatprep.mubr.bf16.mxu0 %v1363_v24  ;;  %617 = vmatprep.mubr.bf16.mxu1 %v1365_v25 }
  0x36   : > { %554 = vmatmul.mubr.bf16.gmra.mrb[8].mxu0 %v1367_v26  ;;  %618 = vmatmul.mubr.bf16.gmra.mrb[8].mxu1 %v1368_v27 }
  0x37   : > { %561 = vmatprep.mubr.bf16.mxu0 %v1369_v28  ;;  %625 = vmatprep.mubr.bf16.mxu1 %v1371_v29 }
  0x3e   : > { %562 = vmatmul.mubr.bf16.gmra.mrb[12].mxu0 %v1373_v30  ;;  %626 = vmatmul.mubr.bf16.gmra.mrb[12].mxu1 %v1374_v31 }
  0x3f   : > { %569 = vmatprep.mubr.bf16.mxu0 %v1375_v32  ;;  %633 = vmatprep.mubr.bf16.mxu1 %v1377_v33 }
  0x46   : > { %570 = vmatmul.mubr.bf16.gmra.mrb[16].mxu0 %v1379_v34  ;;  %634 = vmatmul.mubr.bf16.gmra.mrb[16].mxu1 %v1380_v35 }
  0x47   : > { %577 = vmatprep.mubr.bf16.mxu0 %v1381_v36  ;;  %641 = vmatprep.mubr.bf16.mxu1 %v1383_v37 }
  0x4e   : > { %578 = vmatmul.mubr.bf16.gmra.mrb[20].mxu0 %v1385_v38  ;;  %642 = vmatmul.mubr.bf16.gmra.mrb[20].mxu1 %v1386_v39 }
  0x4f   : > { %585 = vmatprep.mubr.bf16.mxu0 %v1387_v40  ;;  %649 = vmatprep.mubr.bf16.mxu1 %v1389_v41 }
  0x56   : > { %586 = vmatmul.mubr.bf16.gmra.mrb[24].mxu0 %v1391_v42  ;;  %650 = vmatmul.mubr.bf16.gmra.mrb[24].mxu1 %v1392_v43 }
  0x57   : > { %593 = vmatprep.mubr.bf16.mxu0 %v1393_v44  ;;  %657 = vmatprep.mubr.bf16.mxu1 %v1395_v45 }
  0x5e   : > { %594 = vmatmul.mubr.bf16.gmra.mrb[28].mxu0 %v1397_v46  ;;  %658 = vmatmul.mubr.bf16.gmra.mrb[28].mxu1 %v1398_v47 }
  0xf9   : > { %v1215_v48 = vpop.f32.mrb[0].mxu0  ;;  %v1263_v49 = vpop.f32.mrb[0].mxu1 }
  0xfa   : > { %v1216_v51 = vpop.f32.mrb[1].mxu0  ;;  %v1264_v52 = vpop.f32.mrb[1].mxu1 }
  0xfb   : > { %v1217_v53 = vadd.f32 %v1216_v51, %v1215_v48  ;;  %v1265_v54 = vadd.f32 %v1264_v52, %v1263_v49  ;;  %v1218_v55 = vpop.f32.mrb[2].mxu0  ;;  %v1266_v56 = vpop.f32.mrb[2].mxu1 }
  0xfc   : > { %v1219_v57 = vpop.f32.mrb[3].mxu0  ;;  %v1267_v58 = vpop.f32.mrb[3].mxu1 }
  0xfd   : > { %v540_v59 = vadd.f32 %v1217_v53, %v1526_v50  ;;  %v604_v60 = vadd.f32 %v1265_v54, %v1526_v50  ;;  %v1220_v61 = vadd.f32 %v1219_v57, %v1218_v55  ;;  %v1268_v62 = vadd.f32 %v1267_v58, %v1266_v56 }
  0xff   : > { %v698_v63 = vmul.f32 0.2, %v540_v59  ;;  %v714_v0 = vmul.f32 0.2, %v604_v60  ;;  %vm666_vm0 = vcmp.ge.f32.partialorder %v540_v59, 0.0  ;;  %vm682_vm1 = vcmp.ge.f32.partialorder %v604_v60, 0.0 }
 0x100   : > { %v543_v1 = vadd.f32 %v1220_v61, %v1526_v50  ;;  %v607_v2 = vadd.f32 %v1268_v62, %v1526_v50 }
 0x101   : > { %v1221_v3 = vpop.f32.mrb[4].mxu0  ;;  %v1269_v4 = vpop.f32.mrb[4].mxu1  ;;  %v730_v7 = vsel %vm666_vm0, %v540_v59, %v698_v63  ;;  %v746_v8 = vsel %vm682_vm1, %v604_v60, %v714_v0 }
 0x102   : > { %vm667_vm2 = vcmp.ge.f32.partialorder %v543_v1, 0.0  ;;  %v699_v5 = vmul.f32 0.2, %v543_v1  ;;  %vm683_vm3 = vcmp.ge.f32.partialorder %v607_v2, 0.0  ;;  %v715_v6 = vmul.f32 0.2, %v607_v2 }
 0x103   : > { %v1222_v9 = vpop.f32.mrb[5].mxu0  ;;  %v1270_v10 = vpop.f32.mrb[5].mxu1 }
 0x104   : > { %v731_v11 = vsel %vm667_vm2, %v543_v1, %v699_v5  ;;  %v747_v12 = vsel %vm683_vm3, %v607_v2, %v715_v6  ;;  %v1223_v13 = vadd.f32 %v1222_v9, %v1221_v3  ;;  %v1271_v14 = vadd.f32 %v1270_v10, %v1269_v4  ;;  %v1224_v15 = vpop.f32.mrb[6].mxu0  ;;  %v1272_v16 = vpop.f32.mrb[6].mxu1 }
 0x105   : > { %v1107_v17 = vpack.c.bf16 %v731_v11, %v730_v7  ;;  %v1147_v18 = vpack.c.bf16 %v747_v12, %v746_v8  ;;  %v1225_v19 = vpop.f32.mrb[7].mxu0  ;;  %v1273_v20 = vpop.f32.mrb[7].mxu1 }
 0x106   : > { %v548_v21 = vadd.f32 %v1223_v13, %v1526_v50  ;;  %v612_v22 = vadd.f32 %v1271_v14, %v1526_v50  ;;  %v1226_v23 = vadd.f32 %v1225_v19, %v1224_v15  ;;  %v1274_v24 = vadd.f32 %v1273_v20, %v1272_v16 }
 0x107   : > { %1108 = vst [vmem:[%s1536_s4] sm:$0xff] %v1107_v17   ;;  %1191 = vst [vmem:[%s1536_s4 + $0x40] sm:$0xff] %v1147_v18  }
 0x108   : > { %v700_v25 = vmul.f32 0.2, %v548_v21  ;;  %v716_v26 = vmul.f32 0.2, %v612_v22  ;;  %v551_v27 = vadd.f32 %v1226_v23, %v1526_v50  ;;  %v615_v28 = vadd.f32 %v1274_v24, %v1526_v50 }
 0x109   : > { %v1227_v29 = vpop.f32.mrb[8].mxu0  ;;  %v1275_v30 = vpop.f32.mrb[8].mxu1  ;;  %vm668_vm4 = vcmp.ge.f32.partialorder %v548_v21, 0.0  ;;  %vm684_vm5 = vcmp.ge.f32.partialorder %v612_v22, 0.0 }
 0x10a   : > { %v1228_v31 = vpop.f32.mrb[9].mxu0  ;;  %v1276_v32 = vpop.f32.mrb[9].mxu1  ;;  %vm669_vm6 = vcmp.ge.f32.partialorder %v551_v27, 0.0  ;;  %v701_v33 = vmul.f32 0.2, %v551_v27  ;;  %vm685_vm7 = vcmp.ge.f32.partialorder %v615_v28, 0.0  ;;  %v732_v39 = vsel %vm668_vm4, %v548_v21, %v700_v25 }
 0x10b   : > { %v717_v34 = vmul.f32 0.2, %v615_v28  ;;  %v1229_v35 = vadd.f32 %v1228_v31, %v1227_v29  ;;  %v1277_v36 = vadd.f32 %v1276_v32, %v1275_v30  ;;  %v1230_v37 = vpop.f32.mrb[10].mxu0  ;;  %v1278_v38 = vpop.f32.mrb[10].mxu1  ;;  %v748_v40 = vsel %vm684_vm5, %v612_v22, %v716_v26 }
 0x10c   : > { %v733_v41 = vsel %vm669_vm6, %v551_v27, %v701_v33  ;;  %v1231_v43 = vpop.f32.mrb[11].mxu0  ;;  %v1279_v44 = vpop.f32.mrb[11].mxu1 }
 0x10d   : > { %v749_v42 = vsel %vm685_vm7, %v615_v28, %v717_v34  ;;  %v1112_v45 = vpack.c.bf16 %v733_v41, %v732_v39  ;;  %v556_v47 = vadd.f32 %v1229_v35, %v1526_v50  ;;  %v620_v48 = vadd.f32 %v1277_v36, %v1526_v50 }
 0x10e   : > { %v1152_v46 = vpack.c.bf16 %v749_v42, %v748_v40  ;;  %v1232_v49 = vadd.f32 %v1231_v43, %v1230_v37  ;;  %v1280_v51 = vadd.f32 %v1279_v44, %v1278_v38 }
 0x10f   : > { %1184 = vst [vmem:[%s1536_s4 + $0x8] sm:$0xff] %v1112_v45   ;;  %v702_v52 = vmul.f32 0.2, %v556_v47  ;;  %v718_v53 = vmul.f32 0.2, %v620_v48  ;;  %vm670_vm8 = vcmp.ge.f32.partialorder %v556_v47, 0.0 }
 0x110   : > { %1192 = vst [vmem:[%s1536_s4 + $0x48] sm:$0xff] %v1152_v46   ;;  %v559_v54 = vadd.f32 %v1232_v49, %v1526_v50  ;;  %v623_v55 = vadd.f32 %v1280_v51, %v1526_v50  ;;  %vm686_vm9 = vcmp.ge.f32.partialorder %v620_v48, 0.0 }
 0x111   : > { %v1233_v56 = vpop.f32.mrb[12].mxu0  ;;  %v1281_v57 = vpop.f32.mrb[12].mxu1  ;;  %v734_v2 = vsel %vm670_vm8, %v556_v47, %v702_v52  ;;  %v750_v3 = vsel %vm686_vm9, %v620_v48, %v718_v53 }
 0x112   : > { %v1234_v58 = vpop.f32.mrb[13].mxu0  ;;  %v1282_v59 = vpop.f32.mrb[13].mxu1  ;;  %vm671_vm10 = vcmp.ge.f32.partialorder %v559_v54, 0.0  ;;  %v703_v60 = vmul.f32 0.2, %v559_v54  ;;  %vm687_vm11 = vcmp.ge.f32.partialorder %v623_v55, 0.0 }
 0x113   : > { %v719_v61 = vmul.f32 0.2, %v623_v55  ;;  %v1235_v62 = vadd.f32 %v1234_v58, %v1233_v56  ;;  %v1283_v63 = vadd.f32 %v1282_v59, %v1281_v57  ;;  %v1236_v0 = vpop.f32.mrb[14].mxu0  ;;  %v1284_v1 = vpop.f32.mrb[14].mxu1 }
 0x114   : > { %v735_v4 = vsel %vm671_vm10, %v559_v54, %v703_v60  ;;  %v1237_v6 = vpop.f32.mrb[15].mxu0  ;;  %v1285_v7 = vpop.f32.mrb[15].mxu1 }
 0x115   : > { %v751_v5 = vsel %vm687_vm11, %v623_v55, %v719_v61  ;;  %v1117_v8 = vpack.c.bf16 %v735_v4, %v734_v2  ;;  %v564_v10 = vadd.f32 %v1235_v62, %v1526_v50  ;;  %v628_v11 = vadd.f32 %v1283_v63, %v1526_v50 }
 0x116   : > { %v1157_v9 = vpack.c.bf16 %v751_v5, %v750_v3  ;;  %v1238_v12 = vadd.f32 %v1237_v6, %v1236_v0  ;;  %v1286_v13 = vadd.f32 %v1285_v7, %v1284_v1 }
 0x117   : > { %1185 = vst [vmem:[%s1536_s4 + $0x10] sm:$0xff] %v1117_v8   ;;  %v704_v14 = vmul.f32 0.2, %v564_v10  ;;  %v720_v15 = vmul.f32 0.2, %v628_v11  ;;  %vm672_vm12 = vcmp.ge.f32.partialorder %v564_v10, 0.0 }
 0x118   : > { %1193 = vst [vmem:[%s1536_s4 + $0x50] sm:$0xff] %v1157_v9   ;;  %v567_v16 = vadd.f32 %v1238_v12, %v1526_v50  ;;  %v631_v17 = vadd.f32 %v1286_v13, %v1526_v50  ;;  %vm688_vm13 = vcmp.ge.f32.partialorder %v628_v11, 0.0 }
 0x119   : > { %v1239_v18 = vpop.f32.mrb[16].mxu0  ;;  %v1287_v19 = vpop.f32.mrb[16].mxu1  ;;  %v736_v28 = vsel %vm672_vm12, %v564_v10, %v704_v14  ;;  %v752_v29 = vsel %vm688_vm13, %v628_v11, %v720_v15 }
 0x11a   : > { %v1240_v20 = vpop.f32.mrb[17].mxu0  ;;  %v1288_v21 = vpop.f32.mrb[17].mxu1  ;;  %vm673_vm14 = vcmp.ge.f32.partialorder %v567_v16, 0.0  ;;  %v705_v22 = vmul.f32 0.2, %v567_v16  ;;  %vm689_vm15 = vcmp.ge.f32.partialorder %v631_v17, 0.0 }
 0x11b   : > { %v721_v23 = vmul.f32 0.2, %v631_v17  ;;  %v1241_v24 = vadd.f32 %v1240_v20, %v1239_v18  ;;  %v1289_v25 = vadd.f32 %v1288_v21, %v1287_v19  ;;  %v1242_v26 = vpop.f32.mrb[18].mxu0  ;;  %v1290_v27 = vpop.f32.mrb[18].mxu1 }
 0x11c   : > { %v737_v30 = vsel %vm673_vm14, %v567_v16, %v705_v22  ;;  %v1243_v32 = vpop.f32.mrb[19].mxu0  ;;  %v1291_v33 = vpop.f32.mrb[19].mxu1 }
 0x11d   : > { %v753_v31 = vsel %vm689_vm15, %v631_v17, %v721_v23  ;;  %v1122_v34 = vpack.c.bf16 %v737_v30, %v736_v28  ;;  %v572_v36 = vadd.f32 %v1241_v24, %v1526_v50  ;;  %v636_v37 = vadd.f32 %v1289_v25, %v1526_v50 }
 0x11e   : > { %v1162_v35 = vpack.c.bf16 %v753_v31, %v752_v29  ;;  %v1244_v38 = vadd.f32 %v1243_v32, %v1242_v26  ;;  %v1292_v39 = vadd.f32 %v1291_v33, %v1290_v27 }
 0x11f   : > { %1186 = vst [vmem:[%s1536_s4 + $0x18] sm:$0xff] %v1122_v34   ;;  %v706_v40 = vmul.f32 0.2, %v572_v36  ;;  %v722_v41 = vmul.f32 0.2, %v636_v37  ;;  %vm674_vm0 = vcmp.ge.f32.partialorder %v572_v36, 0.0 }
 0x120   : > { %1194 = vst [vmem:[%s1536_s4 + $0x58] sm:$0xff] %v1162_v35   ;;  %v575_v42 = vadd.f32 %v1244_v38, %v1526_v50  ;;  %v639_v43 = vadd.f32 %v1292_v39, %v1526_v50  ;;  %vm690_vm1 = vcmp.ge.f32.partialorder %v636_v37, 0.0 }
 0x121   : > { %v1245_v44 = vpop.f32.mrb[20].mxu0  ;;  %v1293_v45 = vpop.f32.mrb[20].mxu1  ;;  %v738_v55 = vsel %vm674_vm0, %v572_v36, %v706_v40  ;;  %v754_v56 = vsel %vm690_vm1, %v636_v37, %v722_v41 }
 0x122   : > { %v1246_v46 = vpop.f32.mrb[21].mxu0  ;;  %v1294_v47 = vpop.f32.mrb[21].mxu1  ;;  %vm675_vm2 = vcmp.ge.f32.partialorder %v575_v42, 0.0  ;;  %v707_v48 = vmul.f32 0.2, %v575_v42  ;;  %vm691_vm3 = vcmp.ge.f32.partialorder %v639_v43, 0.0 }
 0x123   : > { %v723_v49 = vmul.f32 0.2, %v639_v43  ;;  %v1247_v51 = vadd.f32 %v1246_v46, %v1245_v44  ;;  %v1295_v52 = vadd.f32 %v1294_v47, %v1293_v45  ;;  %v1248_v53 = vpop.f32.mrb[22].mxu0  ;;  %v1296_v54 = vpop.f32.mrb[22].mxu1 }
 0x124   : > { %v739_v57 = vsel %vm675_vm2, %v575_v42, %v707_v48  ;;  %v1249_v59 = vpop.f32.mrb[23].mxu0  ;;  %v1297_v60 = vpop.f32.mrb[23].mxu1 }
 0x125   : > { %v755_v58 = vsel %vm691_vm3, %v639_v43, %v723_v49  ;;  %v1127_v61 = vpack.c.bf16 %v739_v57, %v738_v55  ;;  %v580_v63 = vadd.f32 %v1247_v51, %v1526_v50  ;;  %v644_v0 = vadd.f32 %v1295_v52, %v1526_v50 }
 0x126   : > { %v1167_v62 = vpack.c.bf16 %v755_v58, %v754_v56  ;;  %v1250_v1 = vadd.f32 %v1249_v59, %v1248_v53  ;;  %v1298_v2 = vadd.f32 %v1297_v60, %v1296_v54 }
 0x127   : > { %1187 = vst [vmem:[%s1536_s4 + $0x20] sm:$0xff] %v1127_v61   ;;  %v708_v3 = vmul.f32 0.2, %v580_v63  ;;  %v724_v4 = vmul.f32 0.2, %v644_v0  ;;  %vm676_vm4 = vcmp.ge.f32.partialorder %v580_v63, 0.0 }
 0x128   : > { %1195 = vst [vmem:[%s1536_s4 + $0x60] sm:$0xff] %v1167_v62   ;;  %v583_v5 = vadd.f32 %v1250_v1, %v1526_v50  ;;  %v647_v6 = vadd.f32 %v1298_v2, %v1526_v50  ;;  %vm692_vm5 = vcmp.ge.f32.partialorder %v644_v0, 0.0 }
 0x129   : > { %v1251_v7 = vpop.f32.mrb[24].mxu0  ;;  %v1299_v8 = vpop.f32.mrb[24].mxu1  ;;  %v740_v17 = vsel %vm676_vm4, %v580_v63, %v708_v3  ;;  %v756_v18 = vsel %vm692_vm5, %v644_v0, %v724_v4 }
 0x12a   : > { %v1252_v9 = vpop.f32.mrb[25].mxu0  ;;  %v1300_v10 = vpop.f32.mrb[25].mxu1  ;;  %vm677_vm6 = vcmp.ge.f32.partialorder %v583_v5, 0.0  ;;  %v709_v11 = vmul.f32 0.2, %v583_v5  ;;  %vm693_vm7 = vcmp.ge.f32.partialorder %v647_v6, 0.0 }
 0x12b   : > { %v725_v12 = vmul.f32 0.2, %v647_v6  ;;  %v1253_v13 = vadd.f32 %v1252_v9, %v1251_v7  ;;  %v1301_v14 = vadd.f32 %v1300_v10, %v1299_v8  ;;  %v1254_v15 = vpop.f32.mrb[26].mxu0  ;;  %v1302_v16 = vpop.f32.mrb[26].mxu1 }
 0x12c   : > { %v741_v19 = vsel %vm677_vm6, %v583_v5, %v709_v11  ;;  %v1255_v21 = vpop.f32.mrb[27].mxu0  ;;  %v1303_v22 = vpop.f32.mrb[27].mxu1 }
 0x12d   : > { %v757_v20 = vsel %vm693_vm7, %v647_v6, %v725_v12  ;;  %v1132_v23 = vpack.c.bf16 %v741_v19, %v740_v17  ;;  %v588_v25 = vadd.f32 %v1253_v13, %v1526_v50  ;;  %v652_v26 = vadd.f32 %v1301_v14, %v1526_v50 }
 0x12e   : > { %v1172_v24 = vpack.c.bf16 %v757_v20, %v756_v18  ;;  %v1256_v27 = vadd.f32 %v1255_v21, %v1254_v15  ;;  %v1304_v28 = vadd.f32 %v1303_v22, %v1302_v16 }
 0x12f   : > { %1188 = vst [vmem:[%s1536_s4 + $0x28] sm:$0xff] %v1132_v23   ;;  %v710_v29 = vmul.f32 0.2, %v588_v25  ;;  %v726_v30 = vmul.f32 0.2, %v652_v26  ;;  %vm678_vm8 = vcmp.ge.f32.partialorder %v588_v25, 0.0 }
 0x130   : > { %1196 = vst [vmem:[%s1536_s4 + $0x68] sm:$0xff] %v1172_v24   ;;  %v591_v31 = vadd.f32 %v1256_v27, %v1526_v50  ;;  %v655_v32 = vadd.f32 %v1304_v28, %v1526_v50  ;;  %vm694_vm9 = vcmp.ge.f32.partialorder %v652_v26, 0.0 }
 0x131   : > { %v1257_v33 = vpop.f32.mrb[28].mxu0  ;;  %v1305_v34 = vpop.f32.mrb[28].mxu1  ;;  %v742_v43 = vsel %vm678_vm8, %v588_v25, %v710_v29  ;;  %v758_v44 = vsel %vm694_vm9, %v652_v26, %v726_v30 }
 0x132   : > { %v1258_v35 = vpop.f32.mrb[29].mxu0  ;;  %v1306_v36 = vpop.f32.mrb[29].mxu1  ;;  %vm679_vm10 = vcmp.ge.f32.partialorder %v591_v31, 0.0  ;;  %v711_v37 = vmul.f32 0.2, %v591_v31  ;;  %vm695_vm11 = vcmp.ge.f32.partialorder %v655_v32, 0.0 }
 0x133   : > { %v727_v38 = vmul.f32 0.2, %v655_v32  ;;  %v1259_v39 = vadd.f32 %v1258_v35, %v1257_v33  ;;  %v1307_v40 = vadd.f32 %v1306_v36, %v1305_v34  ;;  %v1260_v41 = vpop.f32.mrb[30].mxu0  ;;  %v1308_v42 = vpop.f32.mrb[30].mxu1 }
 0x134   : > { %v743_v45 = vsel %vm679_vm10, %v591_v31, %v711_v37  ;;  %v1261_v47 = vpop.f32.mrb[31].mxu0  ;;  %v1309_v48 = vpop.f32.mrb[31].mxu1 }
 0x135   : > { %v759_v46 = vsel %vm695_vm11, %v655_v32, %v727_v38  ;;  %v1137_v49 = vpack.c.bf16 %v743_v45, %v742_v43  ;;  %v596_v52 = vadd.f32 %v1259_v39, %v1526_v50  ;;  %v660_v53 = vadd.f32 %v1307_v40, %v1526_v50 }
 0x136   : > { %v1177_v51 = vpack.c.bf16 %v759_v46, %v758_v44  ;;  %v1262_v54 = vadd.f32 %v1261_v47, %v1260_v41  ;;  %v1310_v55 = vadd.f32 %v1309_v48, %v1308_v42 }
 0x137   : > { %1189 = vst [vmem:[%s1536_s4 + $0x30] sm:$0xff] %v1137_v49   ;;  %v712_v56 = vmul.f32 0.2, %v596_v52  ;;  %v728_v57 = vmul.f32 0.2, %v660_v53  ;;  %vm680_vm12 = vcmp.ge.f32.partialorder %v596_v52, 0.0 }
 0x138   : > { %1197 = vst [vmem:[%s1536_s4 + $0x70] sm:$0xff] %v1177_v51   ;;  %v599_v58 = vadd.f32 %v1262_v54, %v1526_v50  ;;  %v663_v59 = vadd.f32 %v1310_v55, %v1526_v50  ;;  %vm696_vm13 = vcmp.ge.f32.partialorder %v660_v53, 0.0 }
 0x139   : > { %v744_v62 = vsel %vm680_vm12, %v596_v52, %v712_v56  ;;  %v760_v63 = vsel %vm696_vm13, %v660_v53, %v728_v57 }
 0x13a   : > { %vm681_vm14 = vcmp.ge.f32.partialorder %v599_v58, 0.0  ;;  %v713_v60 = vmul.f32 0.2, %v599_v58  ;;  %vm697_vm15 = vcmp.ge.f32.partialorder %v663_v59, 0.0  ;;  %v729_v61 = vmul.f32 0.2, %v663_v59 }
 0x13c   : > { %v745_v0 = vsel %vm681_vm14, %v599_v58, %v713_v60  ;;  %v761_v1 = vsel %vm697_vm15, %v663_v59, %v729_v61 }
 0x13d   : > { %v1142_v2 = vpack.c.bf16 %v745_v0, %v744_v62  ;;  %v1182_v3 = vpack.c.bf16 %v761_v1, %v760_v63 }
 0x13f   : > { %1190 = vst [vmem:[%s1536_s4 + $0x38] sm:$0xff] %v1142_v2   ;;  %1198 = vst [vmem:[%s1536_s4 + $0x78] sm:$0xff] %v1182_v3  }
 0x140 PF: > { %s13_s12 = sadd.s32 1, %s1405_s12  }
 0x141   : > { %p10_p4 = scmp.ge.s32.totalorder %s13_s12, 4  }
 0x143   :  { %12 = sbr.rel (!%p10_p4) target bundleno = 1 (0x1), region = 62 }

// kernel: unet_forward.56
= control target key start
LH: loop header
LB: loop body
LE: loop exit
PB: predicated region body
PF: predicated region fallthrough
CT: control target
= control target key end

     0   :  { %s1331_s12 = smov 0   ;;  %s1489_s0 = inlined_call_operand.vmem [shape: bf16[512,256], index: 0, kind: input, shape index: {}]   ;;  %s1490_s1 = inlined_call_operand.vmem [shape: bf16[256,128], index: 1, kind: input, shape index: {}]   ;;  %s1491_s2 = inlined_call_operand.vmem [shape: f32[1,128], index: 2, kind: input, shape index: {}]   ;;  %s1492_s3 = inlined_call_operand.vmem [shape: bf16[512,128], index: 3, kind: output, shape index: {}]  }
   0x1 LB: > { %s882_s13 = sadd.s32 4294967295, %s1309_s12   ;;  %p886_p0 = scmp.ge.s32.totalorder %s1309_s12, 1  ;;  %s1309_s12 = sphi %s1331_s12, %s13_s12  }
   0x2   : > { %p139_p1 = scmp.lt.s32.totalorder %s1309_s12, 3 }
   0x4   : > { %p140_p2 = pnand %p886_p0, %p139_p1 }
   0x5   : > { %v1239_v0 = vld [vmem:[%s1490_s1 + $0x40] sm:$0xff] (!%p140_p2)   ;;  %s887_s16 = sshll.u32 (!%p140_p2), %s882_s13, 5  ;;  %v1241_v2 = vld [vmem:[%s1490_s1 + $0x48] sm:$0xff] (!%p140_p2)   ;;  %v1243_v4 = vld [vmem:[%s1490_s1 + $0x50] sm:$0xff] (!%p140_p2)  }
   0x6   : > { %143 = sbr.rel (%p140_p2) target bundleno = 316 (0x13c), region = 32  ;;  %v1240_v1 = vld [vmem:[%s1490_s1] sm:$0xff] (!%p140_p2)   ;;  %1103 = vmatprep.subr.bf16.mxu0 (!%p140_p2), %v1239_v0  ;;  %1215 = vmatprep.subr.bf16.mxu1 (!%p140_p2), %v1239_v0  ;;  %v1242_v3 = vld [vmem:[%s1490_s1 + $0x8] sm:$0xff] (!%p140_p2)   ;;  %p165_p3 = scmp.lt.s32.totalorder (!%p140_p2), %s887_s16, 63  ;;  %v1244_v5 = vld [vmem:[%s1490_s1 + $0x10] sm:$0xff] (!%p140_p2)  }
   0x7   : > { %1104 = vmatpush3.bf16.msra.mxu0 (!%p140_p2), %v1240_v1  ;;  %1223 = vmatpush3.bf16.msra.mxu1 (!%p140_p2), %v1240_v1  ;;  %v1245_v6 = vld [vmem:[%s1490_s1 + $0x58] sm:$0xff] (!%p140_p2)   ;;  %v1247_v8 = vld [vmem:[%s1490_s1 + $0x60] sm:$0xff] (!%p140_p2)   ;;  %v1249_v10 = vld [vmem:[%s1490_s1 + $0x68] sm:$0xff] (!%p140_p2)  }
   0x8   : > { %1105 = vmatprep.subr.bf16.mxu0 (!%p140_p2), %v1241_v2  ;;  %1216 = vmatprep.subr.bf16.mxu1 (!%p140_p2), %v1241_v2  ;;  %v1246_v7 = vld [vmem:[%s1490_s1 + $0x18] sm:$0xff] (!%p140_p2)   ;;  %v1248_v9 = vld [vmem:[%s1490_s1 + $0x20] sm:$0xff] (!%p140_p2)   ;;  %v1250_v13 = vld [vmem:[%s1490_s1 + $0x28] sm:$0xff] (!%p140_p2)  }
   0x9   : > { %v1251_v14 = vld [vmem:[%s1490_s1 + $0x70] sm:$0xff] (!%p140_p2)   ;;  %v1253_v16 = vld [vmem:[%s1490_s1 + $0x78] sm:$0xff] (!%p140_p2)   ;;  %v1430_v56 = vld [vmem:[%s1491_s2] ss:$0 sm:$0xff] (!%p140_p2) }
   0xa   : > { %v1252_v15 = vld [vmem:[%s1490_s1 + $0x30] sm:$0xff] (!%p140_p2)   ;;  %v1254_v17 = vld [vmem:[%s1490_s1 + $0x38] sm:$0xff] (!%p140_p2)  }
   0xb   : > { %1106 = vmatpush3.bf16.msra.mxu0 (!%p140_p2), %v1242_v3  ;;  %1224 = vmatpush3.bf16.msra.mxu1 (!%p140_p2), %v1242_v3 }
   0xc   : > { %1107 = vmatprep.subr.bf16.mxu0 (!%p140_p2), %v1243_v4  ;;  %1217 = vmatprep.subr.bf16.mxu1 (!%p140_p2), %v1243_v4 }
   0xd   : > { %s1494_s16 = smov (!%p165_p3, %s887_s16), 63 }
   0xe   : > { %s975_s4 = sshll.u32 %s1494_s16, 3  ;;  %s891_s28 = sshll.u32 %s1494_s16, 2 }
   0xf   : > { %1108 = vmatpush3.bf16.msra.mxu0 %v1244_v5  ;;  %1225 = vmatpush3.bf16.msra.mxu1 %v1244_v5  ;;  %s1372_s9 = scalar_lea.vmem %s1489_s0, %s975_s4  ;;  %s1440_s4 = scalar_lea.vmem %s1492_s3, %s891_s28 }
  0x10   : > { %1109 = vmatprep.subr.bf16.mxu0 %v1245_v6  ;;  %1218 = vmatprep.subr.bf16.mxu1 %v1245_v6  ;;  %v1257_v11 = vld [vmem:[%s1372_s9 + $0x4] ss:$8 sps:$4 sm:$0xff]   ;;  %v1255_v18 = vld [vmem:[%s1372_s9] ss:$8 sps:$4 sm:$0xff]   ;;  %v1261_v20 = vld [vmem:[%s1372_s9 + $0x14] ss:$8 sps:$4 sm:$0xff]  }
  0x11   : > { %v1260_v12 = vld [vmem:[%s1372_s9 + $0x84] ss:$8 sps:$4 sm:$0xff]   ;;  %537 = vmatprep.mubr.bf16.mxu0 %v1257_v11  ;;  %v1258_v19 = vld [vmem:[%s1372_s9 + $0x80] ss:$8 sps:$4 sm:$0xff]   ;;  %v1263_v21 = vld [vmem:[%s1372_s9 + $0x94] ss:$8 sps:$4 sm:$0xff]  }
  0x12   : > { %601 = vmatprep.mubr.bf16.mxu1 %v1260_v12  ;;  %v1265_v22 = vld [vmem:[%s1372_s9 + $0x10] ss:$8 sps:$4 sm:$0xff]   ;;  %v1267_v24 = vld [vmem:[%s1372_s9 + $0x24] ss:$8 sps:$4 sm:$0xff]   ;;  %v1271_v26 = vld [vmem:[%s1372_s9 + $0x20] ss:$8 sps:$4 sm:$0xff]  }
  0x13   : > { %1110 = vmatpush3.bf16.msra.mxu0 %v1246_v7  ;;  %1226 = vmatpush3.bf16.msra.mxu1 %v1246_v7  ;;  %v1266_v23 = vld [vmem:[%s1372_s9 + $0x90] ss:$8 sps:$4 sm:$0xff]   ;;  %v1269_v25 = vld [vmem:[%s1372_s9 + $0xa4] ss:$8 sps:$4 sm:$0xff]   ;;  %v1272_v27 = vld [vmem:[%s1372_s9 + $0xa0] ss:$8 sps:$4 sm:$0xff]  }
  0x14   : > { %1111 = vmatprep.subr.bf16.mxu0 %v1247_v8  ;;  %1219 = vmatprep.subr.bf16.mxu1 %v1247_v8  ;;  %v1273_v28 = vld [vmem:[%s1372_s9 + $0x34] ss:$8 sps:$4 sm:$0xff]   ;;  %v1277_v30 = vld [vmem:[%s1372_s9 + $0x30] ss:$8 sps:$4 sm:$0xff]   ;;  %v1279_v32 = vld [vmem:[%s1372_s9 + $0x44] ss:$8 sps:$4 sm:$0xff]  }
  0x15   : > { %v1275_v29 = vld [vmem:[%s1372_s9 + $0xb4] ss:$8 sps:$4 sm:$0xff]   ;;  %v1278_v31 = vld [vmem:[%s1372_s9 + $0xb0] ss:$8 sps:$4 sm:$0xff]   ;;  %v1281_v33 = vld [vmem:[%s1372_s9 + $0xc4] ss:$8 sps:$4 sm:$0xff]  }
  0x16   : > { %v1283_v34 = vld [vmem:[%s1372_s9 + $0x40] ss:$8 sps:$4 sm:$0xff]   ;;  %v1285_v36 = vld [vmem:[%s1372_s9 + $0x54] ss:$8 sps:$4 sm:$0xff]   ;;  %v1289_v38 = vld [vmem:[%s1372_s9 + $0x50] ss:$8 sps:$4 sm:$0xff]  }
  0x17   : > { %1112 = vmatpush3.bf16.msra.mxu0 %v1248_v9  ;;  %1227 = vmatpush3.bf16.msra.mxu1 %v1248_v9  ;;  %v1284_v35 = vld [vmem:[%s1372_s9 + $0xc0] ss:$8 sps:$4 sm:$0xff]   ;;  %v1287_v37 = vld [vmem:[%s1372_s9 + $0xd4] ss:$8 sps:$4 sm:$0xff]   ;;  %v1290_v39 = vld [vmem:[%s1372_s9 + $0xd0] ss:$8 sps:$4 sm:$0xff]  }
  0x18   : > { %1113 = vmatprep.subr.bf16.mxu0 %v1249_v10  ;;  %1220 = vmatprep.subr.bf16.mxu1 %v1249_v10  ;;  %v1291_v40 = vld [vmem:[%s1372_s9 + $0x64] ss:$8 sps:$4 sm:$0xff]   ;;  %v1295_v42 = vld [vmem:[%s1372_s9 + $0x60] ss:$8 sps:$4 sm:$0xff]   ;;  %v1297_v44 = vld [vmem:[%s1372_s9 + $0x74] ss:$8 sps:$4 sm:$0xff]  }
  0x19   : > { %v1293_v41 = vld [vmem:[%s1372_s9 + $0xe4] ss:$8 sps:$4 sm:$0xff]   ;;  %v1296_v43 = vld [vmem:[%s1372_s9 + $0xe0] ss:$8 sps:$4 sm:$0xff]   ;;  %v1299_v45 = vld [vmem:[%s1372_s9 + $0xf4] ss:$8 sps:$4 sm:$0xff]  }
  0x1a   : > { %v1301_v46 = vld [vmem:[%s1372_s9 + $0x70] ss:$8 sps:$4 sm:$0xff]  }
  0x1b   : > { %1114 = vmatpush3.bf16.msra.mxu0 %v1250_v13  ;;  %1228 = vmatpush3.bf16.msra.mxu1 %v1250_v13  ;;  %v1302_v47 = vld [vmem:[%s1372_s9 + $0xf0] ss:$8 sps:$4 sm:$0xff]  }
  0x1c   : > { %1115 = vmatprep.subr.bf16.mxu0 %v1251_v14  ;;  %1221 = vmatprep.subr.bf16.mxu1 %v1251_v14 }
  0x1f   : > { %1116 = vmatpush3.bf16.msra.mxu0 %v1252_v15  ;;  %1229 = vmatpush3.bf16.msra.mxu1 %v1252_v15 }
  0x20   : > { %1117 = vmatprep.subr.bf16.mxu0 %v1253_v16  ;;  %1222 = vmatprep.subr.bf16.mxu1 %v1253_v16 }
  0x23   : > { %1118 = vmatpush3.bf16.msra.mxu0 %v1254_v17  ;;  %1230 = vmatpush3.bf16.msra.mxu1 %v1254_v17 }
  0x26   : > { %538 = vmatmul.mubr.bf16.vlgmr.msra.gmra.mrb[0].mxu0 %v1255_v18  ;;  %602 = vmatmul.mubr.bf16.vlgmr.msra.gmra.mrb[0].mxu1 %v1258_v19 }
  0x27   : > { %545 = vmatprep.mubr.bf16.mxu0 %v1261_v20  ;;  %609 = vmatprep.mubr.bf16.mxu1 %v1263_v21 }
  0x2e   : > { %546 = vmatmul.mubr.bf16.gmra.mrb[4].mxu0 %v1265_v22  ;;  %610 = vmatmul.mubr.bf16.gmra.mrb[4].mxu1 %v1266_v23 }
  0x2f   : > { %553 = vmatprep.mubr.bf16.mxu0 %v1267_v24  ;;  %617 = vmatprep.mubr.bf16.mxu1 %v1269_v25 }
  0x36   : > { %554 = vmatmul.mubr.bf16.gmra.mrb[8].mxu0 %v1271_v26  ;;  %618 = vmatmul.mubr.bf16.gmra.mrb[8].mxu1 %v1272_v27 }
  0x37   : > { %561 = vmatprep.mubr.bf16.mxu0 %v1273_v28  ;;  %625 = vmatprep.mubr.bf16.mxu1 %v1275_v29 }
  0x3e   : > { %562 = vmatmul.mubr.bf16.gmra.mrb[12].mxu0 %v1277_v30  ;;  %626 = vmatmul.mubr.bf16.gmra.mrb[12].mxu1 %v1278_v31 }
  0x3f   : > { %569 = vmatprep.mubr.bf16.mxu0 %v1279_v32  ;;  %633 = vmatprep.mubr.bf16.mxu1 %v1281_v33 }
  0x46   : > { %570 = vmatmul.mubr.bf16.gmra.mrb[16].mxu0 %v1283_v34  ;;  %634 = vmatmul.mubr.bf16.gmra.mrb[16].mxu1 %v1284_v35 }
  0x47   : > { %577 = vmatprep.mubr.bf16.mxu0 %v1285_v36  ;;  %641 = vmatprep.mubr.bf16.mxu1 %v1287_v37 }
  0x4e   : > { %578 = vmatmul.mubr.bf16.gmra.mrb[20].mxu0 %v1289_v38  ;;  %642 = vmatmul.mubr.bf16.gmra.mrb[20].mxu1 %v1290_v39 }
  0x4f   : > { %585 = vmatprep.mubr.bf16.mxu0 %v1291_v40  ;;  %649 = vmatprep.mubr.bf16.mxu1 %v1293_v41 }
  0x56   : > { %586 = vmatmul.mubr.bf16.gmra.mrb[24].mxu0 %v1295_v42  ;;  %650 = vmatmul.mubr.bf16.gmra.mrb[24].mxu1 %v1296_v43 }
  0x57   : > { %593 = vmatprep.mubr.bf16.mxu0 %v1297_v44  ;;  %657 = vmatprep.mubr.bf16.mxu1 %v1299_v45 }
  0x5e   : > { %594 = vmatmul.mubr.bf16.gmra.mrb[28].mxu0 %v1301_v46  ;;  %658 = vmatmul.mubr.bf16.gmra.mrb[28].mxu1 %v1302_v47 }
  0xf9   : > { %v1119_v48 = vpop.f32.mrb[0].mxu0  ;;  %v1167_v49 = vpop.f32.mrb[0].mxu1 }
  0xfa   : > { %v1120_v50 = vpop.f32.mrb[1].mxu0  ;;  %v1168_v51 = vpop.f32.mrb[1].mxu1 }
  0xfb   : > { %v1121_v52 = vadd.f32 %v1120_v50, %v1119_v48  ;;  %v1169_v53 = vadd.f32 %v1168_v51, %v1167_v49  ;;  %v1122_v54 = vpop.f32.mrb[2].mxu0  ;;  %v1170_v55 = vpop.f32.mrb[2].mxu1 }
  0xfc   : > { %v1123_v57 = vpop.f32.mrb[3].mxu0  ;;  %v1171_v58 = vpop.f32.mrb[3].mxu1 }
  0xfd   : > { %v1124_v59 = vadd.f32 %v1123_v57, %v1122_v54  ;;  %v1172_v60 = vadd.f32 %v1171_v58, %v1170_v55  ;;  %v540_v61 = vadd.f32 %v1121_v52, %v1430_v56  ;;  %v604_v62 = vadd.f32 %v1169_v53, %v1430_v56 }
  0xff   : > { %v543_v63 = vadd.f32 %v1124_v59, %v1430_v56  ;;  %v607_v0 = vadd.f32 %v1172_v60, %v1430_v56 }
 0x101   : > { %v1011_v1 = vpack.c.bf16 %v543_v63, %v540_v61  ;;  %v1051_v2 = vpack.c.bf16 %v607_v0, %v604_v62  ;;  %v1125_v3 = vpop.f32.mrb[4].mxu0  ;;  %v1173_v4 = vpop.f32.mrb[4].mxu1 }
 0x102   : > { %v1126_v5 = vpop.f32.mrb[5].mxu0  ;;  %v1174_v6 = vpop.f32.mrb[5].mxu1 }
 0x103   : > { %1012 = vst [vmem:[%s1440_s4] sm:$0xff] %v1011_v1   ;;  %1095 = vst [vmem:[%s1440_s4 + $0x40] sm:$0xff] %v1051_v2   ;;  %v1127_v7 = vadd.f32 %v1126_v5, %v1125_v3  ;;  %v1175_v8 = vadd.f32 %v1174_v6, %v1173_v4  ;;  %v1128_v9 = vpop.f32.mrb[6].mxu0  ;;  %v1176_v10 = vpop.f32.mrb[6].mxu1 }
 0x104   : > { %v1129_v11 = vpop.f32.mrb[7].mxu0  ;;  %v1177_v12 = vpop.f32.mrb[7].mxu1 }
 0x105   : > { %v1130_v13 = vadd.f32 %v1129_v11, %v1128_v9  ;;  %v1178_v14 = vadd.f32 %v1177_v12, %v1176_v10  ;;  %v548_v15 = vadd.f32 %v1127_v7, %v1430_v56  ;;  %v612_v16 = vadd.f32 %v1175_v8, %v1430_v56 }
 0x107   : > { %v551_v17 = vadd.f32 %v1130_v13, %v1430_v56  ;;  %v615_v18 = vadd.f32 %v1178_v14, %v1430_v56 }
 0x109   : > { %v1016_v19 = vpack.c.bf16 %v551_v17, %v548_v15  ;;  %v1056_v20 = vpack.c.bf16 %v615_v18, %v612_v16  ;;  %v1131_v21 = vpop.f32.mrb[8].mxu0  ;;  %v1179_v22 = vpop.f32.mrb[8].mxu1 }
 0x10a   : > { %v1132_v23 = vpop.f32.mrb[9].mxu0  ;;  %v1180_v24 = vpop.f32.mrb[9].mxu1 }
 0x10b   : > { %1088 = vst [vmem:[%s1440_s4 + $0x8] sm:$0xff] %v1016_v19   ;;  %1096 = vst [vmem:[%s1440_s4 + $0x48] sm:$0xff] %v1056_v20   ;;  %v1133_v25 = vadd.f32 %v1132_v23, %v1131_v21  ;;  %v1181_v26 = vadd.f32 %v1180_v24, %v1179_v22  ;;  %v1134_v27 = vpop.f32.mrb[10].mxu0  ;;  %v1182_v28 = vpop.f32.mrb[10].mxu1 }
 0x10c   : > { %v1135_v29 = vpop.f32.mrb[11].mxu0  ;;  %v1183_v30 = vpop.f32.mrb[11].mxu1 }
 0x10d   : > { %v1136_v31 = vadd.f32 %v1135_v29, %v1134_v27  ;;  %v1184_v32 = vadd.f32 %v1183_v30, %v1182_v28  ;;  %v556_v33 = vadd.f32 %v1133_v25, %v1430_v56  ;;  %v620_v34 = vadd.f32 %v1181_v26, %v1430_v56 }
 0x10f   : > { %v559_v35 = vadd.f32 %v1136_v31, %v1430_v56  ;;  %v623_v36 = vadd.f32 %v1184_v32, %v1430_v56 }
 0x111   : > { %v1021_v37 = vpack.c.bf16 %v559_v35, %v556_v33  ;;  %v1061_v38 = vpack.c.bf16 %v623_v36, %v620_v34  ;;  %v1137_v39 = vpop.f32.mrb[12].mxu0  ;;  %v1185_v40 = vpop.f32.mrb[12].mxu1 }
 0x112   : > { %v1138_v41 = vpop.f32.mrb[13].mxu0  ;;  %v1186_v42 = vpop.f32.mrb[13].mxu1 }
 0x113   : > { %1089 = vst [vmem:[%s1440_s4 + $0x10] sm:$0xff] %v1021_v37   ;;  %1097 = vst [vmem:[%s1440_s4 + $0x50] sm:$0xff] %v1061_v38   ;;  %v1139_v43 = vadd.f32 %v1138_v41, %v1137_v39  ;;  %v1187_v44 = vadd.f32 %v1186_v42, %v1185_v40  ;;  %v1140_v45 = vpop.f32.mrb[14].mxu0  ;;  %v1188_v46 = vpop.f32.mrb[14].mxu1 }
 0x114   : > { %v1141_v47 = vpop.f32.mrb[15].mxu0  ;;  %v1189_v48 = vpop.f32.mrb[15].mxu1 }
 0x115   : > { %v1142_v49 = vadd.f32 %v1141_v47, %v1140_v45  ;;  %v1190_v50 = vadd.f32 %v1189_v48, %v1188_v46  ;;  %v564_v51 = vadd.f32 %v1139_v43, %v1430_v56  ;;  %v628_v52 = vadd.f32 %v1187_v44, %v1430_v56 }
 0x117   : > { %v567_v53 = vadd.f32 %v1142_v49, %v1430_v56  ;;  %v631_v54 = vadd.f32 %v1190_v50, %v1430_v56 }
 0x119   : > { %v1026_v55 = vpack.c.bf16 %v567_v53, %v564_v51  ;;  %v1066_v57 = vpack.c.bf16 %v631_v54, %v628_v52  ;;  %v1143_v58 = vpop.f32.mrb[16].mxu0  ;;  %v1191_v59 = vpop.f32.mrb[16].mxu1 }
 0x11a   : > { %v1144_v60 = vpop.f32.mrb[17].mxu0  ;;  %v1192_v61 = vpop.f32.mrb[17].mxu1 }
 0x11b   : > { %1090 = vst [vmem:[%s1440_s4 + $0x18] sm:$0xff] %v1026_v55   ;;  %1098 = vst [vmem:[%s1440_s4 + $0x58] sm:$0xff] %v1066_v57   ;;  %v1145_v62 = vadd.f32 %v1144_v60, %v1143_v58  ;;  %v1193_v63 = vadd.f32 %v1192_v61, %v1191_v59  ;;  %v1146_v0 = vpop.f32.mrb[18].mxu0  ;;  %v1194_v1 = vpop.f32.mrb[18].mxu1 }
 0x11c   : > { %v1147_v2 = vpop.f32.mrb[19].mxu0  ;;  %v1195_v3 = vpop.f32.mrb[19].mxu1 }
 0x11d   : > { %v1148_v4 = vadd.f32 %v1147_v2, %v1146_v0  ;;  %v1196_v5 = vadd.f32 %v1195_v3, %v1194_v1  ;;  %v572_v6 = vadd.f32 %v1145_v62, %v1430_v56  ;;  %v636_v7 = vadd.f32 %v1193_v63, %v1430_v56 }
 0x11f   : > { %v575_v8 = vadd.f32 %v1148_v4, %v1430_v56  ;;  %v639_v9 = vadd.f32 %v1196_v5, %v1430_v56 }
 0x121   : > { %v1031_v10 = vpack.c.bf16 %v575_v8, %v572_v6  ;;  %v1071_v11 = vpack.c.bf16 %v639_v9, %v636_v7  ;;  %v1149_v12 = vpop.f32.mrb[20].mxu0  ;;  %v1197_v13 = vpop.f32.mrb[20].mxu1 }
 0x122   : > { %v1150_v14 = vpop.f32.mrb[21].mxu0  ;;  %v1198_v15 = vpop.f32.mrb[21].mxu1 }
 0x123   : > { %1091 = vst [vmem:[%s1440_s4 + $0x20] sm:$0xff] %v1031_v10   ;;  %1099 = vst [vmem:[%s1440_s4 + $0x60] sm:$0xff] %v1071_v11   ;;  %v1151_v16 = vadd.f32 %v1150_v14, %v1149_v12  ;;  %v1199_v17 = vadd.f32 %v1198_v15, %v1197_v13  ;;  %v1152_v18 = vpop.f32.mrb[22].mxu0  ;;  %v1200_v19 = vpop.f32.mrb[22].mxu1 }
 0x124   : > { %v1153_v20 = vpop.f32.mrb[23].mxu0  ;;  %v1201_v21 = vpop.f32.mrb[23].mxu1 }
 0x125   : > { %v1154_v22 = vadd.f32 %v1153_v20, %v1152_v18  ;;  %v1202_v23 = vadd.f32 %v1201_v21, %v1200_v19  ;;  %v580_v24 = vadd.f32 %v1151_v16, %v1430_v56  ;;  %v644_v25 = vadd.f32 %v1199_v17, %v1430_v56 }
 0x127   : > { %v583_v26 = vadd.f32 %v1154_v22, %v1430_v56  ;;  %v647_v27 = vadd.f32 %v1202_v23, %v1430_v56 }
 0x129   : > { %v1036_v28 = vpack.c.bf16 %v583_v26, %v580_v24  ;;  %v1076_v29 = vpack.c.bf16 %v647_v27, %v644_v25  ;;  %v1155_v30 = vpop.f32.mrb[24].mxu0  ;;  %v1203_v31 = vpop.f32.mrb[24].mxu1 }
 0x12a   : > { %v1156_v32 = vpop.f32.mrb[25].mxu0  ;;  %v1204_v33 = vpop.f32.mrb[25].mxu1 }
 0x12b   : > { %1092 = vst [vmem:[%s1440_s4 + $0x28] sm:$0xff] %v1036_v28   ;;  %1100 = vst [vmem:[%s1440_s4 + $0x68] sm:$0xff] %v1076_v29   ;;  %v1157_v34 = vadd.f32 %v1156_v32, %v1155_v30  ;;  %v1205_v35 = vadd.f32 %v1204_v33, %v1203_v31  ;;  %v1158_v36 = vpop.f32.mrb[26].mxu0  ;;  %v1206_v37 = vpop.f32.mrb[26].mxu1 }
 0x12c   : > { %v1159_v38 = vpop.f32.mrb[27].mxu0  ;;  %v1207_v39 = vpop.f32.mrb[27].mxu1 }
 0x12d   : > { %v1160_v40 = vadd.f32 %v1159_v38, %v1158_v36  ;;  %v1208_v41 = vadd.f32 %v1207_v39, %v1206_v37  ;;  %v588_v42 = vadd.f32 %v1157_v34, %v1430_v56  ;;  %v652_v43 = vadd.f32 %v1205_v35, %v1430_v56 }
 0x12f   : > { %v591_v44 = vadd.f32 %v1160_v40, %v1430_v56  ;;  %v655_v45 = vadd.f32 %v1208_v41, %v1430_v56 }
 0x131   : > { %v1041_v46 = vpack.c.bf16 %v591_v44, %v588_v42  ;;  %v1081_v47 = vpack.c.bf16 %v655_v45, %v652_v43  ;;  %v1161_v48 = vpop.f32.mrb[28].mxu0  ;;  %v1209_v49 = vpop.f32.mrb[28].mxu1 }
 0x132   : > { %v1162_v50 = vpop.f32.mrb[29].mxu0  ;;  %v1210_v51 = vpop.f32.mrb[29].mxu1 }
 0x133   : > { %1093 = vst [vmem:[%s1440_s4 + $0x30] sm:$0xff] %v1041_v46   ;;  %1101 = vst [vmem:[%s1440_s4 + $0x70] sm:$0xff] %v1081_v47   ;;  %v1163_v52 = vadd.f32 %v1162_v50, %v1161_v48  ;;  %v1211_v53 = vadd.f32 %v1210_v51, %v1209_v49  ;;  %v1164_v54 = vpop.f32.mrb[30].mxu0  ;;  %v1212_v55 = vpop.f32.mrb[30].mxu1 }
 0x134   : > { %v1165_v57 = vpop.f32.mrb[31].mxu0  ;;  %v1213_v58 = vpop.f32.mrb[31].mxu1 }
 0x135   : > { %v1166_v59 = vadd.f32 %v1165_v57, %v1164_v54  ;;  %v1214_v60 = vadd.f32 %v1213_v58, %v1212_v55  ;;  %v596_v61 = vadd.f32 %v1163_v52, %v1430_v56  ;;  %v660_v62 = vadd.f32 %v1211_v53, %v1430_v56 }
 0x137   : > { %v599_v63 = vadd.f32 %v1166_v59, %v1430_v56  ;;  %v663_v0 = vadd.f32 %v1214_v60, %v1430_v56 }
 0x139   : > { %v1046_v1 = vpack.c.bf16 %v599_v63, %v596_v61  ;;  %v1086_v2 = vpack.c.bf16 %v663_v0, %v660_v62 }
 0x13b   : > { %1094 = vst [vmem:[%s1440_s4 + $0x38] sm:$0xff] %v1046_v1   ;;  %1102 = vst [vmem:[%s1440_s4 + $0x78] sm:$0xff] %v1086_v2  }
 0x13c PF: > { %s13_s12 = sadd.s32 1, %s1309_s12  }
 0x13d   : > { %p10_p4 = scmp.ge.s32.totalorder %s13_s12, 4  }
 0x13f   :  { %12 = sbr.rel (!%p10_p4) target bundleno = 1 (0x1), region = 62 }

// kernel: unet_forward.31
= control target key start
LH: loop header
LB: loop body
LE: loop exit
PB: predicated region body
PF: predicated region fallthrough
CT: control target
= control target key end

     0   :  { %s602_s1 = inlined_call_operand.vmem [shape: bf16[128,128], index: 1, kind: input, shape index: {}]   ;;  %s603_s0 = inlined_call_operand.vmem [shape: bf16[128,128], index: 0, kind: input, shape index: {}]   ;;  %s604_s2 = inlined_call_operand.vmem [shape: f32[1,128], index: 2, kind: input, shape index: {}]   ;;  %s605_s3 = inlined_call_operand.vmem [shape: bf16[128,128], index: 3, kind: output, shape index: {}]  }
   0x1   :  { %v491_v0 = vld [vmem:[%s602_s1] sm:$0xff]   ;;  %v492_v1 = vld [vmem:[%s602_s1 + $0x8] sm:$0xff]   ;;  %v493_v2 = vld [vmem:[%s602_s1 + $0x10] sm:$0xff]  }
   0x2   :  { %443 = vmatprep.subr.bf16.mxu0 %v491_v0  ;;  %475 = vmatprep.subr.bf16.mxu1 %v491_v0  ;;  %v494_v3 = vld [vmem:[%s602_s1 + $0x18] sm:$0xff]   ;;  %v499_v4 = vld [vmem:[%s603_s0] sm:$0xff]   ;;  %v496_v7 = vld [vmem:[%s602_s1 + $0x28] sm:$0xff]  }
   0x3   :  { %444 = vmatpush3.bf16.msra.mxu0 %v491_v0  ;;  %483 = vmatpush3.bf16.msra.mxu1 %v491_v0  ;;  %v500_v5 = vld [vmem:[%s603_s0 + $0x20] sm:$0xff]   ;;  %v497_v8 = vld [vmem:[%s602_s1 + $0x30] sm:$0xff]   ;;  %v498_v9 = vld [vmem:[%s602_s1 + $0x38] sm:$0xff]  }
   0x4   :  { %445 = vmatprep.subr.bf16.mxu0 %v492_v1  ;;  %476 = vmatprep.subr.bf16.mxu1 %v492_v1  ;;  %v495_v6 = vld [vmem:[%s602_s1 + $0x20] sm:$0xff]   ;;  %v501_v10 = vld [vmem:[%s603_s0 + $0x8] sm:$0xff]   ;;  %v503_v12 = vld [vmem:[%s603_s0 + $0x10] sm:$0xff]  }
   0x5   :  { %459 = vmatprep.mubr.bf16.mxu0 %v499_v4  ;;  %467 = vmatprep.mubr.bf16.mxu1 %v500_v5  ;;  %v502_v11 = vld [vmem:[%s603_s0 + $0x28] sm:$0xff]   ;;  %v504_v13 = vld [vmem:[%s603_s0 + $0x30] sm:$0xff]   ;;  %v505_v14 = vld [vmem:[%s603_s0 + $0x18] sm:$0xff]  }
   0x6   :  { %v506_v15 = vld [vmem:[%s603_s0 + $0x38] sm:$0xff]   ;;  %v331_v17 = vld [vmem:[%s604_s2] ss:$0 sm:$0xff] }
   0x7   :  { %446 = vmatpush3.bf16.msra.mxu0 %v492_v1  ;;  %484 = vmatpush3.bf16.msra.mxu1 %v492_v1 }
   0x8   :  { %447 = vmatprep.subr.bf16.mxu0 %v493_v2  ;;  %477 = vmatprep.subr.bf16.mxu1 %v493_v2 }
   0xb   :  { %448 = vmatpush3.bf16.msra.mxu0 %v493_v2  ;;  %485 = vmatpush3.bf16.msra.mxu1 %v493_v2 }
   0xc   :  { %449 = vmatprep.subr.bf16.mxu0 %v494_v3  ;;  %478 = vmatprep.subr.bf16.mxu1 %v494_v3 }
   0xf   :  { %450 = vmatpush3.bf16.msra.mxu0 %v494_v3  ;;  %486 = vmatpush3.bf16.msra.mxu1 %v494_v3 }
  0x10   :  { %451 = vmatprep.subr.bf16.mxu0 %v495_v6  ;;  %479 = vmatprep.subr.bf16.mxu1 %v495_v6 }
  0x13   :  { %452 = vmatpush3.bf16.msra.mxu0 %v495_v6  ;;  %487 = vmatpush3.bf16.msra.mxu1 %v495_v6 }
  0x14   :  { %453 = vmatprep.subr.bf16.mxu0 %v496_v7  ;;  %480 = vmatprep.subr.bf16.mxu1 %v496_v7 }
  0x17   :  { %454 = vmatpush3.bf16.msra.mxu0 %v496_v7  ;;  %488 = vmatpush3.bf16.msra.mxu1 %v496_v7 }
  0x18   :  { %455 = vmatprep.subr.bf16.mxu0 %v497_v8  ;;  %481 = vmatprep.subr.bf16.mxu1 %v497_v8 }
  0x1b   :  { %456 = vmatpush3.bf16.msra.mxu0 %v497_v8  ;;  %489 = vmatpush3.bf16.msra.mxu1 %v497_v8 }
  0x1c   :  { %457 = vmatprep.subr.bf16.mxu0 %v498_v9  ;;  %482 = vmatprep.subr.bf16.mxu1 %v498_v9 }
  0x1f   :  { %458 = vmatpush3.bf16.msra.mxu0 %v498_v9  ;;  %490 = vmatpush3.bf16.msra.mxu1 %v498_v9 }
  0x22   :  { %460 = vmatmul.mubr.bf16.vlgmr.msra.gmra.mrb[0].mxu0 %v501_v10  ;;  %468 = vmatmul.mubr.bf16.vlgmr.msra.gmra.mrb[0].mxu1 %v502_v11 }
  0x23   :  { %463 = vmatprep.mubr.bf16.mxu0 %v503_v12  ;;  %471 = vmatprep.mubr.bf16.mxu1 %v504_v13 }
  0x2a   :  { %464 = vmatmul.mubr.bf16.gmra.mrb[4].mxu0 %v505_v14  ;;  %472 = vmatmul.mubr.bf16.gmra.mrb[4].mxu1 %v506_v15 }
  0xf5   :  { %v461_v16 = vpop.f32.mrb[0].mxu0  ;;  %v469_v18 = vpop.f32.mrb[0].mxu1 }
  0xf6   :  { %v184_v19 = vpop.f32.mrb[1].mxu0  ;;  %v216_v20 = vpop.f32.mrb[1].mxu1  ;;  %v193_v23 = vadd.f32 %v461_v16, %v331_v17  ;;  %v225_v24 = vadd.f32 %v469_v18, %v331_v17 }
  0xf7   :  { %v462_v21 = vpop.f32.mrb[2].mxu0  ;;  %v470_v22 = vpop.f32.mrb[2].mxu1  ;;  %v185_v29 = vadd.f32 %v331_v17, %v184_v19  ;;  %v217_v30 = vadd.f32 %v331_v17, %v216_v20 }
  0xf8   :  { %v196_v25 = vadd.f32 %v462_v21, %v331_v17  ;;  %v228_v26 = vadd.f32 %v470_v22, %v331_v17  ;;  %v187_v27 = vpop.f32.mrb[3].mxu0  ;;  %v219_v28 = vpop.f32.mrb[3].mxu1 }
  0xf9   :  { %v188_v31 = vadd.f32 %v331_v17, %v187_v27  ;;  %v220_v32 = vadd.f32 %v331_v17, %v219_v28 }
  0xfa   :  { %v388_v33 = vpack.c.bf16 %v196_v25, %v193_v23  ;;  %v408_v34 = vpack.c.bf16 %v228_v26, %v225_v24 }
  0xfb   :  { %v383_v35 = vpack.c.bf16 %v188_v31, %v185_v29  ;;  %v403_v36 = vpack.c.bf16 %v220_v32, %v217_v30 }
  0xfc   :  { %420 = vst [vmem:[%s605_s3 + $0x8] sm:$0xff] %v388_v33   ;;  %424 = vst [vmem:[%s605_s3 + $0x28] sm:$0xff] %v408_v34  }
  0xfd   :  { %384 = vst [vmem:[%s605_s3] sm:$0xff] %v383_v35   ;;  %423 = vst [vmem:[%s605_s3 + $0x20] sm:$0xff] %v403_v36   ;;  %v465_v37 = vpop.f32.mrb[4].mxu0  ;;  %v473_v38 = vpop.f32.mrb[4].mxu1 }
  0xfe   :  { %v200_v39 = vpop.f32.mrb[5].mxu0  ;;  %v232_v40 = vpop.f32.mrb[5].mxu1  ;;  %v209_v43 = vadd.f32 %v465_v37, %v331_v17  ;;  %v241_v44 = vadd.f32 %v473_v38, %v331_v17 }
  0xff   :  { %v466_v41 = vpop.f32.mrb[6].mxu0  ;;  %v474_v42 = vpop.f32.mrb[6].mxu1  ;;  %v201_v49 = vadd.f32 %v331_v17, %v200_v39  ;;  %v233_v50 = vadd.f32 %v331_v17, %v232_v40 }
 0x100   :  { %v212_v45 = vadd.f32 %v466_v41, %v331_v17  ;;  %v244_v46 = vadd.f32 %v474_v42, %v331_v17  ;;  %v203_v47 = vpop.f32.mrb[7].mxu0  ;;  %v235_v48 = vpop.f32.mrb[7].mxu1 }
 0x101   :  { %v204_v51 = vadd.f32 %v331_v17, %v203_v47  ;;  %v236_v52 = vadd.f32 %v331_v17, %v235_v48 }
 0x102   :  { %v398_v53 = vpack.c.bf16 %v212_v45, %v209_v43  ;;  %v418_v54 = vpack.c.bf16 %v244_v46, %v241_v44 }
 0x103   :  { %v393_v55 = vpack.c.bf16 %v204_v51, %v201_v49  ;;  %v413_v56 = vpack.c.bf16 %v236_v52, %v233_v50 }
 0x104   :  { %422 = vst [vmem:[%s605_s3 + $0x18] sm:$0xff] %v398_v53   ;;  %426 = vst [vmem:[%s605_s3 + $0x38] sm:$0xff] %v418_v54  }
 0x105   :  { %421 = vst [vmem:[%s605_s3 + $0x10] sm:$0xff] %v393_v55   ;;  %425 = vst [vmem:[%s605_s3 + $0x30] sm:$0xff] %v413_v56  }

// kernel: unet_forward.34
= control target key start
LH: loop header
LB: loop body
LE: loop exit
PB: predicated region body
PF: predicated region fallthrough
CT: control target
= control target key end

     0   :  { %s939_s1 = inlined_call_operand.vmem [shape: bf16[256,128], index: 1, kind: input, shape index: {}]   ;;  %s940_s0 = inlined_call_operand.vmem [shape: bf16[128,256], index: 0, kind: input, shape index: {}]   ;;  %s941_s3 = inlined_call_operand.vmem [shape: bf16[128,128], index: 3, kind: input, shape index: {}]   ;;  %s942_s2 = inlined_call_operand.vmem [shape: f32[1,128], index: 2, kind: input, shape index: {}]   ;;  %s943_s4 = inlined_call_operand.vmem [shape: bf16[128,128], index: 4, kind: output, shape index: {}]  }
   0x1   :  { %v709_v0 = vld [vmem:[%s939_s1 + $0x40] sm:$0xff]   ;;  %v711_v2 = vld [vmem:[%s939_s1 + $0x48] sm:$0xff]   ;;  %v713_v4 = vld [vmem:[%s939_s1 + $0x50] sm:$0xff]  }
   0x2   :  { %v710_v1 = vld [vmem:[%s939_s1] sm:$0xff]   ;;  %629 = vmatprep.subr.bf16.mxu0 %v709_v0  ;;  %693 = vmatprep.subr.bf16.mxu1 %v709_v0  ;;  %v712_v3 = vld [vmem:[%s939_s1 + $0x8] sm:$0xff]   ;;  %v714_v5 = vld [vmem:[%s939_s1 + $0x10] sm:$0xff]  }
   0x3   :  { %630 = vmatpush3.bf16.msra.mxu0 %v710_v1  ;;  %701 = vmatpush3.bf16.msra.mxu1 %v710_v1  ;;  %v715_v6 = vld [vmem:[%s939_s1 + $0x58] sm:$0xff]   ;;  %v717_v8 = vld [vmem:[%s939_s1 + $0x60] sm:$0xff]   ;;  %v719_v10 = vld [vmem:[%s939_s1 + $0x68] sm:$0xff]  }
   0x4   :  { %631 = vmatprep.subr.bf16.mxu0 %v711_v2  ;;  %694 = vmatprep.subr.bf16.mxu1 %v711_v2  ;;  %v716_v7 = vld [vmem:[%s939_s1 + $0x18] sm:$0xff]   ;;  %v718_v9 = vld [vmem:[%s939_s1 + $0x20] sm:$0xff]   ;;  %v720_v13 = vld [vmem:[%s939_s1 + $0x28] sm:$0xff]  }
   0x5   :  { %v727_v11 = vld [vmem:[%s940_s0 + $0x4] ss:$8 sps:$4 sm:$0xff]   ;;  %v721_v14 = vld [vmem:[%s939_s1 + $0x70] sm:$0xff]   ;;  %v723_v16 = vld [vmem:[%s939_s1 + $0x78] sm:$0xff]  }
   0x6   :  { %v730_v12 = vld [vmem:[%s940_s0 + $0x44] ss:$8 sps:$4 sm:$0xff]   ;;  %281 = vmatprep.mubr.bf16.mxu0 %v727_v11  ;;  %v722_v15 = vld [vmem:[%s939_s1 + $0x30] sm:$0xff]   ;;  %v724_v17 = vld [vmem:[%s939_s1 + $0x38] sm:$0xff]  }
   0x7   :  { %632 = vmatpush3.bf16.msra.mxu0 %v712_v3  ;;  %702 = vmatpush3.bf16.msra.mxu1 %v712_v3  ;;  %v725_v18 = vld [vmem:[%s940_s0] ss:$8 sps:$4 sm:$0xff]   ;;  %v731_v20 = vld [vmem:[%s940_s0 + $0x14] ss:$8 sps:$4 sm:$0xff]   ;;  %v735_v22 = vld [vmem:[%s940_s0 + $0x10] ss:$8 sps:$4 sm:$0xff]  }
   0x8   :  { %633 = vmatprep.subr.bf16.mxu0 %v713_v4  ;;  %695 = vmatprep.subr.bf16.mxu1 %v713_v4  ;;  %v728_v19 = vld [vmem:[%s940_s0 + $0x40] ss:$8 sps:$4 sm:$0xff]   ;;  %v733_v21 = vld [vmem:[%s940_s0 + $0x54] ss:$8 sps:$4 sm:$0xff]   ;;  %v736_v23 = vld [vmem:[%s940_s0 + $0x50] ss:$8 sps:$4 sm:$0xff]  }
   0x9   :  { %313 = vmatprep.mubr.bf16.mxu1 %v730_v12  ;;  %v737_v24 = vld [vmem:[%s940_s0 + $0x24] ss:$8 sps:$4 sm:$0xff]   ;;  %v741_v26 = vld [vmem:[%s940_s0 + $0x20] ss:$8 sps:$4 sm:$0xff]   ;;  %v743_v28 = vld [vmem:[%s940_s0 + $0x34] ss:$8 sps:$4 sm:$0xff]  }
   0xa   :  { %v739_v25 = vld [vmem:[%s940_s0 + $0x64] ss:$8 sps:$4 sm:$0xff]   ;;  %v742_v27 = vld [vmem:[%s940_s0 + $0x60] ss:$8 sps:$4 sm:$0xff]   ;;  %v745_v29 = vld [vmem:[%s940_s0 + $0x74] ss:$8 sps:$4 sm:$0xff]  }
   0xb   :  { %634 = vmatpush3.bf16.msra.mxu0 %v714_v5  ;;  %703 = vmatpush3.bf16.msra.mxu1 %v714_v5  ;;  %v747_v30 = vld [vmem:[%s940_s0 + $0x30] ss:$8 sps:$4 sm:$0xff]   ;;  %v544_v34 = vld [vmem:[%s941_s3] sm:$0xff]   ;;  %v615_v61 = vld [vmem:[%s941_s3 + $0x8] sm:$0xff]  }
   0xc   :  { %635 = vmatprep.subr.bf16.mxu0 %v715_v6  ;;  %696 = vmatprep.subr.bf16.mxu1 %v715_v6  ;;  %v748_v31 = vld [vmem:[%s940_s0 + $0x70] ss:$8 sps:$4 sm:$0xff]   ;;  %v618_v35 = vld [vmem:[%s941_s3 + $0x20] sm:$0xff]   ;;  %v545_v43 = vunpack.c.l.bf16 %v544_v34  ;;  %v546_v46 = vunpack.c.h.bf16 %v544_v34  ;;  %v619_v62 = vld [vmem:[%s941_s3 + $0x28] sm:$0xff]  }
   0xd   :  { %v879_v36 = vld [vmem:[%s942_s2] ss:$0 sm:$0xff]  ;;  %v561_v44 = vunpack.c.l.bf16 %v618_v35  ;;  %v562_v48 = vunpack.c.h.bf16 %v618_v35  ;;  %v566_v12 = vunpack.c.h.bf16 %v619_v62 }
   0xf   :  { %636 = vmatpush3.bf16.msra.mxu0 %v716_v7  ;;  %704 = vmatpush3.bf16.msra.mxu1 %v716_v7  ;;  %v549_v7 = vunpack.c.l.bf16 %v615_v61 }
  0x10   :  { %637 = vmatprep.subr.bf16.mxu0 %v717_v8  ;;  %697 = vmatprep.subr.bf16.mxu1 %v717_v8  ;;  %v565_v8 = vunpack.c.l.bf16 %v619_v62 }
  0x13   :  { %638 = vmatpush3.bf16.msra.mxu0 %v718_v9  ;;  %705 = vmatpush3.bf16.msra.mxu1 %v718_v9 }
  0x14   :  { %639 = vmatprep.subr.bf16.mxu0 %v719_v10  ;;  %698 = vmatprep.subr.bf16.mxu1 %v719_v10  ;;  %v550_v10 = vunpack.c.h.bf16 %v615_v61 }
  0x17   :  { %640 = vmatpush3.bf16.msra.mxu0 %v720_v13  ;;  %706 = vmatpush3.bf16.msra.mxu1 %v720_v13 }
  0x18   :  { %641 = vmatprep.subr.bf16.mxu0 %v721_v14  ;;  %699 = vmatprep.subr.bf16.mxu1 %v721_v14 }
  0x1b   :  { %642 = vmatpush3.bf16.msra.mxu0 %v722_v15  ;;  %707 = vmatpush3.bf16.msra.mxu1 %v722_v15 }
  0x1c   :  { %643 = vmatprep.subr.bf16.mxu0 %v723_v16  ;;  %700 = vmatprep.subr.bf16.mxu1 %v723_v16 }
  0x1f   :  { %644 = vmatpush3.bf16.msra.mxu0 %v724_v17  ;;  %708 = vmatpush3.bf16.msra.mxu1 %v724_v17 }
  0x22   :  { %282 = vmatmul.mubr.bf16.vlgmr.msra.gmra.mrb[0].mxu0 %v725_v18  ;;  %314 = vmatmul.mubr.bf16.vlgmr.msra.gmra.mrb[0].mxu1 %v728_v19 }
  0x23   :  { %289 = vmatprep.mubr.bf16.mxu0 %v731_v20  ;;  %321 = vmatprep.mubr.bf16.mxu1 %v733_v21 }
  0x2a   :  { %290 = vmatmul.mubr.bf16.gmra.mrb[4].mxu0 %v735_v22  ;;  %322 = vmatmul.mubr.bf16.gmra.mrb[4].mxu1 %v736_v23 }
  0x2b   :  { %297 = vmatprep.mubr.bf16.mxu0 %v737_v24  ;;  %329 = vmatprep.mubr.bf16.mxu1 %v739_v25  ;;  %v616_v25 = vld [vmem:[%s941_s3 + $0x10] sm:$0xff]  }
  0x2c   :  { %v553_v35 = vunpack.c.l.bf16 %v616_v25 }
  0x32   :  { %298 = vmatmul.mubr.bf16.gmra.mrb[8].mxu0 %v741_v26  ;;  %330 = vmatmul.mubr.bf16.gmra.mrb[8].mxu1 %v742_v27  ;;  %v620_v26 = vld [vmem:[%s941_s3 + $0x30] sm:$0xff]  }
  0x33   :  { %305 = vmatprep.mubr.bf16.mxu0 %v743_v28  ;;  %337 = vmatprep.mubr.bf16.mxu1 %v745_v29 }
  0x3a   :  { %306 = vmatmul.mubr.bf16.gmra.mrb[12].mxu0 %v747_v30  ;;  %338 = vmatmul.mubr.bf16.gmra.mrb[12].mxu1 %v748_v31 }
  0xf5   :  { %v645_v32 = vpop.f32.mrb[0].mxu0  ;;  %v669_v33 = vpop.f32.mrb[0].mxu1 }
  0xf6   :  { %v646_v37 = vpop.f32.mrb[1].mxu0  ;;  %v670_v38 = vpop.f32.mrb[1].mxu1 }
  0xf7   :  { %v647_v39 = vadd.f32 %v646_v37, %v645_v32  ;;  %v671_v40 = vadd.f32 %v670_v38, %v669_v33  ;;  %v648_v41 = vpop.f32.mrb[2].mxu0  ;;  %v672_v42 = vpop.f32.mrb[2].mxu1  ;;  %v569_v37 = vunpack.c.l.bf16 %v620_v26 }
  0xf8   :  { %v649_v45 = vpop.f32.mrb[3].mxu0  ;;  %v673_v47 = vpop.f32.mrb[3].mxu1 }
  0xf9   :  { %v284_v49 = vadd.f32 %v647_v39, %v879_v36  ;;  %v316_v50 = vadd.f32 %v671_v40, %v879_v36  ;;  %v650_v51 = vadd.f32 %v649_v45, %v648_v41  ;;  %v674_v52 = vadd.f32 %v673_v47, %v672_v42 }
  0xfa   :  { %v554_v39 = vunpack.c.h.bf16 %v616_v25  ;;  %v570_v41 = vunpack.c.h.bf16 %v620_v26 }
  0xfb   :  { %v287_v53 = vadd.f32 %v650_v51, %v879_v36  ;;  %v319_v54 = vadd.f32 %v674_v52, %v879_v36  ;;  %v378_v55 = vadd.f32 %v545_v43, %v284_v49  ;;  %v386_v56 = vadd.f32 %v561_v44, %v316_v50 }
  0xfd   :  { %v379_v57 = vadd.f32 %v546_v46, %v287_v53  ;;  %v387_v58 = vadd.f32 %v562_v48, %v319_v54  ;;  %v651_v59 = vpop.f32.mrb[4].mxu0  ;;  %v675_v60 = vpop.f32.mrb[4].mxu1  ;;  %v617_v54 = vld [vmem:[%s941_s3 + $0x18] sm:$0xff]  }
  0xfe   :  { %v652_v63 = vpop.f32.mrb[5].mxu0  ;;  %v676_v0 = vpop.f32.mrb[5].mxu1 }
  0xff   :  { %v578_v1 = vpack.c.bf16 %v379_v57, %v378_v55  ;;  %v598_v2 = vpack.c.bf16 %v387_v58, %v386_v56  ;;  %v653_v3 = vadd.f32 %v652_v63, %v651_v59  ;;  %v677_v4 = vadd.f32 %v676_v0, %v675_v60  ;;  %v654_v5 = vpop.f32.mrb[6].mxu0  ;;  %v678_v6 = vpop.f32.mrb[6].mxu1  ;;  %v621_v55 = vld [vmem:[%s941_s3 + $0x38] sm:$0xff]  }
 0x100   :  { %v655_v9 = vpop.f32.mrb[7].mxu0  ;;  %v679_v11 = vpop.f32.mrb[7].mxu1  ;;  %v557_v0 = vunpack.c.l.bf16 %v617_v54 }
 0x101   :  { %579 = vst [vmem:[%s943_s4] sm:$0xff] %v578_v1   ;;  %625 = vst [vmem:[%s943_s4 + $0x20] sm:$0xff] %v598_v2   ;;  %v292_v13 = vadd.f32 %v653_v3, %v879_v36  ;;  %v324_v14 = vadd.f32 %v677_v4, %v879_v36  ;;  %v656_v15 = vadd.f32 %v655_v9, %v654_v5  ;;  %v573_v1 = vunpack.c.l.bf16 %v621_v55 }
 0x102   :  { %v680_v16 = vadd.f32 %v679_v11, %v678_v6  ;;  %v558_v3 = vunpack.c.h.bf16 %v617_v54  ;;  %v574_v5 = vunpack.c.h.bf16 %v621_v55 }
 0x103   :  { %v295_v17 = vadd.f32 %v656_v15, %v879_v36  ;;  %v380_v19 = vadd.f32 %v549_v7, %v292_v13  ;;  %v388_v20 = vadd.f32 %v565_v8, %v324_v14 }
 0x104   :  { %v327_v18 = vadd.f32 %v680_v16, %v879_v36 }
 0x105   :  { %v381_v21 = vadd.f32 %v550_v10, %v295_v17  ;;  %v657_v23 = vpop.f32.mrb[8].mxu0  ;;  %v681_v24 = vpop.f32.mrb[8].mxu1 }
 0x106   :  { %v389_v22 = vadd.f32 %v566_v12, %v327_v18  ;;  %v658_v27 = vpop.f32.mrb[9].mxu0  ;;  %v682_v28 = vpop.f32.mrb[9].mxu1 }
 0x107   :  { %v583_v29 = vpack.c.bf16 %v381_v21, %v380_v19  ;;  %v659_v31 = vadd.f32 %v658_v27, %v657_v23  ;;  %v683_v32 = vadd.f32 %v682_v28, %v681_v24  ;;  %v660_v33 = vpop.f32.mrb[10].mxu0  ;;  %v684_v34 = vpop.f32.mrb[10].mxu1 }
 0x108   :  { %v603_v30 = vpack.c.bf16 %v389_v22, %v388_v20  ;;  %v661_v38 = vpop.f32.mrb[11].mxu0  ;;  %v685_v40 = vpop.f32.mrb[11].mxu1 }
 0x109   :  { %622 = vst [vmem:[%s943_s4 + $0x8] sm:$0xff] %v583_v29   ;;  %v300_v42 = vadd.f32 %v659_v31, %v879_v36  ;;  %v332_v43 = vadd.f32 %v683_v32, %v879_v36  ;;  %v662_v44 = vadd.f32 %v661_v38, %v660_v33  ;;  %v686_v45 = vadd.f32 %v685_v40, %v684_v34 }
 0x10a   :  { %626 = vst [vmem:[%s943_s4 + $0x28] sm:$0xff] %v603_v30  }
 0x10b   :  { %v303_v46 = vadd.f32 %v662_v44, %v879_v36  ;;  %v335_v47 = vadd.f32 %v686_v45, %v879_v36  ;;  %v382_v48 = vadd.f32 %v553_v35, %v300_v42  ;;  %v390_v49 = vadd.f32 %v569_v37, %v332_v43 }
 0x10d   :  { %v383_v50 = vadd.f32 %v554_v39, %v303_v46  ;;  %v391_v51 = vadd.f32 %v570_v41, %v335_v47  ;;  %v663_v52 = vpop.f32.mrb[12].mxu0  ;;  %v687_v53 = vpop.f32.mrb[12].mxu1 }
 0x10e   :  { %v664_v56 = vpop.f32.mrb[13].mxu0  ;;  %v688_v57 = vpop.f32.mrb[13].mxu1 }
 0x10f   :  { %v588_v58 = vpack.c.bf16 %v383_v50, %v382_v48  ;;  %v608_v59 = vpack.c.bf16 %v391_v51, %v390_v49  ;;  %v665_v60 = vadd.f32 %v664_v56, %v663_v52  ;;  %v689_v61 = vadd.f32 %v688_v57, %v687_v53  ;;  %v666_v62 = vpop.f32.mrb[14].mxu0  ;;  %v690_v63 = vpop.f32.mrb[14].mxu1 }
 0x110   :  { %v667_v2 = vpop.f32.mrb[15].mxu0  ;;  %v691_v4 = vpop.f32.mrb[15].mxu1 }
 0x111   :  { %623 = vst [vmem:[%s943_s4 + $0x10] sm:$0xff] %v588_v58   ;;  %627 = vst [vmem:[%s943_s4 + $0x30] sm:$0xff] %v608_v59   ;;  %v308_v6 = vadd.f32 %v665_v60, %v879_v36  ;;  %v340_v7 = vadd.f32 %v689_v61, %v879_v36  ;;  %v668_v8 = vadd.f32 %v667_v2, %v666_v62 }
 0x112   :  { %v692_v9 = vadd.f32 %v691_v4, %v690_v63 }
 0x113   :  { %v311_v10 = vadd.f32 %v668_v8, %v879_v36  ;;  %v384_v12 = vadd.f32 %v557_v0, %v308_v6  ;;  %v392_v13 = vadd.f32 %v573_v1, %v340_v7 }
 0x114   :  { %v343_v11 = vadd.f32 %v692_v9, %v879_v36 }
 0x115   :  { %v385_v14 = vadd.f32 %v558_v3, %v311_v10 }
 0x116   :  { %v393_v15 = vadd.f32 %v574_v5, %v343_v11 }
 0x117   :  { %v593_v16 = vpack.c.bf16 %v385_v14, %v384_v12 }
 0x118   :  { %v613_v17 = vpack.c.bf16 %v393_v15, %v392_v13 }
 0x119   :  { %624 = vst [vmem:[%s943_s4 + $0x18] sm:$0xff] %v593_v16  }
 0x11a   :  { %628 = vst [vmem:[%s943_s4 + $0x38] sm:$0xff] %v613_v17  }

// kernel: unet_forward.36
= control target key start
LH: loop header
LB: loop body
LE: loop exit
PB: predicated region body
PF: predicated region fallthrough
CT: control target
= control target key end

     0   :  { %s868_s1 = inlined_call_operand.vmem [shape: bf16[256,128], index: 1, kind: input, shape index: {}]   ;;  %s869_s0 = inlined_call_operand.vmem [shape: bf16[128,256], index: 0, kind: input, shape index: {}]   ;;  %s870_s2 = inlined_call_operand.vmem [shape: f32[1,128], index: 2, kind: input, shape index: {}]   ;;  %s871_s3 = inlined_call_operand.vmem [shape: bf16[128,128], index: 3, kind: output, shape index: {}]  }
   0x1   :  { %v667_v0 = vld [vmem:[%s868_s1 + $0x40] sm:$0xff]   ;;  %v669_v2 = vld [vmem:[%s868_s1 + $0x48] sm:$0xff]   ;;  %v671_v4 = vld [vmem:[%s868_s1 + $0x50] sm:$0xff]  }
   0x2   :  { %v668_v1 = vld [vmem:[%s868_s1] sm:$0xff]   ;;  %587 = vmatprep.subr.bf16.mxu0 %v667_v0  ;;  %651 = vmatprep.subr.bf16.mxu1 %v667_v0  ;;  %v670_v3 = vld [vmem:[%s868_s1 + $0x8] sm:$0xff]   ;;  %v672_v5 = vld [vmem:[%s868_s1 + $0x10] sm:$0xff]  }
   0x3   :  { %588 = vmatpush3.bf16.msra.mxu0 %v668_v1  ;;  %659 = vmatpush3.bf16.msra.mxu1 %v668_v1  ;;  %v673_v6 = vld [vmem:[%s868_s1 + $0x58] sm:$0xff]   ;;  %v675_v8 = vld [vmem:[%s868_s1 + $0x60] sm:$0xff]   ;;  %v677_v10 = vld [vmem:[%s868_s1 + $0x68] sm:$0xff]  }
   0x4   :  { %589 = vmatprep.subr.bf16.mxu0 %v669_v2  ;;  %652 = vmatprep.subr.bf16.mxu1 %v669_v2  ;;  %v674_v7 = vld [vmem:[%s868_s1 + $0x18] sm:$0xff]   ;;  %v676_v9 = vld [vmem:[%s868_s1 + $0x20] sm:$0xff]   ;;  %v678_v13 = vld [vmem:[%s868_s1 + $0x28] sm:$0xff]  }
   0x5   :  { %v685_v11 = vld [vmem:[%s869_s0 + $0x4] ss:$8 sps:$4 sm:$0xff]   ;;  %v679_v14 = vld [vmem:[%s868_s1 + $0x70] sm:$0xff]   ;;  %v681_v16 = vld [vmem:[%s868_s1 + $0x78] sm:$0xff]  }
   0x6   :  { %v688_v12 = vld [vmem:[%s869_s0 + $0x44] ss:$8 sps:$4 sm:$0xff]   ;;  %278 = vmatprep.mubr.bf16.mxu0 %v685_v11  ;;  %v680_v15 = vld [vmem:[%s868_s1 + $0x30] sm:$0xff]   ;;  %v682_v17 = vld [vmem:[%s868_s1 + $0x38] sm:$0xff]  }
   0x7   :  { %590 = vmatpush3.bf16.msra.mxu0 %v670_v3  ;;  %660 = vmatpush3.bf16.msra.mxu1 %v670_v3  ;;  %v683_v18 = vld [vmem:[%s869_s0] ss:$8 sps:$4 sm:$0xff]   ;;  %v689_v20 = vld [vmem:[%s869_s0 + $0x14] ss:$8 sps:$4 sm:$0xff]   ;;  %v693_v22 = vld [vmem:[%s869_s0 + $0x10] ss:$8 sps:$4 sm:$0xff]  }
   0x8   :  { %591 = vmatprep.subr.bf16.mxu0 %v671_v4  ;;  %653 = vmatprep.subr.bf16.mxu1 %v671_v4  ;;  %v686_v19 = vld [vmem:[%s869_s0 + $0x40] ss:$8 sps:$4 sm:$0xff]   ;;  %v691_v21 = vld [vmem:[%s869_s0 + $0x54] ss:$8 sps:$4 sm:$0xff]   ;;  %v694_v23 = vld [vmem:[%s869_s0 + $0x50] ss:$8 sps:$4 sm:$0xff]  }
   0x9   :  { %310 = vmatprep.mubr.bf16.mxu1 %v688_v12  ;;  %v695_v24 = vld [vmem:[%s869_s0 + $0x24] ss:$8 sps:$4 sm:$0xff]   ;;  %v699_v26 = vld [vmem:[%s869_s0 + $0x20] ss:$8 sps:$4 sm:$0xff]   ;;  %v701_v28 = vld [vmem:[%s869_s0 + $0x34] ss:$8 sps:$4 sm:$0xff]  }
   0xa   :  { %v697_v25 = vld [vmem:[%s869_s0 + $0x64] ss:$8 sps:$4 sm:$0xff]   ;;  %v700_v27 = vld [vmem:[%s869_s0 + $0x60] ss:$8 sps:$4 sm:$0xff]   ;;  %v703_v29 = vld [vmem:[%s869_s0 + $0x74] ss:$8 sps:$4 sm:$0xff]  }
   0xb   :  { %592 = vmatpush3.bf16.msra.mxu0 %v672_v5  ;;  %661 = vmatpush3.bf16.msra.mxu1 %v672_v5  ;;  %v705_v30 = vld [vmem:[%s869_s0 + $0x30] ss:$8 sps:$4 sm:$0xff]   ;;  %v826_v34 = vld [vmem:[%s870_s2] ss:$0 sm:$0xff] }
   0xc   :  { %593 = vmatprep.subr.bf16.mxu0 %v673_v6  ;;  %654 = vmatprep.subr.bf16.mxu1 %v673_v6  ;;  %v706_v31 = vld [vmem:[%s869_s0 + $0x70] ss:$8 sps:$4 sm:$0xff]  }
   0xf   :  { %594 = vmatpush3.bf16.msra.mxu0 %v674_v7  ;;  %662 = vmatpush3.bf16.msra.mxu1 %v674_v7 }
  0x10   :  { %595 = vmatprep.subr.bf16.mxu0 %v675_v8  ;;  %655 = vmatprep.subr.bf16.mxu1 %v675_v8 }
  0x13   :  { %596 = vmatpush3.bf16.msra.mxu0 %v676_v9  ;;  %663 = vmatpush3.bf16.msra.mxu1 %v676_v9 }
  0x14   :  { %597 = vmatprep.subr.bf16.mxu0 %v677_v10  ;;  %656 = vmatprep.subr.bf16.mxu1 %v677_v10 }
  0x17   :  { %598 = vmatpush3.bf16.msra.mxu0 %v678_v13  ;;  %664 = vmatpush3.bf16.msra.mxu1 %v678_v13 }
  0x18   :  { %599 = vmatprep.subr.bf16.mxu0 %v679_v14  ;;  %657 = vmatprep.subr.bf16.mxu1 %v679_v14 }
  0x1b   :  { %600 = vmatpush3.bf16.msra.mxu0 %v680_v15  ;;  %665 = vmatpush3.bf16.msra.mxu1 %v680_v15 }
  0x1c   :  { %601 = vmatprep.subr.bf16.mxu0 %v681_v16  ;;  %658 = vmatprep.subr.bf16.mxu1 %v681_v16 }
  0x1f   :  { %602 = vmatpush3.bf16.msra.mxu0 %v682_v17  ;;  %666 = vmatpush3.bf16.msra.mxu1 %v682_v17 }
  0x22   :  { %279 = vmatmul.mubr.bf16.vlgmr.msra.gmra.mrb[0].mxu0 %v683_v18  ;;  %311 = vmatmul.mubr.bf16.vlgmr.msra.gmra.mrb[0].mxu1 %v686_v19 }
  0x23   :  { %286 = vmatprep.mubr.bf16.mxu0 %v689_v20  ;;  %318 = vmatprep.mubr.bf16.mxu1 %v691_v21 }
  0x2a   :  { %287 = vmatmul.mubr.bf16.gmra.mrb[4].mxu0 %v693_v22  ;;  %319 = vmatmul.mubr.bf16.gmra.mrb[4].mxu1 %v694_v23 }
  0x2b   :  { %294 = vmatprep.mubr.bf16.mxu0 %v695_v24  ;;  %326 = vmatprep.mubr.bf16.mxu1 %v697_v25 }
  0x32   :  { %295 = vmatmul.mubr.bf16.gmra.mrb[8].mxu0 %v699_v26  ;;  %327 = vmatmul.mubr.bf16.gmra.mrb[8].mxu1 %v700_v27 }
  0x33   :  { %302 = vmatprep.mubr.bf16.mxu0 %v701_v28  ;;  %334 = vmatprep.mubr.bf16.mxu1 %v703_v29 }
  0x3a   :  { %303 = vmatmul.mubr.bf16.gmra.mrb[12].mxu0 %v705_v30  ;;  %335 = vmatmul.mubr.bf16.gmra.mrb[12].mxu1 %v706_v31 }
  0xf5   :  { %v603_v32 = vpop.f32.mrb[0].mxu0  ;;  %v627_v33 = vpop.f32.mrb[0].mxu1 }
  0xf6   :  { %v604_v35 = vpop.f32.mrb[1].mxu0  ;;  %v628_v36 = vpop.f32.mrb[1].mxu1 }
  0xf7   :  { %v605_v37 = vadd.f32 %v604_v35, %v603_v32  ;;  %v629_v38 = vadd.f32 %v628_v36, %v627_v33  ;;  %v606_v39 = vpop.f32.mrb[2].mxu0  ;;  %v630_v40 = vpop.f32.mrb[2].mxu1 }
  0xf8   :  { %v607_v41 = vpop.f32.mrb[3].mxu0  ;;  %v631_v42 = vpop.f32.mrb[3].mxu1 }
  0xf9   :  { %v281_v43 = vadd.f32 %v605_v37, %v826_v34  ;;  %v313_v44 = vadd.f32 %v629_v38, %v826_v34  ;;  %v608_v45 = vadd.f32 %v607_v41, %v606_v39  ;;  %v632_v46 = vadd.f32 %v631_v42, %v630_v40 }
  0xfb   :  { %v359_v47 = vmul.f32 0.2, %v281_v43  ;;  %v367_v48 = vmul.f32 0.2, %v313_v44  ;;  %vm343_vm0 = vcmp.ge.f32.partialorder %v281_v43, 0.0  ;;  %vm351_vm1 = vcmp.ge.f32.partialorder %v313_v44, 0.0 }
  0xfc   :  { %v284_v49 = vadd.f32 %v608_v45, %v826_v34  ;;  %v316_v50 = vadd.f32 %v632_v46, %v826_v34 }
  0xfd   :  { %v609_v51 = vpop.f32.mrb[4].mxu0  ;;  %v633_v52 = vpop.f32.mrb[4].mxu1  ;;  %v375_v55 = vsel %vm343_vm0, %v281_v43, %v359_v47  ;;  %v383_v56 = vsel %vm351_vm1, %v313_v44, %v367_v48 }
  0xfe   :  { %vm344_vm2 = vcmp.ge.f32.partialorder %v284_v49, 0.0  ;;  %v360_v53 = vmul.f32 0.2, %v284_v49  ;;  %vm352_vm3 = vcmp.ge.f32.partialorder %v316_v50, 0.0  ;;  %v368_v54 = vmul.f32 0.2, %v316_v50 }
  0xff   :  { %v610_v57 = vpop.f32.mrb[5].mxu0  ;;  %v634_v58 = vpop.f32.mrb[5].mxu1 }
 0x100   :  { %v376_v59 = vsel %vm344_vm2, %v284_v49, %v360_v53  ;;  %v384_v60 = vsel %vm352_vm3, %v316_v50, %v368_v54  ;;  %v611_v61 = vadd.f32 %v610_v57, %v609_v51  ;;  %v635_v62 = vadd.f32 %v634_v58, %v633_v52  ;;  %v612_v63 = vpop.f32.mrb[6].mxu0  ;;  %v636_v0 = vpop.f32.mrb[6].mxu1 }
 0x101   :  { %v543_v1 = vpack.c.bf16 %v376_v59, %v375_v55  ;;  %v563_v2 = vpack.c.bf16 %v384_v60, %v383_v56  ;;  %v613_v3 = vpop.f32.mrb[7].mxu0  ;;  %v637_v4 = vpop.f32.mrb[7].mxu1 }
 0x102   :  { %v289_v5 = vadd.f32 %v611_v61, %v826_v34  ;;  %v321_v6 = vadd.f32 %v635_v62, %v826_v34  ;;  %v614_v7 = vadd.f32 %v613_v3, %v612_v63  ;;  %v638_v8 = vadd.f32 %v637_v4, %v636_v0 }
 0x103   :  { %544 = vst [vmem:[%s871_s3] sm:$0xff] %v543_v1   ;;  %583 = vst [vmem:[%s871_s3 + $0x20] sm:$0xff] %v563_v2  }
 0x104   :  { %v361_v9 = vmul.f32 0.2, %v289_v5  ;;  %v369_v10 = vmul.f32 0.2, %v321_v6  ;;  %v292_v11 = vadd.f32 %v614_v7, %v826_v34  ;;  %v324_v12 = vadd.f32 %v638_v8, %v826_v34 }
 0x105   :  { %v615_v13 = vpop.f32.mrb[8].mxu0  ;;  %v639_v14 = vpop.f32.mrb[8].mxu1  ;;  %vm345_vm4 = vcmp.ge.f32.partialorder %v289_v5, 0.0  ;;  %vm353_vm5 = vcmp.ge.f32.partialorder %v321_v6, 0.0 }
 0x106   :  { %v616_v15 = vpop.f32.mrb[9].mxu0  ;;  %v640_v16 = vpop.f32.mrb[9].mxu1  ;;  %vm346_vm6 = vcmp.ge.f32.partialorder %v292_v11, 0.0  ;;  %v362_v17 = vmul.f32 0.2, %v292_v11  ;;  %vm354_vm7 = vcmp.ge.f32.partialorder %v324_v12, 0.0  ;;  %v377_v23 = vsel %vm345_vm4, %v289_v5, %v361_v9 }
 0x107   :  { %v370_v18 = vmul.f32 0.2, %v324_v12  ;;  %v617_v19 = vadd.f32 %v616_v15, %v615_v13  ;;  %v641_v20 = vadd.f32 %v640_v16, %v639_v14  ;;  %v618_v21 = vpop.f32.mrb[10].mxu0  ;;  %v642_v22 = vpop.f32.mrb[10].mxu1  ;;  %v385_v24 = vsel %vm353_vm5, %v321_v6, %v369_v10 }
 0x108   :  { %v378_v25 = vsel %vm346_vm6, %v292_v11, %v362_v17  ;;  %v619_v27 = vpop.f32.mrb[11].mxu0  ;;  %v643_v28 = vpop.f32.mrb[11].mxu1 }
 0x109   :  { %v386_v26 = vsel %vm354_vm7, %v324_v12, %v370_v18  ;;  %v548_v29 = vpack.c.bf16 %v378_v25, %v377_v23  ;;  %v297_v31 = vadd.f32 %v617_v19, %v826_v34  ;;  %v329_v32 = vadd.f32 %v641_v20, %v826_v34 }
 0x10a   :  { %v568_v30 = vpack.c.bf16 %v386_v26, %v385_v24  ;;  %v620_v33 = vadd.f32 %v619_v27, %v618_v21  ;;  %v644_v35 = vadd.f32 %v643_v28, %v642_v22 }
 0x10b   :  { %580 = vst [vmem:[%s871_s3 + $0x8] sm:$0xff] %v548_v29   ;;  %v363_v36 = vmul.f32 0.2, %v297_v31  ;;  %v371_v37 = vmul.f32 0.2, %v329_v32  ;;  %vm347_vm8 = vcmp.ge.f32.partialorder %v297_v31, 0.0 }
 0x10c   :  { %584 = vst [vmem:[%s871_s3 + $0x28] sm:$0xff] %v568_v30   ;;  %v300_v38 = vadd.f32 %v620_v33, %v826_v34  ;;  %v332_v39 = vadd.f32 %v644_v35, %v826_v34  ;;  %vm355_vm9 = vcmp.ge.f32.partialorder %v329_v32, 0.0 }
 0x10d   :  { %v621_v40 = vpop.f32.mrb[12].mxu0  ;;  %v645_v41 = vpop.f32.mrb[12].mxu1  ;;  %v379_v50 = vsel %vm347_vm8, %v297_v31, %v363_v36  ;;  %v387_v51 = vsel %vm355_vm9, %v329_v32, %v371_v37 }
 0x10e   :  { %v622_v42 = vpop.f32.mrb[13].mxu0  ;;  %v646_v43 = vpop.f32.mrb[13].mxu1  ;;  %vm348_vm10 = vcmp.ge.f32.partialorder %v300_v38, 0.0  ;;  %v364_v44 = vmul.f32 0.2, %v300_v38  ;;  %vm356_vm11 = vcmp.ge.f32.partialorder %v332_v39, 0.0 }
 0x10f   :  { %v372_v45 = vmul.f32 0.2, %v332_v39  ;;  %v623_v46 = vadd.f32 %v622_v42, %v621_v40  ;;  %v647_v47 = vadd.f32 %v646_v43, %v645_v41  ;;  %v624_v48 = vpop.f32.mrb[14].mxu0  ;;  %v648_v49 = vpop.f32.mrb[14].mxu1 }
 0x110   :  { %v380_v52 = vsel %vm348_vm10, %v300_v38, %v364_v44  ;;  %v625_v54 = vpop.f32.mrb[15].mxu0  ;;  %v649_v55 = vpop.f32.mrb[15].mxu1 }
 0x111   :  { %v388_v53 = vsel %vm356_vm11, %v332_v39, %v372_v45  ;;  %v553_v56 = vpack.c.bf16 %v380_v52, %v379_v50  ;;  %v305_v58 = vadd.f32 %v623_v46, %v826_v34  ;;  %v337_v59 = vadd.f32 %v647_v47, %v826_v34 }
 0x112   :  { %v573_v57 = vpack.c.bf16 %v388_v53, %v387_v51  ;;  %v626_v60 = vadd.f32 %v625_v54, %v624_v48  ;;  %v650_v61 = vadd.f32 %v649_v55, %v648_v49 }
 0x113   :  { %581 = vst [vmem:[%s871_s3 + $0x10] sm:$0xff] %v553_v56   ;;  %v365_v62 = vmul.f32 0.2, %v305_v58  ;;  %v373_v63 = vmul.f32 0.2, %v337_v59  ;;  %vm349_vm12 = vcmp.ge.f32.partialorder %v305_v58, 0.0 }
 0x114   :  { %585 = vst [vmem:[%s871_s3 + $0x30] sm:$0xff] %v573_v57   ;;  %v308_v0 = vadd.f32 %v626_v60, %v826_v34  ;;  %v340_v1 = vadd.f32 %v650_v61, %v826_v34  ;;  %vm357_vm13 = vcmp.ge.f32.partialorder %v337_v59, 0.0 }
 0x115   :  { %v381_v4 = vsel %vm349_vm12, %v305_v58, %v365_v62  ;;  %v389_v5 = vsel %vm357_vm13, %v337_v59, %v373_v63 }
 0x116   :  { %vm350_vm14 = vcmp.ge.f32.partialorder %v308_v0, 0.0  ;;  %v366_v2 = vmul.f32 0.2, %v308_v0  ;;  %vm358_vm15 = vcmp.ge.f32.partialorder %v340_v1, 0.0  ;;  %v374_v3 = vmul.f32 0.2, %v340_v1 }
 0x118   :  { %v382_v6 = vsel %vm350_vm14, %v308_v0, %v366_v2  ;;  %v390_v7 = vsel %vm358_vm15, %v340_v1, %v374_v3 }
 0x119   :  { %v558_v8 = vpack.c.bf16 %v382_v6, %v381_v4  ;;  %v578_v9 = vpack.c.bf16 %v390_v7, %v389_v5 }
 0x11b   :  { %582 = vst [vmem:[%s871_s3 + $0x18] sm:$0xff] %v558_v8   ;;  %586 = vst [vmem:[%s871_s3 + $0x38] sm:$0xff] %v578_v9  }

// kernel: unet_forward.52
= control target key start
LH: loop header
LB: loop body
LE: loop exit
PB: predicated region body
PF: predicated region fallthrough
CT: control target
= control target key end

     0   :  { %s1157_s1 = inlined_call_operand.vmem [shape: bf16[384,128], index: 1, kind: input, shape index: {}]   ;;  %s1158_s0 = inlined_call_operand.vmem [shape: bf16[128,384], index: 0, kind: input, shape index: {}]   ;;  %s1159_s2 = inlined_call_operand.vmem [shape: f32[1,128], index: 2, kind: input, shape index: {}]   ;;  %s1160_s3 = inlined_call_operand.vmem [shape: bf16[128,128], index: 3, kind: output, shape index: {}]  }
   0x1   :  { %v892_v0 = vld [vmem:[%s1157_s1 + $0x40] sm:$0xff]   ;;  %v894_v2 = vld [vmem:[%s1157_s1 + $0x48] sm:$0xff]   ;;  %v897_v5 = vld [vmem:[%s1157_s1 + $0x50] sm:$0xff]  }
   0x2   :  { %v893_v1 = vld [vmem:[%s1157_s1] sm:$0xff]   ;;  %780 = vmatprep.subr.bf16.mxu0 %v892_v0  ;;  %v896_v4 = vld [vmem:[%s1157_s1 + $0x8] sm:$0xff]   ;;  %v899_v7 = vld [vmem:[%s1157_s1 + $0x10] sm:$0xff]  }
   0x3   :  { %781 = vmatpush3.bf16.msra.mxu0 %v893_v1  ;;  %v895_v3 = vld [vmem:[%s1157_s1 + $0x80] sm:$0xff]   ;;  %v898_v6 = vld [vmem:[%s1157_s1 + $0x88] sm:$0xff]   ;;  %v900_v8 = vld [vmem:[%s1157_s1 + $0x58] sm:$0xff]  }
   0x4   :  { %782 = vmatprep.subr.bf16.mxu0 %v894_v2  ;;  %860 = vmatprep.subr.bf16.mxu1 %v895_v3  ;;  %v901_v9 = vld [vmem:[%s1157_s1 + $0x90] sm:$0xff]   ;;  %v902_v10 = vld [vmem:[%s1157_s1 + $0x18] sm:$0xff]   ;;  %v903_v11 = vld [vmem:[%s1157_s1 + $0x60] sm:$0xff]  }
   0x5   :  { %861 = vmatpush3.bf16.msra.mxu1 %v895_v3  ;;  %v904_v12 = vld [vmem:[%s1157_s1 + $0x98] sm:$0xff]   ;;  %v905_v13 = vld [vmem:[%s1157_s1 + $0x20] sm:$0xff]   ;;  %v906_v15 = vld [vmem:[%s1157_s1 + $0x68] sm:$0xff]  }
   0x6   :  { %862 = vmatprep.subr.bf16.mxu1 %v898_v6  ;;  %v907_v14 = vld [vmem:[%s1157_s1 + $0xa0] sm:$0xff]   ;;  %v908_v16 = vld [vmem:[%s1157_s1 + $0x28] sm:$0xff]   ;;  %v909_v18 = vld [vmem:[%s1157_s1 + $0x70] sm:$0xff]  }
   0x7   :  { %783 = vmatpush3.bf16.msra.mxu0 %v896_v4  ;;  %v910_v17 = vld [vmem:[%s1157_s1 + $0xa8] sm:$0xff]   ;;  %v911_v19 = vld [vmem:[%s1157_s1 + $0x30] sm:$0xff]   ;;  %v912_v20 = vld [vmem:[%s1157_s1 + $0x78] sm:$0xff]  }
   0x8   :  { %784 = vmatprep.subr.bf16.mxu0 %v897_v5  ;;  %v913_v21 = vld [vmem:[%s1157_s1 + $0xb0] sm:$0xff]   ;;  %v914_v23 = vld [vmem:[%s1157_s1 + $0x38] sm:$0xff]   ;;  %v915_v26 = vld [vmem:[%s1158_s0] ss:$12 sps:$4 sm:$0xff]  }
   0x9   :  { %863 = vmatpush3.bf16.msra.mxu1 %v898_v6  ;;  %v917_v22 = vld [vmem:[%s1158_s0 + $0x4] ss:$12 sps:$4 sm:$0xff]   ;;  %v919_v24 = vld [vmem:[%s1158_s0 + $0x8] ss:$12 sps:$4 sm:$0xff]   ;;  %v918_v25 = vld [vmem:[%s1157_s1 + $0xb8] sm:$0xff]  }
   0xa   :  { %864 = vmatprep.subr.bf16.mxu1 %v901_v9  ;;  %406 = vmatprep.mubr.bf16.mxu0 %v917_v22  ;;  %v921_v27 = vld [vmem:[%s1158_s0 + $0x1c] ss:$12 sps:$4 sm:$0xff]   ;;  %v920_v28 = vld [vmem:[%s1158_s0 + $0x20] ss:$12 sps:$4 sm:$0xff]   ;;  %v927_v29 = vld [vmem:[%s1158_s0 + $0x38] ss:$12 sps:$4 sm:$0xff]  }
   0xb   :  { %785 = vmatpush3.bf16.msra.mxu0 %v899_v7  ;;  %876 = vmatprep.mubr.bf16.mxu1 %v919_v24  ;;  %v923_v30 = vld [vmem:[%s1158_s0 + $0x18] ss:$12 sps:$4 sm:$0xff]   ;;  %v924_v31 = vld [vmem:[%s1158_s0 + $0x34] ss:$12 sps:$4 sm:$0xff]   ;;  %v928_v32 = vld [vmem:[%s1158_s0 + $0x50] ss:$12 sps:$4 sm:$0xff]  }
   0xc   :  { %786 = vmatprep.subr.bf16.mxu0 %v900_v8  ;;  %v935_v33 = vld [vmem:[%s1158_s0 + $0x68] ss:$12 sps:$4 sm:$0xff]   ;;  %v926_v34 = vld [vmem:[%s1158_s0 + $0x30] ss:$12 sps:$4 sm:$0xff]   ;;  %v929_v35 = vld [vmem:[%s1158_s0 + $0x4c] ss:$12 sps:$4 sm:$0xff]  }
   0xd   :  { %865 = vmatpush3.bf16.msra.mxu1 %v901_v9  ;;  %v936_v36 = vld [vmem:[%s1158_s0 + $0x80] ss:$12 sps:$4 sm:$0xff]   ;;  %v943_v37 = vld [vmem:[%s1158_s0 + $0x98] ss:$12 sps:$4 sm:$0xff]   ;;  %v931_v38 = vld [vmem:[%s1158_s0 + $0x48] ss:$12 sps:$4 sm:$0xff]  }
   0xe   :  { %866 = vmatprep.subr.bf16.mxu1 %v904_v12  ;;  %v932_v39 = vld [vmem:[%s1158_s0 + $0x64] ss:$12 sps:$4 sm:$0xff]   ;;  %v934_v41 = vld [vmem:[%s1158_s0 + $0x60] ss:$12 sps:$4 sm:$0xff]   ;;  %v937_v42 = vld [vmem:[%s1158_s0 + $0x7c] ss:$12 sps:$4 sm:$0xff]  }
   0xf   :  { %787 = vmatpush3.bf16.msra.mxu0 %v902_v10  ;;  %v944_v40 = vld [vmem:[%s1158_s0 + $0xb0] ss:$12 sps:$4 sm:$0xff]   ;;  %v939_v43 = vld [vmem:[%s1158_s0 + $0x78] ss:$12 sps:$4 sm:$0xff]   ;;  %v940_v44 = vld [vmem:[%s1158_s0 + $0x94] ss:$12 sps:$4 sm:$0xff]  }
  0x10   :  { %788 = vmatprep.subr.bf16.mxu0 %v903_v11  ;;  %v942_v45 = vld [vmem:[%s1158_s0 + $0x90] ss:$12 sps:$4 sm:$0xff]   ;;  %v945_v46 = vld [vmem:[%s1158_s0 + $0xac] ss:$12 sps:$4 sm:$0xff]   ;;  %v947_v47 = vld [vmem:[%s1158_s0 + $0xa8] ss:$12 sps:$4 sm:$0xff]  }
  0x11   :  { %867 = vmatpush3.bf16.msra.mxu1 %v904_v12  ;;  %v1115_v50 = vld [vmem:[%s1159_s2] ss:$0 sm:$0xff] }
  0x12   :  { %868 = vmatprep.subr.bf16.mxu1 %v907_v14 }
  0x13   :  { %789 = vmatpush3.bf16.msra.mxu0 %v905_v13 }
  0x14   :  { %790 = vmatprep.subr.bf16.mxu0 %v906_v15 }
  0x15   :  { %869 = vmatpush3.bf16.msra.mxu1 %v907_v14 }
  0x16   :  { %870 = vmatprep.subr.bf16.mxu1 %v910_v17 }
  0x17   :  { %791 = vmatpush3.bf16.msra.mxu0 %v908_v16 }
  0x18   :  { %792 = vmatprep.subr.bf16.mxu0 %v909_v18 }
  0x19   :  { %871 = vmatpush3.bf16.msra.mxu1 %v910_v17 }
  0x1a   :  { %872 = vmatprep.subr.bf16.mxu1 %v913_v21 }
  0x1b   :  { %793 = vmatpush3.bf16.msra.mxu0 %v911_v19 }
  0x1c   :  { %794 = vmatprep.subr.bf16.mxu0 %v912_v20 }
  0x1d   :  { %873 = vmatpush3.bf16.msra.mxu1 %v913_v21 }
  0x1e   :  { %874 = vmatprep.subr.bf16.mxu1 %v918_v25 }
  0x1f   :  { %795 = vmatpush3.bf16.msra.mxu0 %v914_v23 }
  0x21   :  { %875 = vmatpush3.bf16.msra.mxu1 %v918_v25 }
  0x22   :  { %407 = vmatmul.mubr.bf16.vlgmr.msra.gmra.mrb[0].mxu0 %v915_v26 }
  0x23   :  { %414 = vmatprep.mubr.bf16.mxu0 %v921_v27 }
  0x24   :  { %877 = vmatmul.mubr.bf16.vlgmr.msra.gmra.mrb[0].mxu1 %v920_v28 }
  0x25   :  { %880 = vmatprep.mubr.bf16.mxu1 %v927_v29 }
  0x2a   :  { %415 = vmatmul.mubr.bf16.gmra.mrb[4].mxu0 %v923_v30 }
  0x2b   :  { %422 = vmatprep.mubr.bf16.mxu0 %v924_v31 }
  0x2c   :  { %881 = vmatmul.mubr.bf16.gmra.mrb[4].mxu1 %v928_v32 }
  0x2d   :  { %884 = vmatprep.mubr.bf16.mxu1 %v935_v33 }
  0x32   :  { %423 = vmatmul.mubr.bf16.gmra.mrb[8].mxu0 %v926_v34 }
  0x33   :  { %430 = vmatprep.mubr.bf16.mxu0 %v929_v35 }
  0x34   :  { %885 = vmatmul.mubr.bf16.gmra.mrb[8].mxu1 %v936_v36 }
  0x35   :  { %888 = vmatprep.mubr.bf16.mxu1 %v943_v37 }
  0x3a   :  { %431 = vmatmul.mubr.bf16.gmra.mrb[12].mxu0 %v931_v38 }
  0x3b   :  { %438 = vmatprep.mubr.bf16.mxu0 %v932_v39 }
  0x3c   :  { %889 = vmatmul.mubr.bf16.gmra.mrb[12].mxu1 %v944_v40 }
  0x42   :  { %439 = vmatmul.mubr.bf16.gmra.mrb[16].mxu0 %v934_v41 }
  0x43   :  { %446 = vmatprep.mubr.bf16.mxu0 %v937_v42 }
  0x4a   :  { %447 = vmatmul.mubr.bf16.gmra.mrb[20].mxu0 %v939_v43 }
  0x4b   :  { %454 = vmatprep.mubr.bf16.mxu0 %v940_v44 }
  0x52   :  { %455 = vmatmul.mubr.bf16.gmra.mrb[24].mxu0 %v942_v45 }
  0x53   :  { %462 = vmatprep.mubr.bf16.mxu0 %v945_v46 }
  0x5a   :  { %463 = vmatmul.mubr.bf16.gmra.mrb[28].mxu0 %v947_v47 }
  0xf5   :  { %v796_v48 = vpop.f32.mrb[0].mxu0 }
  0xf6   :  { %v797_v49 = vpop.f32.mrb[1].mxu0 }
  0xf7   :  { %v798_v51 = vadd.f32 %v797_v49, %v796_v48  ;;  %v799_v52 = vpop.f32.mrb[2].mxu0  ;;  %v878_v54 = vpop.f32.mrb[0].mxu1 }
  0xf8   :  { %v800_v53 = vpop.f32.mrb[3].mxu0  ;;  %v505_v57 = vpop.f32.mrb[1].mxu1 }
  0xf9   :  { %v801_v55 = vadd.f32 %v800_v53, %v799_v52  ;;  %v409_v56 = vadd.f32 %v798_v51, %v1115_v50  ;;  %v879_v58 = vpop.f32.mrb[2].mxu1 }
  0xfa   :  { %v508_v61 = vpop.f32.mrb[3].mxu1 }
  0xfb   :  { %v506_v59 = vadd.f32 %v505_v57, %v409_v56  ;;  %v412_v60 = vadd.f32 %v801_v55, %v1115_v50 }
  0xfd   :  { %v509_v62 = vadd.f32 %v508_v61, %v412_v60  ;;  %v802_v63 = vpop.f32.mrb[4].mxu0 }
  0xfe   :  { %v803_v0 = vpop.f32.mrb[5].mxu0 }
  0xff   :  { %v736_v1 = vpack.c.bf16 %v509_v62, %v506_v59  ;;  %v804_v2 = vadd.f32 %v803_v0, %v802_v63  ;;  %v805_v3 = vpop.f32.mrb[6].mxu0  ;;  %v882_v5 = vpop.f32.mrb[4].mxu1 }
 0x100   :  { %v806_v4 = vpop.f32.mrb[7].mxu0  ;;  %v521_v8 = vpop.f32.mrb[5].mxu1 }
 0x101   :  { %737 = vst [vmem:[%s1160_s3] sm:$0xff] %v736_v1   ;;  %v417_v6 = vadd.f32 %v804_v2, %v1115_v50  ;;  %v807_v7 = vadd.f32 %v806_v4, %v805_v3  ;;  %v883_v9 = vpop.f32.mrb[6].mxu1 }
 0x102   :  { %v524_v12 = vpop.f32.mrb[7].mxu1 }
 0x103   :  { %v514_v10 = vadd.f32 %v878_v54, %v417_v6  ;;  %v420_v11 = vadd.f32 %v807_v7, %v1115_v50 }
 0x105   :  { %v517_v13 = vadd.f32 %v879_v58, %v420_v11  ;;  %v808_v14 = vpop.f32.mrb[8].mxu0 }
 0x106   :  { %v809_v15 = vpop.f32.mrb[9].mxu0 }
 0x107   :  { %v741_v16 = vpack.c.bf16 %v517_v13, %v514_v10  ;;  %v810_v17 = vadd.f32 %v809_v15, %v808_v14  ;;  %v811_v18 = vpop.f32.mrb[10].mxu0  ;;  %v886_v20 = vpop.f32.mrb[8].mxu1 }
 0x108   :  { %v812_v19 = vpop.f32.mrb[11].mxu0  ;;  %v537_v23 = vpop.f32.mrb[9].mxu1 }
 0x109   :  { %773 = vst [vmem:[%s1160_s3 + $0x8] sm:$0xff] %v741_v16   ;;  %v813_v21 = vadd.f32 %v812_v19, %v811_v18  ;;  %v425_v22 = vadd.f32 %v810_v17, %v1115_v50  ;;  %v887_v24 = vpop.f32.mrb[10].mxu1 }
 0x10a   :  { %v540_v27 = vpop.f32.mrb[11].mxu1 }
 0x10b   :  { %v522_v25 = vadd.f32 %v521_v8, %v425_v22  ;;  %v428_v26 = vadd.f32 %v813_v21, %v1115_v50 }
 0x10d   :  { %v525_v28 = vadd.f32 %v524_v12, %v428_v26  ;;  %v814_v29 = vpop.f32.mrb[12].mxu0 }
 0x10e   :  { %v815_v30 = vpop.f32.mrb[13].mxu0 }
 0x10f   :  { %v746_v31 = vpack.c.bf16 %v525_v28, %v522_v25  ;;  %v816_v32 = vadd.f32 %v815_v30, %v814_v29  ;;  %v817_v33 = vpop.f32.mrb[14].mxu0  ;;  %v890_v35 = vpop.f32.mrb[12].mxu1 }
 0x110   :  { %v818_v34 = vpop.f32.mrb[15].mxu0  ;;  %v553_v38 = vpop.f32.mrb[13].mxu1 }
 0x111   :  { %774 = vst [vmem:[%s1160_s3 + $0x10] sm:$0xff] %v746_v31   ;;  %v433_v36 = vadd.f32 %v816_v32, %v1115_v50  ;;  %v819_v37 = vadd.f32 %v818_v34, %v817_v33  ;;  %v891_v39 = vpop.f32.mrb[14].mxu1 }
 0x112   :  { %v556_v42 = vpop.f32.mrb[15].mxu1 }
 0x113   :  { %v530_v40 = vadd.f32 %v882_v5, %v433_v36  ;;  %v436_v41 = vadd.f32 %v819_v37, %v1115_v50 }
 0x115   :  { %v533_v43 = vadd.f32 %v883_v9, %v436_v41  ;;  %v820_v44 = vpop.f32.mrb[16].mxu0 }
 0x116   :  { %v821_v45 = vpop.f32.mrb[17].mxu0 }
 0x117   :  { %v751_v46 = vpack.c.bf16 %v533_v43, %v530_v40  ;;  %v822_v47 = vadd.f32 %v821_v45, %v820_v44  ;;  %v823_v48 = vpop.f32.mrb[18].mxu0 }
 0x118   :  { %v824_v49 = vpop.f32.mrb[19].mxu0 }
 0x119   :  { %775 = vst [vmem:[%s1160_s3 + $0x18] sm:$0xff] %v751_v46   ;;  %v825_v51 = vadd.f32 %v824_v49, %v823_v48  ;;  %v441_v52 = vadd.f32 %v822_v47, %v1115_v50 }
 0x11b   :  { %v538_v53 = vadd.f32 %v537_v23, %v441_v52  ;;  %v444_v54 = vadd.f32 %v825_v51, %v1115_v50 }
 0x11d   :  { %v541_v55 = vadd.f32 %v540_v27, %v444_v54  ;;  %v826_v56 = vpop.f32.mrb[20].mxu0 }
 0x11e   :  { %v827_v57 = vpop.f32.mrb[21].mxu0 }
 0x11f   :  { %v756_v58 = vpack.c.bf16 %v541_v55, %v538_v53  ;;  %v828_v59 = vadd.f32 %v827_v57, %v826_v56  ;;  %v829_v60 = vpop.f32.mrb[22].mxu0 }
 0x120   :  { %v830_v61 = vpop.f32.mrb[23].mxu0 }
 0x121   :  { %776 = vst [vmem:[%s1160_s3 + $0x20] sm:$0xff] %v756_v58   ;;  %v449_v62 = vadd.f32 %v828_v59, %v1115_v50  ;;  %v831_v63 = vadd.f32 %v830_v61, %v829_v60 }
 0x123   :  { %v546_v0 = vadd.f32 %v886_v20, %v449_v62  ;;  %v452_v1 = vadd.f32 %v831_v63, %v1115_v50 }
 0x125   :  { %v549_v2 = vadd.f32 %v887_v24, %v452_v1  ;;  %v832_v3 = vpop.f32.mrb[24].mxu0 }
 0x126   :  { %v833_v4 = vpop.f32.mrb[25].mxu0 }
 0x127   :  { %v761_v5 = vpack.c.bf16 %v549_v2, %v546_v0  ;;  %v834_v6 = vadd.f32 %v833_v4, %v832_v3  ;;  %v835_v7 = vpop.f32.mrb[26].mxu0 }
 0x128   :  { %v836_v8 = vpop.f32.mrb[27].mxu0 }
 0x129   :  { %777 = vst [vmem:[%s1160_s3 + $0x28] sm:$0xff] %v761_v5   ;;  %v837_v9 = vadd.f32 %v836_v8, %v835_v7  ;;  %v457_v10 = vadd.f32 %v834_v6, %v1115_v50 }
 0x12b   :  { %v554_v11 = vadd.f32 %v553_v38, %v457_v10  ;;  %v460_v12 = vadd.f32 %v837_v9, %v1115_v50 }
 0x12d   :  { %v557_v13 = vadd.f32 %v556_v42, %v460_v12  ;;  %v838_v14 = vpop.f32.mrb[28].mxu0 }
 0x12e   :  { %v839_v15 = vpop.f32.mrb[29].mxu0 }
 0x12f   :  { %v766_v16 = vpack.c.bf16 %v557_v13, %v554_v11  ;;  %v840_v17 = vadd.f32 %v839_v15, %v838_v14  ;;  %v841_v18 = vpop.f32.mrb[30].mxu0 }
 0x130   :  { %v842_v19 = vpop.f32.mrb[31].mxu0 }
 0x131   :  { %778 = vst [vmem:[%s1160_s3 + $0x30] sm:$0xff] %v766_v16   ;;  %v465_v20 = vadd.f32 %v840_v17, %v1115_v50  ;;  %v843_v21 = vadd.f32 %v842_v19, %v841_v18 }
 0x133   :  { %v562_v22 = vadd.f32 %v890_v35, %v465_v20  ;;  %v468_v23 = vadd.f32 %v843_v21, %v1115_v50 }
 0x135   :  { %v565_v24 = vadd.f32 %v891_v39, %v468_v23 }
 0x137   :  { %v771_v25 = vpack.c.bf16 %v565_v24, %v562_v22 }
 0x139   :  { %779 = vst [vmem:[%s1160_s3 + $0x38] sm:$0xff] %v771_v25  }

// kernel: unet_forward.37
= control target key start
LH: loop header
LB: loop body
LE: loop exit
PB: predicated region body
PF: predicated region fallthrough
CT: control target
= control target key end

     0   :  { %s1217_s1 = inlined_call_operand.vmem [shape: bf16[384,128], index: 1, kind: input, shape index: {}]   ;;  %s1218_s0 = inlined_call_operand.vmem [shape: bf16[128,384], index: 0, kind: input, shape index: {}]   ;;  %s1219_s2 = inlined_call_operand.vmem [shape: f32[1,128], index: 2, kind: input, shape index: {}]   ;;  %s1220_s3 = inlined_call_operand.vmem [shape: bf16[128,128], index: 3, kind: output, shape index: {}]  }
   0x1   :  { %v940_v0 = vld [vmem:[%s1217_s1 + $0x40] sm:$0xff]   ;;  %v942_v2 = vld [vmem:[%s1217_s1 + $0x48] sm:$0xff]   ;;  %v945_v5 = vld [vmem:[%s1217_s1 + $0x50] sm:$0xff]  }
   0x2   :  { %v941_v1 = vld [vmem:[%s1217_s1] sm:$0xff]   ;;  %828 = vmatprep.subr.bf16.mxu0 %v940_v0  ;;  %v944_v4 = vld [vmem:[%s1217_s1 + $0x8] sm:$0xff]   ;;  %v947_v7 = vld [vmem:[%s1217_s1 + $0x10] sm:$0xff]  }
   0x3   :  { %829 = vmatpush3.bf16.msra.mxu0 %v941_v1  ;;  %v943_v3 = vld [vmem:[%s1217_s1 + $0x80] sm:$0xff]   ;;  %v946_v6 = vld [vmem:[%s1217_s1 + $0x88] sm:$0xff]   ;;  %v948_v8 = vld [vmem:[%s1217_s1 + $0x58] sm:$0xff]  }
   0x4   :  { %830 = vmatprep.subr.bf16.mxu0 %v942_v2  ;;  %908 = vmatprep.subr.bf16.mxu1 %v943_v3  ;;  %v949_v9 = vld [vmem:[%s1217_s1 + $0x90] sm:$0xff]   ;;  %v950_v10 = vld [vmem:[%s1217_s1 + $0x18] sm:$0xff]   ;;  %v951_v11 = vld [vmem:[%s1217_s1 + $0x60] sm:$0xff]  }
   0x5   :  { %909 = vmatpush3.bf16.msra.mxu1 %v943_v3  ;;  %v952_v12 = vld [vmem:[%s1217_s1 + $0x98] sm:$0xff]   ;;  %v953_v13 = vld [vmem:[%s1217_s1 + $0x20] sm:$0xff]   ;;  %v954_v15 = vld [vmem:[%s1217_s1 + $0x68] sm:$0xff]  }
   0x6   :  { %910 = vmatprep.subr.bf16.mxu1 %v946_v6  ;;  %v955_v14 = vld [vmem:[%s1217_s1 + $0xa0] sm:$0xff]   ;;  %v956_v16 = vld [vmem:[%s1217_s1 + $0x28] sm:$0xff]   ;;  %v957_v18 = vld [vmem:[%s1217_s1 + $0x70] sm:$0xff]  }
   0x7   :  { %831 = vmatpush3.bf16.msra.mxu0 %v944_v4  ;;  %v958_v17 = vld [vmem:[%s1217_s1 + $0xa8] sm:$0xff]   ;;  %v959_v19 = vld [vmem:[%s1217_s1 + $0x30] sm:$0xff]   ;;  %v960_v20 = vld [vmem:[%s1217_s1 + $0x78] sm:$0xff]  }
   0x8   :  { %832 = vmatprep.subr.bf16.mxu0 %v945_v5  ;;  %v961_v21 = vld [vmem:[%s1217_s1 + $0xb0] sm:$0xff]   ;;  %v962_v23 = vld [vmem:[%s1217_s1 + $0x38] sm:$0xff]   ;;  %v963_v26 = vld [vmem:[%s1218_s0] ss:$12 sps:$4 sm:$0xff]  }
   0x9   :  { %911 = vmatpush3.bf16.msra.mxu1 %v946_v6  ;;  %v965_v22 = vld [vmem:[%s1218_s0 + $0x4] ss:$12 sps:$4 sm:$0xff]   ;;  %v967_v24 = vld [vmem:[%s1218_s0 + $0x8] ss:$12 sps:$4 sm:$0xff]   ;;  %v966_v25 = vld [vmem:[%s1217_s1 + $0xb8] sm:$0xff]  }
   0xa   :  { %912 = vmatprep.subr.bf16.mxu1 %v949_v9  ;;  %406 = vmatprep.mubr.bf16.mxu0 %v965_v22  ;;  %v969_v27 = vld [vmem:[%s1218_s0 + $0x1c] ss:$12 sps:$4 sm:$0xff]   ;;  %v968_v28 = vld [vmem:[%s1218_s0 + $0x20] ss:$12 sps:$4 sm:$0xff]   ;;  %v975_v29 = vld [vmem:[%s1218_s0 + $0x38] ss:$12 sps:$4 sm:$0xff]  }
   0xb   :  { %833 = vmatpush3.bf16.msra.mxu0 %v947_v7  ;;  %924 = vmatprep.mubr.bf16.mxu1 %v967_v24  ;;  %v971_v30 = vld [vmem:[%s1218_s0 + $0x18] ss:$12 sps:$4 sm:$0xff]   ;;  %v972_v31 = vld [vmem:[%s1218_s0 + $0x34] ss:$12 sps:$4 sm:$0xff]   ;;  %v976_v32 = vld [vmem:[%s1218_s0 + $0x50] ss:$12 sps:$4 sm:$0xff]  }
   0xc   :  { %834 = vmatprep.subr.bf16.mxu0 %v948_v8  ;;  %v983_v33 = vld [vmem:[%s1218_s0 + $0x68] ss:$12 sps:$4 sm:$0xff]   ;;  %v974_v34 = vld [vmem:[%s1218_s0 + $0x30] ss:$12 sps:$4 sm:$0xff]   ;;  %v977_v35 = vld [vmem:[%s1218_s0 + $0x4c] ss:$12 sps:$4 sm:$0xff]  }
   0xd   :  { %913 = vmatpush3.bf16.msra.mxu1 %v949_v9  ;;  %v984_v36 = vld [vmem:[%s1218_s0 + $0x80] ss:$12 sps:$4 sm:$0xff]   ;;  %v991_v37 = vld [vmem:[%s1218_s0 + $0x98] ss:$12 sps:$4 sm:$0xff]   ;;  %v979_v38 = vld [vmem:[%s1218_s0 + $0x48] ss:$12 sps:$4 sm:$0xff]  }
   0xe   :  { %914 = vmatprep.subr.bf16.mxu1 %v952_v12  ;;  %v980_v39 = vld [vmem:[%s1218_s0 + $0x64] ss:$12 sps:$4 sm:$0xff]   ;;  %v982_v41 = vld [vmem:[%s1218_s0 + $0x60] ss:$12 sps:$4 sm:$0xff]   ;;  %v985_v42 = vld [vmem:[%s1218_s0 + $0x7c] ss:$12 sps:$4 sm:$0xff]  }
   0xf   :  { %835 = vmatpush3.bf16.msra.mxu0 %v950_v10  ;;  %v992_v40 = vld [vmem:[%s1218_s0 + $0xb0] ss:$12 sps:$4 sm:$0xff]   ;;  %v987_v43 = vld [vmem:[%s1218_s0 + $0x78] ss:$12 sps:$4 sm:$0xff]   ;;  %v988_v44 = vld [vmem:[%s1218_s0 + $0x94] ss:$12 sps:$4 sm:$0xff]  }
  0x10   :  { %836 = vmatprep.subr.bf16.mxu0 %v951_v11  ;;  %v990_v45 = vld [vmem:[%s1218_s0 + $0x90] ss:$12 sps:$4 sm:$0xff]   ;;  %v993_v46 = vld [vmem:[%s1218_s0 + $0xac] ss:$12 sps:$4 sm:$0xff]   ;;  %v995_v47 = vld [vmem:[%s1218_s0 + $0xa8] ss:$12 sps:$4 sm:$0xff]  }
  0x11   :  { %915 = vmatpush3.bf16.msra.mxu1 %v952_v12  ;;  %v1163_v50 = vld [vmem:[%s1219_s2] ss:$0 sm:$0xff] }
  0x12   :  { %916 = vmatprep.subr.bf16.mxu1 %v955_v14 }
  0x13   :  { %837 = vmatpush3.bf16.msra.mxu0 %v953_v13 }
  0x14   :  { %838 = vmatprep.subr.bf16.mxu0 %v954_v15 }
  0x15   :  { %917 = vmatpush3.bf16.msra.mxu1 %v955_v14 }
  0x16   :  { %918 = vmatprep.subr.bf16.mxu1 %v958_v17 }
  0x17   :  { %839 = vmatpush3.bf16.msra.mxu0 %v956_v16 }
  0x18   :  { %840 = vmatprep.subr.bf16.mxu0 %v957_v18 }
  0x19   :  { %919 = vmatpush3.bf16.msra.mxu1 %v958_v17 }
  0x1a   :  { %920 = vmatprep.subr.bf16.mxu1 %v961_v21 }
  0x1b   :  { %841 = vmatpush3.bf16.msra.mxu0 %v959_v19 }
  0x1c   :  { %842 = vmatprep.subr.bf16.mxu0 %v960_v20 }
  0x1d   :  { %921 = vmatpush3.bf16.msra.mxu1 %v961_v21 }
  0x1e   :  { %922 = vmatprep.subr.bf16.mxu1 %v966_v25 }
  0x1f   :  { %843 = vmatpush3.bf16.msra.mxu0 %v962_v23 }
  0x21   :  { %923 = vmatpush3.bf16.msra.mxu1 %v966_v25 }
  0x22   :  { %407 = vmatmul.mubr.bf16.vlgmr.msra.gmra.mrb[0].mxu0 %v963_v26 }
  0x23   :  { %414 = vmatprep.mubr.bf16.mxu0 %v969_v27 }
  0x24   :  { %925 = vmatmul.mubr.bf16.vlgmr.msra.gmra.mrb[0].mxu1 %v968_v28 }
  0x25   :  { %928 = vmatprep.mubr.bf16.mxu1 %v975_v29 }
  0x2a   :  { %415 = vmatmul.mubr.bf16.gmra.mrb[4].mxu0 %v971_v30 }
  0x2b   :  { %422 = vmatprep.mubr.bf16.mxu0 %v972_v31 }
  0x2c   :  { %929 = vmatmul.mubr.bf16.gmra.mrb[4].mxu1 %v976_v32 }
  0x2d   :  { %932 = vmatprep.mubr.bf16.mxu1 %v983_v33 }
  0x32   :  { %423 = vmatmul.mubr.bf16.gmra.mrb[8].mxu0 %v974_v34 }
  0x33   :  { %430 = vmatprep.mubr.bf16.mxu0 %v977_v35 }
  0x34   :  { %933 = vmatmul.mubr.bf16.gmra.mrb[8].mxu1 %v984_v36 }
  0x35   :  { %936 = vmatprep.mubr.bf16.mxu1 %v991_v37 }
  0x3a   :  { %431 = vmatmul.mubr.bf16.gmra.mrb[12].mxu0 %v979_v38 }
  0x3b   :  { %438 = vmatprep.mubr.bf16.mxu0 %v980_v39 }
  0x3c   :  { %937 = vmatmul.mubr.bf16.gmra.mrb[12].mxu1 %v992_v40 }
  0x42   :  { %439 = vmatmul.mubr.bf16.gmra.mrb[16].mxu0 %v982_v41 }
  0x43   :  { %446 = vmatprep.mubr.bf16.mxu0 %v985_v42 }
  0x4a   :  { %447 = vmatmul.mubr.bf16.gmra.mrb[20].mxu0 %v987_v43 }
  0x4b   :  { %454 = vmatprep.mubr.bf16.mxu0 %v988_v44 }
  0x52   :  { %455 = vmatmul.mubr.bf16.gmra.mrb[24].mxu0 %v990_v45 }
  0x53   :  { %462 = vmatprep.mubr.bf16.mxu0 %v993_v46 }
  0x5a   :  { %463 = vmatmul.mubr.bf16.gmra.mrb[28].mxu0 %v995_v47 }
  0xf5   :  { %v844_v48 = vpop.f32.mrb[0].mxu0 }
  0xf6   :  { %v845_v49 = vpop.f32.mrb[1].mxu0 }
  0xf7   :  { %v846_v51 = vadd.f32 %v845_v49, %v844_v48  ;;  %v847_v52 = vpop.f32.mrb[2].mxu0  ;;  %v926_v54 = vpop.f32.mrb[0].mxu1 }
  0xf8   :  { %v848_v53 = vpop.f32.mrb[3].mxu0  ;;  %v505_v57 = vpop.f32.mrb[1].mxu1 }
  0xf9   :  { %v849_v55 = vadd.f32 %v848_v53, %v847_v52  ;;  %v409_v56 = vadd.f32 %v846_v51, %v1163_v50  ;;  %v927_v58 = vpop.f32.mrb[2].mxu1 }
  0xfa   :  { %v508_v61 = vpop.f32.mrb[3].mxu1 }
  0xfb   :  { %v506_v59 = vadd.f32 %v505_v57, %v409_v56  ;;  %v412_v60 = vadd.f32 %v849_v55, %v1163_v50 }
  0xfd   :  { %v584_v62 = vmul.f32 0.2, %v506_v59  ;;  %v509_v63 = vadd.f32 %v508_v61, %v412_v60  ;;  %v850_v0 = vpop.f32.mrb[4].mxu0  ;;  %vm568_vm0 = vcmp.ge.f32.partialorder %v506_v59, 0.0 }
  0xfe   :  { %v851_v1 = vpop.f32.mrb[5].mxu0 }
  0xff   :  { %vm569_vm1 = vcmp.ge.f32.partialorder %v509_v63, 0.0  ;;  %v585_v2 = vmul.f32 0.2, %v509_v63  ;;  %v852_v3 = vadd.f32 %v851_v1, %v850_v0  ;;  %v853_v4 = vpop.f32.mrb[6].mxu0  ;;  %v930_v6 = vpop.f32.mrb[4].mxu1  ;;  %v600_v7 = vsel %vm568_vm0, %v506_v59, %v584_v62 }
 0x100   :  { %v854_v5 = vpop.f32.mrb[7].mxu0  ;;  %v521_v11 = vpop.f32.mrb[5].mxu1 }
 0x101   :  { %v601_v8 = vsel %vm569_vm1, %v509_v63, %v585_v2  ;;  %v417_v9 = vadd.f32 %v852_v3, %v1163_v50  ;;  %v855_v10 = vadd.f32 %v854_v5, %v853_v4  ;;  %v931_v13 = vpop.f32.mrb[6].mxu1 }
 0x102   :  { %v784_v12 = vpack.c.bf16 %v601_v8, %v600_v7  ;;  %v524_v16 = vpop.f32.mrb[7].mxu1 }
 0x103   :  { %v514_v14 = vadd.f32 %v926_v54, %v417_v9  ;;  %v420_v15 = vadd.f32 %v855_v10, %v1163_v50 }
 0x104   :  { %785 = vst [vmem:[%s1220_s3] sm:$0xff] %v784_v12  }
 0x105   :  { %v586_v17 = vmul.f32 0.2, %v514_v14  ;;  %v517_v18 = vadd.f32 %v927_v58, %v420_v15  ;;  %v856_v19 = vpop.f32.mrb[8].mxu0  ;;  %vm570_vm2 = vcmp.ge.f32.partialorder %v514_v14, 0.0 }
 0x106   :  { %v857_v20 = vpop.f32.mrb[9].mxu0 }
 0x107   :  { %vm571_vm3 = vcmp.ge.f32.partialorder %v517_v18, 0.0  ;;  %v587_v21 = vmul.f32 0.2, %v517_v18  ;;  %v858_v22 = vadd.f32 %v857_v20, %v856_v19  ;;  %v859_v23 = vpop.f32.mrb[10].mxu0  ;;  %v1172_v25 = vpop.f32.mrb[8].mxu1  ;;  %v602_v26 = vsel %vm570_vm2, %v514_v14, %v586_v17 }
 0x108   :  { %v860_v24 = vpop.f32.mrb[11].mxu0  ;;  %v537_v30 = vpop.f32.mrb[9].mxu1 }
 0x109   :  { %v603_v27 = vsel %vm571_vm3, %v517_v18, %v587_v21  ;;  %v861_v28 = vadd.f32 %v860_v24, %v859_v23  ;;  %v425_v29 = vadd.f32 %v858_v22, %v1163_v50  ;;  %v1175_v32 = vpop.f32.mrb[10].mxu1 }
 0x10a   :  { %v789_v31 = vpack.c.bf16 %v603_v27, %v602_v26  ;;  %v540_v35 = vpop.f32.mrb[11].mxu1 }
 0x10b   :  { %v522_v33 = vadd.f32 %v521_v11, %v425_v29  ;;  %v428_v34 = vadd.f32 %v861_v28, %v1163_v50 }
 0x10c   :  { %821 = vst [vmem:[%s1220_s3 + $0x8] sm:$0xff] %v789_v31  }
 0x10d   :  { %v588_v36 = vmul.f32 0.2, %v522_v33  ;;  %v525_v37 = vadd.f32 %v524_v16, %v428_v34  ;;  %v862_v38 = vpop.f32.mrb[12].mxu0  ;;  %vm572_vm4 = vcmp.ge.f32.partialorder %v522_v33, 0.0 }
 0x10e   :  { %v863_v39 = vpop.f32.mrb[13].mxu0 }
 0x10f   :  { %vm573_vm5 = vcmp.ge.f32.partialorder %v525_v37, 0.0  ;;  %v589_v40 = vmul.f32 0.2, %v525_v37  ;;  %v864_v41 = vadd.f32 %v863_v39, %v862_v38  ;;  %v865_v42 = vpop.f32.mrb[14].mxu0  ;;  %v1181_v44 = vpop.f32.mrb[12].mxu1  ;;  %v604_v45 = vsel %vm572_vm4, %v522_v33, %v588_v36 }
 0x110   :  { %v866_v43 = vpop.f32.mrb[15].mxu0  ;;  %v553_v49 = vpop.f32.mrb[13].mxu1 }
 0x111   :  { %v605_v46 = vsel %vm573_vm5, %v525_v37, %v589_v40  ;;  %v433_v47 = vadd.f32 %v864_v41, %v1163_v50  ;;  %v867_v48 = vadd.f32 %v866_v43, %v865_v42  ;;  %v1184_v52 = vpop.f32.mrb[14].mxu1 }
 0x112   :  { %v794_v51 = vpack.c.bf16 %v605_v46, %v604_v45  ;;  %v556_v55 = vpop.f32.mrb[15].mxu1 }
 0x113   :  { %v530_v53 = vadd.f32 %v930_v6, %v433_v47  ;;  %v436_v54 = vadd.f32 %v867_v48, %v1163_v50 }
 0x114   :  { %822 = vst [vmem:[%s1220_s3 + $0x10] sm:$0xff] %v794_v51  }
 0x115   :  { %v590_v56 = vmul.f32 0.2, %v530_v53  ;;  %v533_v57 = vadd.f32 %v931_v13, %v436_v54  ;;  %v868_v58 = vpop.f32.mrb[16].mxu0  ;;  %vm574_vm6 = vcmp.ge.f32.partialorder %v530_v53, 0.0 }
 0x116   :  { %v869_v59 = vpop.f32.mrb[17].mxu0 }
 0x117   :  { %vm575_vm7 = vcmp.ge.f32.partialorder %v533_v57, 0.0  ;;  %v591_v60 = vmul.f32 0.2, %v533_v57  ;;  %v870_v61 = vadd.f32 %v869_v59, %v868_v58  ;;  %v871_v62 = vpop.f32.mrb[18].mxu0  ;;  %v606_v0 = vsel %vm574_vm6, %v530_v53, %v590_v56 }
 0x118   :  { %v872_v63 = vpop.f32.mrb[19].mxu0 }
 0x119   :  { %v607_v1 = vsel %vm575_vm7, %v533_v57, %v591_v60  ;;  %v873_v2 = vadd.f32 %v872_v63, %v871_v62  ;;  %v441_v3 = vadd.f32 %v870_v61, %v1163_v50 }
 0x11a   :  { %v799_v4 = vpack.c.bf16 %v607_v1, %v606_v0 }
 0x11b   :  { %v538_v5 = vadd.f32 %v537_v30, %v441_v3  ;;  %v444_v6 = vadd.f32 %v873_v2, %v1163_v50 }
 0x11c   :  { %823 = vst [vmem:[%s1220_s3 + $0x18] sm:$0xff] %v799_v4  }
 0x11d   :  { %v592_v7 = vmul.f32 0.2, %v538_v5  ;;  %v541_v8 = vadd.f32 %v540_v35, %v444_v6  ;;  %v874_v9 = vpop.f32.mrb[20].mxu0  ;;  %vm576_vm8 = vcmp.ge.f32.partialorder %v538_v5, 0.0 }
 0x11e   :  { %v875_v10 = vpop.f32.mrb[21].mxu0 }
 0x11f   :  { %vm577_vm9 = vcmp.ge.f32.partialorder %v541_v8, 0.0  ;;  %v593_v11 = vmul.f32 0.2, %v541_v8  ;;  %v876_v12 = vadd.f32 %v875_v10, %v874_v9  ;;  %v877_v13 = vpop.f32.mrb[22].mxu0  ;;  %v608_v15 = vsel %vm576_vm8, %v538_v5, %v592_v7 }
 0x120   :  { %v878_v14 = vpop.f32.mrb[23].mxu0 }
 0x121   :  { %v609_v16 = vsel %vm577_vm9, %v541_v8, %v593_v11  ;;  %v449_v17 = vadd.f32 %v876_v12, %v1163_v50  ;;  %v879_v18 = vadd.f32 %v878_v14, %v877_v13 }
 0x122   :  { %v804_v19 = vpack.c.bf16 %v609_v16, %v608_v15 }
 0x123   :  { %v546_v20 = vadd.f32 %v1172_v25, %v449_v17  ;;  %v452_v21 = vadd.f32 %v879_v18, %v1163_v50 }
 0x124   :  { %824 = vst [vmem:[%s1220_s3 + $0x20] sm:$0xff] %v804_v19  }
 0x125   :  { %v594_v22 = vmul.f32 0.2, %v546_v20  ;;  %v549_v23 = vadd.f32 %v1175_v32, %v452_v21  ;;  %v880_v24 = vpop.f32.mrb[24].mxu0  ;;  %vm578_vm10 = vcmp.ge.f32.partialorder %v546_v20, 0.0 }
 0x126   :  { %v881_v26 = vpop.f32.mrb[25].mxu0 }
 0x127   :  { %vm579_vm11 = vcmp.ge.f32.partialorder %v549_v23, 0.0  ;;  %v595_v27 = vmul.f32 0.2, %v549_v23  ;;  %v882_v28 = vadd.f32 %v881_v26, %v880_v24  ;;  %v883_v29 = vpop.f32.mrb[26].mxu0  ;;  %v610_v31 = vsel %vm578_vm10, %v546_v20, %v594_v22 }
 0x128   :  { %v884_v30 = vpop.f32.mrb[27].mxu0 }
 0x129   :  { %v611_v33 = vsel %vm579_vm11, %v549_v23, %v595_v27  ;;  %v885_v25 = vadd.f32 %v884_v30, %v883_v29  ;;  %v457_v34 = vadd.f32 %v882_v28, %v1163_v50 }
 0x12a   :  { %v809_v35 = vpack.c.bf16 %v611_v33, %v610_v31 }
 0x12b   :  { %v554_v36 = vadd.f32 %v553_v49, %v457_v34  ;;  %v460_v37 = vadd.f32 %v885_v25, %v1163_v50 }
 0x12c   :  { %825 = vst [vmem:[%s1220_s3 + $0x28] sm:$0xff] %v809_v35  }
 0x12d   :  { %v596_v32 = vmul.f32 0.2, %v554_v36  ;;  %v557_v38 = vadd.f32 %v556_v55, %v460_v37  ;;  %v886_v39 = vpop.f32.mrb[28].mxu0  ;;  %vm580_vm12 = vcmp.ge.f32.partialorder %v554_v36, 0.0 }
 0x12e   :  { %v887_v40 = vpop.f32.mrb[29].mxu0 }
 0x12f   :  { %vm581_vm13 = vcmp.ge.f32.partialorder %v557_v38, 0.0  ;;  %v597_v41 = vmul.f32 0.2, %v557_v38  ;;  %v888_v42 = vadd.f32 %v887_v40, %v886_v39  ;;  %v889_v43 = vpop.f32.mrb[30].mxu0  ;;  %v612_v46 = vsel %vm580_vm12, %v554_v36, %v596_v32 }
 0x130   :  { %v890_v45 = vpop.f32.mrb[31].mxu0 }
 0x131   :  { %v613_v47 = vsel %vm581_vm13, %v557_v38, %v597_v41  ;;  %v465_v48 = vadd.f32 %v888_v42, %v1163_v50  ;;  %v891_v49 = vadd.f32 %v890_v45, %v889_v43 }
 0x132   :  { %v814_v51 = vpack.c.bf16 %v613_v47, %v612_v46 }
 0x133   :  { %v562_v53 = vadd.f32 %v1181_v44, %v465_v48  ;;  %v468_v54 = vadd.f32 %v891_v49, %v1163_v50 }
 0x134   :  { %826 = vst [vmem:[%s1220_s3 + $0x30] sm:$0xff] %v814_v51  }
 0x135   :  { %v598_v55 = vmul.f32 0.2, %v562_v53  ;;  %v565_v56 = vadd.f32 %v1184_v52, %v468_v54  ;;  %vm582_vm14 = vcmp.ge.f32.partialorder %v562_v53, 0.0 }
 0x137   :  { %vm583_vm15 = vcmp.ge.f32.partialorder %v565_v56, 0.0  ;;  %v599_v57 = vmul.f32 0.2, %v565_v56  ;;  %v614_v58 = vsel %vm582_vm14, %v562_v53, %v598_v55 }
 0x139   :  { %v615_v59 = vsel %vm583_vm15, %v565_v56, %v599_v57 }
 0x13a   :  { %v819_v60 = vpack.c.bf16 %v615_v59, %v614_v58 }
 0x13c   :  { %827 = vst [vmem:[%s1220_s3 + $0x38] sm:$0xff] %v819_v60  }

// kernel: unet_forward.35
= control target key start
LH: loop header
LB: loop body
LE: loop exit
PB: predicated region body
PF: predicated region fallthrough
CT: control target
= control target key end

     0   :  { %s304_s1 = inlined_call_operand.vmem [shape: bf16[128,128], index: 1, kind: input, shape index: {}]   ;;  %s305_s0 = inlined_call_operand.vmem [shape: bf16[32,128], index: 0, kind: input, shape index: {}]   ;;  %s306_s2 = inlined_call_operand.vmem [shape: f32[1,128], index: 2, kind: input, shape index: {}]   ;;  %s307_s3 = inlined_call_operand.vmem [shape: bf16[32,128], index: 3, kind: output, shape index: {}]  }
   0x1   :  { %v235_v0 = vld [vmem:[%s304_s1] sm:$0xff]   ;;  %v236_v1 = vld [vmem:[%s304_s1 + $0x8] sm:$0xff]   ;;  %v237_v2 = vld [vmem:[%s304_s1 + $0x10] sm:$0xff]  }
   0x2   :  { %215 = vmatprep.subr.bf16.mxu0 %v235_v0  ;;  %v238_v3 = vld [vmem:[%s304_s1 + $0x18] sm:$0xff]   ;;  %v243_v4 = vld [vmem:[%s305_s0] sm:$0xff]   ;;  %v240_v6 = vld [vmem:[%s304_s1 + $0x28] sm:$0xff]  }
   0x3   :  { %216 = vmatpush3.bf16.msra.mxu0 %v235_v0  ;;  %231 = vmatprep.mubr.bf16.mxu0 %v243_v4  ;;  %v239_v5 = vld [vmem:[%s304_s1 + $0x20] sm:$0xff]   ;;  %v241_v7 = vld [vmem:[%s304_s1 + $0x30] sm:$0xff]   ;;  %v242_v8 = vld [vmem:[%s304_s1 + $0x38] sm:$0xff]  }
   0x4   :  { %217 = vmatprep.subr.bf16.mxu0 %v236_v1  ;;  %v244_v9 = vld [vmem:[%s305_s0 + $0x8] sm:$0xff]   ;;  %v175_v11 = vld [vmem:[%s306_s2] ss:$0 sm:$0xff] }
   0x7   :  { %218 = vmatpush3.bf16.msra.mxu0 %v236_v1 }
   0x8   :  { %219 = vmatprep.subr.bf16.mxu0 %v237_v2 }
   0xb   :  { %220 = vmatpush3.bf16.msra.mxu0 %v237_v2 }
   0xc   :  { %221 = vmatprep.subr.bf16.mxu0 %v238_v3 }
   0xf   :  { %222 = vmatpush3.bf16.msra.mxu0 %v238_v3 }
  0x10   :  { %223 = vmatprep.subr.bf16.mxu0 %v239_v5 }
  0x13   :  { %224 = vmatpush3.bf16.msra.mxu0 %v239_v5 }
  0x14   :  { %225 = vmatprep.subr.bf16.mxu0 %v240_v6 }
  0x17   :  { %226 = vmatpush3.bf16.msra.mxu0 %v240_v6 }
  0x18   :  { %227 = vmatprep.subr.bf16.mxu0 %v241_v7 }
  0x1b   :  { %228 = vmatpush3.bf16.msra.mxu0 %v241_v7 }
  0x1c   :  { %229 = vmatprep.subr.bf16.mxu0 %v242_v8 }
  0x1f   :  { %230 = vmatpush3.bf16.msra.mxu0 %v242_v8 }
  0x22   :  { %232 = vmatmul.mubr.bf16.vlgmr.msra.gmra.mrb[0].mxu0 %v244_v9 }
  0xf5   :  { %v233_v10 = vpop.f32.mrb[0].mxu0 }
  0xf6   :  { %v136_v12 = vpop.f32.mrb[1].mxu0  ;;  %v145_v14 = vadd.f32 %v233_v10, %v175_v11 }
  0xf7   :  { %v234_v13 = vpop.f32.mrb[2].mxu0  ;;  %v137_v17 = vadd.f32 %v175_v11, %v136_v12 }
  0xf8   :  { %v148_v15 = vadd.f32 %v234_v13, %v175_v11  ;;  %v139_v16 = vpop.f32.mrb[3].mxu0 }
  0xf9   :  { %v140_v18 = vadd.f32 %v175_v11, %v139_v16 }
  0xfa   :  { %v202_v19 = vpack.c.bf16 %v148_v15, %v145_v14 }
  0xfb   :  { %v197_v20 = vpack.c.bf16 %v140_v18, %v137_v17 }
  0xfc   :  { %204 = vst [vmem:[%s307_s3 + $0x8] sm:$0xff] %v202_v19  }
  0xfd   :  { %198 = vst [vmem:[%s307_s3] sm:$0xff] %v197_v20  }

// kernel: unet_forward.38
= control target key start
LH: loop header
LB: loop body
LE: loop exit
PB: predicated region body
PF: predicated region fallthrough
CT: control target
= control target key end

     0   :  { %s792_s1 = inlined_call_operand.vmem [shape: bf16[512,128], index: 1, kind: input, shape index: {}]   ;;  %s793_s0 = inlined_call_operand.vmem [shape: bf16[32,512], index: 0, kind: input, shape index: {}]   ;;  %s794_s2 = inlined_call_operand.vmem [shape: f32[1,128], index: 2, kind: input, shape index: {}]   ;;  %s795_s3 = inlined_call_operand.vmem [shape: bf16[32,128], index: 3, kind: input, shape index: {}]   ;;  %s796_s4 = inlined_call_operand.vmem [shape: bf16[32,128], index: 4, kind: output, shape index: {}]  }
   0x1   :  { %v588_v0 = vld [vmem:[%s792_s1 + $0x40] sm:$0xff]   ;;  %v592_v4 = vld [vmem:[%s792_s1 + $0x48] sm:$0xff]   ;;  %v596_v8 = vld [vmem:[%s792_s1 + $0x50] sm:$0xff]  }
   0x2   :  { %v589_v1 = vld [vmem:[%s792_s1 + $0xc0] sm:$0xff]   ;;  %532 = vmatprep.subr.bf16.mxu0 %v588_v0  ;;  %v593_v5 = vld [vmem:[%s792_s1 + $0xc8] sm:$0xff]   ;;  %v597_v9 = vld [vmem:[%s792_s1 + $0xd0] sm:$0xff]  }
   0x3   :  { %v590_v2 = vld [vmem:[%s792_s1] sm:$0xff]   ;;  %560 = vmatprep.subr.bf16.mxu1 %v589_v1  ;;  %v594_v6 = vld [vmem:[%s792_s1 + $0x8] sm:$0xff]   ;;  %v598_v10 = vld [vmem:[%s792_s1 + $0x10] sm:$0xff]  }
   0x4   :  { %v591_v3 = vld [vmem:[%s792_s1 + $0x80] sm:$0xff]   ;;  %533 = vmatpush3.bf16.msra.mxu0 %v590_v2  ;;  %v595_v7 = vld [vmem:[%s792_s1 + $0x88] sm:$0xff]   ;;  %v599_v11 = vld [vmem:[%s792_s1 + $0x90] sm:$0xff]  }
   0x5   :  { %561 = vmatpush3.bf16.msra.mxu1 %v591_v3  ;;  %534 = vmatprep.subr.bf16.mxu0 %v592_v4  ;;  %v600_v12 = vld [vmem:[%s792_s1 + $0x58] sm:$0xff]   ;;  %v604_v16 = vld [vmem:[%s792_s1 + $0x60] sm:$0xff]   ;;  %v608_v20 = vld [vmem:[%s792_s1 + $0x68] sm:$0xff]  }
   0x6   :  { %562 = vmatprep.subr.bf16.mxu1 %v593_v5  ;;  %v601_v13 = vld [vmem:[%s792_s1 + $0xd8] sm:$0xff]   ;;  %v605_v17 = vld [vmem:[%s792_s1 + $0xe0] sm:$0xff]   ;;  %v609_v21 = vld [vmem:[%s792_s1 + $0xe8] sm:$0xff]  }
   0x7   :  { %v602_v14 = vld [vmem:[%s792_s1 + $0x18] sm:$0xff]   ;;  %v606_v18 = vld [vmem:[%s792_s1 + $0x20] sm:$0xff]   ;;  %v610_v22 = vld [vmem:[%s792_s1 + $0x28] sm:$0xff]  }
   0x8   :  { %535 = vmatpush3.bf16.msra.mxu0 %v594_v6  ;;  %v603_v15 = vld [vmem:[%s792_s1 + $0x98] sm:$0xff]   ;;  %v607_v19 = vld [vmem:[%s792_s1 + $0xa0] sm:$0xff]   ;;  %v611_v23 = vld [vmem:[%s792_s1 + $0xa8] sm:$0xff]  }
   0x9   :  { %563 = vmatpush3.bf16.msra.mxu1 %v595_v7  ;;  %536 = vmatprep.subr.bf16.mxu0 %v596_v8  ;;  %v612_v24 = vld [vmem:[%s792_s1 + $0x70] sm:$0xff]   ;;  %v616_v28 = vld [vmem:[%s792_s1 + $0x78] sm:$0xff]   ;;  %v463_v42 = vld [vmem:[%s794_s2] ss:$0 sm:$0xff] }
   0xa   :  { %564 = vmatprep.subr.bf16.mxu1 %v597_v9  ;;  %v613_v25 = vld [vmem:[%s792_s1 + $0xf0] sm:$0xff]   ;;  %v617_v29 = vld [vmem:[%s792_s1 + $0xf8] sm:$0xff]   ;;  %v513_v48 = vld [vmem:[%s795_s3] sm:$0xff]  }
   0xb   :  { %v614_v26 = vld [vmem:[%s792_s1 + $0x30] sm:$0xff]   ;;  %v618_v30 = vld [vmem:[%s792_s1 + $0x38] sm:$0xff]   ;;  %v514_v56 = vunpack.c.l.bf16 %v513_v48  ;;  %v515_v58 = vunpack.c.h.bf16 %v513_v48  ;;  %v530_v5 = vld [vmem:[%s795_s3 + $0x8] sm:$0xff]  }
   0xc   :  { %537 = vmatpush3.bf16.msra.mxu0 %v598_v10  ;;  %v615_v27 = vld [vmem:[%s792_s1 + $0xb0] sm:$0xff]   ;;  %v619_v31 = vld [vmem:[%s792_s1 + $0xb8] sm:$0xff]  }
   0xd   :  { %565 = vmatpush3.bf16.msra.mxu1 %v599_v11  ;;  %538 = vmatprep.subr.bf16.mxu0 %v600_v12  ;;  %v620_v32 = vld [vmem:[%s793_s0] ss:$16 sps:$4 sm:$0xff]   ;;  %v622_v33 = vld [vmem:[%s793_s0 + $0x4] ss:$16 sps:$4 sm:$0xff]   ;;  %v623_v34 = vld [vmem:[%s793_s0 + $0x8] ss:$16 sps:$4 sm:$0xff]  }
   0xe   :  { %566 = vmatprep.subr.bf16.mxu1 %v601_v13  ;;  %v625_v35 = vld [vmem:[%s793_s0 + $0xc] ss:$16 sps:$4 sm:$0xff]   ;;  %361 = vmatprep.mubr.bf16.mxu0 %v622_v33  ;;  %v626_v36 = vld [vmem:[%s793_s0 + $0x24] ss:$16 sps:$4 sm:$0xff]   ;;  %v630_v38 = vld [vmem:[%s793_s0 + $0x20] ss:$16 sps:$4 sm:$0xff]  }
   0xf   :  { %410 = vmatprep.mubr.bf16.mxu1 %v625_v35  ;;  %v628_v37 = vld [vmem:[%s793_s0 + $0x2c] ss:$16 sps:$4 sm:$0xff]   ;;  %v631_v39 = vld [vmem:[%s793_s0 + $0x28] ss:$16 sps:$4 sm:$0xff]  }
  0x10   :  { %539 = vmatpush3.bf16.msra.mxu0 %v602_v14  ;;  %v518_v14 = vunpack.c.l.bf16 %v530_v5 }
  0x11   :  { %567 = vmatpush3.bf16.msra.mxu1 %v603_v15  ;;  %540 = vmatprep.subr.bf16.mxu0 %v604_v16  ;;  %v519_v16 = vunpack.c.h.bf16 %v530_v5 }
  0x12   :  { %568 = vmatprep.subr.bf16.mxu1 %v605_v17 }
  0x14   :  { %541 = vmatpush3.bf16.msra.mxu0 %v606_v18 }
  0x15   :  { %569 = vmatpush3.bf16.msra.mxu1 %v607_v19  ;;  %542 = vmatprep.subr.bf16.mxu0 %v608_v20 }
  0x16   :  { %570 = vmatprep.subr.bf16.mxu1 %v609_v21 }
  0x18   :  { %543 = vmatpush3.bf16.msra.mxu0 %v610_v22 }
  0x19   :  { %571 = vmatpush3.bf16.msra.mxu1 %v611_v23  ;;  %544 = vmatprep.subr.bf16.mxu0 %v612_v24 }
  0x1a   :  { %572 = vmatprep.subr.bf16.mxu1 %v613_v25 }
  0x1c   :  { %545 = vmatpush3.bf16.msra.mxu0 %v614_v26 }
  0x1d   :  { %573 = vmatpush3.bf16.msra.mxu1 %v615_v27  ;;  %546 = vmatprep.subr.bf16.mxu0 %v616_v28 }
  0x1e   :  { %574 = vmatprep.subr.bf16.mxu1 %v617_v29 }
  0x20   :  { %547 = vmatpush3.bf16.msra.mxu0 %v618_v30 }
  0x21   :  { %575 = vmatpush3.bf16.msra.mxu1 %v619_v31 }
  0x23   :  { %362 = vmatmul.mubr.bf16.vlgmr.msra.gmra.mrb[0].mxu0 %v620_v32 }
  0x24   :  { %411 = vmatmul.mubr.bf16.vlgmr.msra.gmra.mrb[0].mxu1 %v623_v34  ;;  %369 = vmatprep.mubr.bf16.mxu0 %v626_v36 }
  0x25   :  { %418 = vmatprep.mubr.bf16.mxu1 %v628_v37 }
  0x2b   :  { %370 = vmatmul.mubr.bf16.gmra.mrb[4].mxu0 %v630_v38 }
  0x2c   :  { %419 = vmatmul.mubr.bf16.gmra.mrb[4].mxu1 %v631_v39 }
  0xf6   :  { %v548_v40 = vpop.f32.mrb[0].mxu0 }
  0xf7   :  { %v576_v41 = vpop.f32.mrb[0].mxu1  ;;  %v549_v43 = vpop.f32.mrb[1].mxu0 }
  0xf8   :  { %v550_v44 = vadd.f32 %v549_v43, %v548_v40  ;;  %v577_v45 = vpop.f32.mrb[1].mxu1  ;;  %v551_v46 = vpop.f32.mrb[2].mxu0 }
  0xf9   :  { %v578_v47 = vadd.f32 %v577_v45, %v576_v41  ;;  %v579_v49 = vpop.f32.mrb[2].mxu1  ;;  %v552_v50 = vpop.f32.mrb[3].mxu0 }
  0xfa   :  { %v364_v51 = vadd.f32 %v550_v44, %v463_v42  ;;  %v553_v52 = vadd.f32 %v552_v50, %v551_v46  ;;  %v580_v53 = vpop.f32.mrb[3].mxu1 }
  0xfb   :  { %v581_v54 = vadd.f32 %v580_v53, %v579_v49 }
  0xfc   :  { %v413_v55 = vadd.f32 %v578_v47, %v364_v51  ;;  %v367_v57 = vadd.f32 %v553_v52, %v463_v42 }
  0xfe   :  { %v416_v59 = vadd.f32 %v581_v54, %v367_v57  ;;  %v554_v60 = vpop.f32.mrb[4].mxu0  ;;  %v435_v63 = vadd.f32 %v514_v56, %v413_v55 }
  0xff   :  { %v582_v61 = vpop.f32.mrb[4].mxu1  ;;  %v555_v62 = vpop.f32.mrb[5].mxu0 }
 0x100   :  { %v436_v0 = vadd.f32 %v515_v58, %v416_v59  ;;  %v556_v1 = vadd.f32 %v555_v62, %v554_v60  ;;  %v583_v2 = vpop.f32.mrb[5].mxu1  ;;  %v557_v3 = vpop.f32.mrb[6].mxu0 }
 0x101   :  { %v584_v4 = vadd.f32 %v583_v2, %v582_v61  ;;  %v585_v6 = vpop.f32.mrb[6].mxu1  ;;  %v558_v7 = vpop.f32.mrb[7].mxu0 }
 0x102   :  { %v523_v8 = vpack.c.bf16 %v436_v0, %v435_v63  ;;  %v372_v9 = vadd.f32 %v556_v1, %v463_v42  ;;  %v559_v10 = vadd.f32 %v558_v7, %v557_v3  ;;  %v586_v11 = vpop.f32.mrb[7].mxu1 }
 0x103   :  { %v587_v12 = vadd.f32 %v586_v11, %v585_v6 }
 0x104   :  { %524 = vst [vmem:[%s796_s4] sm:$0xff] %v523_v8   ;;  %v421_v13 = vadd.f32 %v584_v4, %v372_v9  ;;  %v375_v15 = vadd.f32 %v559_v10, %v463_v42 }
 0x106   :  { %v424_v17 = vadd.f32 %v587_v12, %v375_v15  ;;  %v437_v18 = vadd.f32 %v518_v14, %v421_v13 }
 0x108   :  { %v438_v19 = vadd.f32 %v519_v16, %v424_v17 }
 0x10a   :  { %v528_v20 = vpack.c.bf16 %v438_v19, %v437_v18 }
 0x10c   :  { %531 = vst [vmem:[%s796_s4 + $0x8] sm:$0xff] %v528_v20  }

// kernel: unet_forward.40
= control target key start
LH: loop header
LB: loop body
LE: loop exit
PB: predicated region body
PF: predicated region fallthrough
CT: control target
= control target key end

     0   :  { %s647_s1 = inlined_call_operand.vmem [shape: bf16[384,128], index: 1, kind: input, shape index: {}]   ;;  %s648_s0 = inlined_call_operand.vmem [shape: bf16[32,384], index: 0, kind: input, shape index: {}]   ;;  %s649_s2 = inlined_call_operand.vmem [shape: f32[1,128], index: 2, kind: input, shape index: {}]   ;;  %s650_s3 = inlined_call_operand.vmem [shape: bf16[32,128], index: 3, kind: output, shape index: {}]  }
   0x1   :  { %v496_v0 = vld [vmem:[%s647_s1 + $0x40] sm:$0xff]   ;;  %v498_v2 = vld [vmem:[%s647_s1 + $0x48] sm:$0xff]   ;;  %v501_v5 = vld [vmem:[%s647_s1 + $0x50] sm:$0xff]  }
   0x2   :  { %v497_v1 = vld [vmem:[%s647_s1] sm:$0xff]   ;;  %438 = vmatprep.subr.bf16.mxu0 %v496_v0  ;;  %v500_v4 = vld [vmem:[%s647_s1 + $0x8] sm:$0xff]   ;;  %v503_v7 = vld [vmem:[%s647_s1 + $0x10] sm:$0xff]  }
   0x3   :  { %439 = vmatpush3.bf16.msra.mxu0 %v497_v1  ;;  %v499_v3 = vld [vmem:[%s647_s1 + $0x80] sm:$0xff]   ;;  %v502_v6 = vld [vmem:[%s647_s1 + $0x88] sm:$0xff]   ;;  %v504_v8 = vld [vmem:[%s647_s1 + $0x58] sm:$0xff]  }
   0x4   :  { %440 = vmatprep.subr.bf16.mxu0 %v498_v2  ;;  %476 = vmatprep.subr.bf16.mxu1 %v499_v3  ;;  %v505_v9 = vld [vmem:[%s647_s1 + $0x90] sm:$0xff]   ;;  %v506_v10 = vld [vmem:[%s647_s1 + $0x18] sm:$0xff]   ;;  %v507_v11 = vld [vmem:[%s647_s1 + $0x60] sm:$0xff]  }
   0x5   :  { %477 = vmatpush3.bf16.msra.mxu1 %v499_v3  ;;  %v508_v12 = vld [vmem:[%s647_s1 + $0x98] sm:$0xff]   ;;  %v509_v13 = vld [vmem:[%s647_s1 + $0x20] sm:$0xff]   ;;  %v510_v15 = vld [vmem:[%s647_s1 + $0x68] sm:$0xff]  }
   0x6   :  { %478 = vmatprep.subr.bf16.mxu1 %v502_v6  ;;  %v511_v14 = vld [vmem:[%s647_s1 + $0xa0] sm:$0xff]   ;;  %v512_v16 = vld [vmem:[%s647_s1 + $0x28] sm:$0xff]   ;;  %v513_v18 = vld [vmem:[%s647_s1 + $0x70] sm:$0xff]  }
   0x7   :  { %441 = vmatpush3.bf16.msra.mxu0 %v500_v4  ;;  %v514_v17 = vld [vmem:[%s647_s1 + $0xa8] sm:$0xff]   ;;  %v515_v19 = vld [vmem:[%s647_s1 + $0x30] sm:$0xff]   ;;  %v516_v20 = vld [vmem:[%s647_s1 + $0x78] sm:$0xff]  }
   0x8   :  { %442 = vmatprep.subr.bf16.mxu0 %v501_v5  ;;  %v517_v21 = vld [vmem:[%s647_s1 + $0xb0] sm:$0xff]   ;;  %v518_v23 = vld [vmem:[%s647_s1 + $0x38] sm:$0xff]   ;;  %v519_v26 = vld [vmem:[%s648_s0] ss:$12 sps:$4 sm:$0xff]  }
   0x9   :  { %479 = vmatpush3.bf16.msra.mxu1 %v502_v6  ;;  %v521_v22 = vld [vmem:[%s648_s0 + $0x4] ss:$12 sps:$4 sm:$0xff]   ;;  %v523_v24 = vld [vmem:[%s648_s0 + $0x8] ss:$12 sps:$4 sm:$0xff]   ;;  %v522_v25 = vld [vmem:[%s647_s1 + $0xb8] sm:$0xff]  }
   0xa   :  { %480 = vmatprep.subr.bf16.mxu1 %v505_v9  ;;  %286 = vmatprep.mubr.bf16.mxu0 %v521_v22  ;;  %v525_v27 = vld [vmem:[%s648_s0 + $0x1c] ss:$12 sps:$4 sm:$0xff]   ;;  %v524_v28 = vld [vmem:[%s648_s0 + $0x20] ss:$12 sps:$4 sm:$0xff]   ;;  %v527_v29 = vld [vmem:[%s648_s0 + $0x18] ss:$12 sps:$4 sm:$0xff]  }
   0xb   :  { %443 = vmatpush3.bf16.msra.mxu0 %v503_v7  ;;  %492 = vmatprep.mubr.bf16.mxu1 %v523_v24  ;;  %v388_v32 = vld [vmem:[%s649_s2] ss:$0 sm:$0xff] }
   0xc   :  { %444 = vmatprep.subr.bf16.mxu0 %v504_v8 }
   0xd   :  { %481 = vmatpush3.bf16.msra.mxu1 %v505_v9 }
   0xe   :  { %482 = vmatprep.subr.bf16.mxu1 %v508_v12 }
   0xf   :  { %445 = vmatpush3.bf16.msra.mxu0 %v506_v10 }
  0x10   :  { %446 = vmatprep.subr.bf16.mxu0 %v507_v11 }
  0x11   :  { %483 = vmatpush3.bf16.msra.mxu1 %v508_v12 }
  0x12   :  { %484 = vmatprep.subr.bf16.mxu1 %v511_v14 }
  0x13   :  { %447 = vmatpush3.bf16.msra.mxu0 %v509_v13 }
  0x14   :  { %448 = vmatprep.subr.bf16.mxu0 %v510_v15 }
  0x15   :  { %485 = vmatpush3.bf16.msra.mxu1 %v511_v14 }
  0x16   :  { %486 = vmatprep.subr.bf16.mxu1 %v514_v17 }
  0x17   :  { %449 = vmatpush3.bf16.msra.mxu0 %v512_v16 }
  0x18   :  { %450 = vmatprep.subr.bf16.mxu0 %v513_v18 }
  0x19   :  { %487 = vmatpush3.bf16.msra.mxu1 %v514_v17 }
  0x1a   :  { %488 = vmatprep.subr.bf16.mxu1 %v517_v21 }
  0x1b   :  { %451 = vmatpush3.bf16.msra.mxu0 %v515_v19 }
  0x1c   :  { %452 = vmatprep.subr.bf16.mxu0 %v516_v20 }
  0x1d   :  { %489 = vmatpush3.bf16.msra.mxu1 %v517_v21 }
  0x1e   :  { %490 = vmatprep.subr.bf16.mxu1 %v522_v25 }
  0x1f   :  { %453 = vmatpush3.bf16.msra.mxu0 %v518_v23 }
  0x21   :  { %491 = vmatpush3.bf16.msra.mxu1 %v522_v25 }
  0x22   :  { %287 = vmatmul.mubr.bf16.vlgmr.msra.gmra.mrb[0].mxu0 %v519_v26 }
  0x23   :  { %294 = vmatprep.mubr.bf16.mxu0 %v525_v27 }
  0x24   :  { %493 = vmatmul.mubr.bf16.vlgmr.msra.gmra.mrb[0].mxu1 %v524_v28 }
  0x2a   :  { %295 = vmatmul.mubr.bf16.gmra.mrb[4].mxu0 %v527_v29 }
  0xf5   :  { %v454_v30 = vpop.f32.mrb[0].mxu0 }
  0xf6   :  { %v455_v31 = vpop.f32.mrb[1].mxu0 }
  0xf7   :  { %v456_v33 = vadd.f32 %v455_v31, %v454_v30  ;;  %v457_v34 = vpop.f32.mrb[2].mxu0  ;;  %v494_v36 = vpop.f32.mrb[0].mxu1 }
  0xf8   :  { %v458_v35 = vpop.f32.mrb[3].mxu0  ;;  %v337_v39 = vpop.f32.mrb[1].mxu1 }
  0xf9   :  { %v459_v37 = vadd.f32 %v458_v35, %v457_v34  ;;  %v289_v38 = vadd.f32 %v456_v33, %v388_v32  ;;  %v495_v40 = vpop.f32.mrb[2].mxu1 }
  0xfa   :  { %v340_v43 = vpop.f32.mrb[3].mxu1 }
  0xfb   :  { %v338_v41 = vadd.f32 %v337_v39, %v289_v38  ;;  %v292_v42 = vadd.f32 %v459_v37, %v388_v32 }
  0xfd   :  { %v356_v44 = vmul.f32 0.2, %v338_v41  ;;  %v341_v45 = vadd.f32 %v340_v43, %v292_v42  ;;  %v460_v46 = vpop.f32.mrb[4].mxu0  ;;  %vm352_vm0 = vcmp.ge.f32.partialorder %v338_v41, 0.0 }
  0xfe   :  { %v461_v47 = vpop.f32.mrb[5].mxu0 }
  0xff   :  { %vm353_vm1 = vcmp.ge.f32.partialorder %v341_v45, 0.0  ;;  %v357_v48 = vmul.f32 0.2, %v341_v45  ;;  %v462_v49 = vadd.f32 %v461_v47, %v460_v46  ;;  %v463_v50 = vpop.f32.mrb[6].mxu0  ;;  %v360_v52 = vsel %vm352_vm0, %v338_v41, %v356_v44 }
 0x100   :  { %v464_v51 = vpop.f32.mrb[7].mxu0 }
 0x101   :  { %v361_v53 = vsel %vm353_vm1, %v341_v45, %v357_v48  ;;  %v297_v54 = vadd.f32 %v462_v49, %v388_v32  ;;  %v465_v55 = vadd.f32 %v464_v51, %v463_v50 }
 0x102   :  { %v430_v56 = vpack.c.bf16 %v361_v53, %v360_v52 }
 0x103   :  { %v346_v57 = vadd.f32 %v494_v36, %v297_v54  ;;  %v300_v58 = vadd.f32 %v465_v55, %v388_v32 }
 0x104   :  { %431 = vst [vmem:[%s650_s3] sm:$0xff] %v430_v56  }
 0x105   :  { %v358_v59 = vmul.f32 0.2, %v346_v57  ;;  %v349_v60 = vadd.f32 %v495_v40, %v300_v58  ;;  %vm354_vm2 = vcmp.ge.f32.partialorder %v346_v57, 0.0 }
 0x107   :  { %vm355_vm3 = vcmp.ge.f32.partialorder %v349_v60, 0.0  ;;  %v359_v61 = vmul.f32 0.2, %v349_v60  ;;  %v362_v62 = vsel %vm354_vm2, %v346_v57, %v358_v59 }
 0x109   :  { %v363_v63 = vsel %vm355_vm3, %v349_v60, %v359_v61 }
 0x10a   :  { %v435_v0 = vpack.c.bf16 %v363_v63, %v362_v62 }
 0x10c   :  { %437 = vst [vmem:[%s650_s3 + $0x8] sm:$0xff] %v435_v0  }

// kernel: unet_forward.41
= control target key start
LH: loop header
LB: loop body
LE: loop exit
PB: predicated region body
PF: predicated region fallthrough
CT: control target
= control target key end

     0   :  { %s978_s1 = inlined_call_operand.vmem [shape: bf16[640,128], index: 1, kind: input, shape index: {}]   ;;  %s979_s0 = inlined_call_operand.vmem [shape: bf16[32,640], index: 0, kind: input, shape index: {}]   ;;  %s980_s2 = inlined_call_operand.vmem [shape: f32[1,128], index: 2, kind: input, shape index: {}]   ;;  %s981_s3 = inlined_call_operand.vmem [shape: bf16[32,128], index: 3, kind: output, shape index: {}]  }
   0x1   :  { %v745_v0 = vld [vmem:[%s978_s1 + $0x40] sm:$0xff]   ;;  %v749_v4 = vld [vmem:[%s978_s1 + $0x48] sm:$0xff]   ;;  %v753_v8 = vld [vmem:[%s978_s1 + $0x50] sm:$0xff]  }
   0x2   :  { %v746_v1 = vld [vmem:[%s978_s1] sm:$0xff]   ;;  %659 = vmatprep.subr.bf16.mxu0 %v745_v0  ;;  %v750_v5 = vld [vmem:[%s978_s1 + $0x8] sm:$0xff]   ;;  %v754_v9 = vld [vmem:[%s978_s1 + $0x10] sm:$0xff]  }
   0x3   :  { %v747_v2 = vld [vmem:[%s978_s1 + $0xc0] sm:$0xff]   ;;  %660 = vmatpush3.bf16.msra.mxu0 %v746_v1  ;;  %v751_v6 = vld [vmem:[%s978_s1 + $0xc8] sm:$0xff]   ;;  %v755_v10 = vld [vmem:[%s978_s1 + $0xd0] sm:$0xff]  }
   0x4   :  { %v748_v3 = vld [vmem:[%s978_s1 + $0x80] sm:$0xff]   ;;  %687 = vmatprep.subr.bf16.mxu1 %v747_v2  ;;  %661 = vmatprep.subr.bf16.mxu0 %v749_v4  ;;  %v752_v7 = vld [vmem:[%s978_s1 + $0x88] sm:$0xff]   ;;  %v756_v11 = vld [vmem:[%s978_s1 + $0x90] sm:$0xff]  }
   0x5   :  { %688 = vmatpush3.bf16.msra.mxu1 %v748_v3  ;;  %v757_v12 = vld [vmem:[%s978_s1 + $0x58] sm:$0xff]   ;;  %v761_v16 = vld [vmem:[%s978_s1 + $0x60] sm:$0xff]   ;;  %v765_v20 = vld [vmem:[%s978_s1 + $0x68] sm:$0xff]  }
   0x6   :  { %689 = vmatprep.subr.bf16.mxu1 %v751_v6  ;;  %v758_v13 = vld [vmem:[%s978_s1 + $0x18] sm:$0xff]   ;;  %v762_v17 = vld [vmem:[%s978_s1 + $0x20] sm:$0xff]   ;;  %v766_v21 = vld [vmem:[%s978_s1 + $0x28] sm:$0xff]  }
   0x7   :  { %662 = vmatpush3.bf16.msra.mxu0 %v750_v5  ;;  %v759_v14 = vld [vmem:[%s978_s1 + $0xd8] sm:$0xff]   ;;  %v763_v18 = vld [vmem:[%s978_s1 + $0xe0] sm:$0xff]   ;;  %v767_v22 = vld [vmem:[%s978_s1 + $0xe8] sm:$0xff]  }
   0x8   :  { %663 = vmatprep.subr.bf16.mxu0 %v753_v8  ;;  %v760_v15 = vld [vmem:[%s978_s1 + $0x98] sm:$0xff]   ;;  %v764_v19 = vld [vmem:[%s978_s1 + $0xa0] sm:$0xff]   ;;  %v768_v23 = vld [vmem:[%s978_s1 + $0xa8] sm:$0xff]  }
   0x9   :  { %690 = vmatpush3.bf16.msra.mxu1 %v752_v7  ;;  %v769_v24 = vld [vmem:[%s978_s1 + $0x70] sm:$0xff]   ;;  %v773_v28 = vld [vmem:[%s978_s1 + $0x78] sm:$0xff]   ;;  %v780_v34 = vld [vmem:[%s978_s1 + $0x100] sm:$0xff]  }
   0xa   :  { %691 = vmatprep.subr.bf16.mxu1 %v755_v10  ;;  %v770_v25 = vld [vmem:[%s978_s1 + $0x30] sm:$0xff]   ;;  %v774_v29 = vld [vmem:[%s978_s1 + $0x38] sm:$0xff]   ;;  %v783_v36 = vld [vmem:[%s979_s0 + $0xc] ss:$20 sps:$4 sm:$0xff]  }
   0xb   :  { %664 = vmatpush3.bf16.msra.mxu0 %v754_v9  ;;  %v771_v26 = vld [vmem:[%s978_s1 + $0xf0] sm:$0xff]   ;;  %v775_v30 = vld [vmem:[%s978_s1 + $0xf8] sm:$0xff]   ;;  %v784_v37 = vld [vmem:[%s978_s1 + $0x108] sm:$0xff]   ;;  %487 = vmatprep.mubr.bf16.mxu1 %v783_v36 }
   0xc   :  { %665 = vmatprep.subr.bf16.mxu0 %v757_v12  ;;  %v772_v27 = vld [vmem:[%s978_s1 + $0xb0] sm:$0xff]   ;;  %v778_v32 = vld [vmem:[%s979_s0 + $0x4] ss:$20 sps:$4 sm:$0xff]   ;;  %v781_v35 = vld [vmem:[%s979_s0 + $0x8] ss:$20 sps:$4 sm:$0xff]  }
   0xd   :  { %692 = vmatpush3.bf16.msra.mxu1 %v756_v11  ;;  %v776_v31 = vld [vmem:[%s979_s0] ss:$20 sps:$4 sm:$0xff]   ;;  %v779_v33 = vld [vmem:[%s978_s1 + $0xb8] sm:$0xff]   ;;  %438 = vmatprep.mubr.bf16.mxu0 %v778_v32  ;;  %v794_v43 = vld [vmem:[%s979_s0 + $0x30] ss:$20 sps:$4 sm:$0xff]  }
   0xe   :  { %693 = vmatprep.subr.bf16.mxu1 %v759_v14  ;;  %v785_v38 = vld [vmem:[%s978_s1 + $0x110] sm:$0xff]   ;;  %v788_v39 = vld [vmem:[%s979_s0 + $0x2c] ss:$20 sps:$4 sm:$0xff]   ;;  %v786_v40 = vld [vmem:[%s978_s1 + $0x118] sm:$0xff]  }
   0xf   :  { %666 = vmatpush3.bf16.msra.mxu0 %v758_v13  ;;  %v791_v41 = vld [vmem:[%s979_s0 + $0x28] ss:$20 sps:$4 sm:$0xff]   ;;  %v787_v44 = vld [vmem:[%s978_s1 + $0x120] sm:$0xff]   ;;  %v795_v47 = vld [vmem:[%s978_s1 + $0x130] sm:$0xff]  }
  0x10   :  { %667 = vmatprep.subr.bf16.mxu0 %v761_v16  ;;  %v792_v42 = vld [vmem:[%s979_s0 + $0x34] ss:$20 sps:$4 sm:$0xff]   ;;  %v797_v45 = vld [vmem:[%s979_s0 + $0x10] ss:$20 sps:$4 sm:$0xff]   ;;  %v796_v48 = vld [vmem:[%s978_s1 + $0x138] sm:$0xff]  }
  0x11   :  { %694 = vmatpush3.bf16.msra.mxu1 %v760_v15  ;;  %v790_v46 = vld [vmem:[%s978_s1 + $0x128] sm:$0xff]   ;;  %v589_v51 = vld [vmem:[%s980_s2] ss:$0 sm:$0xff] }
  0x12   :  { %695 = vmatprep.subr.bf16.mxu1 %v763_v18  ;;  %v798_v49 = vld [vmem:[%s979_s0 + $0x38] ss:$20 sps:$4 sm:$0xff]  }
  0x13   :  { %668 = vmatpush3.bf16.msra.mxu0 %v762_v17 }
  0x14   :  { %669 = vmatprep.subr.bf16.mxu0 %v765_v20 }
  0x15   :  { %696 = vmatpush3.bf16.msra.mxu1 %v764_v19 }
  0x16   :  { %697 = vmatprep.subr.bf16.mxu1 %v767_v22 }
  0x17   :  { %670 = vmatpush3.bf16.msra.mxu0 %v766_v21 }
  0x18   :  { %671 = vmatprep.subr.bf16.mxu0 %v769_v24 }
  0x19   :  { %698 = vmatpush3.bf16.msra.mxu1 %v768_v23 }
  0x1a   :  { %699 = vmatprep.subr.bf16.mxu1 %v771_v26 }
  0x1b   :  { %672 = vmatpush3.bf16.msra.mxu0 %v770_v25 }
  0x1c   :  { %673 = vmatprep.subr.bf16.mxu0 %v773_v28 }
  0x1d   :  { %700 = vmatpush3.bf16.msra.mxu1 %v772_v27 }
  0x1e   :  { %701 = vmatprep.subr.bf16.mxu1 %v775_v30 }
  0x1f   :  { %674 = vmatpush3.bf16.msra.mxu0 %v774_v29 }
  0x20   :  { %725 = vmatprep.subr.bf16.mxu0 %v780_v34 }
  0x21   :  { %702 = vmatpush3.bf16.msra.mxu1 %v779_v33 }
  0x22   :  { %439 = vmatmul.mubr.bf16.vlgmr.msra.gmra.mrb[0].mxu0 %v776_v31 }
  0x23   :  { %726 = vmatpush3.bf16.msra.mxu0 %v780_v34  ;;  %446 = vmatprep.mubr.bf16.mxu0 %v788_v39 }
  0x24   :  { %488 = vmatmul.mubr.bf16.vlgmr.msra.gmra.mrb[0].mxu1 %v781_v35  ;;  %727 = vmatprep.subr.bf16.mxu0 %v784_v37 }
  0x25   :  { %495 = vmatprep.mubr.bf16.mxu1 %v792_v42 }
  0x27   :  { %728 = vmatpush3.bf16.msra.mxu0 %v784_v37 }
  0x28   :  { %729 = vmatprep.subr.bf16.mxu0 %v785_v38 }
  0x2a   :  { %447 = vmatmul.mubr.bf16.gmra.mrb[4].mxu0 %v791_v41 }
  0x2b   :  { %730 = vmatpush3.bf16.msra.mxu0 %v785_v38  ;;  %741 = vmatprep.mubr.bf16.mxu0 %v797_v45 }
  0x2c   :  { %731 = vmatprep.subr.bf16.mxu0 %v786_v40  ;;  %496 = vmatmul.mubr.bf16.gmra.mrb[4].mxu1 %v794_v43 }
  0x2f   :  { %732 = vmatpush3.bf16.msra.mxu0 %v786_v40 }
  0x30   :  { %733 = vmatprep.subr.bf16.mxu0 %v787_v44 }
  0x33   :  { %734 = vmatpush3.bf16.msra.mxu0 %v787_v44 }
  0x34   :  { %735 = vmatprep.subr.bf16.mxu0 %v790_v46 }
  0x37   :  { %736 = vmatpush3.bf16.msra.mxu0 %v790_v46 }
  0x38   :  { %737 = vmatprep.subr.bf16.mxu0 %v795_v47 }
  0x3b   :  { %738 = vmatpush3.bf16.msra.mxu0 %v795_v47 }
  0x3c   :  { %739 = vmatprep.subr.bf16.mxu0 %v796_v48 }
  0x3f   :  { %740 = vmatpush3.bf16.msra.mxu0 %v796_v48 }
  0x42   :  { %742 = vmatmul.mubr.bf16.vlgmr.msra.gmra.mrb[8].mxu0 %v798_v49 }
  0xf5   :  { %v675_v50 = vpop.f32.mrb[0].mxu0 }
  0xf6   :  { %v676_v52 = vpop.f32.mrb[1].mxu0 }
  0xf7   :  { %v677_v53 = vadd.f32 %v676_v52, %v675_v50  ;;  %v678_v54 = vpop.f32.mrb[2].mxu0  ;;  %v703_v55 = vpop.f32.mrb[0].mxu1 }
  0xf8   :  { %v679_v56 = vpop.f32.mrb[3].mxu0  ;;  %v704_v59 = vpop.f32.mrb[1].mxu1 }
  0xf9   :  { %v441_v57 = vadd.f32 %v677_v53, %v589_v51  ;;  %v680_v58 = vadd.f32 %v679_v56, %v678_v54  ;;  %v705_v60 = vadd.f32 %v704_v59, %v703_v55  ;;  %v706_v61 = vpop.f32.mrb[2].mxu1 }
  0xfa   :  { %v707_v63 = vpop.f32.mrb[3].mxu1 }
  0xfb   :  { %v444_v62 = vadd.f32 %v680_v58, %v589_v51  ;;  %v708_v0 = vadd.f32 %v707_v63, %v706_v61  ;;  %v490_v1 = vadd.f32 %v705_v60, %v441_v57 }
  0xfd   :  { %v681_v2 = vpop.f32.mrb[4].mxu0  ;;  %v493_v4 = vadd.f32 %v708_v0, %v444_v62 }
  0xfe   :  { %v682_v3 = vpop.f32.mrb[5].mxu0 }
  0xff   :  { %v683_v5 = vadd.f32 %v682_v3, %v681_v2  ;;  %v684_v6 = vpop.f32.mrb[6].mxu0  ;;  %v709_v7 = vpop.f32.mrb[4].mxu1 }
 0x100   :  { %v685_v8 = vpop.f32.mrb[7].mxu0  ;;  %v710_v11 = vpop.f32.mrb[5].mxu1 }
 0x101   :  { %v449_v9 = vadd.f32 %v683_v5, %v589_v51  ;;  %v686_v10 = vadd.f32 %v685_v8, %v684_v6  ;;  %v711_v12 = vadd.f32 %v710_v11, %v709_v7  ;;  %v712_v13 = vpop.f32.mrb[6].mxu1 }
 0x102   :  { %v713_v15 = vpop.f32.mrb[7].mxu1 }
 0x103   :  { %v452_v14 = vadd.f32 %v686_v10, %v589_v51  ;;  %v714_v16 = vadd.f32 %v713_v15, %v712_v13  ;;  %v498_v17 = vadd.f32 %v711_v12, %v449_v9 }
 0x105   :  { %v501_v18 = vadd.f32 %v714_v16, %v452_v14 }
 0x115   :  { %v743_v19 = vpop.f32.mrb[8].mxu0 }
 0x116   :  { %v547_v20 = vadd.f32 %v743_v19, %v498_v17  ;;  %v538_v21 = vpop.f32.mrb[9].mxu0 }
 0x117   :  { %v539_v22 = vadd.f32 %v538_v21, %v490_v1  ;;  %v744_v23 = vpop.f32.mrb[10].mxu0 }
 0x118   :  { %v559_v24 = vmul.f32 0.2, %v547_v20  ;;  %v550_v25 = vadd.f32 %v744_v23, %v501_v18  ;;  %v541_v26 = vpop.f32.mrb[11].mxu0  ;;  %vm555_vm0 = vcmp.ge.f32.partialorder %v547_v20, 0.0 }
 0x119   :  { %v557_v27 = vmul.f32 0.2, %v539_v22  ;;  %v542_v28 = vadd.f32 %v541_v26, %v493_v4  ;;  %vm553_vm1 = vcmp.ge.f32.partialorder %v539_v22, 0.0 }
 0x11a   :  { %vm556_vm2 = vcmp.ge.f32.partialorder %v550_v25, 0.0  ;;  %v560_v29 = vmul.f32 0.2, %v550_v25  ;;  %v563_v31 = vsel %vm555_vm0, %v547_v20, %v559_v24 }
 0x11b   :  { %vm554_vm3 = vcmp.ge.f32.partialorder %v542_v28, 0.0  ;;  %v558_v30 = vmul.f32 0.2, %v542_v28  ;;  %v561_v33 = vsel %vm553_vm1, %v539_v22, %v557_v27 }
 0x11c   :  { %v564_v32 = vsel %vm556_vm2, %v550_v25, %v560_v29 }
 0x11d   :  { %v656_v34 = vpack.c.bf16 %v564_v32, %v563_v31  ;;  %v562_v35 = vsel %vm554_vm3, %v542_v28, %v558_v30 }
 0x11e   :  { %v651_v36 = vpack.c.bf16 %v562_v35, %v561_v33 }
 0x11f   :  { %658 = vst [vmem:[%s981_s3 + $0x8] sm:$0xff] %v656_v34  }
 0x120   :  { %652 = vst [vmem:[%s981_s3] sm:$0xff] %v651_v36  }

// kernel: unet_forward.48
= control target key start
LH: loop header
LB: loop body
LE: loop exit
PB: predicated region body
PF: predicated region fallthrough
CT: control target
= control target key end

     0   :  { %s966_s1 = inlined_call_operand.vmem [shape: bf16[640,128], index: 1, kind: input, shape index: {}]   ;;  %s967_s0 = inlined_call_operand.vmem [shape: bf16[32,640], index: 0, kind: input, shape index: {}]   ;;  %s968_s2 = inlined_call_operand.vmem [shape: f32[1,128], index: 2, kind: input, shape index: {}]   ;;  %s969_s3 = inlined_call_operand.vmem [shape: bf16[32,128], index: 3, kind: output, shape index: {}]  }
   0x1   :  { %v733_v0 = vld [vmem:[%s966_s1 + $0x40] sm:$0xff]   ;;  %v737_v4 = vld [vmem:[%s966_s1 + $0x48] sm:$0xff]   ;;  %v741_v8 = vld [vmem:[%s966_s1 + $0x50] sm:$0xff]  }
   0x2   :  { %v734_v1 = vld [vmem:[%s966_s1] sm:$0xff]   ;;  %647 = vmatprep.subr.bf16.mxu0 %v733_v0  ;;  %v738_v5 = vld [vmem:[%s966_s1 + $0x8] sm:$0xff]   ;;  %v742_v9 = vld [vmem:[%s966_s1 + $0x10] sm:$0xff]  }
   0x3   :  { %v735_v2 = vld [vmem:[%s966_s1 + $0xc0] sm:$0xff]   ;;  %648 = vmatpush3.bf16.msra.mxu0 %v734_v1  ;;  %v739_v6 = vld [vmem:[%s966_s1 + $0xc8] sm:$0xff]   ;;  %v743_v10 = vld [vmem:[%s966_s1 + $0xd0] sm:$0xff]  }
   0x4   :  { %v736_v3 = vld [vmem:[%s966_s1 + $0x80] sm:$0xff]   ;;  %675 = vmatprep.subr.bf16.mxu1 %v735_v2  ;;  %649 = vmatprep.subr.bf16.mxu0 %v737_v4  ;;  %v740_v7 = vld [vmem:[%s966_s1 + $0x88] sm:$0xff]   ;;  %v744_v11 = vld [vmem:[%s966_s1 + $0x90] sm:$0xff]  }
   0x5   :  { %676 = vmatpush3.bf16.msra.mxu1 %v736_v3  ;;  %v745_v12 = vld [vmem:[%s966_s1 + $0x58] sm:$0xff]   ;;  %v749_v16 = vld [vmem:[%s966_s1 + $0x60] sm:$0xff]   ;;  %v753_v20 = vld [vmem:[%s966_s1 + $0x68] sm:$0xff]  }
   0x6   :  { %677 = vmatprep.subr.bf16.mxu1 %v739_v6  ;;  %v746_v13 = vld [vmem:[%s966_s1 + $0x18] sm:$0xff]   ;;  %v750_v17 = vld [vmem:[%s966_s1 + $0x20] sm:$0xff]   ;;  %v754_v21 = vld [vmem:[%s966_s1 + $0x28] sm:$0xff]  }
   0x7   :  { %650 = vmatpush3.bf16.msra.mxu0 %v738_v5  ;;  %v747_v14 = vld [vmem:[%s966_s1 + $0xd8] sm:$0xff]   ;;  %v751_v18 = vld [vmem:[%s966_s1 + $0xe0] sm:$0xff]   ;;  %v755_v22 = vld [vmem:[%s966_s1 + $0xe8] sm:$0xff]  }
   0x8   :  { %651 = vmatprep.subr.bf16.mxu0 %v741_v8  ;;  %v748_v15 = vld [vmem:[%s966_s1 + $0x98] sm:$0xff]   ;;  %v752_v19 = vld [vmem:[%s966_s1 + $0xa0] sm:$0xff]   ;;  %v756_v23 = vld [vmem:[%s966_s1 + $0xa8] sm:$0xff]  }
   0x9   :  { %678 = vmatpush3.bf16.msra.mxu1 %v740_v7  ;;  %v757_v24 = vld [vmem:[%s966_s1 + $0x70] sm:$0xff]   ;;  %v761_v28 = vld [vmem:[%s966_s1 + $0x78] sm:$0xff]   ;;  %v768_v34 = vld [vmem:[%s966_s1 + $0x100] sm:$0xff]  }
   0xa   :  { %679 = vmatprep.subr.bf16.mxu1 %v743_v10  ;;  %v758_v25 = vld [vmem:[%s966_s1 + $0x30] sm:$0xff]   ;;  %v762_v29 = vld [vmem:[%s966_s1 + $0x38] sm:$0xff]   ;;  %v771_v36 = vld [vmem:[%s967_s0 + $0xc] ss:$20 sps:$4 sm:$0xff]  }
   0xb   :  { %652 = vmatpush3.bf16.msra.mxu0 %v742_v9  ;;  %v759_v26 = vld [vmem:[%s966_s1 + $0xf0] sm:$0xff]   ;;  %v763_v30 = vld [vmem:[%s966_s1 + $0xf8] sm:$0xff]   ;;  %v772_v37 = vld [vmem:[%s966_s1 + $0x108] sm:$0xff]   ;;  %487 = vmatprep.mubr.bf16.mxu1 %v771_v36 }
   0xc   :  { %653 = vmatprep.subr.bf16.mxu0 %v745_v12  ;;  %v760_v27 = vld [vmem:[%s966_s1 + $0xb0] sm:$0xff]   ;;  %v766_v32 = vld [vmem:[%s967_s0 + $0x4] ss:$20 sps:$4 sm:$0xff]   ;;  %v769_v35 = vld [vmem:[%s967_s0 + $0x8] ss:$20 sps:$4 sm:$0xff]  }
   0xd   :  { %680 = vmatpush3.bf16.msra.mxu1 %v744_v11  ;;  %v764_v31 = vld [vmem:[%s967_s0] ss:$20 sps:$4 sm:$0xff]   ;;  %v767_v33 = vld [vmem:[%s966_s1 + $0xb8] sm:$0xff]   ;;  %438 = vmatprep.mubr.bf16.mxu0 %v766_v32  ;;  %v782_v43 = vld [vmem:[%s967_s0 + $0x30] ss:$20 sps:$4 sm:$0xff]  }
   0xe   :  { %681 = vmatprep.subr.bf16.mxu1 %v747_v14  ;;  %v773_v38 = vld [vmem:[%s966_s1 + $0x110] sm:$0xff]   ;;  %v776_v39 = vld [vmem:[%s967_s0 + $0x2c] ss:$20 sps:$4 sm:$0xff]   ;;  %v774_v40 = vld [vmem:[%s966_s1 + $0x118] sm:$0xff]  }
   0xf   :  { %654 = vmatpush3.bf16.msra.mxu0 %v746_v13  ;;  %v779_v41 = vld [vmem:[%s967_s0 + $0x28] ss:$20 sps:$4 sm:$0xff]   ;;  %v775_v44 = vld [vmem:[%s966_s1 + $0x120] sm:$0xff]   ;;  %v783_v47 = vld [vmem:[%s966_s1 + $0x130] sm:$0xff]  }
  0x10   :  { %655 = vmatprep.subr.bf16.mxu0 %v749_v16  ;;  %v780_v42 = vld [vmem:[%s967_s0 + $0x34] ss:$20 sps:$4 sm:$0xff]   ;;  %v785_v45 = vld [vmem:[%s967_s0 + $0x10] ss:$20 sps:$4 sm:$0xff]   ;;  %v784_v48 = vld [vmem:[%s966_s1 + $0x138] sm:$0xff]  }
  0x11   :  { %682 = vmatpush3.bf16.msra.mxu1 %v748_v15  ;;  %v778_v46 = vld [vmem:[%s966_s1 + $0x128] sm:$0xff]   ;;  %v577_v51 = vld [vmem:[%s968_s2] ss:$0 sm:$0xff] }
  0x12   :  { %683 = vmatprep.subr.bf16.mxu1 %v751_v18  ;;  %v786_v49 = vld [vmem:[%s967_s0 + $0x38] ss:$20 sps:$4 sm:$0xff]  }
  0x13   :  { %656 = vmatpush3.bf16.msra.mxu0 %v750_v17 }
  0x14   :  { %657 = vmatprep.subr.bf16.mxu0 %v753_v20 }
  0x15   :  { %684 = vmatpush3.bf16.msra.mxu1 %v752_v19 }
  0x16   :  { %685 = vmatprep.subr.bf16.mxu1 %v755_v22 }
  0x17   :  { %658 = vmatpush3.bf16.msra.mxu0 %v754_v21 }
  0x18   :  { %659 = vmatprep.subr.bf16.mxu0 %v757_v24 }
  0x19   :  { %686 = vmatpush3.bf16.msra.mxu1 %v756_v23 }
  0x1a   :  { %687 = vmatprep.subr.bf16.mxu1 %v759_v26 }
  0x1b   :  { %660 = vmatpush3.bf16.msra.mxu0 %v758_v25 }
  0x1c   :  { %661 = vmatprep.subr.bf16.mxu0 %v761_v28 }
  0x1d   :  { %688 = vmatpush3.bf16.msra.mxu1 %v760_v27 }
  0x1e   :  { %689 = vmatprep.subr.bf16.mxu1 %v763_v30 }
  0x1f   :  { %662 = vmatpush3.bf16.msra.mxu0 %v762_v29 }
  0x20   :  { %713 = vmatprep.subr.bf16.mxu0 %v768_v34 }
  0x21   :  { %690 = vmatpush3.bf16.msra.mxu1 %v767_v33 }
  0x22   :  { %439 = vmatmul.mubr.bf16.vlgmr.msra.gmra.mrb[0].mxu0 %v764_v31 }
  0x23   :  { %714 = vmatpush3.bf16.msra.mxu0 %v768_v34  ;;  %446 = vmatprep.mubr.bf16.mxu0 %v776_v39 }
  0x24   :  { %488 = vmatmul.mubr.bf16.vlgmr.msra.gmra.mrb[0].mxu1 %v769_v35  ;;  %715 = vmatprep.subr.bf16.mxu0 %v772_v37 }
  0x25   :  { %495 = vmatprep.mubr.bf16.mxu1 %v780_v42 }
  0x27   :  { %716 = vmatpush3.bf16.msra.mxu0 %v772_v37 }
  0x28   :  { %717 = vmatprep.subr.bf16.mxu0 %v773_v38 }
  0x2a   :  { %447 = vmatmul.mubr.bf16.gmra.mrb[4].mxu0 %v779_v41 }
  0x2b   :  { %718 = vmatpush3.bf16.msra.mxu0 %v773_v38  ;;  %729 = vmatprep.mubr.bf16.mxu0 %v785_v45 }
  0x2c   :  { %719 = vmatprep.subr.bf16.mxu0 %v774_v40  ;;  %496 = vmatmul.mubr.bf16.gmra.mrb[4].mxu1 %v782_v43 }
  0x2f   :  { %720 = vmatpush3.bf16.msra.mxu0 %v774_v40 }
  0x30   :  { %721 = vmatprep.subr.bf16.mxu0 %v775_v44 }
  0x33   :  { %722 = vmatpush3.bf16.msra.mxu0 %v775_v44 }
  0x34   :  { %723 = vmatprep.subr.bf16.mxu0 %v778_v46 }
  0x37   :  { %724 = vmatpush3.bf16.msra.mxu0 %v778_v46 }
  0x38   :  { %725 = vmatprep.subr.bf16.mxu0 %v783_v47 }
  0x3b   :  { %726 = vmatpush3.bf16.msra.mxu0 %v783_v47 }
  0x3c   :  { %727 = vmatprep.subr.bf16.mxu0 %v784_v48 }
  0x3f   :  { %728 = vmatpush3.bf16.msra.mxu0 %v784_v48 }
  0x42   :  { %730 = vmatmul.mubr.bf16.vlgmr.msra.gmra.mrb[8].mxu0 %v786_v49 }
  0xf5   :  { %v663_v50 = vpop.f32.mrb[0].mxu0 }
  0xf6   :  { %v664_v52 = vpop.f32.mrb[1].mxu0 }
  0xf7   :  { %v665_v53 = vadd.f32 %v664_v52, %v663_v50  ;;  %v666_v54 = vpop.f32.mrb[2].mxu0  ;;  %v691_v55 = vpop.f32.mrb[0].mxu1 }
  0xf8   :  { %v667_v56 = vpop.f32.mrb[3].mxu0  ;;  %v692_v59 = vpop.f32.mrb[1].mxu1 }
  0xf9   :  { %v441_v57 = vadd.f32 %v665_v53, %v577_v51  ;;  %v668_v58 = vadd.f32 %v667_v56, %v666_v54  ;;  %v693_v60 = vadd.f32 %v692_v59, %v691_v55  ;;  %v694_v61 = vpop.f32.mrb[2].mxu1 }
  0xfa   :  { %v695_v63 = vpop.f32.mrb[3].mxu1 }
  0xfb   :  { %v444_v62 = vadd.f32 %v668_v58, %v577_v51  ;;  %v696_v0 = vadd.f32 %v695_v63, %v694_v61  ;;  %v490_v1 = vadd.f32 %v693_v60, %v441_v57 }
  0xfd   :  { %v669_v2 = vpop.f32.mrb[4].mxu0  ;;  %v493_v4 = vadd.f32 %v696_v0, %v444_v62 }
  0xfe   :  { %v670_v3 = vpop.f32.mrb[5].mxu0 }
  0xff   :  { %v671_v5 = vadd.f32 %v670_v3, %v669_v2  ;;  %v672_v6 = vpop.f32.mrb[6].mxu0  ;;  %v697_v7 = vpop.f32.mrb[4].mxu1 }
 0x100   :  { %v673_v8 = vpop.f32.mrb[7].mxu0  ;;  %v698_v11 = vpop.f32.mrb[5].mxu1 }
 0x101   :  { %v449_v9 = vadd.f32 %v671_v5, %v577_v51  ;;  %v674_v10 = vadd.f32 %v673_v8, %v672_v6  ;;  %v699_v12 = vadd.f32 %v698_v11, %v697_v7  ;;  %v700_v13 = vpop.f32.mrb[6].mxu1 }
 0x102   :  { %v701_v15 = vpop.f32.mrb[7].mxu1 }
 0x103   :  { %v452_v14 = vadd.f32 %v674_v10, %v577_v51  ;;  %v702_v16 = vadd.f32 %v701_v15, %v700_v13  ;;  %v498_v17 = vadd.f32 %v699_v12, %v449_v9 }
 0x105   :  { %v501_v18 = vadd.f32 %v702_v16, %v452_v14 }
 0x115   :  { %v731_v19 = vpop.f32.mrb[8].mxu0 }
 0x116   :  { %v547_v20 = vadd.f32 %v731_v19, %v498_v17  ;;  %v538_v21 = vpop.f32.mrb[9].mxu0 }
 0x117   :  { %v539_v22 = vadd.f32 %v538_v21, %v490_v1  ;;  %v732_v23 = vpop.f32.mrb[10].mxu0 }
 0x118   :  { %v550_v24 = vadd.f32 %v732_v23, %v501_v18  ;;  %v541_v25 = vpop.f32.mrb[11].mxu0 }
 0x119   :  { %v542_v26 = vadd.f32 %v541_v25, %v493_v4 }
 0x11a   :  { %v644_v27 = vpack.c.bf16 %v550_v24, %v547_v20 }
 0x11b   :  { %v639_v28 = vpack.c.bf16 %v542_v26, %v539_v22 }
 0x11c   :  { %646 = vst [vmem:[%s969_s3 + $0x8] sm:$0xff] %v644_v27  }
 0x11d   :  { %640 = vst [vmem:[%s969_s3] sm:$0xff] %v639_v28  }

// kernel: unet_forward.39
= control target key start
LH: loop header
LB: loop body
LE: loop exit
PB: predicated region body
PF: predicated region fallthrough
CT: control target
= control target key end

     0   :  { %v181_v0 = vmov 0.0   ;;  %vm182_vm0 = vmmov 0   ;;  %s236_s1 = inlined_call_operand.vmem [shape: bf16[128,128], index: 1, kind: input, shape index: {}]   ;;  %s237_s0 = inlined_call_operand.vmem [shape: bf16[8,128], index: 0, kind: input, shape index: {}]   ;;  %s238_s2 = inlined_call_operand.vmem [shape: f32[1,128], index: 2, kind: input, shape index: {}]   ;;  %s239_s3 = inlined_call_operand.vmem [shape: bf16[8,128], index: 3, kind: output, shape index: {}]  }
   0x1   :  { %151 = vmatprep.subr.bf16.mxu0 %v181_v0  ;;  %v173_v1 = vld [vmem:[%s236_s1] sm:$0xff]   ;;  %167 = vmatprep.mubr.msk.bf16.mxu0 %vm182_vm0, %v181_v0  ;;  %v174_v2 = vld [vmem:[%s236_s1 + $0x8] sm:$0xff]   ;;  %v175_v3 = vld [vmem:[%s236_s1 + $0x10] sm:$0xff]  }
   0x2   :  { %152 = vmatpush3.bf16.msra.mxu0 %v173_v1  ;;  %v176_v4 = vld [vmem:[%s236_s1 + $0x18] sm:$0xff]   ;;  %v177_v5 = vld [vmem:[%s236_s1 + $0x20] sm:$0xff]   ;;  %v178_v6 = vld [vmem:[%s236_s1 + $0x28] sm:$0xff]  }
   0x3   :  { %153 = vmatprep.subr.bf16.mxu0 %v181_v0  ;;  %v179_v7 = vld [vmem:[%s236_s1 + $0x30] sm:$0xff]   ;;  %v180_v8 = vld [vmem:[%s236_s1 + $0x38] sm:$0xff]   ;;  %v15_v9 = vld [vmem:[%s237_s0] sm:$0xf] }
   0x4   :  { %v133_v10 = vld [vmem:[%s238_s2] ss:$0 sm:$0xff] }
   0x6   :  { %154 = vmatpush3.bf16.msra.mxu0 %v174_v2 }
   0x7   :  { %155 = vmatprep.subr.bf16.mxu0 %v181_v0 }
   0xa   :  { %156 = vmatpush3.bf16.msra.mxu0 %v175_v3 }
   0xb   :  { %157 = vmatprep.subr.bf16.mxu0 %v181_v0 }
   0xe   :  { %158 = vmatpush3.bf16.msra.mxu0 %v176_v4 }
   0xf   :  { %159 = vmatprep.subr.bf16.mxu0 %v181_v0 }
  0x12   :  { %160 = vmatpush3.bf16.msra.mxu0 %v177_v5 }
  0x13   :  { %161 = vmatprep.subr.bf16.mxu0 %v181_v0 }
  0x16   :  { %162 = vmatpush3.bf16.msra.mxu0 %v178_v6 }
  0x17   :  { %163 = vmatprep.subr.bf16.mxu0 %v181_v0 }
  0x1a   :  { %164 = vmatpush3.bf16.msra.mxu0 %v179_v7 }
  0x1b   :  { %165 = vmatprep.subr.bf16.mxu0 %v181_v0 }
  0x1e   :  { %166 = vmatpush3.bf16.msra.mxu0 %v180_v8 }
  0x21   :  { %168 = vmatmul.mubr.bf16.vlgmr.msra.gmra.mrb[0].mxu0 %v15_v9 }
  0xf4   :  { %v121_v11 = vpop.f32.mrb[0].mxu0 }
  0xf5   :  { %v122_v12 = vadd.f32 %v133_v10, %v121_v11  ;;  %v169_v13 = vpop.f32.mrb[1].mxu0 }
  0xf6   :  { %v124_v14 = vpop.f32.mrb[2].mxu0 }
  0xf7   :  { %v127_v15 = vpack.c.bf16 %v122_v12, %v122_v12  ;;  %v170_v16 = vpop.f32.mrb[3].mxu0 }
  0xf9   :  { %128 = vst [vmem:[%s239_s3] sm:$0xf] %v127_v15 }

// kernel: unet_forward.42
= control target key start
LH: loop header
LB: loop body
LE: loop exit
PB: predicated region body
PF: predicated region fallthrough
CT: control target
= control target key end

     0   :  { %s1209_s1 = inlined_call_operand.vmem [shape: bf16[1024,128], index: 1, kind: input, shape index: {}]   ;;  %s1210_s0 = inlined_call_operand.vmem [shape: bf16[8,1024], index: 0, kind: input, shape index: {}]   ;;  %s1211_s2 = inlined_call_operand.vmem [shape: f32[1,128], index: 2, kind: input, shape index: {}]   ;;  %s1212_s3 = inlined_call_operand.vmem [shape: bf16[8,128], index: 3, kind: input, shape index: {}]   ;;  %s1213_s4 = inlined_call_operand.vmem [shape: bf16[8,128], index: 4, kind: output, shape index: {}]  }
   0x1   :  { %v899_v0 = vld [vmem:[%s1209_s1 + $0x40] sm:$0xff]   ;;  %v903_v4 = vld [vmem:[%s1209_s1 + $0x48] sm:$0xff]   ;;  %v907_v8 = vld [vmem:[%s1209_s1 + $0x50] sm:$0xff]  }
   0x2   :  { %v900_v1 = vld [vmem:[%s1209_s1 + $0xc0] sm:$0xff]   ;;  %811 = vmatprep.subr.bf16.mxu0 %v899_v0  ;;  %v904_v5 = vld [vmem:[%s1209_s1 + $0xc8] sm:$0xff]   ;;  %v908_v9 = vld [vmem:[%s1209_s1 + $0xd0] sm:$0xff]  }
   0x3   :  { %v901_v2 = vld [vmem:[%s1209_s1] sm:$0xff]   ;;  %833 = vmatprep.subr.bf16.mxu1 %v900_v1  ;;  %v905_v6 = vld [vmem:[%s1209_s1 + $0x8] sm:$0xff]   ;;  %v909_v10 = vld [vmem:[%s1209_s1 + $0x10] sm:$0xff]  }
   0x4   :  { %v902_v3 = vld [vmem:[%s1209_s1 + $0x80] sm:$0xff]   ;;  %812 = vmatpush3.bf16.msra.mxu0 %v901_v2  ;;  %v906_v7 = vld [vmem:[%s1209_s1 + $0x88] sm:$0xff]   ;;  %v910_v11 = vld [vmem:[%s1209_s1 + $0x90] sm:$0xff]  }
   0x5   :  { %834 = vmatpush3.bf16.msra.mxu1 %v902_v3  ;;  %813 = vmatprep.subr.bf16.mxu0 %v903_v4  ;;  %v911_v12 = vld [vmem:[%s1209_s1 + $0x58] sm:$0xff]   ;;  %v915_v16 = vld [vmem:[%s1209_s1 + $0x60] sm:$0xff]   ;;  %v919_v20 = vld [vmem:[%s1209_s1 + $0x68] sm:$0xff]  }
   0x6   :  { %835 = vmatprep.subr.bf16.mxu1 %v904_v5  ;;  %v912_v13 = vld [vmem:[%s1209_s1 + $0xd8] sm:$0xff]   ;;  %v916_v17 = vld [vmem:[%s1209_s1 + $0xe0] sm:$0xff]   ;;  %v920_v21 = vld [vmem:[%s1209_s1 + $0xe8] sm:$0xff]  }
   0x7   :  { %v913_v14 = vld [vmem:[%s1209_s1 + $0x18] sm:$0xff]   ;;  %v917_v18 = vld [vmem:[%s1209_s1 + $0x20] sm:$0xff]   ;;  %v921_v22 = vld [vmem:[%s1209_s1 + $0x28] sm:$0xff]  }
   0x8   :  { %814 = vmatpush3.bf16.msra.mxu0 %v905_v6  ;;  %v914_v15 = vld [vmem:[%s1209_s1 + $0x98] sm:$0xff]   ;;  %v918_v19 = vld [vmem:[%s1209_s1 + $0xa0] sm:$0xff]   ;;  %v922_v23 = vld [vmem:[%s1209_s1 + $0xa8] sm:$0xff]  }
   0x9   :  { %836 = vmatpush3.bf16.msra.mxu1 %v906_v7  ;;  %815 = vmatprep.subr.bf16.mxu0 %v907_v8  ;;  %v923_v24 = vld [vmem:[%s1209_s1 + $0x70] sm:$0xff]   ;;  %v927_v28 = vld [vmem:[%s1209_s1 + $0x78] sm:$0xff]   ;;  %v18_v32 = vld [vmem:[%s1210_s0] sm:$0xff] }
   0xa   :  { %837 = vmatprep.subr.bf16.mxu1 %v908_v9  ;;  %v924_v25 = vld [vmem:[%s1209_s1 + $0xf0] sm:$0xff]   ;;  %v928_v29 = vld [vmem:[%s1209_s1 + $0xf8] sm:$0xff]   ;;  %v19_v33 = vld [vmem:[%s1210_s0 + $0x8] sm:$0xff]  ;;  %v739_v34 = vcombine.low %v18_v32, %v18_v32  ;;  %v740_v35 = vcombine.high %v18_v32, %v18_v32 }
   0xb   :  { %v925_v26 = vld [vmem:[%s1209_s1 + $0x30] sm:$0xff]   ;;  %v929_v30 = vld [vmem:[%s1209_s1 + $0x38] sm:$0xff]   ;;  %v741_v36 = vcombine.low %v19_v33, %v19_v33  ;;  %v742_v37 = vcombine.high %v19_v33, %v19_v33  ;;  %v935_v38 = vld [vmem:[%s1209_s1 + $0x140] sm:$0xff]  }
   0xc   :  { %816 = vmatpush3.bf16.msra.mxu0 %v909_v10  ;;  %v926_v27 = vld [vmem:[%s1209_s1 + $0xb0] sm:$0xff]   ;;  %v930_v31 = vld [vmem:[%s1209_s1 + $0xb8] sm:$0xff]   ;;  %v936_v39 = vld [vmem:[%s1209_s1 + $0x1c0] sm:$0xff]   ;;  %601 = vmatprep.mubr.bf16.mxu0 %v740_v35 }
   0xd   :  { %838 = vmatpush3.bf16.msra.mxu1 %v910_v11  ;;  %817 = vmatprep.subr.bf16.mxu0 %v911_v12  ;;  %v937_v40 = vld [vmem:[%s1209_s1 + $0x100] sm:$0xff]   ;;  %v939_v42 = vld [vmem:[%s1209_s1 + $0x148] sm:$0xff]   ;;  %v943_v46 = vld [vmem:[%s1209_s1 + $0x150] sm:$0xff]  }
   0xe   :  { %839 = vmatprep.subr.bf16.mxu1 %v912_v13  ;;  %641 = vmatprep.mubr.bf16.mxu1 %v742_v37  ;;  %v938_v41 = vld [vmem:[%s1209_s1 + $0x180] sm:$0xff]   ;;  %v940_v43 = vld [vmem:[%s1209_s1 + $0x1c8] sm:$0xff]   ;;  %v944_v47 = vld [vmem:[%s1209_s1 + $0x1d0] sm:$0xff]  }
   0xf   :  { %v941_v44 = vld [vmem:[%s1209_s1 + $0x108] sm:$0xff]   ;;  %v945_v48 = vld [vmem:[%s1209_s1 + $0x110] sm:$0xff]   ;;  %v947_v50 = vld [vmem:[%s1209_s1 + $0x158] sm:$0xff]  }
  0x10   :  { %818 = vmatpush3.bf16.msra.mxu0 %v913_v14  ;;  %v942_v45 = vld [vmem:[%s1209_s1 + $0x188] sm:$0xff]   ;;  %v946_v49 = vld [vmem:[%s1209_s1 + $0x190] sm:$0xff]   ;;  %v948_v51 = vld [vmem:[%s1209_s1 + $0x1d8] sm:$0xff]  }
  0x11   :  { %840 = vmatpush3.bf16.msra.mxu1 %v914_v15  ;;  %819 = vmatprep.subr.bf16.mxu0 %v915_v16  ;;  %v949_v52 = vld [vmem:[%s1209_s1 + $0x118] sm:$0xff]   ;;  %v951_v54 = vld [vmem:[%s1209_s1 + $0x160] sm:$0xff]   ;;  %v955_v58 = vld [vmem:[%s1209_s1 + $0x168] sm:$0xff]  }
  0x12   :  { %841 = vmatprep.subr.bf16.mxu1 %v916_v17  ;;  %v950_v53 = vld [vmem:[%s1209_s1 + $0x198] sm:$0xff]   ;;  %v952_v55 = vld [vmem:[%s1209_s1 + $0x1e0] sm:$0xff]   ;;  %v956_v59 = vld [vmem:[%s1209_s1 + $0x1e8] sm:$0xff]  }
  0x13   :  { %v953_v56 = vld [vmem:[%s1209_s1 + $0x120] sm:$0xff]   ;;  %v957_v60 = vld [vmem:[%s1209_s1 + $0x128] sm:$0xff]   ;;  %v959_v62 = vld [vmem:[%s1209_s1 + $0x170] sm:$0xff]  }
  0x14   :  { %820 = vmatpush3.bf16.msra.mxu0 %v917_v18  ;;  %v954_v57 = vld [vmem:[%s1209_s1 + $0x1a0] sm:$0xff]   ;;  %v958_v61 = vld [vmem:[%s1209_s1 + $0x1a8] sm:$0xff]   ;;  %v960_v63 = vld [vmem:[%s1209_s1 + $0x1f0] sm:$0xff]  }
  0x15   :  { %842 = vmatpush3.bf16.msra.mxu1 %v918_v19  ;;  %821 = vmatprep.subr.bf16.mxu0 %v919_v20  ;;  %v961_v0 = vld [vmem:[%s1209_s1 + $0x130] sm:$0xff]   ;;  %v963_v2 = vld [vmem:[%s1209_s1 + $0x178] sm:$0xff]   ;;  %v738_v14 = vld [vmem:[%s1211_s2] ss:$0 sm:$0xff] }
  0x16   :  { %843 = vmatprep.subr.bf16.mxu1 %v920_v21  ;;  %v962_v1 = vld [vmem:[%s1209_s1 + $0x1b0] sm:$0xff]   ;;  %v964_v3 = vld [vmem:[%s1209_s1 + $0x1f8] sm:$0xff]  }
  0x17   :  { %v965_v4 = vld [vmem:[%s1209_s1 + $0x138] sm:$0xff]   ;;  %v20_v6 = vld [vmem:[%s1210_s0 + $0x10] sm:$0xff] }
  0x18   :  { %822 = vmatpush3.bf16.msra.mxu0 %v921_v22  ;;  %v966_v5 = vld [vmem:[%s1209_s1 + $0x1b8] sm:$0xff]   ;;  %v743_v7 = vcombine.low %v20_v6, %v20_v6  ;;  %v744_v8 = vcombine.high %v20_v6, %v20_v6 }
  0x19   :  { %844 = vmatpush3.bf16.msra.mxu1 %v922_v23  ;;  %823 = vmatprep.subr.bf16.mxu0 %v923_v24  ;;  %v21_v9 = vld [vmem:[%s1210_s0 + $0x18] sm:$0xff] }
  0x1a   :  { %845 = vmatprep.subr.bf16.mxu1 %v924_v25  ;;  %v745_v10 = vcombine.low %v21_v9, %v21_v9  ;;  %v746_v11 = vcombine.high %v21_v9, %v21_v9 }
  0x1c   :  { %824 = vmatpush3.bf16.msra.mxu0 %v925_v26 }
  0x1d   :  { %846 = vmatpush3.bf16.msra.mxu1 %v926_v27  ;;  %825 = vmatprep.subr.bf16.mxu0 %v927_v28 }
  0x1e   :  { %847 = vmatprep.subr.bf16.mxu1 %v928_v29  ;;  %v729_v29 = vld [vmem:[%s1212_s3] sm:$0xf] }
  0x1f   :  { %v730_v37 = vunpack.c.l.bf16 %v729_v29 }
  0x20   :  { %826 = vmatpush3.bf16.msra.mxu0 %v929_v30 }
  0x21   :  { %848 = vmatpush3.bf16.msra.mxu1 %v930_v31  ;;  %855 = vmatprep.subr.bf16.mxu0 %v935_v38 }
  0x22   :  { %877 = vmatprep.subr.bf16.mxu1 %v936_v39 }
  0x23   :  { %602 = vmatmul.mubr.bf16.vlgmr.msra.gmra.mrb[0].mxu0 %v739_v34 }
  0x24   :  { %642 = vmatmul.mubr.bf16.vlgmr.msra.gmra.mrb[0].mxu1 %v741_v36  ;;  %856 = vmatpush3.bf16.msra.mxu0 %v937_v40 }
  0x25   :  { %878 = vmatpush3.bf16.msra.mxu1 %v938_v41  ;;  %857 = vmatprep.subr.bf16.mxu0 %v939_v42 }
  0x26   :  { %879 = vmatprep.subr.bf16.mxu1 %v940_v43  ;;  %681 = vmatprep.mubr.bf16.mxu0 %v744_v8 }
  0x27   :  { %721 = vmatprep.mubr.bf16.mxu1 %v746_v11 }
  0x28   :  { %858 = vmatpush3.bf16.msra.mxu0 %v941_v44 }
  0x29   :  { %880 = vmatpush3.bf16.msra.mxu1 %v942_v45  ;;  %859 = vmatprep.subr.bf16.mxu0 %v943_v46 }
  0x2a   :  { %881 = vmatprep.subr.bf16.mxu1 %v944_v47 }
  0x2c   :  { %860 = vmatpush3.bf16.msra.mxu0 %v945_v48 }
  0x2d   :  { %882 = vmatpush3.bf16.msra.mxu1 %v946_v49  ;;  %861 = vmatprep.subr.bf16.mxu0 %v947_v50 }
  0x2e   :  { %883 = vmatprep.subr.bf16.mxu1 %v948_v51 }
  0x30   :  { %862 = vmatpush3.bf16.msra.mxu0 %v949_v52 }
  0x31   :  { %884 = vmatpush3.bf16.msra.mxu1 %v950_v53  ;;  %863 = vmatprep.subr.bf16.mxu0 %v951_v54 }
  0x32   :  { %885 = vmatprep.subr.bf16.mxu1 %v952_v55 }
  0x34   :  { %864 = vmatpush3.bf16.msra.mxu0 %v953_v56 }
  0x35   :  { %886 = vmatpush3.bf16.msra.mxu1 %v954_v57  ;;  %865 = vmatprep.subr.bf16.mxu0 %v955_v58 }
  0x36   :  { %887 = vmatprep.subr.bf16.mxu1 %v956_v59 }
  0x38   :  { %866 = vmatpush3.bf16.msra.mxu0 %v957_v60 }
  0x39   :  { %888 = vmatpush3.bf16.msra.mxu1 %v958_v61  ;;  %867 = vmatprep.subr.bf16.mxu0 %v959_v62 }
  0x3a   :  { %889 = vmatprep.subr.bf16.mxu1 %v960_v63 }
  0x3c   :  { %868 = vmatpush3.bf16.msra.mxu0 %v961_v0 }
  0x3d   :  { %890 = vmatpush3.bf16.msra.mxu1 %v962_v1  ;;  %869 = vmatprep.subr.bf16.mxu0 %v963_v2 }
  0x3e   :  { %891 = vmatprep.subr.bf16.mxu1 %v964_v3 }
  0x40   :  { %870 = vmatpush3.bf16.msra.mxu0 %v965_v4 }
  0x41   :  { %892 = vmatpush3.bf16.msra.mxu1 %v966_v5 }
  0x43   :  { %682 = vmatmul.mubr.bf16.vlgmr.msra.gmra.mrb[4].mxu0 %v743_v7 }
  0x44   :  { %722 = vmatmul.mubr.bf16.vlgmr.msra.gmra.mrb[4].mxu1 %v745_v10 }
  0xf6   :  { %v827_v12 = vpop.f32.mrb[0].mxu0 }
  0xf7   :  { %v849_v13 = vpop.f32.mrb[0].mxu1  ;;  %v828_v15 = vpop.f32.mrb[1].mxu0 }
  0xf8   :  { %v850_v16 = vpop.f32.mrb[1].mxu1  ;;  %v829_v17 = vadd.f32 %v828_v15, %v827_v12  ;;  %v830_v19 = vpop.f32.mrb[2].mxu0 }
  0xf9   :  { %v851_v18 = vadd.f32 %v850_v16, %v849_v13  ;;  %v852_v20 = vpop.f32.mrb[2].mxu1  ;;  %v831_v21 = vpop.f32.mrb[3].mxu0 }
  0xfa   :  { %v853_v22 = vpop.f32.mrb[3].mxu1  ;;  %v604_v23 = vadd.f32 %v829_v17, %v738_v14 }
  0xfc   :  { %v644_v24 = vadd.f32 %v851_v18, %v604_v23 }
 0x116   :  { %v871_v25 = vpop.f32.mrb[4].mxu0 }
 0x117   :  { %v893_v26 = vpop.f32.mrb[4].mxu1  ;;  %v872_v27 = vpop.f32.mrb[5].mxu0 }
 0x118   :  { %v894_v28 = vpop.f32.mrb[5].mxu1  ;;  %v873_v30 = vadd.f32 %v872_v27, %v871_v25  ;;  %v874_v32 = vpop.f32.mrb[6].mxu0 }
 0x119   :  { %v895_v31 = vadd.f32 %v894_v28, %v893_v26  ;;  %v896_v33 = vpop.f32.mrb[6].mxu1  ;;  %v875_v34 = vpop.f32.mrb[7].mxu0 }
 0x11a   :  { %v897_v35 = vpop.f32.mrb[7].mxu1  ;;  %v684_v36 = vadd.f32 %v873_v30, %v644_v24 }
 0x11c   :  { %v724_v38 = vadd.f32 %v895_v31, %v684_v36 }
 0x11e   :  { %v731_v39 = vadd.f32 %v730_v37, %v724_v38 }
 0x120   :  { %v732_v40 = vpack.c.bf16 %v731_v39, %v731_v39 }
 0x122   :  { %733 = vst [vmem:[%s1213_s4] sm:$0xf] %v732_v40 }

// kernel: unet_forward.43
= control target key start
LH: loop header
LB: loop body
LE: loop exit
PB: predicated region body
PF: predicated region fallthrough
CT: control target
= control target key end

     0   :  { %v181_v0 = vmov 0.0   ;;  %vm182_vm0 = vmmov 0   ;;  %s236_s1 = inlined_call_operand.vmem [shape: bf16[128,128], index: 1, kind: input, shape index: {}]   ;;  %s237_s0 = inlined_call_operand.vmem [shape: bf16[8,128], index: 0, kind: input, shape index: {}]   ;;  %s238_s2 = inlined_call_operand.vmem [shape: f32[1,128], index: 2, kind: input, shape index: {}]   ;;  %s239_s3 = inlined_call_operand.vmem [shape: bf16[8,128], index: 3, kind: output, shape index: {}]  }
   0x1   :  { %151 = vmatprep.subr.bf16.mxu0 %v181_v0  ;;  %v173_v1 = vld [vmem:[%s236_s1] sm:$0xff]   ;;  %167 = vmatprep.mubr.msk.bf16.mxu0 %vm182_vm0, %v181_v0  ;;  %v174_v2 = vld [vmem:[%s236_s1 + $0x8] sm:$0xff]   ;;  %v175_v3 = vld [vmem:[%s236_s1 + $0x10] sm:$0xff]  }
   0x2   :  { %152 = vmatpush3.bf16.msra.mxu0 %v173_v1  ;;  %v176_v4 = vld [vmem:[%s236_s1 + $0x18] sm:$0xff]   ;;  %v177_v5 = vld [vmem:[%s236_s1 + $0x20] sm:$0xff]   ;;  %v178_v6 = vld [vmem:[%s236_s1 + $0x28] sm:$0xff]  }
   0x3   :  { %153 = vmatprep.subr.bf16.mxu0 %v181_v0  ;;  %v179_v7 = vld [vmem:[%s236_s1 + $0x30] sm:$0xff]   ;;  %v180_v8 = vld [vmem:[%s236_s1 + $0x38] sm:$0xff]   ;;  %v15_v9 = vld [vmem:[%s237_s0] sm:$0xf] }
   0x4   :  { %v133_v10 = vld [vmem:[%s238_s2] ss:$0 sm:$0xff] }
   0x6   :  { %154 = vmatpush3.bf16.msra.mxu0 %v174_v2 }
   0x7   :  { %155 = vmatprep.subr.bf16.mxu0 %v181_v0 }
   0xa   :  { %156 = vmatpush3.bf16.msra.mxu0 %v175_v3 }
   0xb   :  { %157 = vmatprep.subr.bf16.mxu0 %v181_v0 }
   0xe   :  { %158 = vmatpush3.bf16.msra.mxu0 %v176_v4 }
   0xf   :  { %159 = vmatprep.subr.bf16.mxu0 %v181_v0 }
  0x12   :  { %160 = vmatpush3.bf16.msra.mxu0 %v177_v5 }
  0x13   :  { %161 = vmatprep.subr.bf16.mxu0 %v181_v0 }
  0x16   :  { %162 = vmatpush3.bf16.msra.mxu0 %v178_v6 }
  0x17   :  { %163 = vmatprep.subr.bf16.mxu0 %v181_v0 }
  0x1a   :  { %164 = vmatpush3.bf16.msra.mxu0 %v179_v7 }
  0x1b   :  { %165 = vmatprep.subr.bf16.mxu0 %v181_v0 }
  0x1e   :  { %166 = vmatpush3.bf16.msra.mxu0 %v180_v8 }
  0x21   :  { %168 = vmatmul.mubr.bf16.vlgmr.msra.gmra.mrb[0].mxu0 %v15_v9 }
  0xf4   :  { %v121_v11 = vpop.f32.mrb[0].mxu0 }
  0xf5   :  { %v122_v12 = vadd.f32 %v133_v10, %v121_v11  ;;  %v169_v13 = vpop.f32.mrb[1].mxu0 }
  0xf6   :  { %v124_v14 = vpop.f32.mrb[2].mxu0 }
  0xf7   :  { %v127_v15 = vpack.c.bf16 %v122_v12, %v122_v12  ;;  %v170_v16 = vpop.f32.mrb[3].mxu0 }
  0xf9   :  { %128 = vst [vmem:[%s239_s3] sm:$0xf] %v127_v15 }

// kernel: unet_forward.44
= control target key start
LH: loop header
LB: loop body
LE: loop exit
PB: predicated region body
PF: predicated region fallthrough
CT: control target
= control target key end

     0   :  { %v658_v35 = vmov 0.0   ;;  %vm659_vm0 = vmmov 0   ;;  %s815_s1 = inlined_call_operand.vmem [shape: bf16[640,128], index: 1, kind: input, shape index: {}]   ;;  %s816_s0 = inlined_call_operand.vmem [shape: bf16[8,640], index: 0, kind: input, shape index: {}]   ;;  %s817_s2 = inlined_call_operand.vmem [shape: f32[1,128], index: 2, kind: input, shape index: {}]   ;;  %s818_s3 = inlined_call_operand.vmem [shape: bf16[8,128], index: 3, kind: output, shape index: {}]  }
   0x1   :  { %v613_v0 = vld [vmem:[%s815_s1 + $0x40] sm:$0xff]   ;;  %v617_v4 = vld [vmem:[%s815_s1 + $0x48] sm:$0xff]   ;;  %v621_v8 = vld [vmem:[%s815_s1 + $0x50] sm:$0xff]  }
   0x2   :  { %v614_v1 = vld [vmem:[%s815_s1] sm:$0xff]   ;;  %538 = vmatprep.subr.bf16.mxu0 %v613_v0  ;;  %v618_v5 = vld [vmem:[%s815_s1 + $0x8] sm:$0xff]   ;;  %v622_v9 = vld [vmem:[%s815_s1 + $0x10] sm:$0xff]  }
   0x3   :  { %v615_v2 = vld [vmem:[%s815_s1 + $0xc0] sm:$0xff]   ;;  %539 = vmatpush3.bf16.msra.mxu0 %v614_v1  ;;  %v619_v6 = vld [vmem:[%s815_s1 + $0xc8] sm:$0xff]   ;;  %v623_v10 = vld [vmem:[%s815_s1 + $0xd0] sm:$0xff]  }
   0x4   :  { %v616_v3 = vld [vmem:[%s815_s1 + $0x80] sm:$0xff]   ;;  %560 = vmatprep.subr.bf16.mxu1 %v615_v2  ;;  %540 = vmatprep.subr.bf16.mxu0 %v617_v4  ;;  %v620_v7 = vld [vmem:[%s815_s1 + $0x88] sm:$0xff]   ;;  %v624_v11 = vld [vmem:[%s815_s1 + $0x90] sm:$0xff]  }
   0x5   :  { %561 = vmatpush3.bf16.msra.mxu1 %v616_v3  ;;  %v625_v12 = vld [vmem:[%s815_s1 + $0x58] sm:$0xff]   ;;  %v629_v16 = vld [vmem:[%s815_s1 + $0x60] sm:$0xff]   ;;  %v633_v20 = vld [vmem:[%s815_s1 + $0x68] sm:$0xff]  }
   0x6   :  { %562 = vmatprep.subr.bf16.mxu1 %v619_v6  ;;  %v626_v13 = vld [vmem:[%s815_s1 + $0x18] sm:$0xff]   ;;  %v630_v17 = vld [vmem:[%s815_s1 + $0x20] sm:$0xff]   ;;  %v634_v21 = vld [vmem:[%s815_s1 + $0x28] sm:$0xff]  }
   0x7   :  { %541 = vmatpush3.bf16.msra.mxu0 %v618_v5  ;;  %v627_v14 = vld [vmem:[%s815_s1 + $0xd8] sm:$0xff]   ;;  %v631_v18 = vld [vmem:[%s815_s1 + $0xe0] sm:$0xff]   ;;  %v635_v22 = vld [vmem:[%s815_s1 + $0xe8] sm:$0xff]  }
   0x8   :  { %542 = vmatprep.subr.bf16.mxu0 %v621_v8  ;;  %v628_v15 = vld [vmem:[%s815_s1 + $0x98] sm:$0xff]   ;;  %v632_v19 = vld [vmem:[%s815_s1 + $0xa0] sm:$0xff]   ;;  %v636_v23 = vld [vmem:[%s815_s1 + $0xa8] sm:$0xff]  }
   0x9   :  { %563 = vmatpush3.bf16.msra.mxu1 %v620_v7  ;;  %v637_v24 = vld [vmem:[%s815_s1 + $0x70] sm:$0xff]   ;;  %v641_v28 = vld [vmem:[%s815_s1 + $0x78] sm:$0xff]   ;;  %v15_v31 = vld [vmem:[%s816_s0] sm:$0xff] }
   0xa   :  { %564 = vmatprep.subr.bf16.mxu1 %v623_v10  ;;  %v638_v25 = vld [vmem:[%s815_s1 + $0x30] sm:$0xff]   ;;  %v642_v29 = vld [vmem:[%s815_s1 + $0x38] sm:$0xff]   ;;  %v493_v32 = vcombine.low %v15_v31, %v15_v31  ;;  %v494_v33 = vcombine.high %v15_v31, %v15_v31  ;;  %v16_v36 = vld [vmem:[%s816_s0 + $0x8] sm:$0xff] }
   0xb   :  { %543 = vmatpush3.bf16.msra.mxu0 %v622_v9  ;;  %v639_v26 = vld [vmem:[%s815_s1 + $0xf0] sm:$0xff]   ;;  %v643_v30 = vld [vmem:[%s815_s1 + $0xf8] sm:$0xff]   ;;  %v495_v37 = vcombine.low %v16_v36, %v16_v36  ;;  %v496_v38 = vcombine.high %v16_v36, %v16_v36  ;;  %v650_v39 = vld [vmem:[%s815_s1 + $0x100] sm:$0xff]  }
   0xc   :  { %544 = vmatprep.subr.bf16.mxu0 %v625_v12  ;;  %v640_v27 = vld [vmem:[%s815_s1 + $0xb0] sm:$0xff]   ;;  %v647_v34 = vld [vmem:[%s815_s1 + $0xb8] sm:$0xff]   ;;  %395 = vmatprep.mubr.bf16.mxu0 %v494_v33  ;;  %v651_v40 = vld [vmem:[%s815_s1 + $0x108] sm:$0xff]  }
   0xd   :  { %565 = vmatpush3.bf16.msra.mxu1 %v624_v11  ;;  %435 = vmatprep.mubr.bf16.mxu1 %v496_v38  ;;  %v652_v41 = vld [vmem:[%s815_s1 + $0x110] sm:$0xff]   ;;  %v653_v42 = vld [vmem:[%s815_s1 + $0x118] sm:$0xff]   ;;  %v654_v43 = vld [vmem:[%s815_s1 + $0x120] sm:$0xff]  }
   0xe   :  { %566 = vmatprep.subr.bf16.mxu1 %v627_v14  ;;  %v655_v44 = vld [vmem:[%s815_s1 + $0x128] sm:$0xff]   ;;  %v656_v45 = vld [vmem:[%s815_s1 + $0x130] sm:$0xff]   ;;  %v657_v46 = vld [vmem:[%s815_s1 + $0x138] sm:$0xff]  }
   0xf   :  { %545 = vmatpush3.bf16.msra.mxu0 %v626_v13  ;;  %v646_v47 = vld [vmem:[%s816_s0 + $0x10] ss:$0 sps:$4 sm:$0xff]   ;;  %v492_v49 = vld [vmem:[%s817_s2] ss:$0 sm:$0xff] }
  0x10   :  { %546 = vmatprep.subr.bf16.mxu0 %v629_v16 }
  0x11   :  { %567 = vmatpush3.bf16.msra.mxu1 %v628_v15 }
  0x12   :  { %568 = vmatprep.subr.bf16.mxu1 %v631_v18 }
  0x13   :  { %547 = vmatpush3.bf16.msra.mxu0 %v630_v17 }
  0x14   :  { %548 = vmatprep.subr.bf16.mxu0 %v633_v20 }
  0x15   :  { %569 = vmatpush3.bf16.msra.mxu1 %v632_v19 }
  0x16   :  { %570 = vmatprep.subr.bf16.mxu1 %v635_v22 }
  0x17   :  { %549 = vmatpush3.bf16.msra.mxu0 %v634_v21 }
  0x18   :  { %550 = vmatprep.subr.bf16.mxu0 %v637_v24 }
  0x19   :  { %571 = vmatpush3.bf16.msra.mxu1 %v636_v23 }
  0x1a   :  { %572 = vmatprep.subr.bf16.mxu1 %v639_v26 }
  0x1b   :  { %551 = vmatpush3.bf16.msra.mxu0 %v638_v25 }
  0x1c   :  { %552 = vmatprep.subr.bf16.mxu0 %v641_v28 }
  0x1d   :  { %573 = vmatpush3.bf16.msra.mxu1 %v640_v27 }
  0x1e   :  { %574 = vmatprep.subr.bf16.mxu1 %v643_v30 }
  0x1f   :  { %553 = vmatpush3.bf16.msra.mxu0 %v642_v29 }
  0x20   :  { %591 = vmatprep.subr.bf16.mxu0 %v658_v35 }
  0x21   :  { %575 = vmatpush3.bf16.msra.mxu1 %v647_v34 }
  0x22   :  { %396 = vmatmul.mubr.bf16.vlgmr.msra.gmra.mrb[0].mxu0 %v493_v32 }
  0x23   :  { %592 = vmatpush3.bf16.msra.mxu0 %v650_v39  ;;  %607 = vmatprep.mubr.msk.bf16.mxu0 %vm659_vm0, %v658_v35 }
  0x24   :  { %436 = vmatmul.mubr.bf16.vlgmr.msra.gmra.mrb[0].mxu1 %v495_v37  ;;  %593 = vmatprep.subr.bf16.mxu0 %v658_v35 }
  0x27   :  { %594 = vmatpush3.bf16.msra.mxu0 %v651_v40 }
  0x28   :  { %595 = vmatprep.subr.bf16.mxu0 %v658_v35 }
  0x2b   :  { %596 = vmatpush3.bf16.msra.mxu0 %v652_v41 }
  0x2c   :  { %597 = vmatprep.subr.bf16.mxu0 %v658_v35 }
  0x2f   :  { %598 = vmatpush3.bf16.msra.mxu0 %v653_v42 }
  0x30   :  { %599 = vmatprep.subr.bf16.mxu0 %v658_v35 }
  0x33   :  { %600 = vmatpush3.bf16.msra.mxu0 %v654_v43 }
  0x34   :  { %601 = vmatprep.subr.bf16.mxu0 %v658_v35 }
  0x37   :  { %602 = vmatpush3.bf16.msra.mxu0 %v655_v44 }
  0x38   :  { %603 = vmatprep.subr.bf16.mxu0 %v658_v35 }
  0x3b   :  { %604 = vmatpush3.bf16.msra.mxu0 %v656_v45 }
  0x3c   :  { %605 = vmatprep.subr.bf16.mxu0 %v658_v35 }
  0x3f   :  { %606 = vmatpush3.bf16.msra.mxu0 %v657_v46 }
  0x42   :  { %608 = vmatmul.mubr.bf16.vlgmr.msra.gmra.mrb[4].mxu0 %v646_v47 }
  0xf5   :  { %v554_v48 = vpop.f32.mrb[0].mxu0 }
  0xf6   :  { %v555_v50 = vpop.f32.mrb[1].mxu0 }
  0xf7   :  { %v556_v51 = vadd.f32 %v555_v50, %v554_v48  ;;  %v557_v52 = vpop.f32.mrb[2].mxu0  ;;  %v576_v53 = vpop.f32.mrb[0].mxu1 }
  0xf8   :  { %v558_v54 = vpop.f32.mrb[3].mxu0  ;;  %v577_v55 = vpop.f32.mrb[1].mxu1 }
  0xf9   :  { %v398_v56 = vadd.f32 %v556_v51, %v492_v49  ;;  %v578_v57 = vadd.f32 %v577_v55, %v576_v53  ;;  %v579_v58 = vpop.f32.mrb[2].mxu1 }
  0xfa   :  { %v580_v59 = vpop.f32.mrb[3].mxu1 }
  0xfb   :  { %v438_v60 = vadd.f32 %v578_v57, %v398_v56 }
 0x115   :  { %v477_v61 = vpop.f32.mrb[4].mxu0 }
 0x116   :  { %v478_v62 = vadd.f32 %v477_v61, %v438_v60  ;;  %v609_v63 = vpop.f32.mrb[5].mxu0 }
 0x117   :  { %v480_v0 = vpop.f32.mrb[6].mxu0 }
 0x118   :  { %vm483_vm1 = vcmp.ge.f32.partialorder %v478_v62, 0.0  ;;  %v484_v1 = vmul.f32 0.2, %v478_v62  ;;  %v610_v2 = vpop.f32.mrb[7].mxu0 }
 0x11a   :  { %v485_v3 = vsel %vm483_vm1, %v478_v62, %v484_v1 }
 0x11b   :  { %v486_v4 = vpack.c.bf16 %v485_v3, %v485_v3 }
 0x11d   :  { %487 = vst [vmem:[%s818_s3] sm:$0xf] %v486_v4 }

// kernel: unet_forward.45
= control target key start
LH: loop header
LB: loop body
LE: loop exit
PB: predicated region body
PF: predicated region fallthrough
CT: control target
= control target key end

     0   :  { %v664_v35 = vmov 0.0   ;;  %vm665_vm0 = vmmov 0   ;;  %s829_s1 = inlined_call_operand.vmem [shape: bf16[640,128], index: 1, kind: input, shape index: {}]   ;;  %s830_s0 = inlined_call_operand.vmem [shape: bf16[8,640], index: 0, kind: input, shape index: {}]   ;;  %s831_s2 = inlined_call_operand.vmem [shape: f32[1,128], index: 2, kind: input, shape index: {}]   ;;  %s832_s3 = inlined_call_operand.vmem [shape: bf16[8,128], index: 3, kind: input, shape index: {}]   ;;  %s833_s4 = inlined_call_operand.vmem [shape: bf16[8,128], index: 4, kind: output, shape index: {}]  }
   0x1   :  { %v619_v0 = vld [vmem:[%s829_s1 + $0x40] sm:$0xff]   ;;  %v623_v4 = vld [vmem:[%s829_s1 + $0x48] sm:$0xff]   ;;  %v627_v8 = vld [vmem:[%s829_s1 + $0x50] sm:$0xff]  }
   0x2   :  { %v620_v1 = vld [vmem:[%s829_s1] sm:$0xff]   ;;  %544 = vmatprep.subr.bf16.mxu0 %v619_v0  ;;  %v624_v5 = vld [vmem:[%s829_s1 + $0x8] sm:$0xff]   ;;  %v628_v9 = vld [vmem:[%s829_s1 + $0x10] sm:$0xff]  }
   0x3   :  { %v621_v2 = vld [vmem:[%s829_s1 + $0xc0] sm:$0xff]   ;;  %545 = vmatpush3.bf16.msra.mxu0 %v620_v1  ;;  %v625_v6 = vld [vmem:[%s829_s1 + $0xc8] sm:$0xff]   ;;  %v629_v10 = vld [vmem:[%s829_s1 + $0xd0] sm:$0xff]  }
   0x4   :  { %v622_v3 = vld [vmem:[%s829_s1 + $0x80] sm:$0xff]   ;;  %566 = vmatprep.subr.bf16.mxu1 %v621_v2  ;;  %546 = vmatprep.subr.bf16.mxu0 %v623_v4  ;;  %v626_v7 = vld [vmem:[%s829_s1 + $0x88] sm:$0xff]   ;;  %v630_v11 = vld [vmem:[%s829_s1 + $0x90] sm:$0xff]  }
   0x5   :  { %567 = vmatpush3.bf16.msra.mxu1 %v622_v3  ;;  %v631_v12 = vld [vmem:[%s829_s1 + $0x58] sm:$0xff]   ;;  %v635_v16 = vld [vmem:[%s829_s1 + $0x60] sm:$0xff]   ;;  %v639_v20 = vld [vmem:[%s829_s1 + $0x68] sm:$0xff]  }
   0x6   :  { %568 = vmatprep.subr.bf16.mxu1 %v625_v6  ;;  %v632_v13 = vld [vmem:[%s829_s1 + $0x18] sm:$0xff]   ;;  %v636_v17 = vld [vmem:[%s829_s1 + $0x20] sm:$0xff]   ;;  %v640_v21 = vld [vmem:[%s829_s1 + $0x28] sm:$0xff]  }
   0x7   :  { %547 = vmatpush3.bf16.msra.mxu0 %v624_v5  ;;  %v633_v14 = vld [vmem:[%s829_s1 + $0xd8] sm:$0xff]   ;;  %v637_v18 = vld [vmem:[%s829_s1 + $0xe0] sm:$0xff]   ;;  %v641_v22 = vld [vmem:[%s829_s1 + $0xe8] sm:$0xff]  }
   0x8   :  { %548 = vmatprep.subr.bf16.mxu0 %v627_v8  ;;  %v634_v15 = vld [vmem:[%s829_s1 + $0x98] sm:$0xff]   ;;  %v638_v19 = vld [vmem:[%s829_s1 + $0xa0] sm:$0xff]   ;;  %v642_v23 = vld [vmem:[%s829_s1 + $0xa8] sm:$0xff]  }
   0x9   :  { %569 = vmatpush3.bf16.msra.mxu1 %v626_v7  ;;  %v643_v24 = vld [vmem:[%s829_s1 + $0x70] sm:$0xff]   ;;  %v647_v28 = vld [vmem:[%s829_s1 + $0x78] sm:$0xff]   ;;  %v18_v31 = vld [vmem:[%s830_s0] sm:$0xff] }
   0xa   :  { %570 = vmatprep.subr.bf16.mxu1 %v629_v10  ;;  %v644_v25 = vld [vmem:[%s829_s1 + $0x30] sm:$0xff]   ;;  %v648_v29 = vld [vmem:[%s829_s1 + $0x38] sm:$0xff]   ;;  %v499_v32 = vcombine.low %v18_v31, %v18_v31  ;;  %v500_v33 = vcombine.high %v18_v31, %v18_v31  ;;  %v19_v36 = vld [vmem:[%s830_s0 + $0x8] sm:$0xff] }
   0xb   :  { %549 = vmatpush3.bf16.msra.mxu0 %v628_v9  ;;  %v645_v26 = vld [vmem:[%s829_s1 + $0xf0] sm:$0xff]   ;;  %v649_v30 = vld [vmem:[%s829_s1 + $0xf8] sm:$0xff]   ;;  %v501_v37 = vcombine.low %v19_v36, %v19_v36  ;;  %v502_v38 = vcombine.high %v19_v36, %v19_v36  ;;  %v656_v39 = vld [vmem:[%s829_s1 + $0x100] sm:$0xff]  }
   0xc   :  { %550 = vmatprep.subr.bf16.mxu0 %v631_v12  ;;  %v646_v27 = vld [vmem:[%s829_s1 + $0xb0] sm:$0xff]   ;;  %v653_v34 = vld [vmem:[%s829_s1 + $0xb8] sm:$0xff]   ;;  %398 = vmatprep.mubr.bf16.mxu0 %v500_v33  ;;  %v657_v40 = vld [vmem:[%s829_s1 + $0x108] sm:$0xff]  }
   0xd   :  { %571 = vmatpush3.bf16.msra.mxu1 %v630_v11  ;;  %438 = vmatprep.mubr.bf16.mxu1 %v502_v38  ;;  %v658_v41 = vld [vmem:[%s829_s1 + $0x110] sm:$0xff]   ;;  %v659_v42 = vld [vmem:[%s829_s1 + $0x118] sm:$0xff]   ;;  %v660_v43 = vld [vmem:[%s829_s1 + $0x120] sm:$0xff]  }
   0xe   :  { %572 = vmatprep.subr.bf16.mxu1 %v633_v14  ;;  %v661_v44 = vld [vmem:[%s829_s1 + $0x128] sm:$0xff]   ;;  %v662_v45 = vld [vmem:[%s829_s1 + $0x130] sm:$0xff]   ;;  %v663_v46 = vld [vmem:[%s829_s1 + $0x138] sm:$0xff]  }
   0xf   :  { %551 = vmatpush3.bf16.msra.mxu0 %v632_v13  ;;  %v652_v47 = vld [vmem:[%s830_s0 + $0x10] ss:$0 sps:$4 sm:$0xff]   ;;  %v498_v49 = vld [vmem:[%s831_s2] ss:$0 sm:$0xff] }
  0x10   :  { %552 = vmatprep.subr.bf16.mxu0 %v635_v16  ;;  %v489_v61 = vld [vmem:[%s832_s3] sm:$0xf] }
  0x11   :  { %573 = vmatpush3.bf16.msra.mxu1 %v634_v15  ;;  %v490_v1 = vunpack.c.l.bf16 %v489_v61 }
  0x12   :  { %574 = vmatprep.subr.bf16.mxu1 %v637_v18 }
  0x13   :  { %553 = vmatpush3.bf16.msra.mxu0 %v636_v17 }
  0x14   :  { %554 = vmatprep.subr.bf16.mxu0 %v639_v20 }
  0x15   :  { %575 = vmatpush3.bf16.msra.mxu1 %v638_v19 }
  0x16   :  { %576 = vmatprep.subr.bf16.mxu1 %v641_v22 }
  0x17   :  { %555 = vmatpush3.bf16.msra.mxu0 %v640_v21 }
  0x18   :  { %556 = vmatprep.subr.bf16.mxu0 %v643_v24 }
  0x19   :  { %577 = vmatpush3.bf16.msra.mxu1 %v642_v23 }
  0x1a   :  { %578 = vmatprep.subr.bf16.mxu1 %v645_v26 }
  0x1b   :  { %557 = vmatpush3.bf16.msra.mxu0 %v644_v25 }
  0x1c   :  { %558 = vmatprep.subr.bf16.mxu0 %v647_v28 }
  0x1d   :  { %579 = vmatpush3.bf16.msra.mxu1 %v646_v27 }
  0x1e   :  { %580 = vmatprep.subr.bf16.mxu1 %v649_v30 }
  0x1f   :  { %559 = vmatpush3.bf16.msra.mxu0 %v648_v29 }
  0x20   :  { %597 = vmatprep.subr.bf16.mxu0 %v664_v35 }
  0x21   :  { %581 = vmatpush3.bf16.msra.mxu1 %v653_v34 }
  0x22   :  { %399 = vmatmul.mubr.bf16.vlgmr.msra.gmra.mrb[0].mxu0 %v499_v32 }
  0x23   :  { %598 = vmatpush3.bf16.msra.mxu0 %v656_v39  ;;  %613 = vmatprep.mubr.msk.bf16.mxu0 %vm665_vm0, %v664_v35 }
  0x24   :  { %439 = vmatmul.mubr.bf16.vlgmr.msra.gmra.mrb[0].mxu1 %v501_v37  ;;  %599 = vmatprep.subr.bf16.mxu0 %v664_v35 }
  0x27   :  { %600 = vmatpush3.bf16.msra.mxu0 %v657_v40 }
  0x28   :  { %601 = vmatprep.subr.bf16.mxu0 %v664_v35 }
  0x2b   :  { %602 = vmatpush3.bf16.msra.mxu0 %v658_v41 }
  0x2c   :  { %603 = vmatprep.subr.bf16.mxu0 %v664_v35 }
  0x2f   :  { %604 = vmatpush3.bf16.msra.mxu0 %v659_v42 }
  0x30   :  { %605 = vmatprep.subr.bf16.mxu0 %v664_v35 }
  0x33   :  { %606 = vmatpush3.bf16.msra.mxu0 %v660_v43 }
  0x34   :  { %607 = vmatprep.subr.bf16.mxu0 %v664_v35 }
  0x37   :  { %608 = vmatpush3.bf16.msra.mxu0 %v661_v44 }
  0x38   :  { %609 = vmatprep.subr.bf16.mxu0 %v664_v35 }
  0x3b   :  { %610 = vmatpush3.bf16.msra.mxu0 %v662_v45 }
  0x3c   :  { %611 = vmatprep.subr.bf16.mxu0 %v664_v35 }
  0x3f   :  { %612 = vmatpush3.bf16.msra.mxu0 %v663_v46 }
  0x42   :  { %614 = vmatmul.mubr.bf16.vlgmr.msra.gmra.mrb[4].mxu0 %v652_v47 }
  0xf5   :  { %v560_v48 = vpop.f32.mrb[0].mxu0 }
  0xf6   :  { %v561_v50 = vpop.f32.mrb[1].mxu0 }
  0xf7   :  { %v562_v51 = vadd.f32 %v561_v50, %v560_v48  ;;  %v563_v52 = vpop.f32.mrb[2].mxu0  ;;  %v582_v53 = vpop.f32.mrb[0].mxu1 }
  0xf8   :  { %v564_v54 = vpop.f32.mrb[3].mxu0  ;;  %v583_v55 = vpop.f32.mrb[1].mxu1 }
  0xf9   :  { %v401_v56 = vadd.f32 %v562_v51, %v498_v49  ;;  %v584_v57 = vadd.f32 %v583_v55, %v582_v53  ;;  %v585_v58 = vpop.f32.mrb[2].mxu1 }
  0xfa   :  { %v586_v59 = vpop.f32.mrb[3].mxu1 }
  0xfb   :  { %v441_v60 = vadd.f32 %v584_v57, %v401_v56 }
 0x115   :  { %v480_v62 = vpop.f32.mrb[4].mxu0 }
 0x116   :  { %v481_v63 = vadd.f32 %v480_v62, %v441_v60  ;;  %v615_v0 = vpop.f32.mrb[5].mxu0 }
 0x117   :  { %v483_v2 = vpop.f32.mrb[6].mxu0 }
 0x118   :  { %vm486_vm1 = vcmp.ge.f32.partialorder %v481_v63, 0.0  ;;  %v487_v3 = vmul.f32 0.2, %v481_v63  ;;  %v616_v4 = vpop.f32.mrb[7].mxu0 }
 0x11a   :  { %v488_v5 = vsel %vm486_vm1, %v481_v63, %v487_v3 }
 0x11b   :  { %v491_v6 = vadd.f32 %v490_v1, %v488_v5 }
 0x11d   :  { %v492_v7 = vpack.c.bf16 %v491_v6, %v491_v6 }
 0x11f   :  { %493 = vst [vmem:[%s833_s4] sm:$0xf] %v492_v7 }

// kernel: unet_forward.50
= control target key start
LH: loop header
LB: loop body
LE: loop exit
PB: predicated region body
PF: predicated region fallthrough
CT: control target
= control target key end

     0   :  { %s304_s1 = inlined_call_operand.vmem [shape: bf16[128,128], index: 1, kind: input, shape index: {}]   ;;  %s305_s0 = inlined_call_operand.vmem [shape: bf16[32,128], index: 0, kind: input, shape index: {}]   ;;  %s306_s2 = inlined_call_operand.vmem [shape: f32[1,128], index: 2, kind: input, shape index: {}]   ;;  %s307_s3 = inlined_call_operand.vmem [shape: bf16[32,128], index: 3, kind: output, shape index: {}]  }
   0x1   :  { %v235_v0 = vld [vmem:[%s304_s1] sm:$0xff]   ;;  %v236_v1 = vld [vmem:[%s304_s1 + $0x8] sm:$0xff]   ;;  %v237_v2 = vld [vmem:[%s304_s1 + $0x10] sm:$0xff]  }
   0x2   :  { %215 = vmatprep.subr.bf16.mxu0 %v235_v0  ;;  %v238_v3 = vld [vmem:[%s304_s1 + $0x18] sm:$0xff]   ;;  %v243_v4 = vld [vmem:[%s305_s0] sm:$0xff]   ;;  %v240_v6 = vld [vmem:[%s304_s1 + $0x28] sm:$0xff]  }
   0x3   :  { %216 = vmatpush3.bf16.msra.mxu0 %v235_v0  ;;  %231 = vmatprep.mubr.bf16.mxu0 %v243_v4  ;;  %v239_v5 = vld [vmem:[%s304_s1 + $0x20] sm:$0xff]   ;;  %v241_v7 = vld [vmem:[%s304_s1 + $0x30] sm:$0xff]   ;;  %v242_v8 = vld [vmem:[%s304_s1 + $0x38] sm:$0xff]  }
   0x4   :  { %217 = vmatprep.subr.bf16.mxu0 %v236_v1  ;;  %v244_v9 = vld [vmem:[%s305_s0 + $0x8] sm:$0xff]   ;;  %v175_v11 = vld [vmem:[%s306_s2] ss:$0 sm:$0xff] }
   0x7   :  { %218 = vmatpush3.bf16.msra.mxu0 %v236_v1 }
   0x8   :  { %219 = vmatprep.subr.bf16.mxu0 %v237_v2 }
   0xb   :  { %220 = vmatpush3.bf16.msra.mxu0 %v237_v2 }
   0xc   :  { %221 = vmatprep.subr.bf16.mxu0 %v238_v3 }
   0xf   :  { %222 = vmatpush3.bf16.msra.mxu0 %v238_v3 }
  0x10   :  { %223 = vmatprep.subr.bf16.mxu0 %v239_v5 }
  0x13   :  { %224 = vmatpush3.bf16.msra.mxu0 %v239_v5 }
  0x14   :  { %225 = vmatprep.subr.bf16.mxu0 %v240_v6 }
  0x17   :  { %226 = vmatpush3.bf16.msra.mxu0 %v240_v6 }
  0x18   :  { %227 = vmatprep.subr.bf16.mxu0 %v241_v7 }
  0x1b   :  { %228 = vmatpush3.bf16.msra.mxu0 %v241_v7 }
  0x1c   :  { %229 = vmatprep.subr.bf16.mxu0 %v242_v8 }
  0x1f   :  { %230 = vmatpush3.bf16.msra.mxu0 %v242_v8 }
  0x22   :  { %232 = vmatmul.mubr.bf16.vlgmr.msra.gmra.mrb[0].mxu0 %v244_v9 }
  0xf5   :  { %v233_v10 = vpop.f32.mrb[0].mxu0 }
  0xf6   :  { %v136_v12 = vpop.f32.mrb[1].mxu0  ;;  %v145_v14 = vadd.f32 %v233_v10, %v175_v11 }
  0xf7   :  { %v234_v13 = vpop.f32.mrb[2].mxu0  ;;  %v137_v17 = vadd.f32 %v175_v11, %v136_v12 }
  0xf8   :  { %v148_v15 = vadd.f32 %v234_v13, %v175_v11  ;;  %v139_v16 = vpop.f32.mrb[3].mxu0 }
  0xf9   :  { %v140_v18 = vadd.f32 %v175_v11, %v139_v16 }
  0xfa   :  { %v202_v19 = vpack.c.bf16 %v148_v15, %v145_v14 }
  0xfb   :  { %v197_v20 = vpack.c.bf16 %v140_v18, %v137_v17 }
  0xfc   :  { %204 = vst [vmem:[%s307_s3 + $0x8] sm:$0xff] %v202_v19  }
  0xfd   :  { %198 = vst [vmem:[%s307_s3] sm:$0xff] %v197_v20  }

// kernel: unet_forward.51
= control target key start
LH: loop header
LB: loop body
LE: loop exit
PB: predicated region body
PF: predicated region fallthrough
CT: control target
= control target key end

     0   :  { %s682_s1 = inlined_call_operand.vmem [shape: bf16[384,128], index: 1, kind: input, shape index: {}]   ;;  %s683_s0 = inlined_call_operand.vmem [shape: bf16[32,384], index: 0, kind: input, shape index: {}]   ;;  %s684_s2 = inlined_call_operand.vmem [shape: f32[1,128], index: 2, kind: input, shape index: {}]   ;;  %s685_s3 = inlined_call_operand.vmem [shape: bf16[32,128], index: 3, kind: input, shape index: {}]   ;;  %s686_s4 = inlined_call_operand.vmem [shape: bf16[32,128], index: 4, kind: output, shape index: {}]  }
   0x1   :  { %v520_v0 = vld [vmem:[%s682_s1 + $0x40] sm:$0xff]   ;;  %v522_v2 = vld [vmem:[%s682_s1 + $0x48] sm:$0xff]   ;;  %v525_v5 = vld [vmem:[%s682_s1 + $0x50] sm:$0xff]  }
   0x2   :  { %v521_v1 = vld [vmem:[%s682_s1] sm:$0xff]   ;;  %462 = vmatprep.subr.bf16.mxu0 %v520_v0  ;;  %v524_v4 = vld [vmem:[%s682_s1 + $0x8] sm:$0xff]   ;;  %v527_v7 = vld [vmem:[%s682_s1 + $0x10] sm:$0xff]  }
   0x3   :  { %463 = vmatpush3.bf16.msra.mxu0 %v521_v1  ;;  %v523_v3 = vld [vmem:[%s682_s1 + $0x80] sm:$0xff]   ;;  %v526_v6 = vld [vmem:[%s682_s1 + $0x88] sm:$0xff]   ;;  %v528_v8 = vld [vmem:[%s682_s1 + $0x58] sm:$0xff]  }
   0x4   :  { %464 = vmatprep.subr.bf16.mxu0 %v522_v2  ;;  %500 = vmatprep.subr.bf16.mxu1 %v523_v3  ;;  %v529_v9 = vld [vmem:[%s682_s1 + $0x90] sm:$0xff]   ;;  %v530_v10 = vld [vmem:[%s682_s1 + $0x18] sm:$0xff]   ;;  %v531_v11 = vld [vmem:[%s682_s1 + $0x60] sm:$0xff]  }
   0x5   :  { %501 = vmatpush3.bf16.msra.mxu1 %v523_v3  ;;  %v532_v12 = vld [vmem:[%s682_s1 + $0x98] sm:$0xff]   ;;  %v533_v13 = vld [vmem:[%s682_s1 + $0x20] sm:$0xff]   ;;  %v534_v15 = vld [vmem:[%s682_s1 + $0x68] sm:$0xff]  }
   0x6   :  { %502 = vmatprep.subr.bf16.mxu1 %v526_v6  ;;  %v535_v14 = vld [vmem:[%s682_s1 + $0xa0] sm:$0xff]   ;;  %v536_v16 = vld [vmem:[%s682_s1 + $0x28] sm:$0xff]   ;;  %v537_v18 = vld [vmem:[%s682_s1 + $0x70] sm:$0xff]  }
   0x7   :  { %465 = vmatpush3.bf16.msra.mxu0 %v524_v4  ;;  %v538_v17 = vld [vmem:[%s682_s1 + $0xa8] sm:$0xff]   ;;  %v539_v19 = vld [vmem:[%s682_s1 + $0x30] sm:$0xff]   ;;  %v540_v20 = vld [vmem:[%s682_s1 + $0x78] sm:$0xff]  }
   0x8   :  { %466 = vmatprep.subr.bf16.mxu0 %v525_v5  ;;  %v541_v21 = vld [vmem:[%s682_s1 + $0xb0] sm:$0xff]   ;;  %v542_v23 = vld [vmem:[%s682_s1 + $0x38] sm:$0xff]   ;;  %v543_v26 = vld [vmem:[%s683_s0] ss:$12 sps:$4 sm:$0xff]  }
   0x9   :  { %503 = vmatpush3.bf16.msra.mxu1 %v526_v6  ;;  %v545_v22 = vld [vmem:[%s683_s0 + $0x4] ss:$12 sps:$4 sm:$0xff]   ;;  %v547_v24 = vld [vmem:[%s683_s0 + $0x8] ss:$12 sps:$4 sm:$0xff]   ;;  %v546_v25 = vld [vmem:[%s682_s1 + $0xb8] sm:$0xff]  }
   0xa   :  { %504 = vmatprep.subr.bf16.mxu1 %v529_v9  ;;  %289 = vmatprep.mubr.bf16.mxu0 %v545_v22  ;;  %v549_v27 = vld [vmem:[%s683_s0 + $0x1c] ss:$12 sps:$4 sm:$0xff]   ;;  %v548_v28 = vld [vmem:[%s683_s0 + $0x20] ss:$12 sps:$4 sm:$0xff]   ;;  %v551_v29 = vld [vmem:[%s683_s0 + $0x18] ss:$12 sps:$4 sm:$0xff]  }
   0xb   :  { %467 = vmatpush3.bf16.msra.mxu0 %v527_v7  ;;  %516 = vmatprep.mubr.bf16.mxu1 %v547_v24  ;;  %v403_v32 = vld [vmem:[%s684_s2] ss:$0 sm:$0xff]  ;;  %v460_v61 = vld [vmem:[%s685_s3 + $0x8] sm:$0xff]  }
   0xc   :  { %468 = vmatprep.subr.bf16.mxu0 %v528_v8  ;;  %v443_v42 = vld [vmem:[%s685_s3] sm:$0xff]   ;;  %v448_v3 = vunpack.c.l.bf16 %v460_v61  ;;  %v449_v4 = vunpack.c.h.bf16 %v460_v61 }
   0xd   :  { %505 = vmatpush3.bf16.msra.mxu1 %v529_v9  ;;  %v444_v48 = vunpack.c.l.bf16 %v443_v42  ;;  %v445_v49 = vunpack.c.h.bf16 %v443_v42 }
   0xe   :  { %506 = vmatprep.subr.bf16.mxu1 %v532_v12 }
   0xf   :  { %469 = vmatpush3.bf16.msra.mxu0 %v530_v10 }
  0x10   :  { %470 = vmatprep.subr.bf16.mxu0 %v531_v11 }
  0x11   :  { %507 = vmatpush3.bf16.msra.mxu1 %v532_v12 }
  0x12   :  { %508 = vmatprep.subr.bf16.mxu1 %v535_v14 }
  0x13   :  { %471 = vmatpush3.bf16.msra.mxu0 %v533_v13 }
  0x14   :  { %472 = vmatprep.subr.bf16.mxu0 %v534_v15 }
  0x15   :  { %509 = vmatpush3.bf16.msra.mxu1 %v535_v14 }
  0x16   :  { %510 = vmatprep.subr.bf16.mxu1 %v538_v17 }
  0x17   :  { %473 = vmatpush3.bf16.msra.mxu0 %v536_v16 }
  0x18   :  { %474 = vmatprep.subr.bf16.mxu0 %v537_v18 }
  0x19   :  { %511 = vmatpush3.bf16.msra.mxu1 %v538_v17 }
  0x1a   :  { %512 = vmatprep.subr.bf16.mxu1 %v541_v21 }
  0x1b   :  { %475 = vmatpush3.bf16.msra.mxu0 %v539_v19 }
  0x1c   :  { %476 = vmatprep.subr.bf16.mxu0 %v540_v20 }
  0x1d   :  { %513 = vmatpush3.bf16.msra.mxu1 %v541_v21 }
  0x1e   :  { %514 = vmatprep.subr.bf16.mxu1 %v546_v25 }
  0x1f   :  { %477 = vmatpush3.bf16.msra.mxu0 %v542_v23 }
  0x21   :  { %515 = vmatpush3.bf16.msra.mxu1 %v546_v25 }
  0x22   :  { %290 = vmatmul.mubr.bf16.vlgmr.msra.gmra.mrb[0].mxu0 %v543_v26 }
  0x23   :  { %297 = vmatprep.mubr.bf16.mxu0 %v549_v27 }
  0x24   :  { %517 = vmatmul.mubr.bf16.vlgmr.msra.gmra.mrb[0].mxu1 %v548_v28 }
  0x2a   :  { %298 = vmatmul.mubr.bf16.gmra.mrb[4].mxu0 %v551_v29 }
  0xf5   :  { %v478_v30 = vpop.f32.mrb[0].mxu0 }
  0xf6   :  { %v479_v31 = vpop.f32.mrb[1].mxu0 }
  0xf7   :  { %v480_v33 = vadd.f32 %v479_v31, %v478_v30  ;;  %v481_v34 = vpop.f32.mrb[2].mxu0  ;;  %v518_v36 = vpop.f32.mrb[0].mxu1 }
  0xf8   :  { %v482_v35 = vpop.f32.mrb[3].mxu0  ;;  %v340_v39 = vpop.f32.mrb[1].mxu1 }
  0xf9   :  { %v483_v37 = vadd.f32 %v482_v35, %v481_v34  ;;  %v292_v38 = vadd.f32 %v480_v33, %v403_v32  ;;  %v519_v40 = vpop.f32.mrb[2].mxu1 }
  0xfa   :  { %v343_v44 = vpop.f32.mrb[3].mxu1 }
  0xfb   :  { %v341_v41 = vadd.f32 %v340_v39, %v292_v38  ;;  %v295_v43 = vadd.f32 %v483_v37, %v403_v32 }
  0xfd   :  { %vm355_vm0 = vcmp.ge.f32.partialorder %v341_v41, 0.0  ;;  %v359_v45 = vmul.f32 0.2, %v341_v41  ;;  %v344_v46 = vadd.f32 %v343_v44, %v295_v43  ;;  %v484_v47 = vpop.f32.mrb[4].mxu0 }
  0xfe   :  { %v485_v50 = vpop.f32.mrb[5].mxu0 }
  0xff   :  { %v363_v51 = vsel %vm355_vm0, %v341_v41, %v359_v45  ;;  %vm356_vm1 = vcmp.ge.f32.partialorder %v344_v46, 0.0  ;;  %v360_v52 = vmul.f32 0.2, %v344_v46  ;;  %v486_v53 = vadd.f32 %v485_v50, %v484_v47  ;;  %v487_v54 = vpop.f32.mrb[6].mxu0 }
 0x100   :  { %v488_v55 = vpop.f32.mrb[7].mxu0  ;;  %v375_v59 = vadd.f32 %v444_v48, %v363_v51 }
 0x101   :  { %v364_v56 = vsel %vm356_vm1, %v344_v46, %v360_v52  ;;  %v300_v57 = vadd.f32 %v486_v53, %v403_v32  ;;  %v489_v58 = vadd.f32 %v488_v55, %v487_v54 }
 0x102   :  { %v376_v60 = vadd.f32 %v445_v49, %v364_v56 }
 0x103   :  { %v349_v62 = vadd.f32 %v518_v36, %v300_v57  ;;  %v303_v63 = vadd.f32 %v489_v58, %v403_v32 }
 0x104   :  { %v453_v0 = vpack.c.bf16 %v376_v60, %v375_v59 }
 0x105   :  { %vm357_vm2 = vcmp.ge.f32.partialorder %v349_v62, 0.0  ;;  %v361_v1 = vmul.f32 0.2, %v349_v62  ;;  %v352_v2 = vadd.f32 %v519_v40, %v303_v63 }
 0x106   :  { %454 = vst [vmem:[%s686_s4] sm:$0xff] %v453_v0  }
 0x107   :  { %v365_v5 = vsel %vm357_vm2, %v349_v62, %v361_v1  ;;  %vm358_vm3 = vcmp.ge.f32.partialorder %v352_v2, 0.0  ;;  %v362_v6 = vmul.f32 0.2, %v352_v2 }
 0x108   :  { %v377_v8 = vadd.f32 %v448_v3, %v365_v5 }
 0x109   :  { %v366_v7 = vsel %vm358_vm3, %v352_v2, %v362_v6 }
 0x10a   :  { %v378_v9 = vadd.f32 %v449_v4, %v366_v7 }
 0x10c   :  { %v458_v10 = vpack.c.bf16 %v378_v9, %v377_v8 }
 0x10e   :  { %461 = vst [vmem:[%s686_s4 + $0x8] sm:$0xff] %v458_v10  }

// kernel: unet_forward.49
= control target key start
LH: loop header
LB: loop body
LE: loop exit
PB: predicated region body
PF: predicated region fallthrough
CT: control target
= control target key end

     0   :  { %s1013_s1 = inlined_call_operand.vmem [shape: bf16[640,128], index: 1, kind: input, shape index: {}]   ;;  %s1014_s0 = inlined_call_operand.vmem [shape: bf16[32,640], index: 0, kind: input, shape index: {}]   ;;  %s1015_s2 = inlined_call_operand.vmem [shape: f32[1,128], index: 2, kind: input, shape index: {}]   ;;  %s1016_s3 = inlined_call_operand.vmem [shape: bf16[32,128], index: 3, kind: input, shape index: {}]   ;;  %s1017_s4 = inlined_call_operand.vmem [shape: bf16[32,128], index: 4, kind: output, shape index: {}]  }
   0x1   :  { %v769_v0 = vld [vmem:[%s1013_s1 + $0x40] sm:$0xff]   ;;  %v773_v4 = vld [vmem:[%s1013_s1 + $0x48] sm:$0xff]   ;;  %v777_v8 = vld [vmem:[%s1013_s1 + $0x50] sm:$0xff]  }
   0x2   :  { %v770_v1 = vld [vmem:[%s1013_s1] sm:$0xff]   ;;  %683 = vmatprep.subr.bf16.mxu0 %v769_v0  ;;  %v774_v5 = vld [vmem:[%s1013_s1 + $0x8] sm:$0xff]   ;;  %v778_v9 = vld [vmem:[%s1013_s1 + $0x10] sm:$0xff]  }
   0x3   :  { %v771_v2 = vld [vmem:[%s1013_s1 + $0xc0] sm:$0xff]   ;;  %684 = vmatpush3.bf16.msra.mxu0 %v770_v1  ;;  %v775_v6 = vld [vmem:[%s1013_s1 + $0xc8] sm:$0xff]   ;;  %v779_v10 = vld [vmem:[%s1013_s1 + $0xd0] sm:$0xff]  }
   0x4   :  { %v772_v3 = vld [vmem:[%s1013_s1 + $0x80] sm:$0xff]   ;;  %711 = vmatprep.subr.bf16.mxu1 %v771_v2  ;;  %685 = vmatprep.subr.bf16.mxu0 %v773_v4  ;;  %v776_v7 = vld [vmem:[%s1013_s1 + $0x88] sm:$0xff]   ;;  %v780_v11 = vld [vmem:[%s1013_s1 + $0x90] sm:$0xff]  }
   0x5   :  { %712 = vmatpush3.bf16.msra.mxu1 %v772_v3  ;;  %v781_v12 = vld [vmem:[%s1013_s1 + $0x58] sm:$0xff]   ;;  %v785_v16 = vld [vmem:[%s1013_s1 + $0x60] sm:$0xff]   ;;  %v789_v20 = vld [vmem:[%s1013_s1 + $0x68] sm:$0xff]  }
   0x6   :  { %713 = vmatprep.subr.bf16.mxu1 %v775_v6  ;;  %v782_v13 = vld [vmem:[%s1013_s1 + $0x18] sm:$0xff]   ;;  %v786_v17 = vld [vmem:[%s1013_s1 + $0x20] sm:$0xff]   ;;  %v790_v21 = vld [vmem:[%s1013_s1 + $0x28] sm:$0xff]  }
   0x7   :  { %686 = vmatpush3.bf16.msra.mxu0 %v774_v5  ;;  %v783_v14 = vld [vmem:[%s1013_s1 + $0xd8] sm:$0xff]   ;;  %v787_v18 = vld [vmem:[%s1013_s1 + $0xe0] sm:$0xff]   ;;  %v791_v22 = vld [vmem:[%s1013_s1 + $0xe8] sm:$0xff]  }
   0x8   :  { %687 = vmatprep.subr.bf16.mxu0 %v777_v8  ;;  %v784_v15 = vld [vmem:[%s1013_s1 + $0x98] sm:$0xff]   ;;  %v788_v19 = vld [vmem:[%s1013_s1 + $0xa0] sm:$0xff]   ;;  %v792_v23 = vld [vmem:[%s1013_s1 + $0xa8] sm:$0xff]  }
   0x9   :  { %714 = vmatpush3.bf16.msra.mxu1 %v776_v7  ;;  %v793_v24 = vld [vmem:[%s1013_s1 + $0x70] sm:$0xff]   ;;  %v797_v28 = vld [vmem:[%s1013_s1 + $0x78] sm:$0xff]   ;;  %v804_v34 = vld [vmem:[%s1013_s1 + $0x100] sm:$0xff]  }
   0xa   :  { %715 = vmatprep.subr.bf16.mxu1 %v779_v10  ;;  %v794_v25 = vld [vmem:[%s1013_s1 + $0x30] sm:$0xff]   ;;  %v798_v29 = vld [vmem:[%s1013_s1 + $0x38] sm:$0xff]   ;;  %v807_v36 = vld [vmem:[%s1014_s0 + $0xc] ss:$20 sps:$4 sm:$0xff]  }
   0xb   :  { %688 = vmatpush3.bf16.msra.mxu0 %v778_v9  ;;  %v795_v26 = vld [vmem:[%s1013_s1 + $0xf0] sm:$0xff]   ;;  %v799_v30 = vld [vmem:[%s1013_s1 + $0xf8] sm:$0xff]   ;;  %v808_v37 = vld [vmem:[%s1013_s1 + $0x108] sm:$0xff]   ;;  %490 = vmatprep.mubr.bf16.mxu1 %v807_v36 }
   0xc   :  { %689 = vmatprep.subr.bf16.mxu0 %v781_v12  ;;  %v796_v27 = vld [vmem:[%s1013_s1 + $0xb0] sm:$0xff]   ;;  %v802_v32 = vld [vmem:[%s1014_s0 + $0x4] ss:$20 sps:$4 sm:$0xff]   ;;  %v805_v35 = vld [vmem:[%s1014_s0 + $0x8] ss:$20 sps:$4 sm:$0xff]  }
   0xd   :  { %716 = vmatpush3.bf16.msra.mxu1 %v780_v11  ;;  %v800_v31 = vld [vmem:[%s1014_s0] ss:$20 sps:$4 sm:$0xff]   ;;  %v803_v33 = vld [vmem:[%s1013_s1 + $0xb8] sm:$0xff]   ;;  %441 = vmatprep.mubr.bf16.mxu0 %v802_v32  ;;  %v818_v43 = vld [vmem:[%s1014_s0 + $0x30] ss:$20 sps:$4 sm:$0xff]  }
   0xe   :  { %717 = vmatprep.subr.bf16.mxu1 %v783_v14  ;;  %v809_v38 = vld [vmem:[%s1013_s1 + $0x110] sm:$0xff]   ;;  %v812_v39 = vld [vmem:[%s1014_s0 + $0x2c] ss:$20 sps:$4 sm:$0xff]   ;;  %v810_v40 = vld [vmem:[%s1013_s1 + $0x118] sm:$0xff]  }
   0xf   :  { %690 = vmatpush3.bf16.msra.mxu0 %v782_v13  ;;  %v815_v41 = vld [vmem:[%s1014_s0 + $0x28] ss:$20 sps:$4 sm:$0xff]   ;;  %v811_v44 = vld [vmem:[%s1013_s1 + $0x120] sm:$0xff]   ;;  %v819_v47 = vld [vmem:[%s1013_s1 + $0x130] sm:$0xff]  }
  0x10   :  { %691 = vmatprep.subr.bf16.mxu0 %v785_v16  ;;  %v816_v42 = vld [vmem:[%s1014_s0 + $0x34] ss:$20 sps:$4 sm:$0xff]   ;;  %v821_v45 = vld [vmem:[%s1014_s0 + $0x10] ss:$20 sps:$4 sm:$0xff]   ;;  %v820_v48 = vld [vmem:[%s1013_s1 + $0x138] sm:$0xff]  }
  0x11   :  { %718 = vmatpush3.bf16.msra.mxu1 %v784_v15  ;;  %v814_v46 = vld [vmem:[%s1013_s1 + $0x128] sm:$0xff]   ;;  %v604_v51 = vld [vmem:[%s1015_s2] ss:$0 sm:$0xff] }
  0x12   :  { %719 = vmatprep.subr.bf16.mxu1 %v787_v18  ;;  %v822_v49 = vld [vmem:[%s1014_s0 + $0x38] ss:$20 sps:$4 sm:$0xff]  }
  0x13   :  { %692 = vmatpush3.bf16.msra.mxu0 %v786_v17 }
  0x14   :  { %693 = vmatprep.subr.bf16.mxu0 %v789_v20  ;;  %v664_v20 = vld [vmem:[%s1016_s3] sm:$0xff]  }
  0x15   :  { %720 = vmatpush3.bf16.msra.mxu1 %v788_v19  ;;  %v681_v19 = vld [vmem:[%s1016_s3 + $0x8] sm:$0xff]  }
  0x16   :  { %721 = vmatprep.subr.bf16.mxu1 %v791_v22 }
  0x17   :  { %694 = vmatpush3.bf16.msra.mxu0 %v790_v21  ;;  %v669_v21 = vunpack.c.l.bf16 %v681_v19 }
  0x18   :  { %695 = vmatprep.subr.bf16.mxu0 %v793_v24 }
  0x19   :  { %722 = vmatpush3.bf16.msra.mxu1 %v792_v23  ;;  %v665_v23 = vunpack.c.l.bf16 %v664_v20 }
  0x1a   :  { %723 = vmatprep.subr.bf16.mxu1 %v795_v26  ;;  %v670_v26 = vunpack.c.h.bf16 %v681_v19 }
  0x1b   :  { %696 = vmatpush3.bf16.msra.mxu0 %v794_v25 }
  0x1c   :  { %697 = vmatprep.subr.bf16.mxu0 %v797_v28 }
  0x1d   :  { %724 = vmatpush3.bf16.msra.mxu1 %v796_v27 }
  0x1e   :  { %725 = vmatprep.subr.bf16.mxu1 %v799_v30 }
  0x1f   :  { %698 = vmatpush3.bf16.msra.mxu0 %v798_v29  ;;  %v666_v29 = vunpack.c.h.bf16 %v664_v20 }
  0x20   :  { %749 = vmatprep.subr.bf16.mxu0 %v804_v34 }
  0x21   :  { %726 = vmatpush3.bf16.msra.mxu1 %v803_v33 }
  0x22   :  { %442 = vmatmul.mubr.bf16.vlgmr.msra.gmra.mrb[0].mxu0 %v800_v31 }
  0x23   :  { %750 = vmatpush3.bf16.msra.mxu0 %v804_v34  ;;  %449 = vmatprep.mubr.bf16.mxu0 %v812_v39 }
  0x24   :  { %491 = vmatmul.mubr.bf16.vlgmr.msra.gmra.mrb[0].mxu1 %v805_v35  ;;  %751 = vmatprep.subr.bf16.mxu0 %v808_v37 }
  0x25   :  { %498 = vmatprep.mubr.bf16.mxu1 %v816_v42 }
  0x27   :  { %752 = vmatpush3.bf16.msra.mxu0 %v808_v37 }
  0x28   :  { %753 = vmatprep.subr.bf16.mxu0 %v809_v38 }
  0x2a   :  { %450 = vmatmul.mubr.bf16.gmra.mrb[4].mxu0 %v815_v41 }
  0x2b   :  { %754 = vmatpush3.bf16.msra.mxu0 %v809_v38  ;;  %765 = vmatprep.mubr.bf16.mxu0 %v821_v45 }
  0x2c   :  { %755 = vmatprep.subr.bf16.mxu0 %v810_v40  ;;  %499 = vmatmul.mubr.bf16.gmra.mrb[4].mxu1 %v818_v43 }
  0x2f   :  { %756 = vmatpush3.bf16.msra.mxu0 %v810_v40 }
  0x30   :  { %757 = vmatprep.subr.bf16.mxu0 %v811_v44 }
  0x33   :  { %758 = vmatpush3.bf16.msra.mxu0 %v811_v44 }
  0x34   :  { %759 = vmatprep.subr.bf16.mxu0 %v814_v46 }
  0x37   :  { %760 = vmatpush3.bf16.msra.mxu0 %v814_v46 }
  0x38   :  { %761 = vmatprep.subr.bf16.mxu0 %v819_v47 }
  0x3b   :  { %762 = vmatpush3.bf16.msra.mxu0 %v819_v47 }
  0x3c   :  { %763 = vmatprep.subr.bf16.mxu0 %v820_v48 }
  0x3f   :  { %764 = vmatpush3.bf16.msra.mxu0 %v820_v48 }
  0x42   :  { %766 = vmatmul.mubr.bf16.vlgmr.msra.gmra.mrb[8].mxu0 %v822_v49 }
  0xf5   :  { %v699_v50 = vpop.f32.mrb[0].mxu0 }
  0xf6   :  { %v700_v52 = vpop.f32.mrb[1].mxu0 }
  0xf7   :  { %v701_v53 = vadd.f32 %v700_v52, %v699_v50  ;;  %v702_v54 = vpop.f32.mrb[2].mxu0  ;;  %v727_v55 = vpop.f32.mrb[0].mxu1 }
  0xf8   :  { %v703_v56 = vpop.f32.mrb[3].mxu0  ;;  %v728_v59 = vpop.f32.mrb[1].mxu1 }
  0xf9   :  { %v444_v57 = vadd.f32 %v701_v53, %v604_v51  ;;  %v704_v58 = vadd.f32 %v703_v56, %v702_v54  ;;  %v729_v60 = vadd.f32 %v728_v59, %v727_v55  ;;  %v730_v61 = vpop.f32.mrb[2].mxu1 }
  0xfa   :  { %v731_v63 = vpop.f32.mrb[3].mxu1 }
  0xfb   :  { %v447_v62 = vadd.f32 %v704_v58, %v604_v51  ;;  %v732_v0 = vadd.f32 %v731_v63, %v730_v61  ;;  %v493_v1 = vadd.f32 %v729_v60, %v444_v57 }
  0xfd   :  { %v705_v2 = vpop.f32.mrb[4].mxu0  ;;  %v496_v4 = vadd.f32 %v732_v0, %v447_v62 }
  0xfe   :  { %v706_v3 = vpop.f32.mrb[5].mxu0 }
  0xff   :  { %v707_v5 = vadd.f32 %v706_v3, %v705_v2  ;;  %v708_v6 = vpop.f32.mrb[6].mxu0  ;;  %v733_v7 = vpop.f32.mrb[4].mxu1 }
 0x100   :  { %v709_v8 = vpop.f32.mrb[7].mxu0  ;;  %v734_v11 = vpop.f32.mrb[5].mxu1 }
 0x101   :  { %v452_v9 = vadd.f32 %v707_v5, %v604_v51  ;;  %v710_v10 = vadd.f32 %v709_v8, %v708_v6  ;;  %v735_v12 = vadd.f32 %v734_v11, %v733_v7  ;;  %v736_v13 = vpop.f32.mrb[6].mxu1 }
 0x102   :  { %v737_v15 = vpop.f32.mrb[7].mxu1 }
 0x103   :  { %v455_v14 = vadd.f32 %v710_v10, %v604_v51  ;;  %v738_v16 = vadd.f32 %v737_v15, %v736_v13  ;;  %v501_v17 = vadd.f32 %v735_v12, %v452_v9 }
 0x105   :  { %v504_v18 = vadd.f32 %v738_v16, %v455_v14 }
 0x115   :  { %v767_v22 = vpop.f32.mrb[8].mxu0 }
 0x116   :  { %v550_v24 = vadd.f32 %v767_v22, %v501_v17  ;;  %v541_v25 = vpop.f32.mrb[9].mxu0 }
 0x117   :  { %v542_v27 = vadd.f32 %v541_v25, %v493_v1  ;;  %v768_v28 = vpop.f32.mrb[10].mxu0 }
 0x118   :  { %v566_v30 = vadd.f32 %v669_v21, %v550_v24  ;;  %v553_v31 = vadd.f32 %v768_v28, %v504_v18  ;;  %v544_v32 = vpop.f32.mrb[11].mxu0 }
 0x119   :  { %v564_v33 = vadd.f32 %v665_v23, %v542_v27  ;;  %v545_v34 = vadd.f32 %v544_v32, %v496_v4 }
 0x11a   :  { %v574_v35 = vmul.f32 0.2, %v566_v30  ;;  %v567_v36 = vadd.f32 %v670_v26, %v553_v31  ;;  %vm570_vm0 = vcmp.ge.f32.partialorder %v566_v30, 0.0 }
 0x11b   :  { %v572_v37 = vmul.f32 0.2, %v564_v33  ;;  %v565_v38 = vadd.f32 %v666_v29, %v545_v34  ;;  %vm568_vm1 = vcmp.ge.f32.partialorder %v564_v33, 0.0 }
 0x11c   :  { %vm571_vm2 = vcmp.ge.f32.partialorder %v567_v36, 0.0  ;;  %v575_v39 = vmul.f32 0.2, %v567_v36  ;;  %v578_v41 = vsel %vm570_vm0, %v566_v30, %v574_v35 }
 0x11d   :  { %vm569_vm3 = vcmp.ge.f32.partialorder %v565_v38, 0.0  ;;  %v573_v40 = vmul.f32 0.2, %v565_v38  ;;  %v576_v43 = vsel %vm568_vm1, %v564_v33, %v572_v37 }
 0x11e   :  { %v579_v42 = vsel %vm571_vm2, %v567_v36, %v575_v39 }
 0x11f   :  { %v679_v44 = vpack.c.bf16 %v579_v42, %v578_v41  ;;  %v577_v45 = vsel %vm569_vm3, %v565_v38, %v573_v40 }
 0x120   :  { %v674_v46 = vpack.c.bf16 %v577_v45, %v576_v43 }
 0x121   :  { %682 = vst [vmem:[%s1017_s4 + $0x8] sm:$0xff] %v679_v44  }
 0x122   :  { %675 = vst [vmem:[%s1017_s4] sm:$0xff] %v674_v46  }

// kernel: unet_forward.54
= control target key start
LH: loop header
LB: loop body
LE: loop exit
PB: predicated region body
PF: predicated region fallthrough
CT: control target
= control target key end

     0   :  { %s602_s1 = inlined_call_operand.vmem [shape: bf16[128,128], index: 1, kind: input, shape index: {}]   ;;  %s603_s0 = inlined_call_operand.vmem [shape: bf16[128,128], index: 0, kind: input, shape index: {}]   ;;  %s604_s2 = inlined_call_operand.vmem [shape: f32[1,128], index: 2, kind: input, shape index: {}]   ;;  %s605_s3 = inlined_call_operand.vmem [shape: bf16[128,128], index: 3, kind: output, shape index: {}]  }
   0x1   :  { %v491_v0 = vld [vmem:[%s602_s1] sm:$0xff]   ;;  %v492_v1 = vld [vmem:[%s602_s1 + $0x8] sm:$0xff]   ;;  %v493_v2 = vld [vmem:[%s602_s1 + $0x10] sm:$0xff]  }
   0x2   :  { %443 = vmatprep.subr.bf16.mxu0 %v491_v0  ;;  %475 = vmatprep.subr.bf16.mxu1 %v491_v0  ;;  %v494_v3 = vld [vmem:[%s602_s1 + $0x18] sm:$0xff]   ;;  %v499_v4 = vld [vmem:[%s603_s0] sm:$0xff]   ;;  %v496_v7 = vld [vmem:[%s602_s1 + $0x28] sm:$0xff]  }
   0x3   :  { %444 = vmatpush3.bf16.msra.mxu0 %v491_v0  ;;  %483 = vmatpush3.bf16.msra.mxu1 %v491_v0  ;;  %v500_v5 = vld [vmem:[%s603_s0 + $0x20] sm:$0xff]   ;;  %v497_v8 = vld [vmem:[%s602_s1 + $0x30] sm:$0xff]   ;;  %v498_v9 = vld [vmem:[%s602_s1 + $0x38] sm:$0xff]  }
   0x4   :  { %445 = vmatprep.subr.bf16.mxu0 %v492_v1  ;;  %476 = vmatprep.subr.bf16.mxu1 %v492_v1  ;;  %v495_v6 = vld [vmem:[%s602_s1 + $0x20] sm:$0xff]   ;;  %v501_v10 = vld [vmem:[%s603_s0 + $0x8] sm:$0xff]   ;;  %v503_v12 = vld [vmem:[%s603_s0 + $0x10] sm:$0xff]  }
   0x5   :  { %459 = vmatprep.mubr.bf16.mxu0 %v499_v4  ;;  %467 = vmatprep.mubr.bf16.mxu1 %v500_v5  ;;  %v502_v11 = vld [vmem:[%s603_s0 + $0x28] sm:$0xff]   ;;  %v504_v13 = vld [vmem:[%s603_s0 + $0x30] sm:$0xff]   ;;  %v505_v14 = vld [vmem:[%s603_s0 + $0x18] sm:$0xff]  }
   0x6   :  { %v506_v15 = vld [vmem:[%s603_s0 + $0x38] sm:$0xff]   ;;  %v331_v17 = vld [vmem:[%s604_s2] ss:$0 sm:$0xff] }
   0x7   :  { %446 = vmatpush3.bf16.msra.mxu0 %v492_v1  ;;  %484 = vmatpush3.bf16.msra.mxu1 %v492_v1 }
   0x8   :  { %447 = vmatprep.subr.bf16.mxu0 %v493_v2  ;;  %477 = vmatprep.subr.bf16.mxu1 %v493_v2 }
   0xb   :  { %448 = vmatpush3.bf16.msra.mxu0 %v493_v2  ;;  %485 = vmatpush3.bf16.msra.mxu1 %v493_v2 }
   0xc   :  { %449 = vmatprep.subr.bf16.mxu0 %v494_v3  ;;  %478 = vmatprep.subr.bf16.mxu1 %v494_v3 }
   0xf   :  { %450 = vmatpush3.bf16.msra.mxu0 %v494_v3  ;;  %486 = vmatpush3.bf16.msra.mxu1 %v494_v3 }
  0x10   :  { %451 = vmatprep.subr.bf16.mxu0 %v495_v6  ;;  %479 = vmatprep.subr.bf16.mxu1 %v495_v6 }
  0x13   :  { %452 = vmatpush3.bf16.msra.mxu0 %v495_v6  ;;  %487 = vmatpush3.bf16.msra.mxu1 %v495_v6 }
  0x14   :  { %453 = vmatprep.subr.bf16.mxu0 %v496_v7  ;;  %480 = vmatprep.subr.bf16.mxu1 %v496_v7 }
  0x17   :  { %454 = vmatpush3.bf16.msra.mxu0 %v496_v7  ;;  %488 = vmatpush3.bf16.msra.mxu1 %v496_v7 }
  0x18   :  { %455 = vmatprep.subr.bf16.mxu0 %v497_v8  ;;  %481 = vmatprep.subr.bf16.mxu1 %v497_v8 }
  0x1b   :  { %456 = vmatpush3.bf16.msra.mxu0 %v497_v8  ;;  %489 = vmatpush3.bf16.msra.mxu1 %v497_v8 }
  0x1c   :  { %457 = vmatprep.subr.bf16.mxu0 %v498_v9  ;;  %482 = vmatprep.subr.bf16.mxu1 %v498_v9 }
  0x1f   :  { %458 = vmatpush3.bf16.msra.mxu0 %v498_v9  ;;  %490 = vmatpush3.bf16.msra.mxu1 %v498_v9 }
  0x22   :  { %460 = vmatmul.mubr.bf16.vlgmr.msra.gmra.mrb[0].mxu0 %v501_v10  ;;  %468 = vmatmul.mubr.bf16.vlgmr.msra.gmra.mrb[0].mxu1 %v502_v11 }
  0x23   :  { %463 = vmatprep.mubr.bf16.mxu0 %v503_v12  ;;  %471 = vmatprep.mubr.bf16.mxu1 %v504_v13 }
  0x2a   :  { %464 = vmatmul.mubr.bf16.gmra.mrb[4].mxu0 %v505_v14  ;;  %472 = vmatmul.mubr.bf16.gmra.mrb[4].mxu1 %v506_v15 }
  0xf5   :  { %v461_v16 = vpop.f32.mrb[0].mxu0  ;;  %v469_v18 = vpop.f32.mrb[0].mxu1 }
  0xf6   :  { %v184_v19 = vpop.f32.mrb[1].mxu0  ;;  %v216_v20 = vpop.f32.mrb[1].mxu1  ;;  %v193_v23 = vadd.f32 %v461_v16, %v331_v17  ;;  %v225_v24 = vadd.f32 %v469_v18, %v331_v17 }
  0xf7   :  { %v462_v21 = vpop.f32.mrb[2].mxu0  ;;  %v470_v22 = vpop.f32.mrb[2].mxu1  ;;  %v185_v29 = vadd.f32 %v331_v17, %v184_v19  ;;  %v217_v30 = vadd.f32 %v331_v17, %v216_v20 }
  0xf8   :  { %v196_v25 = vadd.f32 %v462_v21, %v331_v17  ;;  %v228_v26 = vadd.f32 %v470_v22, %v331_v17  ;;  %v187_v27 = vpop.f32.mrb[3].mxu0  ;;  %v219_v28 = vpop.f32.mrb[3].mxu1 }
  0xf9   :  { %v188_v31 = vadd.f32 %v331_v17, %v187_v27  ;;  %v220_v32 = vadd.f32 %v331_v17, %v219_v28 }
  0xfa   :  { %v388_v33 = vpack.c.bf16 %v196_v25, %v193_v23  ;;  %v408_v34 = vpack.c.bf16 %v228_v26, %v225_v24 }
  0xfb   :  { %v383_v35 = vpack.c.bf16 %v188_v31, %v185_v29  ;;  %v403_v36 = vpack.c.bf16 %v220_v32, %v217_v30 }
  0xfc   :  { %420 = vst [vmem:[%s605_s3 + $0x8] sm:$0xff] %v388_v33   ;;  %424 = vst [vmem:[%s605_s3 + $0x28] sm:$0xff] %v408_v34  }
  0xfd   :  { %384 = vst [vmem:[%s605_s3] sm:$0xff] %v383_v35   ;;  %423 = vst [vmem:[%s605_s3 + $0x20] sm:$0xff] %v403_v36   ;;  %v465_v37 = vpop.f32.mrb[4].mxu0  ;;  %v473_v38 = vpop.f32.mrb[4].mxu1 }
  0xfe   :  { %v200_v39 = vpop.f32.mrb[5].mxu0  ;;  %v232_v40 = vpop.f32.mrb[5].mxu1  ;;  %v209_v43 = vadd.f32 %v465_v37, %v331_v17  ;;  %v241_v44 = vadd.f32 %v473_v38, %v331_v17 }
  0xff   :  { %v466_v41 = vpop.f32.mrb[6].mxu0  ;;  %v474_v42 = vpop.f32.mrb[6].mxu1  ;;  %v201_v49 = vadd.f32 %v331_v17, %v200_v39  ;;  %v233_v50 = vadd.f32 %v331_v17, %v232_v40 }
 0x100   :  { %v212_v45 = vadd.f32 %v466_v41, %v331_v17  ;;  %v244_v46 = vadd.f32 %v474_v42, %v331_v17  ;;  %v203_v47 = vpop.f32.mrb[7].mxu0  ;;  %v235_v48 = vpop.f32.mrb[7].mxu1 }
 0x101   :  { %v204_v51 = vadd.f32 %v331_v17, %v203_v47  ;;  %v236_v52 = vadd.f32 %v331_v17, %v235_v48 }
 0x102   :  { %v398_v53 = vpack.c.bf16 %v212_v45, %v209_v43  ;;  %v418_v54 = vpack.c.bf16 %v244_v46, %v241_v44 }
 0x103   :  { %v393_v55 = vpack.c.bf16 %v204_v51, %v201_v49  ;;  %v413_v56 = vpack.c.bf16 %v236_v52, %v233_v50 }
 0x104   :  { %422 = vst [vmem:[%s605_s3 + $0x18] sm:$0xff] %v398_v53   ;;  %426 = vst [vmem:[%s605_s3 + $0x38] sm:$0xff] %v418_v54  }
 0x105   :  { %421 = vst [vmem:[%s605_s3 + $0x10] sm:$0xff] %v393_v55   ;;  %425 = vst [vmem:[%s605_s3 + $0x30] sm:$0xff] %v413_v56  }

// kernel: unet_forward.55
= control target key start
LH: loop header
LB: loop body
LE: loop exit
PB: predicated region body
PF: predicated region fallthrough
CT: control target
= control target key end

     0   :  { %s1000_s1 = inlined_call_operand.vmem [shape: bf16[256,128], index: 1, kind: input, shape index: {}]   ;;  %s1001_s0 = inlined_call_operand.vmem [shape: bf16[128,256], index: 0, kind: input, shape index: {}]   ;;  %s1002_s2 = inlined_call_operand.vmem [shape: f32[1,128], index: 2, kind: input, shape index: {}]   ;;  %s1003_s3 = inlined_call_operand.vmem [shape: bf16[128,128], index: 3, kind: input, shape index: {}]   ;;  %s1004_s4 = inlined_call_operand.vmem [shape: bf16[128,128], index: 4, kind: output, shape index: {}]  }
   0x1   :  { %v757_v0 = vld [vmem:[%s1000_s1 + $0x40] sm:$0xff]   ;;  %v759_v2 = vld [vmem:[%s1000_s1 + $0x48] sm:$0xff]   ;;  %v761_v4 = vld [vmem:[%s1000_s1 + $0x50] sm:$0xff]  }
   0x2   :  { %v758_v1 = vld [vmem:[%s1000_s1] sm:$0xff]   ;;  %677 = vmatprep.subr.bf16.mxu0 %v757_v0  ;;  %741 = vmatprep.subr.bf16.mxu1 %v757_v0  ;;  %v760_v3 = vld [vmem:[%s1000_s1 + $0x8] sm:$0xff]   ;;  %v762_v5 = vld [vmem:[%s1000_s1 + $0x10] sm:$0xff]  }
   0x3   :  { %678 = vmatpush3.bf16.msra.mxu0 %v758_v1  ;;  %749 = vmatpush3.bf16.msra.mxu1 %v758_v1  ;;  %v763_v6 = vld [vmem:[%s1000_s1 + $0x58] sm:$0xff]   ;;  %v765_v8 = vld [vmem:[%s1000_s1 + $0x60] sm:$0xff]   ;;  %v767_v10 = vld [vmem:[%s1000_s1 + $0x68] sm:$0xff]  }
   0x4   :  { %679 = vmatprep.subr.bf16.mxu0 %v759_v2  ;;  %742 = vmatprep.subr.bf16.mxu1 %v759_v2  ;;  %v764_v7 = vld [vmem:[%s1000_s1 + $0x18] sm:$0xff]   ;;  %v766_v9 = vld [vmem:[%s1000_s1 + $0x20] sm:$0xff]   ;;  %v768_v13 = vld [vmem:[%s1000_s1 + $0x28] sm:$0xff]  }
   0x5   :  { %v775_v11 = vld [vmem:[%s1001_s0 + $0x4] ss:$8 sps:$4 sm:$0xff]   ;;  %v769_v14 = vld [vmem:[%s1000_s1 + $0x70] sm:$0xff]   ;;  %v771_v16 = vld [vmem:[%s1000_s1 + $0x78] sm:$0xff]  }
   0x6   :  { %v778_v12 = vld [vmem:[%s1001_s0 + $0x44] ss:$8 sps:$4 sm:$0xff]   ;;  %281 = vmatprep.mubr.bf16.mxu0 %v775_v11  ;;  %v770_v15 = vld [vmem:[%s1000_s1 + $0x30] sm:$0xff]   ;;  %v772_v17 = vld [vmem:[%s1000_s1 + $0x38] sm:$0xff]  }
   0x7   :  { %680 = vmatpush3.bf16.msra.mxu0 %v760_v3  ;;  %750 = vmatpush3.bf16.msra.mxu1 %v760_v3  ;;  %v773_v18 = vld [vmem:[%s1001_s0] ss:$8 sps:$4 sm:$0xff]   ;;  %v779_v20 = vld [vmem:[%s1001_s0 + $0x14] ss:$8 sps:$4 sm:$0xff]   ;;  %v783_v22 = vld [vmem:[%s1001_s0 + $0x10] ss:$8 sps:$4 sm:$0xff]  }
   0x8   :  { %681 = vmatprep.subr.bf16.mxu0 %v761_v4  ;;  %743 = vmatprep.subr.bf16.mxu1 %v761_v4  ;;  %v776_v19 = vld [vmem:[%s1001_s0 + $0x40] ss:$8 sps:$4 sm:$0xff]   ;;  %v781_v21 = vld [vmem:[%s1001_s0 + $0x54] ss:$8 sps:$4 sm:$0xff]   ;;  %v784_v23 = vld [vmem:[%s1001_s0 + $0x50] ss:$8 sps:$4 sm:$0xff]  }
   0x9   :  { %313 = vmatprep.mubr.bf16.mxu1 %v778_v12  ;;  %v785_v24 = vld [vmem:[%s1001_s0 + $0x24] ss:$8 sps:$4 sm:$0xff]   ;;  %v789_v26 = vld [vmem:[%s1001_s0 + $0x20] ss:$8 sps:$4 sm:$0xff]   ;;  %v791_v28 = vld [vmem:[%s1001_s0 + $0x34] ss:$8 sps:$4 sm:$0xff]  }
   0xa   :  { %v787_v25 = vld [vmem:[%s1001_s0 + $0x64] ss:$8 sps:$4 sm:$0xff]   ;;  %v790_v27 = vld [vmem:[%s1001_s0 + $0x60] ss:$8 sps:$4 sm:$0xff]   ;;  %v793_v29 = vld [vmem:[%s1001_s0 + $0x74] ss:$8 sps:$4 sm:$0xff]  }
   0xb   :  { %682 = vmatpush3.bf16.msra.mxu0 %v762_v5  ;;  %751 = vmatpush3.bf16.msra.mxu1 %v762_v5  ;;  %v795_v30 = vld [vmem:[%s1001_s0 + $0x30] ss:$8 sps:$4 sm:$0xff]   ;;  %v921_v34 = vld [vmem:[%s1002_s2] ss:$0 sm:$0xff]  ;;  %v936_v59 = vld [vmem:[%s1003_s3 + $0x8] sm:$0xff]  }
   0xc   :  { %683 = vmatprep.subr.bf16.mxu0 %v763_v6  ;;  %744 = vmatprep.subr.bf16.mxu1 %v763_v6  ;;  %v796_v31 = vld [vmem:[%s1001_s0 + $0x70] ss:$8 sps:$4 sm:$0xff]   ;;  %v592_v44 = vld [vmem:[%s1003_s3] sm:$0xff]  }
   0xd   :  { %v666_v48 = vld [vmem:[%s1003_s3 + $0x20] sm:$0xff]   ;;  %v593_v51 = vunpack.c.l.bf16 %v592_v44  ;;  %v594_v56 = vunpack.c.h.bf16 %v592_v44 }
   0xe   :  { %v609_v55 = vunpack.c.l.bf16 %v666_v48  ;;  %v610_v62 = vunpack.c.h.bf16 %v666_v48 }
   0xf   :  { %684 = vmatpush3.bf16.msra.mxu0 %v764_v7  ;;  %752 = vmatpush3.bf16.msra.mxu1 %v764_v7 }
  0x10   :  { %685 = vmatprep.subr.bf16.mxu0 %v765_v8  ;;  %745 = vmatprep.subr.bf16.mxu1 %v765_v8  ;;  %v597_v8 = vunpack.c.l.bf16 %v936_v59 }
  0x13   :  { %686 = vmatpush3.bf16.msra.mxu0 %v766_v9  ;;  %753 = vmatpush3.bf16.msra.mxu1 %v766_v9 }
  0x14   :  { %687 = vmatprep.subr.bf16.mxu0 %v767_v10  ;;  %746 = vmatprep.subr.bf16.mxu1 %v767_v10 }
  0x17   :  { %688 = vmatpush3.bf16.msra.mxu0 %v768_v13  ;;  %754 = vmatpush3.bf16.msra.mxu1 %v768_v13 }
  0x18   :  { %689 = vmatprep.subr.bf16.mxu0 %v769_v14  ;;  %747 = vmatprep.subr.bf16.mxu1 %v769_v14 }
  0x1b   :  { %690 = vmatpush3.bf16.msra.mxu0 %v770_v15  ;;  %755 = vmatpush3.bf16.msra.mxu1 %v770_v15 }
  0x1c   :  { %691 = vmatprep.subr.bf16.mxu0 %v771_v16  ;;  %748 = vmatprep.subr.bf16.mxu1 %v771_v16 }
  0x1f   :  { %692 = vmatpush3.bf16.msra.mxu0 %v772_v17  ;;  %756 = vmatpush3.bf16.msra.mxu1 %v772_v17  ;;  %v667_v17 = vld [vmem:[%s1003_s3 + $0x28] sm:$0xff]  }
  0x22   :  { %282 = vmatmul.mubr.bf16.vlgmr.msra.gmra.mrb[0].mxu0 %v773_v18  ;;  %314 = vmatmul.mubr.bf16.vlgmr.msra.gmra.mrb[0].mxu1 %v776_v19 }
  0x23   :  { %289 = vmatprep.mubr.bf16.mxu0 %v779_v20  ;;  %321 = vmatprep.mubr.bf16.mxu1 %v781_v21 }
  0x2a   :  { %290 = vmatmul.mubr.bf16.gmra.mrb[4].mxu0 %v783_v22  ;;  %322 = vmatmul.mubr.bf16.gmra.mrb[4].mxu1 %v784_v23  ;;  %v947_v22 = vld [vmem:[%s1003_s3 + $0x10] sm:$0xff]  }
  0x2b   :  { %297 = vmatprep.mubr.bf16.mxu0 %v785_v24  ;;  %329 = vmatprep.mubr.bf16.mxu1 %v787_v25  ;;  %v952_v23 = vld [vmem:[%s1003_s3 + $0x30] sm:$0xff]  }
  0x32   :  { %298 = vmatmul.mubr.bf16.gmra.mrb[8].mxu0 %v789_v26  ;;  %330 = vmatmul.mubr.bf16.gmra.mrb[8].mxu1 %v790_v27 }
  0x33   :  { %305 = vmatprep.mubr.bf16.mxu0 %v791_v28  ;;  %337 = vmatprep.mubr.bf16.mxu1 %v793_v29  ;;  %v613_v29 = vunpack.c.l.bf16 %v667_v17 }
  0x3a   :  { %306 = vmatmul.mubr.bf16.gmra.mrb[12].mxu0 %v795_v30  ;;  %338 = vmatmul.mubr.bf16.gmra.mrb[12].mxu1 %v796_v31  ;;  %v598_v30 = vunpack.c.h.bf16 %v936_v59  ;;  %v614_v31 = vunpack.c.h.bf16 %v667_v17 }
  0xf5   :  { %v693_v32 = vpop.f32.mrb[0].mxu0  ;;  %v717_v33 = vpop.f32.mrb[0].mxu1 }
  0xf6   :  { %v694_v35 = vpop.f32.mrb[1].mxu0  ;;  %v718_v36 = vpop.f32.mrb[1].mxu1 }
  0xf7   :  { %v695_v37 = vadd.f32 %v694_v35, %v693_v32  ;;  %v719_v38 = vadd.f32 %v718_v36, %v717_v33  ;;  %v696_v39 = vpop.f32.mrb[2].mxu0  ;;  %v720_v40 = vpop.f32.mrb[2].mxu1 }
  0xf8   :  { %v697_v41 = vpop.f32.mrb[3].mxu0  ;;  %v721_v42 = vpop.f32.mrb[3].mxu1 }
  0xf9   :  { %v284_v43 = vadd.f32 %v695_v37, %v921_v34  ;;  %v316_v45 = vadd.f32 %v719_v38, %v921_v34  ;;  %v698_v46 = vadd.f32 %v697_v41, %v696_v39  ;;  %v722_v47 = vadd.f32 %v721_v42, %v720_v40 }
  0xfa   :  { %v601_v37 = vunpack.c.l.bf16 %v947_v22  ;;  %v617_v39 = vunpack.c.l.bf16 %v952_v23 }
  0xfb   :  { %vm346_vm0 = vcmp.ge.f32.partialorder %v284_v43, 0.0  ;;  %v362_v49 = vmul.f32 0.2, %v284_v43  ;;  %vm354_vm1 = vcmp.ge.f32.partialorder %v316_v45, 0.0  ;;  %v370_v50 = vmul.f32 0.2, %v316_v45 }
  0xfc   :  { %v287_v52 = vadd.f32 %v698_v46, %v921_v34  ;;  %v319_v53 = vadd.f32 %v722_v47, %v921_v34 }
  0xfd   :  { %v378_v54 = vsel %vm346_vm0, %v284_v43, %v362_v49  ;;  %v699_v57 = vpop.f32.mrb[4].mxu0  ;;  %v723_v58 = vpop.f32.mrb[4].mxu1  ;;  %v386_v60 = vsel %vm354_vm1, %v316_v45, %v370_v50  ;;  %v602_v49 = vunpack.c.h.bf16 %v947_v22 }
  0xfe   :  { %vm347_vm2 = vcmp.ge.f32.partialorder %v287_v52, 0.0  ;;  %v363_v61 = vmul.f32 0.2, %v287_v52  ;;  %v700_v63 = vpop.f32.mrb[5].mxu0  ;;  %v724_v0 = vpop.f32.mrb[5].mxu1  ;;  %vm355_vm3 = vcmp.ge.f32.partialorder %v319_v53, 0.0  ;;  %v426_v6 = vadd.f32 %v593_v51, %v378_v54 }
  0xff   :  { %v371_v1 = vmul.f32 0.2, %v319_v53  ;;  %v701_v2 = vadd.f32 %v700_v63, %v699_v57  ;;  %v725_v3 = vadd.f32 %v724_v0, %v723_v58  ;;  %v702_v4 = vpop.f32.mrb[6].mxu0  ;;  %v726_v5 = vpop.f32.mrb[6].mxu1  ;;  %v434_v15 = vadd.f32 %v609_v55, %v386_v60 }
 0x100   :  { %v379_v7 = vsel %vm347_vm2, %v287_v52, %v363_v61  ;;  %v703_v9 = vpop.f32.mrb[7].mxu0  ;;  %v727_v10 = vpop.f32.mrb[7].mxu1 }
 0x101   :  { %v427_v11 = vadd.f32 %v594_v56, %v379_v7  ;;  %v387_v12 = vsel %vm355_vm3, %v319_v53, %v371_v1  ;;  %v292_v13 = vadd.f32 %v701_v2, %v921_v34  ;;  %v324_v14 = vadd.f32 %v725_v3, %v921_v34 }
 0x102   :  { %v435_v16 = vadd.f32 %v610_v62, %v387_v12  ;;  %v704_v18 = vadd.f32 %v703_v9, %v702_v4  ;;  %v728_v19 = vadd.f32 %v727_v10, %v726_v5  ;;  %v618_v3 = vunpack.c.h.bf16 %v952_v23 }
 0x103   :  { %v626_v20 = vpack.c.bf16 %v427_v11, %v426_v6  ;;  %vm348_vm4 = vcmp.ge.f32.partialorder %v292_v13, 0.0  ;;  %v364_v21 = vmul.f32 0.2, %v292_v13  ;;  %vm356_vm5 = vcmp.ge.f32.partialorder %v324_v14, 0.0 }
 0x104   :  { %v646_v24 = vpack.c.bf16 %v435_v16, %v434_v15  ;;  %v372_v25 = vmul.f32 0.2, %v324_v14  ;;  %v295_v26 = vadd.f32 %v704_v18, %v921_v34  ;;  %v327_v27 = vadd.f32 %v728_v19, %v921_v34 }
 0x105   :  { %627 = vst [vmem:[%s1004_s4] sm:$0xff] %v626_v20   ;;  %v380_v28 = vsel %vm348_vm4, %v292_v13, %v364_v21  ;;  %v705_v32 = vpop.f32.mrb[8].mxu0  ;;  %v729_v33 = vpop.f32.mrb[8].mxu1 }
 0x106   :  { %673 = vst [vmem:[%s1004_s4 + $0x20] sm:$0xff] %v646_v24   ;;  %vm349_vm6 = vcmp.ge.f32.partialorder %v295_v26, 0.0  ;;  %v365_v35 = vmul.f32 0.2, %v295_v26  ;;  %v706_v36 = vpop.f32.mrb[9].mxu0  ;;  %v730_v38 = vpop.f32.mrb[9].mxu1  ;;  %v388_v40 = vsel %vm356_vm5, %v324_v14, %v372_v25  ;;  %v428_v45 = vadd.f32 %v597_v8, %v380_v28 }
 0x107   :  { %vm357_vm7 = vcmp.ge.f32.partialorder %v327_v27, 0.0  ;;  %v373_v41 = vmul.f32 0.2, %v327_v27  ;;  %v707_v42 = vadd.f32 %v706_v36, %v705_v32  ;;  %v708_v43 = vpop.f32.mrb[10].mxu0  ;;  %v732_v44 = vpop.f32.mrb[10].mxu1  ;;  %v731_v47 = vadd.f32 %v730_v38, %v729_v33 }
 0x108   :  { %v381_v46 = vsel %vm349_vm6, %v295_v26, %v365_v35  ;;  %v709_v48 = vpop.f32.mrb[11].mxu0  ;;  %v733_v50 = vpop.f32.mrb[11].mxu1  ;;  %v436_v55 = vadd.f32 %v613_v29, %v388_v40  ;;  %v665_v26 = vld [vmem:[%s1003_s3 + $0x18] sm:$0xff]  }
 0x109   :  { %v429_v51 = vadd.f32 %v598_v30, %v381_v46  ;;  %v389_v52 = vsel %vm357_vm7, %v327_v27, %v373_v41  ;;  %v300_v53 = vadd.f32 %v707_v42, %v921_v34  ;;  %v710_v54 = vadd.f32 %v709_v48, %v708_v43  ;;  %v669_v27 = vld [vmem:[%s1003_s3 + $0x38] sm:$0xff]  }
 0x10a   :  { %v437_v56 = vadd.f32 %v614_v31, %v389_v52  ;;  %v332_v57 = vadd.f32 %v731_v47, %v921_v34  ;;  %v734_v58 = vadd.f32 %v733_v50, %v732_v44  ;;  %v605_v35 = vunpack.c.l.bf16 %v665_v26 }
 0x10b   :  { %v631_v59 = vpack.c.bf16 %v429_v51, %v428_v45  ;;  %vm350_vm8 = vcmp.ge.f32.partialorder %v300_v53, 0.0  ;;  %v366_v60 = vmul.f32 0.2, %v300_v53  ;;  %v303_v61 = vadd.f32 %v710_v54, %v921_v34 }
 0x10c   :  { %v651_v62 = vpack.c.bf16 %v437_v56, %v436_v55  ;;  %vm358_vm9 = vcmp.ge.f32.partialorder %v332_v57, 0.0  ;;  %v374_v63 = vmul.f32 0.2, %v332_v57  ;;  %v335_v0 = vadd.f32 %v734_v58, %v921_v34 }
 0x10d   :  { %670 = vst [vmem:[%s1004_s4 + $0x8] sm:$0xff] %v631_v59   ;;  %v382_v1 = vsel %vm350_vm8, %v300_v53, %v366_v60  ;;  %vm351_vm10 = vcmp.ge.f32.partialorder %v303_v61, 0.0  ;;  %v367_v2 = vmul.f32 0.2, %v303_v61  ;;  %v711_v4 = vpop.f32.mrb[12].mxu0  ;;  %v735_v5 = vpop.f32.mrb[12].mxu1  ;;  %v621_v36 = vunpack.c.l.bf16 %v669_v27 }
 0x10e   :  { %674 = vst [vmem:[%s1004_s4 + $0x28] sm:$0xff] %v651_v62   ;;  %v390_v6 = vsel %vm358_vm9, %v332_v57, %v374_v63  ;;  %vm359_vm11 = vcmp.ge.f32.partialorder %v335_v0, 0.0  ;;  %v375_v7 = vmul.f32 0.2, %v335_v0  ;;  %v712_v8 = vpop.f32.mrb[13].mxu0  ;;  %v736_v9 = vpop.f32.mrb[13].mxu1  ;;  %v430_v15 = vadd.f32 %v601_v37, %v382_v1 }
 0x10f   :  { %v383_v10 = vsel %vm351_vm10, %v303_v61, %v367_v2  ;;  %v713_v11 = vadd.f32 %v712_v8, %v711_v4  ;;  %v737_v12 = vadd.f32 %v736_v9, %v735_v5  ;;  %v714_v13 = vpop.f32.mrb[14].mxu0  ;;  %v738_v14 = vpop.f32.mrb[14].mxu1  ;;  %v438_v16 = vadd.f32 %v617_v39, %v390_v6 }
 0x110   :  { %v431_v17 = vadd.f32 %v602_v49, %v383_v10  ;;  %v391_v18 = vsel %vm359_vm11, %v335_v0, %v375_v7  ;;  %v715_v19 = vpop.f32.mrb[15].mxu0  ;;  %v739_v20 = vpop.f32.mrb[15].mxu1  ;;  %v606_v37 = vunpack.c.h.bf16 %v665_v26  ;;  %v622_v40 = vunpack.c.h.bf16 %v669_v27 }
 0x111   :  { %v439_v21 = vadd.f32 %v618_v3, %v391_v18  ;;  %v308_v22 = vadd.f32 %v713_v11, %v921_v34  ;;  %v340_v23 = vadd.f32 %v737_v12, %v921_v34  ;;  %v716_v24 = vadd.f32 %v715_v19, %v714_v13 }
 0x112   :  { %v636_v25 = vpack.c.bf16 %v431_v17, %v430_v15  ;;  %v740_v28 = vadd.f32 %v739_v20, %v738_v14 }
 0x113   :  { %v656_v29 = vpack.c.bf16 %v439_v21, %v438_v16  ;;  %vm352_vm12 = vcmp.ge.f32.partialorder %v308_v22, 0.0  ;;  %v368_v30 = vmul.f32 0.2, %v308_v22  ;;  %vm360_vm13 = vcmp.ge.f32.partialorder %v340_v23, 0.0 }
 0x114   :  { %671 = vst [vmem:[%s1004_s4 + $0x10] sm:$0xff] %v636_v25   ;;  %v376_v31 = vmul.f32 0.2, %v340_v23  ;;  %v311_v32 = vadd.f32 %v716_v24, %v921_v34  ;;  %v343_v33 = vadd.f32 %v740_v28, %v921_v34 }
 0x115   :  { %675 = vst [vmem:[%s1004_s4 + $0x30] sm:$0xff] %v656_v29   ;;  %v384_v38 = vsel %vm352_vm12, %v308_v22, %v368_v30 }
 0x116   :  { %vm353_vm14 = vcmp.ge.f32.partialorder %v311_v32, 0.0  ;;  %v369_v39 = vmul.f32 0.2, %v311_v32  ;;  %v392_v41 = vsel %vm360_vm13, %v340_v23, %v376_v31  ;;  %vm361_vm15 = vcmp.ge.f32.partialorder %v343_v33, 0.0 }
 0x117   :  { %v377_v42 = vmul.f32 0.2, %v343_v33  ;;  %v432_v44 = vadd.f32 %v605_v35, %v384_v38  ;;  %v440_v47 = vadd.f32 %v621_v36, %v392_v41 }
 0x118   :  { %v385_v43 = vsel %vm353_vm14, %v311_v32, %v369_v39 }
 0x119   :  { %v433_v45 = vadd.f32 %v606_v37, %v385_v43  ;;  %v393_v46 = vsel %vm361_vm15, %v343_v33, %v377_v42 }
 0x11a   :  { %v441_v34 = vadd.f32 %v622_v40, %v393_v46 }
 0x11b   :  { %v641_v48 = vpack.c.bf16 %v433_v45, %v432_v44 }
 0x11c   :  { %v661_v49 = vpack.c.bf16 %v441_v34, %v440_v47 }
 0x11d   :  { %672 = vst [vmem:[%s1004_s4 + $0x18] sm:$0xff] %v641_v48  }
 0x11e   :  { %676 = vst [vmem:[%s1004_s4 + $0x38] sm:$0xff] %v661_v49  }

// kernel: unet_forward.53
= control target key start
LH: loop header
LB: loop body
LE: loop exit
PB: predicated region body
PF: predicated region fallthrough
CT: control target
= control target key end

     0   :  { %s1348_s1 = inlined_call_operand.vmem [shape: bf16[384,128], index: 1, kind: input, shape index: {}]   ;;  %s1349_s0 = inlined_call_operand.vmem [shape: bf16[128,384], index: 0, kind: input, shape index: {}]   ;;  %s1350_s2 = inlined_call_operand.vmem [shape: f32[1,128], index: 2, kind: input, shape index: {}]   ;;  %s1351_s3 = inlined_call_operand.vmem [shape: bf16[128,128], index: 3, kind: input, shape index: {}]   ;;  %s1352_s4 = inlined_call_operand.vmem [shape: bf16[128,128], index: 4, kind: output, shape index: {}]  }
   0x1   :  { %v1030_v0 = vld [vmem:[%s1348_s1 + $0x40] sm:$0xff]   ;;  %v1032_v2 = vld [vmem:[%s1348_s1 + $0x48] sm:$0xff]   ;;  %v1035_v5 = vld [vmem:[%s1348_s1 + $0x50] sm:$0xff]  }
   0x2   :  { %v1031_v1 = vld [vmem:[%s1348_s1] sm:$0xff]   ;;  %918 = vmatprep.subr.bf16.mxu0 %v1030_v0  ;;  %v1034_v4 = vld [vmem:[%s1348_s1 + $0x8] sm:$0xff]   ;;  %v1037_v7 = vld [vmem:[%s1348_s1 + $0x10] sm:$0xff]  }
   0x3   :  { %919 = vmatpush3.bf16.msra.mxu0 %v1031_v1  ;;  %v1033_v3 = vld [vmem:[%s1348_s1 + $0x80] sm:$0xff]   ;;  %v1036_v6 = vld [vmem:[%s1348_s1 + $0x88] sm:$0xff]   ;;  %v1038_v8 = vld [vmem:[%s1348_s1 + $0x58] sm:$0xff]  }
   0x4   :  { %920 = vmatprep.subr.bf16.mxu0 %v1032_v2  ;;  %998 = vmatprep.subr.bf16.mxu1 %v1033_v3  ;;  %v1039_v9 = vld [vmem:[%s1348_s1 + $0x90] sm:$0xff]   ;;  %v1040_v10 = vld [vmem:[%s1348_s1 + $0x18] sm:$0xff]   ;;  %v1041_v11 = vld [vmem:[%s1348_s1 + $0x60] sm:$0xff]  }
   0x5   :  { %999 = vmatpush3.bf16.msra.mxu1 %v1033_v3  ;;  %v1042_v12 = vld [vmem:[%s1348_s1 + $0x98] sm:$0xff]   ;;  %v1043_v13 = vld [vmem:[%s1348_s1 + $0x20] sm:$0xff]   ;;  %v1044_v15 = vld [vmem:[%s1348_s1 + $0x68] sm:$0xff]  }
   0x6   :  { %1000 = vmatprep.subr.bf16.mxu1 %v1036_v6  ;;  %v1045_v14 = vld [vmem:[%s1348_s1 + $0xa0] sm:$0xff]   ;;  %v1046_v16 = vld [vmem:[%s1348_s1 + $0x28] sm:$0xff]   ;;  %v1047_v18 = vld [vmem:[%s1348_s1 + $0x70] sm:$0xff]  }
   0x7   :  { %921 = vmatpush3.bf16.msra.mxu0 %v1034_v4  ;;  %v1048_v17 = vld [vmem:[%s1348_s1 + $0xa8] sm:$0xff]   ;;  %v1049_v19 = vld [vmem:[%s1348_s1 + $0x30] sm:$0xff]   ;;  %v1050_v20 = vld [vmem:[%s1348_s1 + $0x78] sm:$0xff]  }
   0x8   :  { %922 = vmatprep.subr.bf16.mxu0 %v1035_v5  ;;  %v1051_v21 = vld [vmem:[%s1348_s1 + $0xb0] sm:$0xff]   ;;  %v1052_v23 = vld [vmem:[%s1348_s1 + $0x38] sm:$0xff]   ;;  %v1053_v26 = vld [vmem:[%s1349_s0] ss:$12 sps:$4 sm:$0xff]  }
   0x9   :  { %1001 = vmatpush3.bf16.msra.mxu1 %v1036_v6  ;;  %v1055_v22 = vld [vmem:[%s1349_s0 + $0x4] ss:$12 sps:$4 sm:$0xff]   ;;  %v1057_v24 = vld [vmem:[%s1349_s0 + $0x8] ss:$12 sps:$4 sm:$0xff]   ;;  %v1056_v25 = vld [vmem:[%s1348_s1 + $0xb8] sm:$0xff]  }
   0xa   :  { %1002 = vmatprep.subr.bf16.mxu1 %v1039_v9  ;;  %409 = vmatprep.mubr.bf16.mxu0 %v1055_v22  ;;  %v1059_v27 = vld [vmem:[%s1349_s0 + $0x1c] ss:$12 sps:$4 sm:$0xff]   ;;  %v1058_v28 = vld [vmem:[%s1349_s0 + $0x20] ss:$12 sps:$4 sm:$0xff]   ;;  %v1065_v29 = vld [vmem:[%s1349_s0 + $0x38] ss:$12 sps:$4 sm:$0xff]  }
   0xb   :  { %923 = vmatpush3.bf16.msra.mxu0 %v1037_v7  ;;  %1014 = vmatprep.mubr.bf16.mxu1 %v1057_v24  ;;  %v1061_v30 = vld [vmem:[%s1349_s0 + $0x18] ss:$12 sps:$4 sm:$0xff]   ;;  %v1062_v31 = vld [vmem:[%s1349_s0 + $0x34] ss:$12 sps:$4 sm:$0xff]   ;;  %v1066_v32 = vld [vmem:[%s1349_s0 + $0x50] ss:$12 sps:$4 sm:$0xff]  }
   0xc   :  { %924 = vmatprep.subr.bf16.mxu0 %v1038_v8  ;;  %v1073_v33 = vld [vmem:[%s1349_s0 + $0x68] ss:$12 sps:$4 sm:$0xff]   ;;  %v1064_v34 = vld [vmem:[%s1349_s0 + $0x30] ss:$12 sps:$4 sm:$0xff]   ;;  %v1067_v35 = vld [vmem:[%s1349_s0 + $0x4c] ss:$12 sps:$4 sm:$0xff]  }
   0xd   :  { %1003 = vmatpush3.bf16.msra.mxu1 %v1039_v9  ;;  %v1074_v36 = vld [vmem:[%s1349_s0 + $0x80] ss:$12 sps:$4 sm:$0xff]   ;;  %v1081_v37 = vld [vmem:[%s1349_s0 + $0x98] ss:$12 sps:$4 sm:$0xff]   ;;  %v1069_v38 = vld [vmem:[%s1349_s0 + $0x48] ss:$12 sps:$4 sm:$0xff]  }
   0xe   :  { %1004 = vmatprep.subr.bf16.mxu1 %v1042_v12  ;;  %v1070_v39 = vld [vmem:[%s1349_s0 + $0x64] ss:$12 sps:$4 sm:$0xff]   ;;  %v1072_v41 = vld [vmem:[%s1349_s0 + $0x60] ss:$12 sps:$4 sm:$0xff]   ;;  %v1075_v42 = vld [vmem:[%s1349_s0 + $0x7c] ss:$12 sps:$4 sm:$0xff]  }
   0xf   :  { %925 = vmatpush3.bf16.msra.mxu0 %v1040_v10  ;;  %v1082_v40 = vld [vmem:[%s1349_s0 + $0xb0] ss:$12 sps:$4 sm:$0xff]   ;;  %v1077_v43 = vld [vmem:[%s1349_s0 + $0x78] ss:$12 sps:$4 sm:$0xff]   ;;  %v1078_v44 = vld [vmem:[%s1349_s0 + $0x94] ss:$12 sps:$4 sm:$0xff]  }
  0x10   :  { %926 = vmatprep.subr.bf16.mxu0 %v1041_v11  ;;  %v1080_v45 = vld [vmem:[%s1349_s0 + $0x90] ss:$12 sps:$4 sm:$0xff]   ;;  %v1083_v46 = vld [vmem:[%s1349_s0 + $0xac] ss:$12 sps:$4 sm:$0xff]   ;;  %v1085_v47 = vld [vmem:[%s1349_s0 + $0xa8] ss:$12 sps:$4 sm:$0xff]  }
  0x11   :  { %1005 = vmatpush3.bf16.msra.mxu1 %v1042_v12  ;;  %v1258_v50 = vld [vmem:[%s1350_s2] ss:$0 sm:$0xff]  ;;  %v904_v5 = vld [vmem:[%s1351_s3 + $0x8] sm:$0xff]  }
  0x12   :  { %1006 = vmatprep.subr.bf16.mxu1 %v1045_v14  ;;  %v833_v51 = vld [vmem:[%s1351_s3] sm:$0xff]   ;;  %v839_v24 = vunpack.c.h.bf16 %v904_v5 }
  0x13   :  { %927 = vmatpush3.bf16.msra.mxu0 %v1043_v13  ;;  %v834_v59 = vunpack.c.l.bf16 %v833_v51  ;;  %v835_v0 = vunpack.c.h.bf16 %v833_v51 }
  0x14   :  { %928 = vmatprep.subr.bf16.mxu0 %v1044_v15 }
  0x15   :  { %1007 = vmatpush3.bf16.msra.mxu1 %v1045_v14  ;;  %v838_v14 = vunpack.c.l.bf16 %v904_v5 }
  0x16   :  { %1008 = vmatprep.subr.bf16.mxu1 %v1048_v17 }
  0x17   :  { %929 = vmatpush3.bf16.msra.mxu0 %v1046_v16 }
  0x18   :  { %930 = vmatprep.subr.bf16.mxu0 %v1047_v18 }
  0x19   :  { %1009 = vmatpush3.bf16.msra.mxu1 %v1048_v17 }
  0x1a   :  { %1010 = vmatprep.subr.bf16.mxu1 %v1051_v21 }
  0x1b   :  { %931 = vmatpush3.bf16.msra.mxu0 %v1049_v19 }
  0x1c   :  { %932 = vmatprep.subr.bf16.mxu0 %v1050_v20 }
  0x1d   :  { %1011 = vmatpush3.bf16.msra.mxu1 %v1051_v21 }
  0x1e   :  { %1012 = vmatprep.subr.bf16.mxu1 %v1056_v25 }
  0x1f   :  { %933 = vmatpush3.bf16.msra.mxu0 %v1052_v23 }
  0x21   :  { %1013 = vmatpush3.bf16.msra.mxu1 %v1056_v25 }
  0x22   :  { %410 = vmatmul.mubr.bf16.vlgmr.msra.gmra.mrb[0].mxu0 %v1053_v26 }
  0x23   :  { %417 = vmatprep.mubr.bf16.mxu0 %v1059_v27 }
  0x24   :  { %1015 = vmatmul.mubr.bf16.vlgmr.msra.gmra.mrb[0].mxu1 %v1058_v28 }
  0x25   :  { %1018 = vmatprep.mubr.bf16.mxu1 %v1065_v29  ;;  %v905_v29 = vld [vmem:[%s1351_s3 + $0x10] sm:$0xff]  }
  0x2a   :  { %418 = vmatmul.mubr.bf16.gmra.mrb[4].mxu0 %v1061_v30 }
  0x2b   :  { %425 = vmatprep.mubr.bf16.mxu0 %v1062_v31 }
  0x2c   :  { %1019 = vmatmul.mubr.bf16.gmra.mrb[4].mxu1 %v1066_v32 }
  0x2d   :  { %1022 = vmatprep.mubr.bf16.mxu1 %v1073_v33 }
  0x32   :  { %426 = vmatmul.mubr.bf16.gmra.mrb[8].mxu0 %v1064_v34 }
  0x33   :  { %433 = vmatprep.mubr.bf16.mxu0 %v1067_v35 }
  0x34   :  { %1023 = vmatmul.mubr.bf16.gmra.mrb[8].mxu1 %v1074_v36 }
  0x35   :  { %1026 = vmatprep.mubr.bf16.mxu1 %v1081_v37 }
  0x3a   :  { %434 = vmatmul.mubr.bf16.gmra.mrb[12].mxu0 %v1069_v38  ;;  %v842_v38 = vunpack.c.l.bf16 %v905_v29 }
  0x3b   :  { %441 = vmatprep.mubr.bf16.mxu0 %v1070_v39 }
  0x3c   :  { %1027 = vmatmul.mubr.bf16.gmra.mrb[12].mxu1 %v1082_v40 }
  0x42   :  { %442 = vmatmul.mubr.bf16.gmra.mrb[16].mxu0 %v1072_v41 }
  0x43   :  { %449 = vmatprep.mubr.bf16.mxu0 %v1075_v42 }
  0x4a   :  { %450 = vmatmul.mubr.bf16.gmra.mrb[20].mxu0 %v1077_v43 }
  0x4b   :  { %457 = vmatprep.mubr.bf16.mxu0 %v1078_v44  ;;  %v843_v44 = vunpack.c.h.bf16 %v905_v29 }
  0x52   :  { %458 = vmatmul.mubr.bf16.gmra.mrb[24].mxu0 %v1080_v45 }
  0x53   :  { %465 = vmatprep.mubr.bf16.mxu0 %v1083_v46 }
  0x5a   :  { %466 = vmatmul.mubr.bf16.gmra.mrb[28].mxu0 %v1085_v47 }
  0xf5   :  { %v934_v48 = vpop.f32.mrb[0].mxu0 }
  0xf6   :  { %v935_v49 = vpop.f32.mrb[1].mxu0 }
  0xf7   :  { %v936_v52 = vadd.f32 %v935_v49, %v934_v48  ;;  %v937_v53 = vpop.f32.mrb[2].mxu0  ;;  %v1016_v55 = vpop.f32.mrb[0].mxu1 }
  0xf8   :  { %v938_v54 = vpop.f32.mrb[3].mxu0  ;;  %v508_v58 = vpop.f32.mrb[1].mxu1 }
  0xf9   :  { %v939_v56 = vadd.f32 %v938_v54, %v937_v53  ;;  %v412_v57 = vadd.f32 %v936_v52, %v1258_v50  ;;  %v1017_v60 = vpop.f32.mrb[2].mxu1  ;;  %v906_v54 = vld [vmem:[%s1351_s3 + $0x18] sm:$0xff]  }
  0xfa   :  { %v511_v63 = vpop.f32.mrb[3].mxu1 }
  0xfb   :  { %v509_v61 = vadd.f32 %v508_v58, %v412_v57  ;;  %v415_v62 = vadd.f32 %v939_v56, %v1258_v50 }
  0xfd   :  { %v603_v1 = vadd.f32 %v834_v59, %v509_v61  ;;  %v512_v2 = vadd.f32 %v511_v63, %v415_v62  ;;  %v940_v3 = vpop.f32.mrb[4].mxu0  ;;  %v846_v63 = vunpack.c.l.bf16 %v906_v54 }
  0xfe   :  { %v941_v4 = vpop.f32.mrb[5].mxu0 }
  0xff   :  { %v635_v6 = vmul.f32 0.2, %v603_v1  ;;  %v604_v7 = vadd.f32 %v835_v0, %v512_v2  ;;  %v942_v8 = vadd.f32 %v941_v4, %v940_v3  ;;  %v943_v9 = vpop.f32.mrb[6].mxu0  ;;  %vm619_vm0 = vcmp.ge.f32.partialorder %v603_v1, 0.0  ;;  %v1268_v11 = vpop.f32.mrb[4].mxu1 }
 0x100   :  { %v944_v10 = vpop.f32.mrb[7].mxu0  ;;  %v524_v15 = vpop.f32.mrb[5].mxu1 }
 0x101   :  { %vm620_vm1 = vcmp.ge.f32.partialorder %v604_v7, 0.0  ;;  %v636_v12 = vmul.f32 0.2, %v604_v7  ;;  %v420_v13 = vadd.f32 %v942_v8, %v1258_v50  ;;  %v945_v16 = vadd.f32 %v944_v10, %v943_v9  ;;  %v1271_v17 = vpop.f32.mrb[6].mxu1 }
 0x102   :  { %v651_v18 = vsel %vm619_vm0, %v603_v1, %v635_v6  ;;  %v527_v21 = vpop.f32.mrb[7].mxu1  ;;  %v847_v9 = vunpack.c.h.bf16 %v906_v54 }
 0x103   :  { %v652_v19 = vsel %vm620_vm1, %v604_v7, %v636_v12  ;;  %v517_v20 = vadd.f32 %v1016_v55, %v420_v13  ;;  %v423_v23 = vadd.f32 %v945_v16, %v1258_v50 }
 0x104   :  { %v867_v22 = vpack.c.bf16 %v652_v19, %v651_v18 }
 0x105   :  { %v605_v25 = vadd.f32 %v838_v14, %v517_v20  ;;  %v946_v26 = vpop.f32.mrb[8].mxu0  ;;  %v520_v27 = vadd.f32 %v1017_v60, %v423_v23 }
 0x106   :  { %868 = vst [vmem:[%s1352_s4] sm:$0xff] %v867_v22   ;;  %v947_v28 = vpop.f32.mrb[9].mxu0 }
 0x107   :  { %v948_v30 = vadd.f32 %v947_v28, %v946_v26  ;;  %v949_v31 = vpop.f32.mrb[10].mxu0  ;;  %v637_v32 = vmul.f32 0.2, %v605_v25  ;;  %v606_v33 = vadd.f32 %v839_v24, %v520_v27  ;;  %v1280_v35 = vpop.f32.mrb[8].mxu1  ;;  %vm621_vm2 = vcmp.ge.f32.partialorder %v605_v25, 0.0 }
 0x108   :  { %v950_v34 = vpop.f32.mrb[11].mxu0  ;;  %v540_v39 = vpop.f32.mrb[9].mxu1 }
 0x109   :  { %v951_v36 = vadd.f32 %v950_v34, %v949_v31  ;;  %v428_v37 = vadd.f32 %v948_v30, %v1258_v50  ;;  %vm622_vm3 = vcmp.ge.f32.partialorder %v606_v33, 0.0  ;;  %v638_v40 = vmul.f32 0.2, %v606_v33  ;;  %v1283_v41 = vpop.f32.mrb[10].mxu1  ;;  %v908_v34 = vld [vmem:[%s1351_s3 + $0x28] sm:$0xff]  }
 0x10a   :  { %v543_v45 = vpop.f32.mrb[11].mxu1  ;;  %v653_v46 = vsel %vm621_vm2, %v605_v25, %v637_v32 }
 0x10b   :  { %v525_v42 = vadd.f32 %v524_v15, %v428_v37  ;;  %v431_v43 = vadd.f32 %v951_v36, %v1258_v50  ;;  %v654_v47 = vsel %vm622_vm3, %v606_v33, %v638_v40  ;;  %v907_v15 = vld [vmem:[%s1351_s3 + $0x20] sm:$0xff]  }
 0x10c   :  { %v872_v48 = vpack.c.bf16 %v654_v47, %v653_v46  ;;  %v850_v23 = vunpack.c.l.bf16 %v907_v15  ;;  %v851_v26 = vunpack.c.h.bf16 %v907_v15 }
 0x10d   :  { %v607_v49 = vadd.f32 %v842_v38, %v525_v42  ;;  %v528_v51 = vadd.f32 %v527_v21, %v431_v43  ;;  %v952_v52 = vpop.f32.mrb[12].mxu0 }
 0x10e   :  { %v953_v53 = vpop.f32.mrb[13].mxu0  ;;  %911 = vst [vmem:[%s1352_s4 + $0x8] sm:$0xff] %v872_v48  }
 0x10f   :  { %v639_v55 = vmul.f32 0.2, %v607_v49  ;;  %v608_v56 = vadd.f32 %v843_v44, %v528_v51  ;;  %v954_v57 = vadd.f32 %v953_v53, %v952_v52  ;;  %v955_v58 = vpop.f32.mrb[14].mxu0  ;;  %vm623_vm4 = vcmp.ge.f32.partialorder %v607_v49, 0.0  ;;  %v1292_v60 = vpop.f32.mrb[12].mxu1 }
 0x110   :  { %v956_v59 = vpop.f32.mrb[15].mxu0  ;;  %v1295_v0 = vpop.f32.mrb[13].mxu1  ;;  %v854_v44 = vunpack.c.l.bf16 %v908_v34  ;;  %v855_v52 = vunpack.c.h.bf16 %v908_v34 }
 0x111   :  { %vm624_vm5 = vcmp.ge.f32.partialorder %v608_v56, 0.0  ;;  %v640_v61 = vmul.f32 0.2, %v608_v56  ;;  %v436_v62 = vadd.f32 %v954_v57, %v1258_v50  ;;  %v957_v1 = vadd.f32 %v956_v59, %v955_v58  ;;  %v1297_v2 = vpop.f32.mrb[14].mxu1  ;;  %v909_v57 = vld [vmem:[%s1351_s3 + $0x30] sm:$0xff]  }
 0x112   :  { %v655_v3 = vsel %vm623_vm4, %v607_v49, %v639_v55  ;;  %v1300_v6 = vpop.f32.mrb[15].mxu1 }
 0x113   :  { %v656_v4 = vsel %vm624_vm5, %v608_v56, %v640_v61  ;;  %v533_v5 = vadd.f32 %v1268_v11, %v436_v62  ;;  %v439_v8 = vadd.f32 %v957_v1, %v1258_v50 }
 0x114   :  { %v877_v7 = vpack.c.bf16 %v656_v4, %v655_v3  ;;  %v858_v3 = vunpack.c.l.bf16 %v909_v57 }
 0x115   :  { %v609_v10 = vadd.f32 %v846_v63, %v533_v5  ;;  %v958_v12 = vpop.f32.mrb[16].mxu0  ;;  %v536_v13 = vadd.f32 %v1271_v17, %v439_v8 }
 0x116   :  { %912 = vst [vmem:[%s1352_s4 + $0x10] sm:$0xff] %v877_v7   ;;  %v959_v14 = vpop.f32.mrb[17].mxu0  ;;  %v859_v7 = vunpack.c.h.bf16 %v909_v57 }
 0x117   :  { %v960_v11 = vadd.f32 %v959_v14, %v958_v12  ;;  %v961_v16 = vpop.f32.mrb[18].mxu0  ;;  %v641_v18 = vmul.f32 0.2, %v609_v10  ;;  %v610_v19 = vadd.f32 %v847_v9, %v536_v13  ;;  %vm625_vm6 = vcmp.ge.f32.partialorder %v609_v10, 0.0 }
 0x118   :  { %v962_v20 = vpop.f32.mrb[19].mxu0 }
 0x119   :  { %v963_v21 = vadd.f32 %v962_v20, %v961_v16  ;;  %v444_v22 = vadd.f32 %v960_v11, %v1258_v50  ;;  %vm626_vm7 = vcmp.ge.f32.partialorder %v610_v19, 0.0  ;;  %v642_v24 = vmul.f32 0.2, %v610_v19  ;;  %v910_v11 = vld [vmem:[%s1351_s3 + $0x38] sm:$0xff]  }
 0x11a   :  { %v657_v27 = vsel %vm625_vm6, %v609_v10, %v641_v18 }
 0x11b   :  { %v541_v25 = vadd.f32 %v540_v39, %v444_v22  ;;  %v447_v17 = vadd.f32 %v963_v21, %v1258_v50  ;;  %v658_v28 = vsel %vm626_vm7, %v610_v19, %v642_v24  ;;  %v862_v22 = vunpack.c.l.bf16 %v910_v11 }
 0x11c   :  { %v882_v29 = vpack.c.bf16 %v658_v28, %v657_v27  ;;  %v863_v28 = vunpack.c.h.bf16 %v910_v11 }
 0x11d   :  { %v611_v30 = vadd.f32 %v850_v23, %v541_v25  ;;  %v544_v31 = vadd.f32 %v543_v45, %v447_v17  ;;  %v964_v32 = vpop.f32.mrb[20].mxu0 }
 0x11e   :  { %v965_v33 = vpop.f32.mrb[21].mxu0  ;;  %913 = vst [vmem:[%s1352_s4 + $0x18] sm:$0xff] %v882_v29  }
 0x11f   :  { %v643_v36 = vmul.f32 0.2, %v611_v30  ;;  %v612_v37 = vadd.f32 %v851_v26, %v544_v31  ;;  %v966_v38 = vadd.f32 %v965_v33, %v964_v32  ;;  %v967_v39 = vpop.f32.mrb[22].mxu0  ;;  %vm627_vm8 = vcmp.ge.f32.partialorder %v611_v30, 0.0 }
 0x120   :  { %v968_v40 = vpop.f32.mrb[23].mxu0 }
 0x121   :  { %vm628_vm9 = vcmp.ge.f32.partialorder %v612_v37, 0.0  ;;  %v644_v42 = vmul.f32 0.2, %v612_v37  ;;  %v452_v43 = vadd.f32 %v966_v38, %v1258_v50  ;;  %v969_v45 = vadd.f32 %v968_v40, %v967_v39 }
 0x122   :  { %v659_v46 = vsel %vm627_vm8, %v611_v30, %v643_v36 }
 0x123   :  { %v660_v47 = vsel %vm628_vm9, %v612_v37, %v644_v42  ;;  %v549_v48 = vadd.f32 %v1280_v35, %v452_v43  ;;  %v455_v51 = vadd.f32 %v969_v45, %v1258_v50 }
 0x124   :  { %v887_v49 = vpack.c.bf16 %v660_v47, %v659_v46 }
 0x125   :  { %v613_v53 = vadd.f32 %v854_v44, %v549_v48  ;;  %v970_v54 = vpop.f32.mrb[24].mxu0  ;;  %v552_v55 = vadd.f32 %v1283_v41, %v455_v51 }
 0x126   :  { %914 = vst [vmem:[%s1352_s4 + $0x20] sm:$0xff] %v887_v49   ;;  %v971_v56 = vpop.f32.mrb[25].mxu0 }
 0x127   :  { %v972_v58 = vadd.f32 %v971_v56, %v970_v54  ;;  %v973_v59 = vpop.f32.mrb[26].mxu0  ;;  %v645_v35 = vmul.f32 0.2, %v613_v53  ;;  %v614_v61 = vadd.f32 %v855_v52, %v552_v55  ;;  %vm629_vm10 = vcmp.ge.f32.partialorder %v613_v53, 0.0 }
 0x128   :  { %v974_v62 = vpop.f32.mrb[27].mxu0 }
 0x129   :  { %v975_v63 = vadd.f32 %v974_v62, %v973_v59  ;;  %v460_v1 = vadd.f32 %v972_v58, %v1258_v50  ;;  %vm630_vm11 = vcmp.ge.f32.partialorder %v614_v61, 0.0  ;;  %v646_v4 = vmul.f32 0.2, %v614_v61 }
 0x12a   :  { %v661_v8 = vsel %vm629_vm10, %v613_v53, %v645_v35 }
 0x12b   :  { %v557_v5 = vadd.f32 %v1295_v0, %v460_v1  ;;  %v463_v41 = vadd.f32 %v975_v63, %v1258_v50  ;;  %v662_v9 = vsel %vm630_vm11, %v614_v61, %v646_v4 }
 0x12c   :  { %v892_v10 = vpack.c.bf16 %v662_v9, %v661_v8 }
 0x12d   :  { %v615_v12 = vadd.f32 %v858_v3, %v557_v5  ;;  %v560_v13 = vadd.f32 %v1300_v6, %v463_v41  ;;  %v976_v14 = vpop.f32.mrb[28].mxu0 }
 0x12e   :  { %v977_v15 = vpop.f32.mrb[29].mxu0  ;;  %915 = vst [vmem:[%s1352_s4 + $0x28] sm:$0xff] %v892_v10  }
 0x12f   :  { %v647_v0 = vmul.f32 0.2, %v615_v12  ;;  %v616_v16 = vadd.f32 %v859_v7, %v560_v13  ;;  %v978_v18 = vadd.f32 %v977_v15, %v976_v14  ;;  %v979_v19 = vpop.f32.mrb[30].mxu0  ;;  %vm631_vm12 = vcmp.ge.f32.partialorder %v615_v12, 0.0 }
 0x130   :  { %v980_v20 = vpop.f32.mrb[31].mxu0 }
 0x131   :  { %vm632_vm13 = vcmp.ge.f32.partialorder %v616_v16, 0.0  ;;  %v648_v21 = vmul.f32 0.2, %v616_v16  ;;  %v468_v6 = vadd.f32 %v978_v18, %v1258_v50  ;;  %v981_v23 = vadd.f32 %v980_v20, %v979_v19 }
 0x132   :  { %v663_v24 = vsel %vm631_vm12, %v615_v12, %v647_v0 }
 0x133   :  { %v664_v25 = vsel %vm632_vm13, %v616_v16, %v648_v21  ;;  %v565_v17 = vadd.f32 %v1292_v60, %v468_v6  ;;  %v471_v27 = vadd.f32 %v981_v23, %v1258_v50 }
 0x134   :  { %v897_v26 = vpack.c.bf16 %v664_v25, %v663_v24 }
 0x135   :  { %v617_v29 = vadd.f32 %v862_v22, %v565_v17  ;;  %v568_v30 = vadd.f32 %v1297_v2, %v471_v27 }
 0x136   :  { %916 = vst [vmem:[%s1352_s4 + $0x30] sm:$0xff] %v897_v26  }
 0x137   :  { %v649_v31 = vmul.f32 0.2, %v617_v29  ;;  %v618_v32 = vadd.f32 %v863_v28, %v568_v30  ;;  %vm633_vm14 = vcmp.ge.f32.partialorder %v617_v29, 0.0 }
 0x139   :  { %vm634_vm15 = vcmp.ge.f32.partialorder %v618_v32, 0.0  ;;  %v650_v33 = vmul.f32 0.2, %v618_v32  ;;  %v665_v34 = vsel %vm633_vm14, %v617_v29, %v649_v31 }
 0x13b   :  { %v666_v36 = vsel %vm634_vm15, %v618_v32, %v650_v33 }
 0x13c   :  { %v902_v37 = vpack.c.bf16 %v666_v36, %v665_v34 }
 0x13e   :  { %917 = vst [vmem:[%s1352_s4 + $0x38] sm:$0xff] %v902_v37  }

// kernel: unet_forward.58
= control target key start
LH: loop header
LB: loop body
LE: loop exit
PB: predicated region body
PF: predicated region fallthrough
CT: control target
= control target key end

     0   :  { %s1094_s12 = smov 0   ;;  %s1215_s0 = inlined_call_operand.vmem [shape: bf16[512,128], index: 0, kind: input, shape index: {}]   ;;  %s1216_s1 = inlined_call_operand.vmem [shape: bf16[128,128], index: 1, kind: input, shape index: {}]   ;;  %s1217_s2 = inlined_call_operand.vmem [shape: f32[1,128], index: 2, kind: input, shape index: {}]   ;;  %s1218_s3 = inlined_call_operand.vmem [shape: bf16[512,128], index: 3, kind: output, shape index: {}]  }
   0x1 LB: > { %s751_s13 = sadd.s32 4294967295, %s1072_s12   ;;  %p755_p0 = scmp.ge.s32.totalorder %s1072_s12, 1  ;;  %s1072_s12 = sphi %s1094_s12, %s13_s12  }
   0x2   : > { %p138_p1 = scmp.lt.s32.totalorder %s1072_s12, 3 }
   0x4   : > { %p139_p2 = pnand %p755_p0, %p138_p1 }
   0x5   : > { %v1042_v0 = vld [vmem:[%s1216_s1] sm:$0xff] (!%p139_p2)   ;;  %s756_s16 = sshll.u32 (!%p139_p2), %s751_s13, 5  ;;  %v1043_v1 = vld [vmem:[%s1216_s1 + $0x8] sm:$0xff] (!%p139_p2)   ;;  %v1044_v2 = vld [vmem:[%s1216_s1 + $0x10] sm:$0xff] (!%p139_p2)  }
   0x6   : > { %142 = sbr.rel (%p139_p2) target bundleno = 282 (0x11a), region = 32  ;;  %p163_p3 = scmp.lt.s32.totalorder (!%p139_p2), %s756_s16, 63  ;;  %970 = vmatprep.subr.bf16.mxu0 (!%p139_p2), %v1042_v0  ;;  %1018 = vmatprep.subr.bf16.mxu1 (!%p139_p2), %v1042_v0  ;;  %v1045_v3 = vld [vmem:[%s1216_s1 + $0x18] sm:$0xff] (!%p139_p2)   ;;  %v1046_v6 = vld [vmem:[%s1216_s1 + $0x20] sm:$0xff] (!%p139_p2)   ;;  %v1047_v7 = vld [vmem:[%s1216_s1 + $0x28] sm:$0xff] (!%p139_p2)  }
   0x7   : > { %971 = vmatpush3.bf16.msra.mxu0 (!%p139_p2), %v1042_v0  ;;  %1026 = vmatpush3.bf16.msra.mxu1 (!%p139_p2), %v1042_v0  ;;  %v1048_v8 = vld [vmem:[%s1216_s1 + $0x30] sm:$0xff] (!%p139_p2)   ;;  %v1049_v9 = vld [vmem:[%s1216_s1 + $0x38] sm:$0xff] (!%p139_p2)   ;;  %v1155_v25 = vld [vmem:[%s1217_s2] ss:$0 sm:$0xff] (!%p139_p2) }
   0x8   : > { %972 = vmatprep.subr.bf16.mxu0 (!%p139_p2), %v1043_v1  ;;  %1019 = vmatprep.subr.bf16.mxu1 (!%p139_p2), %v1043_v1 }
   0xb   : > { %973 = vmatpush3.bf16.msra.mxu0 (!%p139_p2), %v1043_v1  ;;  %1027 = vmatpush3.bf16.msra.mxu1 (!%p139_p2), %v1043_v1 }
   0xc   : > { %974 = vmatprep.subr.bf16.mxu0 (!%p139_p2), %v1044_v2  ;;  %1020 = vmatprep.subr.bf16.mxu1 (!%p139_p2), %v1044_v2 }
   0xd   : > { %s1220_s16 = smov (!%p163_p3, %s756_s16), 63 }
   0xe   : > { %s757_s21 = sshll.u32 %s1220_s16, 2 }
   0xf   : > { %s1119_s24 = scalar_lea.vmem %s1215_s0, %s757_s21  ;;  %975 = vmatpush3.bf16.msra.mxu0 %v1044_v2  ;;  %1028 = vmatpush3.bf16.msra.mxu1 %v1044_v2  ;;  %s1168_s13 = scalar_lea.vmem %s1218_s3, %s757_s21 }
  0x10   : > { %v1050_v4 = vld [vmem:[%s1119_s24] sm:$0xff]   ;;  %976 = vmatprep.subr.bf16.mxu0 %v1045_v3  ;;  %1021 = vmatprep.subr.bf16.mxu1 %v1045_v3  ;;  %v1052_v10 = vld [vmem:[%s1119_s24 + $0x8] sm:$0xff]   ;;  %v1054_v12 = vld [vmem:[%s1119_s24 + $0x10] sm:$0xff]  }
  0x11   : > { %v1051_v5 = vld [vmem:[%s1119_s24 + $0x40] sm:$0xff]   ;;  %986 = vmatprep.mubr.bf16.mxu0 %v1050_v4  ;;  %v1053_v11 = vld [vmem:[%s1119_s24 + $0x48] sm:$0xff]   ;;  %v1055_v13 = vld [vmem:[%s1119_s24 + $0x50] sm:$0xff]  }
  0x12   : > { %1002 = vmatprep.mubr.bf16.mxu1 %v1051_v5  ;;  %v1056_v14 = vld [vmem:[%s1119_s24 + $0x18] sm:$0xff]   ;;  %v1058_v16 = vld [vmem:[%s1119_s24 + $0x20] sm:$0xff]   ;;  %v1060_v18 = vld [vmem:[%s1119_s24 + $0x28] sm:$0xff]  }
  0x13   : > { %977 = vmatpush3.bf16.msra.mxu0 %v1045_v3  ;;  %1029 = vmatpush3.bf16.msra.mxu1 %v1045_v3  ;;  %v1057_v15 = vld [vmem:[%s1119_s24 + $0x58] sm:$0xff]   ;;  %v1059_v17 = vld [vmem:[%s1119_s24 + $0x60] sm:$0xff]   ;;  %v1061_v19 = vld [vmem:[%s1119_s24 + $0x68] sm:$0xff]  }
  0x14   : > { %978 = vmatprep.subr.bf16.mxu0 %v1046_v6  ;;  %1022 = vmatprep.subr.bf16.mxu1 %v1046_v6  ;;  %v1062_v20 = vld [vmem:[%s1119_s24 + $0x30] sm:$0xff]   ;;  %v1064_v22 = vld [vmem:[%s1119_s24 + $0x38] sm:$0xff]  }
  0x15   : > { %v1063_v21 = vld [vmem:[%s1119_s24 + $0x70] sm:$0xff]   ;;  %v1065_v23 = vld [vmem:[%s1119_s24 + $0x78] sm:$0xff]  }
  0x17   : > { %979 = vmatpush3.bf16.msra.mxu0 %v1046_v6  ;;  %1030 = vmatpush3.bf16.msra.mxu1 %v1046_v6 }
  0x18   : > { %980 = vmatprep.subr.bf16.mxu0 %v1047_v7  ;;  %1023 = vmatprep.subr.bf16.mxu1 %v1047_v7 }
  0x1b   : > { %981 = vmatpush3.bf16.msra.mxu0 %v1047_v7  ;;  %1031 = vmatpush3.bf16.msra.mxu1 %v1047_v7 }
  0x1c   : > { %982 = vmatprep.subr.bf16.mxu0 %v1048_v8  ;;  %1024 = vmatprep.subr.bf16.mxu1 %v1048_v8 }
  0x1f   : > { %983 = vmatpush3.bf16.msra.mxu0 %v1048_v8  ;;  %1032 = vmatpush3.bf16.msra.mxu1 %v1048_v8 }
  0x20   : > { %984 = vmatprep.subr.bf16.mxu0 %v1049_v9  ;;  %1025 = vmatprep.subr.bf16.mxu1 %v1049_v9 }
  0x23   : > { %985 = vmatpush3.bf16.msra.mxu0 %v1049_v9  ;;  %1033 = vmatpush3.bf16.msra.mxu1 %v1049_v9 }
  0x26   : > { %987 = vmatmul.mubr.bf16.vlgmr.msra.gmra.mrb[0].mxu0 %v1052_v10  ;;  %1003 = vmatmul.mubr.bf16.vlgmr.msra.gmra.mrb[0].mxu1 %v1053_v11 }
  0x27   : > { %990 = vmatprep.mubr.bf16.mxu0 %v1054_v12  ;;  %1006 = vmatprep.mubr.bf16.mxu1 %v1055_v13 }
  0x2e   : > { %991 = vmatmul.mubr.bf16.gmra.mrb[4].mxu0 %v1056_v14  ;;  %1007 = vmatmul.mubr.bf16.gmra.mrb[4].mxu1 %v1057_v15 }
  0x2f   : > { %994 = vmatprep.mubr.bf16.mxu0 %v1058_v16  ;;  %1010 = vmatprep.mubr.bf16.mxu1 %v1059_v17 }
  0x36   : > { %995 = vmatmul.mubr.bf16.gmra.mrb[8].mxu0 %v1060_v18  ;;  %1011 = vmatmul.mubr.bf16.gmra.mrb[8].mxu1 %v1061_v19 }
  0x37   : > { %998 = vmatprep.mubr.bf16.mxu0 %v1062_v20  ;;  %1014 = vmatprep.mubr.bf16.mxu1 %v1063_v21 }
  0x3e   : > { %999 = vmatmul.mubr.bf16.gmra.mrb[12].mxu0 %v1064_v22  ;;  %1015 = vmatmul.mubr.bf16.gmra.mrb[12].mxu1 %v1065_v23 }
  0xf9   : > { %v988_v24 = vpop.f32.mrb[0].mxu0  ;;  %v1004_v26 = vpop.f32.mrb[0].mxu1 }
  0xfa   : > { %v408_v27 = vpop.f32.mrb[1].mxu0  ;;  %v472_v28 = vpop.f32.mrb[1].mxu1  ;;  %v417_v31 = vadd.f32 %v988_v24, %v1155_v25  ;;  %v481_v32 = vadd.f32 %v1004_v26, %v1155_v25 }
  0xfb   : > { %v989_v29 = vpop.f32.mrb[2].mxu0  ;;  %v1005_v30 = vpop.f32.mrb[2].mxu1  ;;  %v409_v37 = vadd.f32 %v1155_v25, %v408_v27  ;;  %v473_v38 = vadd.f32 %v1155_v25, %v472_v28 }
  0xfc   : > { %v420_v33 = vadd.f32 %v989_v29, %v1155_v25  ;;  %v484_v34 = vadd.f32 %v1005_v30, %v1155_v25  ;;  %v411_v35 = vpop.f32.mrb[3].mxu0  ;;  %v475_v36 = vpop.f32.mrb[3].mxu1 }
  0xfd   : > { %v412_v39 = vadd.f32 %v1155_v25, %v411_v35  ;;  %v476_v40 = vadd.f32 %v1155_v25, %v475_v36 }
  0xfe   : > { %v859_v41 = vpack.c.bf16 %v420_v33, %v417_v31  ;;  %v899_v42 = vpack.c.bf16 %v484_v34, %v481_v32 }
  0xff   : > { %v854_v43 = vpack.c.bf16 %v412_v39, %v409_v37  ;;  %v894_v44 = vpack.c.bf16 %v476_v40, %v473_v38 }
 0x100   : > { %931 = vst [vmem:[%s1168_s13 + $0x8] sm:$0xff] %v859_v41   ;;  %939 = vst [vmem:[%s1168_s13 + $0x48] sm:$0xff] %v899_v42  }
 0x101   : > { %855 = vst [vmem:[%s1168_s13] sm:$0xff] %v854_v43   ;;  %938 = vst [vmem:[%s1168_s13 + $0x40] sm:$0xff] %v894_v44   ;;  %v992_v45 = vpop.f32.mrb[4].mxu0  ;;  %v1008_v46 = vpop.f32.mrb[4].mxu1 }
 0x102   : > { %v424_v47 = vpop.f32.mrb[5].mxu0  ;;  %v488_v48 = vpop.f32.mrb[5].mxu1  ;;  %v433_v51 = vadd.f32 %v992_v45, %v1155_v25  ;;  %v497_v52 = vadd.f32 %v1008_v46, %v1155_v25 }
 0x103   : > { %v993_v49 = vpop.f32.mrb[6].mxu0  ;;  %v1009_v50 = vpop.f32.mrb[6].mxu1  ;;  %v425_v57 = vadd.f32 %v1155_v25, %v424_v47  ;;  %v489_v58 = vadd.f32 %v1155_v25, %v488_v48 }
 0x104   : > { %v436_v53 = vadd.f32 %v993_v49, %v1155_v25  ;;  %v500_v54 = vadd.f32 %v1009_v50, %v1155_v25  ;;  %v427_v55 = vpop.f32.mrb[7].mxu0  ;;  %v491_v56 = vpop.f32.mrb[7].mxu1 }
 0x105   : > { %v428_v59 = vadd.f32 %v1155_v25, %v427_v55  ;;  %v492_v60 = vadd.f32 %v1155_v25, %v491_v56 }
 0x106   : > { %v869_v61 = vpack.c.bf16 %v436_v53, %v433_v51  ;;  %v909_v62 = vpack.c.bf16 %v500_v54, %v497_v52 }
 0x107   : > { %v864_v63 = vpack.c.bf16 %v428_v59, %v425_v57  ;;  %v904_v0 = vpack.c.bf16 %v492_v60, %v489_v58 }
 0x108   : > { %933 = vst [vmem:[%s1168_s13 + $0x18] sm:$0xff] %v869_v61   ;;  %941 = vst [vmem:[%s1168_s13 + $0x58] sm:$0xff] %v909_v62  }
 0x109   : > { %932 = vst [vmem:[%s1168_s13 + $0x10] sm:$0xff] %v864_v63   ;;  %940 = vst [vmem:[%s1168_s13 + $0x50] sm:$0xff] %v904_v0   ;;  %v996_v1 = vpop.f32.mrb[8].mxu0  ;;  %v1012_v2 = vpop.f32.mrb[8].mxu1 }
 0x10a   : > { %v440_v3 = vpop.f32.mrb[9].mxu0  ;;  %v504_v4 = vpop.f32.mrb[9].mxu1  ;;  %v449_v7 = vadd.f32 %v996_v1, %v1155_v25  ;;  %v513_v8 = vadd.f32 %v1012_v2, %v1155_v25 }
 0x10b   : > { %v997_v5 = vpop.f32.mrb[10].mxu0  ;;  %v1013_v6 = vpop.f32.mrb[10].mxu1  ;;  %v441_v13 = vadd.f32 %v1155_v25, %v440_v3  ;;  %v505_v14 = vadd.f32 %v1155_v25, %v504_v4 }
 0x10c   : > { %v452_v9 = vadd.f32 %v997_v5, %v1155_v25  ;;  %v516_v10 = vadd.f32 %v1013_v6, %v1155_v25  ;;  %v443_v11 = vpop.f32.mrb[11].mxu0  ;;  %v507_v12 = vpop.f32.mrb[11].mxu1 }
 0x10d   : > { %v444_v15 = vadd.f32 %v1155_v25, %v443_v11  ;;  %v508_v16 = vadd.f32 %v1155_v25, %v507_v12 }
 0x10e   : > { %v879_v17 = vpack.c.bf16 %v452_v9, %v449_v7  ;;  %v919_v18 = vpack.c.bf16 %v516_v10, %v513_v8 }
 0x10f   : > { %v874_v19 = vpack.c.bf16 %v444_v15, %v441_v13  ;;  %v914_v20 = vpack.c.bf16 %v508_v16, %v505_v14 }
 0x110   : > { %935 = vst [vmem:[%s1168_s13 + $0x28] sm:$0xff] %v879_v17   ;;  %943 = vst [vmem:[%s1168_s13 + $0x68] sm:$0xff] %v919_v18  }
 0x111   : > { %934 = vst [vmem:[%s1168_s13 + $0x20] sm:$0xff] %v874_v19   ;;  %942 = vst [vmem:[%s1168_s13 + $0x60] sm:$0xff] %v914_v20   ;;  %v1000_v21 = vpop.f32.mrb[12].mxu0  ;;  %v1016_v22 = vpop.f32.mrb[12].mxu1 }
 0x112   : > { %v456_v23 = vpop.f32.mrb[13].mxu0  ;;  %v520_v24 = vpop.f32.mrb[13].mxu1  ;;  %v465_v28 = vadd.f32 %v1000_v21, %v1155_v25  ;;  %v529_v29 = vadd.f32 %v1016_v22, %v1155_v25 }
 0x113   : > { %v1001_v26 = vpop.f32.mrb[14].mxu0  ;;  %v1017_v27 = vpop.f32.mrb[14].mxu1  ;;  %v457_v34 = vadd.f32 %v1155_v25, %v456_v23  ;;  %v521_v35 = vadd.f32 %v1155_v25, %v520_v24 }
 0x114   : > { %v468_v30 = vadd.f32 %v1001_v26, %v1155_v25  ;;  %v532_v31 = vadd.f32 %v1017_v27, %v1155_v25  ;;  %v459_v32 = vpop.f32.mrb[15].mxu0  ;;  %v523_v33 = vpop.f32.mrb[15].mxu1 }
 0x115   : > { %v460_v36 = vadd.f32 %v1155_v25, %v459_v32  ;;  %v524_v37 = vadd.f32 %v1155_v25, %v523_v33 }
 0x116   : > { %v889_v38 = vpack.c.bf16 %v468_v30, %v465_v28  ;;  %v929_v39 = vpack.c.bf16 %v532_v31, %v529_v29 }
 0x117   : > { %v884_v40 = vpack.c.bf16 %v460_v36, %v457_v34  ;;  %v924_v41 = vpack.c.bf16 %v524_v37, %v521_v35 }
 0x118   : > { %937 = vst [vmem:[%s1168_s13 + $0x38] sm:$0xff] %v889_v38   ;;  %945 = vst [vmem:[%s1168_s13 + $0x78] sm:$0xff] %v929_v39  }
 0x119   : > { %936 = vst [vmem:[%s1168_s13 + $0x30] sm:$0xff] %v884_v40   ;;  %944 = vst [vmem:[%s1168_s13 + $0x70] sm:$0xff] %v924_v41  }
 0x11a PF: > { %s13_s12 = sadd.s32 1, %s1072_s12  }
 0x11b   : > { %p10_p4 = scmp.ge.s32.totalorder %s13_s12, 4  }
 0x11d   :  { %12 = sbr.rel (!%p10_p4) target bundleno = 1 (0x1), region = 62 }

// kernel: unet_forward.57
= control target key start
LH: loop header
LB: loop body
LE: loop exit
PB: predicated region body
PF: predicated region fallthrough
CT: control target
= control target key end

     0   :  { %s1670_s15 = smov 0   ;;  %s1853_s0 = inlined_call_operand.vmem [shape: bf16[512,256], index: 0, kind: input, shape index: {}]   ;;  %s1854_s1 = inlined_call_operand.vmem [shape: bf16[256,128], index: 1, kind: input, shape index: {}]   ;;  %s1855_s2 = inlined_call_operand.vmem [shape: f32[1,128], index: 2, kind: input, shape index: {}]   ;;  %s1856_s3 = inlined_call_operand.vmem [shape: bf16[512,128], index: 3, kind: input, shape index: {}]   ;;  %s1857_s4 = inlined_call_operand.vmem [shape: bf16[512,128], index: 4, kind: output, shape index: {}]  }
   0x1 LB: > { %s1135_s16 = sadd.s32 4294967295, %s1643_s15   ;;  %p1139_p0 = scmp.ge.s32.totalorder %s1643_s15, 1  ;;  %s1643_s15 = sphi %s1670_s15, %s14_s15  }
   0x2   : > { %p175_p1 = scmp.lt.s32.totalorder %s1643_s15, 3 }
   0x4   : > { %p176_p2 = pnand %p1139_p0, %p175_p1 }
   0x5   : > { %v1573_v0 = vld [vmem:[%s1854_s1 + $0x40] sm:$0xff] (!%p176_p2)   ;;  %s1140_s19 = sshll.u32 (!%p176_p2), %s1135_s16, 5  ;;  %v1575_v2 = vld [vmem:[%s1854_s1 + $0x48] sm:$0xff] (!%p176_p2)   ;;  %v1577_v4 = vld [vmem:[%s1854_s1 + $0x50] sm:$0xff] (!%p176_p2)  }
   0x6   : > { %179 = sbr.rel (%p176_p2) target bundleno = 323 (0x143), region = 36  ;;  %v1574_v1 = vld [vmem:[%s1854_s1] sm:$0xff] (!%p176_p2)   ;;  %1437 = vmatprep.subr.bf16.mxu0 (!%p176_p2), %v1573_v0  ;;  %1549 = vmatprep.subr.bf16.mxu1 (!%p176_p2), %v1573_v0  ;;  %v1576_v3 = vld [vmem:[%s1854_s1 + $0x8] sm:$0xff] (!%p176_p2)   ;;  %p208_p3 = scmp.lt.s32.totalorder (!%p176_p2), %s1140_s19, 63  ;;  %v1578_v5 = vld [vmem:[%s1854_s1 + $0x10] sm:$0xff] (!%p176_p2)  }
   0x7   : > { %1438 = vmatpush3.bf16.msra.mxu0 (!%p176_p2), %v1574_v1  ;;  %1557 = vmatpush3.bf16.msra.mxu1 (!%p176_p2), %v1574_v1  ;;  %v1579_v6 = vld [vmem:[%s1854_s1 + $0x58] sm:$0xff] (!%p176_p2)   ;;  %v1581_v8 = vld [vmem:[%s1854_s1 + $0x60] sm:$0xff] (!%p176_p2)   ;;  %v1583_v10 = vld [vmem:[%s1854_s1 + $0x68] sm:$0xff] (!%p176_p2)  }
   0x8   : > { %1439 = vmatprep.subr.bf16.mxu0 (!%p176_p2), %v1575_v2  ;;  %1550 = vmatprep.subr.bf16.mxu1 (!%p176_p2), %v1575_v2  ;;  %v1580_v7 = vld [vmem:[%s1854_s1 + $0x18] sm:$0xff] (!%p176_p2)   ;;  %v1582_v9 = vld [vmem:[%s1854_s1 + $0x20] sm:$0xff] (!%p176_p2)   ;;  %v1584_v13 = vld [vmem:[%s1854_s1 + $0x28] sm:$0xff] (!%p176_p2)  }
   0x9   : > { %v1585_v14 = vld [vmem:[%s1854_s1 + $0x70] sm:$0xff] (!%p176_p2)   ;;  %v1587_v16 = vld [vmem:[%s1854_s1 + $0x78] sm:$0xff] (!%p176_p2)   ;;  %v1779_v52 = vld [vmem:[%s1855_s2] ss:$0 sm:$0xff] (!%p176_p2) }
   0xa   : > { %v1586_v15 = vld [vmem:[%s1854_s1 + $0x30] sm:$0xff] (!%p176_p2)   ;;  %v1588_v17 = vld [vmem:[%s1854_s1 + $0x38] sm:$0xff] (!%p176_p2)  }
   0xb   : > { %1440 = vmatpush3.bf16.msra.mxu0 (!%p176_p2), %v1576_v3  ;;  %1558 = vmatpush3.bf16.msra.mxu1 (!%p176_p2), %v1576_v3 }
   0xc   : > { %1441 = vmatprep.subr.bf16.mxu0 (!%p176_p2), %v1577_v4  ;;  %1551 = vmatprep.subr.bf16.mxu1 (!%p176_p2), %v1577_v4 }
   0xd   : > { %s1859_s19 = smov (!%p208_p3, %s1140_s19), 63 }
   0xe   : > { %s1230_s8 = sshll.u32 %s1859_s19, 3  ;;  %s1144_s30 = sshll.u32 %s1859_s19, 2 }
   0xf   : > { %1442 = vmatpush3.bf16.msra.mxu0 %v1578_v5  ;;  %1559 = vmatpush3.bf16.msra.mxu1 %v1578_v5  ;;  %s1711_s13 = scalar_lea.vmem %s1853_s0, %s1230_s8  ;;  %s1772_s7 = scalar_lea.vmem %s1856_s3, %s1144_s30 }
  0x10   : > { %1443 = vmatprep.subr.bf16.mxu0 %v1579_v6  ;;  %1552 = vmatprep.subr.bf16.mxu1 %v1579_v6  ;;  %v1591_v11 = vld [vmem:[%s1711_s13 + $0x4] ss:$8 sps:$4 sm:$0xff]   ;;  %v1589_v18 = vld [vmem:[%s1711_s13] ss:$8 sps:$4 sm:$0xff]   ;;  %v1595_v20 = vld [vmem:[%s1711_s13 + $0x14] ss:$8 sps:$4 sm:$0xff]   ;;  %s1792_s12 = scalar_lea.vmem %s1857_s4, %s1144_s30 }
  0x11   : > { %v1594_v12 = vld [vmem:[%s1711_s13 + $0x84] ss:$8 sps:$4 sm:$0xff]   ;;  %586 = vmatprep.mubr.bf16.mxu0 %v1591_v11  ;;  %v1592_v19 = vld [vmem:[%s1711_s13 + $0x80] ss:$8 sps:$4 sm:$0xff]   ;;  %v1597_v21 = vld [vmem:[%s1711_s13 + $0x94] ss:$8 sps:$4 sm:$0xff]  }
  0x12   : > { %650 = vmatprep.mubr.bf16.mxu1 %v1594_v12  ;;  %v1599_v22 = vld [vmem:[%s1711_s13 + $0x10] ss:$8 sps:$4 sm:$0xff]   ;;  %v1601_v24 = vld [vmem:[%s1711_s13 + $0x24] ss:$8 sps:$4 sm:$0xff]   ;;  %v1605_v26 = vld [vmem:[%s1711_s13 + $0x20] ss:$8 sps:$4 sm:$0xff]  }
  0x13   : > { %1444 = vmatpush3.bf16.msra.mxu0 %v1580_v7  ;;  %1560 = vmatpush3.bf16.msra.mxu1 %v1580_v7  ;;  %v1600_v23 = vld [vmem:[%s1711_s13 + $0x90] ss:$8 sps:$4 sm:$0xff]   ;;  %v1603_v25 = vld [vmem:[%s1711_s13 + $0xa4] ss:$8 sps:$4 sm:$0xff]   ;;  %v1606_v27 = vld [vmem:[%s1711_s13 + $0xa0] ss:$8 sps:$4 sm:$0xff]  }
  0x14   : > { %1445 = vmatprep.subr.bf16.mxu0 %v1581_v8  ;;  %1553 = vmatprep.subr.bf16.mxu1 %v1581_v8  ;;  %v1607_v28 = vld [vmem:[%s1711_s13 + $0x34] ss:$8 sps:$4 sm:$0xff]   ;;  %v1611_v30 = vld [vmem:[%s1711_s13 + $0x30] ss:$8 sps:$4 sm:$0xff]   ;;  %v1613_v32 = vld [vmem:[%s1711_s13 + $0x44] ss:$8 sps:$4 sm:$0xff]  }
  0x15   : > { %v1609_v29 = vld [vmem:[%s1711_s13 + $0xb4] ss:$8 sps:$4 sm:$0xff]   ;;  %v1612_v31 = vld [vmem:[%s1711_s13 + $0xb0] ss:$8 sps:$4 sm:$0xff]   ;;  %v1615_v33 = vld [vmem:[%s1711_s13 + $0xc4] ss:$8 sps:$4 sm:$0xff]  }
  0x16   : > { %v1617_v34 = vld [vmem:[%s1711_s13 + $0x40] ss:$8 sps:$4 sm:$0xff]   ;;  %v1619_v36 = vld [vmem:[%s1711_s13 + $0x54] ss:$8 sps:$4 sm:$0xff]   ;;  %v1623_v38 = vld [vmem:[%s1711_s13 + $0x50] ss:$8 sps:$4 sm:$0xff]  }
  0x17   : > { %1446 = vmatpush3.bf16.msra.mxu0 %v1582_v9  ;;  %1561 = vmatpush3.bf16.msra.mxu1 %v1582_v9  ;;  %v1618_v35 = vld [vmem:[%s1711_s13 + $0xc0] ss:$8 sps:$4 sm:$0xff]   ;;  %v1621_v37 = vld [vmem:[%s1711_s13 + $0xd4] ss:$8 sps:$4 sm:$0xff]   ;;  %v1624_v39 = vld [vmem:[%s1711_s13 + $0xd0] ss:$8 sps:$4 sm:$0xff]  }
  0x18   : > { %1447 = vmatprep.subr.bf16.mxu0 %v1583_v10  ;;  %1554 = vmatprep.subr.bf16.mxu1 %v1583_v10  ;;  %v1625_v40 = vld [vmem:[%s1711_s13 + $0x64] ss:$8 sps:$4 sm:$0xff]   ;;  %v1629_v42 = vld [vmem:[%s1711_s13 + $0x60] ss:$8 sps:$4 sm:$0xff]   ;;  %v1631_v44 = vld [vmem:[%s1711_s13 + $0x74] ss:$8 sps:$4 sm:$0xff]  }
  0x19   : > { %v1627_v41 = vld [vmem:[%s1711_s13 + $0xe4] ss:$8 sps:$4 sm:$0xff]   ;;  %v1630_v43 = vld [vmem:[%s1711_s13 + $0xe0] ss:$8 sps:$4 sm:$0xff]   ;;  %v1633_v45 = vld [vmem:[%s1711_s13 + $0xf4] ss:$8 sps:$4 sm:$0xff]  }
  0x1a   : > { %v1635_v46 = vld [vmem:[%s1711_s13 + $0x70] ss:$8 sps:$4 sm:$0xff]   ;;  %v1264_v48 = vld [vmem:[%s1772_s7] sm:$0xff]   ;;  %v1407_v9 = vld [vmem:[%s1772_s7 + $0x8] sm:$0xff]  }
  0x1b   : > { %1448 = vmatpush3.bf16.msra.mxu0 %v1584_v13  ;;  %1562 = vmatpush3.bf16.msra.mxu1 %v1584_v13  ;;  %v1636_v47 = vld [vmem:[%s1711_s13 + $0xf0] ss:$8 sps:$4 sm:$0xff]   ;;  %v1414_v49 = vld [vmem:[%s1772_s7 + $0x40] sm:$0xff]   ;;  %v1265_v56 = vunpack.c.l.bf16 %v1264_v48  ;;  %v1266_v3 = vunpack.c.h.bf16 %v1264_v48  ;;  %v1415_v10 = vld [vmem:[%s1772_s7 + $0x48] sm:$0xff]  }
  0x1c   : > { %1449 = vmatprep.subr.bf16.mxu0 %v1585_v14  ;;  %1555 = vmatprep.subr.bf16.mxu1 %v1585_v14  ;;  %v1297_v58 = vunpack.c.l.bf16 %v1414_v49  ;;  %v1298_v4 = vunpack.c.h.bf16 %v1414_v49 }
  0x1f   : > { %1450 = vmatpush3.bf16.msra.mxu0 %v1586_v15  ;;  %1563 = vmatpush3.bf16.msra.mxu1 %v1586_v15 }
  0x20   : > { %1451 = vmatprep.subr.bf16.mxu0 %v1587_v16  ;;  %1556 = vmatprep.subr.bf16.mxu1 %v1587_v16 }
  0x23   : > { %1452 = vmatpush3.bf16.msra.mxu0 %v1588_v17  ;;  %1564 = vmatpush3.bf16.msra.mxu1 %v1588_v17 }
  0x26   : > { %587 = vmatmul.mubr.bf16.vlgmr.msra.gmra.mrb[0].mxu0 %v1589_v18  ;;  %651 = vmatmul.mubr.bf16.vlgmr.msra.gmra.mrb[0].mxu1 %v1592_v19 }
  0x27   : > { %594 = vmatprep.mubr.bf16.mxu0 %v1595_v20  ;;  %658 = vmatprep.mubr.bf16.mxu1 %v1597_v21 }
  0x2e   : > { %595 = vmatmul.mubr.bf16.gmra.mrb[4].mxu0 %v1599_v22  ;;  %659 = vmatmul.mubr.bf16.gmra.mrb[4].mxu1 %v1600_v23  ;;  %v1269_v22 = vunpack.c.l.bf16 %v1407_v9 }
  0x2f   : > { %602 = vmatprep.mubr.bf16.mxu0 %v1601_v24  ;;  %666 = vmatprep.mubr.bf16.mxu1 %v1603_v25  ;;  %v1301_v24 = vunpack.c.l.bf16 %v1415_v10 }
  0x36   : > { %603 = vmatmul.mubr.bf16.gmra.mrb[8].mxu0 %v1605_v26  ;;  %667 = vmatmul.mubr.bf16.gmra.mrb[8].mxu1 %v1606_v27 }
  0x37   : > { %610 = vmatprep.mubr.bf16.mxu0 %v1607_v28  ;;  %674 = vmatprep.mubr.bf16.mxu1 %v1609_v29 }
  0x3e   : > { %611 = vmatmul.mubr.bf16.gmra.mrb[12].mxu0 %v1611_v30  ;;  %675 = vmatmul.mubr.bf16.gmra.mrb[12].mxu1 %v1612_v31 }
  0x3f   : > { %618 = vmatprep.mubr.bf16.mxu0 %v1613_v32  ;;  %682 = vmatprep.mubr.bf16.mxu1 %v1615_v33 }
  0x46   : > { %619 = vmatmul.mubr.bf16.gmra.mrb[16].mxu0 %v1617_v34  ;;  %683 = vmatmul.mubr.bf16.gmra.mrb[16].mxu1 %v1618_v35 }
  0x47   : > { %626 = vmatprep.mubr.bf16.mxu0 %v1619_v36  ;;  %690 = vmatprep.mubr.bf16.mxu1 %v1621_v37 }
  0x4e   : > { %627 = vmatmul.mubr.bf16.gmra.mrb[20].mxu0 %v1623_v38  ;;  %691 = vmatmul.mubr.bf16.gmra.mrb[20].mxu1 %v1624_v39  ;;  %v1270_v38 = vunpack.c.h.bf16 %v1407_v9 }
  0x4f   : > { %634 = vmatprep.mubr.bf16.mxu0 %v1625_v40  ;;  %698 = vmatprep.mubr.bf16.mxu1 %v1627_v41  ;;  %v1302_v40 = vunpack.c.h.bf16 %v1415_v10  ;;  %v1408_v41 = vld [vmem:[%s1772_s7 + $0x10] sm:$0xff]  }
  0x56   : > { %635 = vmatmul.mubr.bf16.gmra.mrb[24].mxu0 %v1629_v42  ;;  %699 = vmatmul.mubr.bf16.gmra.mrb[24].mxu1 %v1630_v43  ;;  %v1416_v42 = vld [vmem:[%s1772_s7 + $0x50] sm:$0xff]  }
  0x57   : > { %642 = vmatprep.mubr.bf16.mxu0 %v1631_v44  ;;  %706 = vmatprep.mubr.bf16.mxu1 %v1633_v45 }
  0x5e   : > { %643 = vmatmul.mubr.bf16.gmra.mrb[28].mxu0 %v1635_v46  ;;  %707 = vmatmul.mubr.bf16.gmra.mrb[28].mxu1 %v1636_v47 }
  0xf9   : > { %v1453_v50 = vpop.f32.mrb[0].mxu0  ;;  %v1501_v51 = vpop.f32.mrb[0].mxu1 }
  0xfa   : > { %v1454_v53 = vpop.f32.mrb[1].mxu0  ;;  %v1502_v54 = vpop.f32.mrb[1].mxu1 }
  0xfb   : > { %v1455_v55 = vadd.f32 %v1454_v53, %v1453_v50  ;;  %v1503_v57 = vadd.f32 %v1502_v54, %v1501_v51  ;;  %v1456_v59 = vpop.f32.mrb[2].mxu0  ;;  %v1504_v60 = vpop.f32.mrb[2].mxu1  ;;  %v1273_v54 = vunpack.c.l.bf16 %v1408_v41 }
  0xfc   : > { %v1457_v61 = vpop.f32.mrb[3].mxu0  ;;  %v1505_v62 = vpop.f32.mrb[3].mxu1 }
  0xfd   : > { %v589_v63 = vadd.f32 %v1455_v55, %v1779_v52  ;;  %v653_v0 = vadd.f32 %v1503_v57, %v1779_v52  ;;  %v1458_v1 = vadd.f32 %v1457_v61, %v1456_v59  ;;  %v1506_v2 = vadd.f32 %v1505_v62, %v1504_v60 }
  0xfe   : > { %v1305_v55 = vunpack.c.l.bf16 %v1416_v42 }
  0xff   : > { %v779_v5 = vadd.f32 %v1265_v56, %v589_v63  ;;  %v795_v6 = vadd.f32 %v1297_v58, %v653_v0  ;;  %v592_v7 = vadd.f32 %v1458_v1, %v1779_v52  ;;  %v656_v8 = vadd.f32 %v1506_v2, %v1779_v52 }
 0x100   : > { %v1274_v63 = vunpack.c.h.bf16 %v1408_v41  ;;  %v1306_v1 = vunpack.c.h.bf16 %v1416_v42 }
 0x101   : > { %v843_v11 = vmul.f32 0.2, %v779_v5  ;;  %v859_v12 = vmul.f32 0.2, %v795_v6  ;;  %v780_v13 = vadd.f32 %v1266_v3, %v592_v7  ;;  %v796_v14 = vadd.f32 %v1298_v4, %v656_v8  ;;  %v1459_v15 = vpop.f32.mrb[4].mxu0  ;;  %v1507_v16 = vpop.f32.mrb[4].mxu1 }
 0x102   : > { %vm811_vm0 = vcmp.ge.f32.partialorder %v779_v5, 0.0  ;;  %vm827_vm1 = vcmp.ge.f32.partialorder %v795_v6, 0.0  ;;  %v1460_v17 = vpop.f32.mrb[5].mxu0  ;;  %v1508_v18 = vpop.f32.mrb[5].mxu1 }
 0x103   : > { %vm812_vm2 = vcmp.ge.f32.partialorder %v780_v13, 0.0  ;;  %v844_v19 = vmul.f32 0.2, %v780_v13  ;;  %vm828_vm3 = vcmp.ge.f32.partialorder %v796_v14, 0.0  ;;  %v860_v20 = vmul.f32 0.2, %v796_v14 }
 0x104   : > { %v1461_v21 = vadd.f32 %v1460_v17, %v1459_v15  ;;  %v1509_v23 = vadd.f32 %v1508_v18, %v1507_v16  ;;  %v1462_v25 = vpop.f32.mrb[6].mxu0  ;;  %v1510_v26 = vpop.f32.mrb[6].mxu1  ;;  %v875_v27 = vsel %vm811_vm0, %v779_v5, %v843_v11  ;;  %v891_v28 = vsel %vm827_vm1, %v795_v6, %v859_v12  ;;  %v1409_v12 = vld [vmem:[%s1772_s7 + $0x18] sm:$0xff]  }
 0x105   : > { %v876_v29 = vsel %vm812_vm2, %v780_v13, %v844_v19  ;;  %v892_v30 = vsel %vm828_vm3, %v796_v14, %v860_v20  ;;  %v1463_v31 = vpop.f32.mrb[7].mxu0  ;;  %v1511_v32 = vpop.f32.mrb[7].mxu1  ;;  %v1417_v13 = vld [vmem:[%s1772_s7 + $0x58] sm:$0xff]  }
 0x106   : > { %v1330_v33 = vpack.c.bf16 %v876_v29, %v875_v27  ;;  %v1370_v34 = vpack.c.bf16 %v892_v30, %v891_v28  ;;  %v597_v35 = vadd.f32 %v1461_v21, %v1779_v52  ;;  %v661_v36 = vadd.f32 %v1509_v23, %v1779_v52 }
 0x107   : > { %v1464_v37 = vadd.f32 %v1463_v31, %v1462_v25  ;;  %v1512_v39 = vadd.f32 %v1511_v32, %v1510_v26  ;;  %v1277_v26 = vunpack.c.l.bf16 %v1409_v12  ;;  %v1309_v27 = vunpack.c.l.bf16 %v1417_v13 }
 0x108   : > { %1331 = vst [vmem:[%s1792_s12] sm:$0xff] %v1330_v33   ;;  %1429 = vst [vmem:[%s1792_s12 + $0x40] sm:$0xff] %v1370_v34   ;;  %v781_v43 = vadd.f32 %v1269_v22, %v597_v35  ;;  %v797_v44 = vadd.f32 %v1301_v24, %v661_v36  ;;  %v1278_v35 = vunpack.c.h.bf16 %v1409_v12 }
 0x109   : > { %v1465_v45 = vpop.f32.mrb[8].mxu0  ;;  %v1513_v46 = vpop.f32.mrb[8].mxu1  ;;  %v600_v47 = vadd.f32 %v1464_v37, %v1779_v52  ;;  %v664_v48 = vadd.f32 %v1512_v39, %v1779_v52  ;;  %v1310_v37 = vunpack.c.h.bf16 %v1417_v13 }
 0x10a   : > { %v1466_v49 = vpop.f32.mrb[9].mxu0  ;;  %v1514_v50 = vpop.f32.mrb[9].mxu1  ;;  %v845_v51 = vmul.f32 0.2, %v781_v43  ;;  %v861_v53 = vmul.f32 0.2, %v797_v44 }
 0x10b   : > { %v782_v56 = vadd.f32 %v1270_v38, %v600_v47  ;;  %v798_v57 = vadd.f32 %v1302_v40, %v664_v48  ;;  %v1467_v58 = vadd.f32 %v1466_v49, %v1465_v45  ;;  %v1515_v59 = vadd.f32 %v1514_v50, %v1513_v46  ;;  %v1468_v60 = vpop.f32.mrb[10].mxu0  ;;  %v1516_v61 = vpop.f32.mrb[10].mxu1  ;;  %v1410_v48 = vld [vmem:[%s1772_s7 + $0x20] sm:$0xff]  }
 0x10c   : > { %vm813_vm4 = vcmp.ge.f32.partialorder %v781_v43, 0.0  ;;  %vm829_vm5 = vcmp.ge.f32.partialorder %v797_v44, 0.0  ;;  %v1469_v62 = vpop.f32.mrb[11].mxu0  ;;  %v1517_v0 = vpop.f32.mrb[11].mxu1  ;;  %v1418_v49 = vld [vmem:[%s1772_s7 + $0x60] sm:$0xff]  }
 0x10d   : > { %vm814_vm6 = vcmp.ge.f32.partialorder %v782_v56, 0.0  ;;  %v846_v2 = vmul.f32 0.2, %v782_v56  ;;  %vm830_vm7 = vcmp.ge.f32.partialorder %v798_v57, 0.0  ;;  %v862_v3 = vmul.f32 0.2, %v798_v57 }
 0x10e   : > { %v605_v4 = vadd.f32 %v1467_v58, %v1779_v52  ;;  %v669_v5 = vadd.f32 %v1515_v59, %v1779_v52  ;;  %v1470_v6 = vadd.f32 %v1469_v62, %v1468_v60  ;;  %v1518_v7 = vadd.f32 %v1517_v0, %v1516_v61 }
 0x10f   : > { %v877_v8 = vsel %vm813_vm4, %v781_v43, %v845_v51  ;;  %v893_v9 = vsel %vm829_vm5, %v797_v44, %v861_v53  ;;  %v878_v10 = vsel %vm814_vm6, %v782_v56, %v846_v2  ;;  %v894_v11 = vsel %vm830_vm7, %v798_v57, %v862_v3 }
 0x110   : > { %v1335_v14 = vpack.c.bf16 %v878_v10, %v877_v8  ;;  %v1375_v15 = vpack.c.bf16 %v894_v11, %v893_v9  ;;  %v783_v16 = vadd.f32 %v1273_v54, %v605_v4  ;;  %v799_v17 = vadd.f32 %v1305_v55, %v669_v5 }
 0x111   : > { %v1471_v18 = vpop.f32.mrb[12].mxu0  ;;  %v1519_v19 = vpop.f32.mrb[12].mxu1  ;;  %v608_v20 = vadd.f32 %v1470_v6, %v1779_v52  ;;  %v672_v21 = vadd.f32 %v1518_v7, %v1779_v52  ;;  %v1313_v0 = vunpack.c.l.bf16 %v1418_v49  ;;  %v1282_v8 = vunpack.c.h.bf16 %v1410_v48 }
 0x112   : > { %v1472_v22 = vpop.f32.mrb[13].mxu0  ;;  %v1520_v23 = vpop.f32.mrb[13].mxu1  ;;  %1422 = vst [vmem:[%s1792_s12 + $0x8] sm:$0xff] %v1335_v14   ;;  %1430 = vst [vmem:[%s1792_s12 + $0x48] sm:$0xff] %v1375_v15   ;;  %v847_v24 = vmul.f32 0.2, %v783_v16  ;;  %v1314_v10 = vunpack.c.h.bf16 %v1418_v49 }
 0x113   : > { %v863_v25 = vmul.f32 0.2, %v799_v17  ;;  %v784_v28 = vadd.f32 %v1274_v63, %v608_v20  ;;  %v800_v29 = vadd.f32 %v1306_v1, %v672_v21  ;;  %v1473_v30 = vadd.f32 %v1472_v22, %v1471_v18  ;;  %v1474_v32 = vpop.f32.mrb[14].mxu0  ;;  %v1522_v33 = vpop.f32.mrb[14].mxu1  ;;  %v1411_v21 = vld [vmem:[%s1772_s7 + $0x28] sm:$0xff]  }
 0x114   : > { %v1521_v31 = vadd.f32 %v1520_v23, %v1519_v19  ;;  %vm815_vm8 = vcmp.ge.f32.partialorder %v783_v16, 0.0  ;;  %vm831_vm9 = vcmp.ge.f32.partialorder %v799_v17, 0.0  ;;  %v1475_v34 = vpop.f32.mrb[15].mxu0  ;;  %v1523_v36 = vpop.f32.mrb[15].mxu1  ;;  %v1281_v63 = vunpack.c.l.bf16 %v1410_v48  ;;  %v1419_v22 = vld [vmem:[%s1772_s7 + $0x68] sm:$0xff]  }
 0x115   : > { %vm816_vm10 = vcmp.ge.f32.partialorder %v784_v28, 0.0  ;;  %v848_v38 = vmul.f32 0.2, %v784_v28  ;;  %vm832_vm11 = vcmp.ge.f32.partialorder %v800_v29, 0.0  ;;  %v864_v39 = vmul.f32 0.2, %v800_v29 }
 0x116   : > { %v613_v40 = vadd.f32 %v1473_v30, %v1779_v52  ;;  %v677_v41 = vadd.f32 %v1521_v31, %v1779_v52  ;;  %v1476_v42 = vadd.f32 %v1475_v34, %v1474_v32  ;;  %v1524_v43 = vadd.f32 %v1523_v36, %v1522_v33 }
 0x117   : > { %v879_v44 = vsel %vm815_vm8, %v783_v16, %v847_v24  ;;  %v895_v45 = vsel %vm831_vm9, %v799_v17, %v863_v25  ;;  %v880_v46 = vsel %vm816_vm10, %v784_v28, %v848_v38  ;;  %v896_v47 = vsel %vm832_vm11, %v800_v29, %v864_v39 }
 0x118   : > { %v1340_v50 = vpack.c.bf16 %v880_v46, %v879_v44  ;;  %v1380_v51 = vpack.c.bf16 %v896_v47, %v895_v45  ;;  %v785_v53 = vadd.f32 %v1277_v26, %v613_v40  ;;  %v801_v54 = vadd.f32 %v1309_v27, %v677_v41 }
 0x119   : > { %v1477_v55 = vpop.f32.mrb[16].mxu0  ;;  %v1525_v56 = vpop.f32.mrb[16].mxu1  ;;  %v616_v57 = vadd.f32 %v1476_v42, %v1779_v52  ;;  %v680_v58 = vadd.f32 %v1524_v43, %v1779_v52  ;;  %v1317_v36 = vunpack.c.l.bf16 %v1419_v22  ;;  %v1286_v44 = vunpack.c.h.bf16 %v1411_v21 }
 0x11a   : > { %v1478_v59 = vpop.f32.mrb[17].mxu0  ;;  %v1526_v60 = vpop.f32.mrb[17].mxu1  ;;  %1423 = vst [vmem:[%s1792_s12 + $0x10] sm:$0xff] %v1340_v50   ;;  %1431 = vst [vmem:[%s1792_s12 + $0x50] sm:$0xff] %v1380_v51   ;;  %v849_v61 = vmul.f32 0.2, %v785_v53  ;;  %v1318_v46 = vunpack.c.h.bf16 %v1419_v22 }
 0x11b   : > { %v865_v62 = vmul.f32 0.2, %v801_v54  ;;  %v786_v1 = vadd.f32 %v1278_v35, %v616_v57  ;;  %v802_v2 = vadd.f32 %v1310_v37, %v680_v58  ;;  %v1479_v3 = vadd.f32 %v1478_v59, %v1477_v55  ;;  %v1480_v5 = vpop.f32.mrb[18].mxu0  ;;  %v1528_v6 = vpop.f32.mrb[18].mxu1  ;;  %v1412_v58 = vld [vmem:[%s1772_s7 + $0x30] sm:$0xff]  }
 0x11c   : > { %v1527_v4 = vadd.f32 %v1526_v60, %v1525_v56  ;;  %vm817_vm12 = vcmp.ge.f32.partialorder %v785_v53, 0.0  ;;  %vm833_vm13 = vcmp.ge.f32.partialorder %v801_v54, 0.0  ;;  %v1481_v7 = vpop.f32.mrb[19].mxu0  ;;  %v1529_v9 = vpop.f32.mrb[19].mxu1  ;;  %v1285_v35 = vunpack.c.l.bf16 %v1411_v21  ;;  %v1420_v59 = vld [vmem:[%s1772_s7 + $0x70] sm:$0xff]  }
 0x11d   : > { %vm818_vm14 = vcmp.ge.f32.partialorder %v786_v1, 0.0  ;;  %v850_v11 = vmul.f32 0.2, %v786_v1  ;;  %vm834_vm15 = vcmp.ge.f32.partialorder %v802_v2, 0.0  ;;  %v866_v12 = vmul.f32 0.2, %v802_v2 }
 0x11e   : > { %v621_v13 = vadd.f32 %v1479_v3, %v1779_v52  ;;  %v685_v14 = vadd.f32 %v1527_v4, %v1779_v52  ;;  %v1482_v15 = vadd.f32 %v1481_v7, %v1480_v5  ;;  %v1530_v16 = vadd.f32 %v1529_v9, %v1528_v6 }
 0x11f   : > { %v881_v17 = vsel %vm817_vm12, %v785_v53, %v849_v61  ;;  %v897_v18 = vsel %vm833_vm13, %v801_v54, %v865_v62  ;;  %v882_v19 = vsel %vm818_vm14, %v786_v1, %v850_v11  ;;  %v898_v20 = vsel %vm834_vm15, %v802_v2, %v866_v12 }
 0x120   : > { %v1345_v23 = vpack.c.bf16 %v882_v19, %v881_v17  ;;  %v1385_v24 = vpack.c.bf16 %v898_v20, %v897_v18  ;;  %v787_v25 = vadd.f32 %v1281_v63, %v621_v13  ;;  %v803_v26 = vadd.f32 %v1313_v0, %v685_v14 }
 0x121   : > { %v1483_v27 = vpop.f32.mrb[20].mxu0  ;;  %v1531_v28 = vpop.f32.mrb[20].mxu1  ;;  %v624_v29 = vadd.f32 %v1482_v15, %v1779_v52  ;;  %v688_v30 = vadd.f32 %v1530_v16, %v1779_v52  ;;  %v1321_v9 = vunpack.c.l.bf16 %v1420_v59  ;;  %v1290_v17 = vunpack.c.h.bf16 %v1412_v58 }
 0x122   : > { %v1484_v31 = vpop.f32.mrb[21].mxu0  ;;  %v1532_v32 = vpop.f32.mrb[21].mxu1  ;;  %1424 = vst [vmem:[%s1792_s12 + $0x18] sm:$0xff] %v1345_v23   ;;  %1432 = vst [vmem:[%s1792_s12 + $0x58] sm:$0xff] %v1385_v24   ;;  %v851_v33 = vmul.f32 0.2, %v787_v25  ;;  %v1322_v19 = vunpack.c.h.bf16 %v1420_v59 }
 0x123   : > { %v867_v34 = vmul.f32 0.2, %v803_v26  ;;  %v788_v37 = vadd.f32 %v1282_v8, %v624_v29  ;;  %v804_v38 = vadd.f32 %v1314_v10, %v688_v30  ;;  %v1485_v39 = vadd.f32 %v1484_v31, %v1483_v27  ;;  %v1486_v41 = vpop.f32.mrb[22].mxu0  ;;  %v1534_v42 = vpop.f32.mrb[22].mxu1  ;;  %v1413_v30 = vld [vmem:[%s1772_s7 + $0x38] sm:$0xff]  }
 0x124   : > { %v1533_v40 = vadd.f32 %v1532_v32, %v1531_v28  ;;  %vm819_vm0 = vcmp.ge.f32.partialorder %v787_v25, 0.0  ;;  %vm835_vm1 = vcmp.ge.f32.partialorder %v803_v26, 0.0  ;;  %v1487_v43 = vpop.f32.mrb[23].mxu0  ;;  %v1535_v45 = vpop.f32.mrb[23].mxu1  ;;  %v1289_v8 = vunpack.c.l.bf16 %v1412_v58  ;;  %v1421_v31 = vld [vmem:[%s1772_s7 + $0x78] sm:$0xff]  }
 0x125   : > { %vm820_vm2 = vcmp.ge.f32.partialorder %v788_v37, 0.0  ;;  %v852_v47 = vmul.f32 0.2, %v788_v37  ;;  %vm836_vm3 = vcmp.ge.f32.partialorder %v804_v38, 0.0  ;;  %v868_v48 = vmul.f32 0.2, %v804_v38 }
 0x126   : > { %v629_v49 = vadd.f32 %v1485_v39, %v1779_v52  ;;  %v693_v50 = vadd.f32 %v1533_v40, %v1779_v52  ;;  %v1488_v51 = vadd.f32 %v1487_v43, %v1486_v41  ;;  %v1536_v53 = vadd.f32 %v1535_v45, %v1534_v42 }
 0x127   : > { %v883_v54 = vsel %vm819_vm0, %v787_v25, %v851_v33  ;;  %v899_v55 = vsel %vm835_vm1, %v803_v26, %v867_v34  ;;  %v884_v56 = vsel %vm820_vm2, %v788_v37, %v852_v47  ;;  %v900_v57 = vsel %vm836_vm3, %v804_v38, %v868_v48 }
 0x128   : > { %v1350_v60 = vpack.c.bf16 %v884_v56, %v883_v54  ;;  %v1390_v61 = vpack.c.bf16 %v900_v57, %v899_v55  ;;  %v789_v62 = vadd.f32 %v1285_v35, %v629_v49  ;;  %v805_v63 = vadd.f32 %v1317_v36, %v693_v50 }
 0x129   : > { %v1489_v0 = vpop.f32.mrb[24].mxu0  ;;  %v1537_v1 = vpop.f32.mrb[24].mxu1  ;;  %v632_v2 = vadd.f32 %v1488_v51, %v1779_v52  ;;  %v696_v3 = vadd.f32 %v1536_v53, %v1779_v52  ;;  %v1325_v45 = vunpack.c.l.bf16 %v1421_v31  ;;  %v1294_v54 = vunpack.c.h.bf16 %v1413_v30 }
 0x12a   : > { %v1490_v4 = vpop.f32.mrb[25].mxu0  ;;  %v1538_v5 = vpop.f32.mrb[25].mxu1  ;;  %1425 = vst [vmem:[%s1792_s12 + $0x20] sm:$0xff] %v1350_v60   ;;  %1433 = vst [vmem:[%s1792_s12 + $0x60] sm:$0xff] %v1390_v61   ;;  %v853_v6 = vmul.f32 0.2, %v789_v62  ;;  %v1326_v56 = vunpack.c.h.bf16 %v1421_v31 }
 0x12b   : > { %v869_v7 = vmul.f32 0.2, %v805_v63  ;;  %v790_v10 = vadd.f32 %v1286_v44, %v632_v2  ;;  %v806_v11 = vadd.f32 %v1318_v46, %v696_v3  ;;  %v1491_v12 = vadd.f32 %v1490_v4, %v1489_v0  ;;  %v1492_v14 = vpop.f32.mrb[26].mxu0  ;;  %v1540_v15 = vpop.f32.mrb[26].mxu1 }
 0x12c   : > { %v1539_v13 = vadd.f32 %v1538_v5, %v1537_v1  ;;  %vm821_vm4 = vcmp.ge.f32.partialorder %v789_v62, 0.0  ;;  %vm837_vm5 = vcmp.ge.f32.partialorder %v805_v63, 0.0  ;;  %v1493_v16 = vpop.f32.mrb[27].mxu0  ;;  %v1541_v18 = vpop.f32.mrb[27].mxu1  ;;  %v1293_v44 = vunpack.c.l.bf16 %v1413_v30 }
 0x12d   : > { %vm822_vm6 = vcmp.ge.f32.partialorder %v790_v10, 0.0  ;;  %v854_v20 = vmul.f32 0.2, %v790_v10  ;;  %vm838_vm7 = vcmp.ge.f32.partialorder %v806_v11, 0.0  ;;  %v870_v21 = vmul.f32 0.2, %v806_v11 }
 0x12e   : > { %v637_v22 = vadd.f32 %v1491_v12, %v1779_v52  ;;  %v701_v23 = vadd.f32 %v1539_v13, %v1779_v52  ;;  %v1494_v24 = vadd.f32 %v1493_v16, %v1492_v14  ;;  %v1542_v25 = vadd.f32 %v1541_v18, %v1540_v15 }
 0x12f   : > { %v885_v26 = vsel %vm821_vm4, %v789_v62, %v853_v6  ;;  %v901_v27 = vsel %vm837_vm5, %v805_v63, %v869_v7  ;;  %v886_v28 = vsel %vm822_vm6, %v790_v10, %v854_v20  ;;  %v902_v29 = vsel %vm838_vm7, %v806_v11, %v870_v21 }
 0x130   : > { %v1355_v32 = vpack.c.bf16 %v886_v28, %v885_v26  ;;  %v1395_v33 = vpack.c.bf16 %v902_v29, %v901_v27  ;;  %v791_v34 = vadd.f32 %v1289_v8, %v637_v22  ;;  %v807_v35 = vadd.f32 %v1321_v9, %v701_v23 }
 0x131   : > { %v1495_v36 = vpop.f32.mrb[28].mxu0  ;;  %v1543_v37 = vpop.f32.mrb[28].mxu1  ;;  %v640_v38 = vadd.f32 %v1494_v24, %v1779_v52  ;;  %v704_v39 = vadd.f32 %v1542_v25, %v1779_v52 }
 0x132   : > { %v1496_v40 = vpop.f32.mrb[29].mxu0  ;;  %v1544_v41 = vpop.f32.mrb[29].mxu1  ;;  %1426 = vst [vmem:[%s1792_s12 + $0x28] sm:$0xff] %v1355_v32   ;;  %1434 = vst [vmem:[%s1792_s12 + $0x68] sm:$0xff] %v1395_v33   ;;  %v855_v42 = vmul.f32 0.2, %v791_v34 }
 0x133   : > { %v871_v43 = vmul.f32 0.2, %v807_v35  ;;  %v792_v46 = vadd.f32 %v1290_v17, %v640_v38  ;;  %v808_v47 = vadd.f32 %v1322_v19, %v704_v39  ;;  %v1497_v48 = vadd.f32 %v1496_v40, %v1495_v36  ;;  %v1498_v50 = vpop.f32.mrb[30].mxu0  ;;  %v1546_v51 = vpop.f32.mrb[30].mxu1 }
 0x134   : > { %v1545_v49 = vadd.f32 %v1544_v41, %v1543_v37  ;;  %vm823_vm8 = vcmp.ge.f32.partialorder %v791_v34, 0.0  ;;  %vm839_vm9 = vcmp.ge.f32.partialorder %v807_v35, 0.0  ;;  %v1499_v53 = vpop.f32.mrb[31].mxu0  ;;  %v1547_v55 = vpop.f32.mrb[31].mxu1 }
 0x135   : > { %vm824_vm10 = vcmp.ge.f32.partialorder %v792_v46, 0.0  ;;  %v856_v57 = vmul.f32 0.2, %v792_v46  ;;  %vm840_vm11 = vcmp.ge.f32.partialorder %v808_v47, 0.0  ;;  %v872_v58 = vmul.f32 0.2, %v808_v47 }
 0x136   : > { %v645_v59 = vadd.f32 %v1497_v48, %v1779_v52  ;;  %v709_v60 = vadd.f32 %v1545_v49, %v1779_v52  ;;  %v1500_v61 = vadd.f32 %v1499_v53, %v1498_v50  ;;  %v1548_v62 = vadd.f32 %v1547_v55, %v1546_v51 }
 0x137   : > { %v887_v63 = vsel %vm823_vm8, %v791_v34, %v855_v42  ;;  %v903_v0 = vsel %vm839_vm9, %v807_v35, %v871_v43  ;;  %v888_v1 = vsel %vm824_vm10, %v792_v46, %v856_v57  ;;  %v904_v2 = vsel %vm840_vm11, %v808_v47, %v872_v58 }
 0x138   : > { %v1360_v3 = vpack.c.bf16 %v888_v1, %v887_v63  ;;  %v1400_v4 = vpack.c.bf16 %v904_v2, %v903_v0  ;;  %v793_v5 = vadd.f32 %v1293_v44, %v645_v59  ;;  %v809_v6 = vadd.f32 %v1325_v45, %v709_v60 }
 0x139   : > { %v648_v7 = vadd.f32 %v1500_v61, %v1779_v52  ;;  %v712_v8 = vadd.f32 %v1548_v62, %v1779_v52 }
 0x13a   : > { %1427 = vst [vmem:[%s1792_s12 + $0x30] sm:$0xff] %v1360_v3   ;;  %1435 = vst [vmem:[%s1792_s12 + $0x70] sm:$0xff] %v1400_v4   ;;  %v857_v9 = vmul.f32 0.2, %v793_v5  ;;  %v873_v10 = vmul.f32 0.2, %v809_v6 }
 0x13b   : > { %v794_v11 = vadd.f32 %v1294_v54, %v648_v7  ;;  %v810_v12 = vadd.f32 %v1326_v56, %v712_v8  ;;  %vm825_vm12 = vcmp.ge.f32.partialorder %v793_v5, 0.0  ;;  %vm841_vm13 = vcmp.ge.f32.partialorder %v809_v6, 0.0 }
 0x13c   : > { %v889_v15 = vsel %vm825_vm12, %v793_v5, %v857_v9  ;;  %v905_v16 = vsel %vm841_vm13, %v809_v6, %v873_v10 }
 0x13d   : > { %vm826_vm14 = vcmp.ge.f32.partialorder %v794_v11, 0.0  ;;  %v858_v13 = vmul.f32 0.2, %v794_v11  ;;  %vm842_vm15 = vcmp.ge.f32.partialorder %v810_v12, 0.0  ;;  %v874_v14 = vmul.f32 0.2, %v810_v12 }
 0x13f   : > { %v890_v17 = vsel %vm826_vm14, %v794_v11, %v858_v13  ;;  %v906_v18 = vsel %vm842_vm15, %v810_v12, %v874_v14 }
 0x140   : > { %v1365_v19 = vpack.c.bf16 %v890_v17, %v889_v15  ;;  %v1405_v52 = vpack.c.bf16 %v906_v18, %v905_v16 }
 0x142   : > { %1428 = vst [vmem:[%s1792_s12 + $0x38] sm:$0xff] %v1365_v19   ;;  %1436 = vst [vmem:[%s1792_s12 + $0x78] sm:$0xff] %v1405_v52  }
 0x143 PF: > { %s14_s15 = sadd.s32 1, %s1643_s15  }
 0x144   : > { %p11_p4 = scmp.ge.s32.totalorder %s14_s15, 4  }
 0x146   :  { %13 = sbr.rel (!%p11_p4) target bundleno = 1 (0x1), region = 69 }

// kernel: unet_forward.59
= control target key start
LH: loop header
LB: loop body
LE: loop exit
PB: predicated region body
PF: predicated region fallthrough
CT: control target
= control target key end

     0   :  { %s1433_s15 = smov 0   ;;  %s1695_s0 = inlined_call_operand.vmem [shape: bf16[512,128], index: 0, kind: input, shape index: {}]   ;;  %s1696_s1 = inlined_call_operand.vmem [shape: bf16[128,128], index: 1, kind: input, shape index: {}]   ;;  %s1697_s2 = inlined_call_operand.vmem [shape: f32[1,128], index: 2, kind: input, shape index: {}]   ;;  %s1698_s3 = inlined_call_operand.vmem [shape: bf16[512,128], index: 3, kind: input, shape index: {}]   ;;  %s1699_s4 = inlined_call_operand.vmem [shape: bf16[512,128], index: 4, kind: output, shape index: {}]  }
   0x1 LB: > { %s1004_s16 = sadd.s32 4294967295, %s1406_s15   ;;  %p1008_p0 = scmp.ge.s32.totalorder %s1406_s15, 1  ;;  %s1406_s15 = sphi %s1433_s15, %s14_s15  }
   0x2   : > { %p174_p1 = scmp.lt.s32.totalorder %s1406_s15, 3 }
   0x4   : > { %p175_p2 = pnand %p1008_p0, %p174_p1 }
   0x5   : > { %v1376_v0 = vld [vmem:[%s1696_s1] sm:$0xff] (!%p175_p2)   ;;  %s1009_s19 = sshll.u32 (!%p175_p2), %s1004_s16, 5  ;;  %v1377_v1 = vld [vmem:[%s1696_s1 + $0x8] sm:$0xff] (!%p175_p2)   ;;  %v1378_v2 = vld [vmem:[%s1696_s1 + $0x10] sm:$0xff] (!%p175_p2)  }
   0x6   : > { %178 = sbr.rel (%p175_p2) target bundleno = 300 (0x12c), region = 36  ;;  %p206_p3 = scmp.lt.s32.totalorder (!%p175_p2), %s1009_s19, 63  ;;  %1304 = vmatprep.subr.bf16.mxu0 (!%p175_p2), %v1376_v0  ;;  %1352 = vmatprep.subr.bf16.mxu1 (!%p175_p2), %v1376_v0  ;;  %v1379_v3 = vld [vmem:[%s1696_s1 + $0x18] sm:$0xff] (!%p175_p2)   ;;  %v1380_v6 = vld [vmem:[%s1696_s1 + $0x20] sm:$0xff] (!%p175_p2)   ;;  %v1381_v7 = vld [vmem:[%s1696_s1 + $0x28] sm:$0xff] (!%p175_p2)  }
   0x7   : > { %1305 = vmatpush3.bf16.msra.mxu0 (!%p175_p2), %v1376_v0  ;;  %1360 = vmatpush3.bf16.msra.mxu1 (!%p175_p2), %v1376_v0  ;;  %v1382_v8 = vld [vmem:[%s1696_s1 + $0x30] sm:$0xff] (!%p175_p2)   ;;  %v1383_v9 = vld [vmem:[%s1696_s1 + $0x38] sm:$0xff] (!%p175_p2)   ;;  %v1544_v46 = vld [vmem:[%s1697_s2] ss:$0 sm:$0xff] (!%p175_p2) }
   0x8   : > { %1306 = vmatprep.subr.bf16.mxu0 (!%p175_p2), %v1377_v1  ;;  %1353 = vmatprep.subr.bf16.mxu1 (!%p175_p2), %v1377_v1 }
   0xb   : > { %1307 = vmatpush3.bf16.msra.mxu0 (!%p175_p2), %v1377_v1  ;;  %1361 = vmatpush3.bf16.msra.mxu1 (!%p175_p2), %v1377_v1 }
   0xc   : > { %1308 = vmatprep.subr.bf16.mxu0 (!%p175_p2), %v1378_v2  ;;  %1354 = vmatprep.subr.bf16.mxu1 (!%p175_p2), %v1378_v2 }
   0xd   : > { %s1702_s19 = smov (!%p206_p3, %s1009_s19), 63 }
   0xe   : > { %s1450_s24 = sshll.u32 %s1702_s19, 2 }
   0xf   : > { %s1456_s27 = scalar_lea.vmem %s1695_s0, %s1450_s24  ;;  %1309 = vmatpush3.bf16.msra.mxu0 %v1378_v2  ;;  %1362 = vmatpush3.bf16.msra.mxu1 %v1378_v2  ;;  %s1493_s14 = scalar_lea.vmem %s1698_s3, %s1450_s24 }
  0x10   : > { %v1384_v4 = vld [vmem:[%s1456_s27] sm:$0xff]   ;;  %1310 = vmatprep.subr.bf16.mxu0 %v1379_v3  ;;  %1355 = vmatprep.subr.bf16.mxu1 %v1379_v3  ;;  %v1386_v10 = vld [vmem:[%s1456_s27 + $0x8] sm:$0xff]   ;;  %v1388_v12 = vld [vmem:[%s1456_s27 + $0x10] sm:$0xff]   ;;  %s1592_s20 = scalar_lea.vmem %s1699_s4, %s1450_s24 }
  0x11   : > { %v1385_v5 = vld [vmem:[%s1456_s27 + $0x40] sm:$0xff]   ;;  %1320 = vmatprep.mubr.bf16.mxu0 %v1384_v4  ;;  %v1387_v11 = vld [vmem:[%s1456_s27 + $0x48] sm:$0xff]   ;;  %v1389_v13 = vld [vmem:[%s1456_s27 + $0x50] sm:$0xff]  }
  0x12   : > { %1336 = vmatprep.mubr.bf16.mxu1 %v1385_v5  ;;  %v1390_v14 = vld [vmem:[%s1456_s27 + $0x18] sm:$0xff]   ;;  %v1392_v16 = vld [vmem:[%s1456_s27 + $0x20] sm:$0xff]   ;;  %v1394_v18 = vld [vmem:[%s1456_s27 + $0x28] sm:$0xff]  }
  0x13   : > { %1311 = vmatpush3.bf16.msra.mxu0 %v1379_v3  ;;  %1363 = vmatpush3.bf16.msra.mxu1 %v1379_v3  ;;  %v1391_v15 = vld [vmem:[%s1456_s27 + $0x58] sm:$0xff]   ;;  %v1393_v17 = vld [vmem:[%s1456_s27 + $0x60] sm:$0xff]   ;;  %v1395_v19 = vld [vmem:[%s1456_s27 + $0x68] sm:$0xff]  }
  0x14   : > { %1312 = vmatprep.subr.bf16.mxu0 %v1380_v6  ;;  %1356 = vmatprep.subr.bf16.mxu1 %v1380_v6  ;;  %v1396_v20 = vld [vmem:[%s1456_s27 + $0x30] sm:$0xff]   ;;  %v1398_v22 = vld [vmem:[%s1456_s27 + $0x38] sm:$0xff]   ;;  %v1496_v24 = vld [vmem:[%s1493_s14 + $0x8] sm:$0xff]  }
  0x15   : > { %v1397_v21 = vld [vmem:[%s1456_s27 + $0x70] sm:$0xff]   ;;  %v1399_v23 = vld [vmem:[%s1456_s27 + $0x78] sm:$0xff]   ;;  %v1499_v25 = vld [vmem:[%s1493_s14 + $0x48] sm:$0xff]   ;;  %v1112_v30 = vunpack.c.l.bf16 %v1496_v24  ;;  %v1113_v36 = vunpack.c.h.bf16 %v1496_v24 }
  0x16   : > { %v1502_v26 = vld [vmem:[%s1493_s14] sm:$0xff]   ;;  %v1508_v28 = vld [vmem:[%s1493_s14 + $0x18] sm:$0xff]   ;;  %v1144_v31 = vunpack.c.l.bf16 %v1499_v25  ;;  %v1516_v32 = vld [vmem:[%s1493_s14 + $0x10] sm:$0xff]   ;;  %v1145_v37 = vunpack.c.h.bf16 %v1499_v25 }
  0x17   : > { %1313 = vmatpush3.bf16.msra.mxu0 %v1380_v6  ;;  %1364 = vmatpush3.bf16.msra.mxu1 %v1380_v6  ;;  %v1505_v27 = vld [vmem:[%s1493_s14 + $0x40] sm:$0xff]   ;;  %v1511_v29 = vld [vmem:[%s1493_s14 + $0x58] sm:$0xff]   ;;  %v1519_v33 = vld [vmem:[%s1493_s14 + $0x50] sm:$0xff]   ;;  %v1108_v34 = vunpack.c.l.bf16 %v1502_v26  ;;  %v1109_v40 = vunpack.c.h.bf16 %v1502_v26  ;;  %v1120_v42 = vunpack.c.l.bf16 %v1508_v28  ;;  %v1116_v47 = vunpack.c.l.bf16 %v1516_v32 }
  0x18   : > { %1314 = vmatprep.subr.bf16.mxu0 %v1381_v7  ;;  %1357 = vmatprep.subr.bf16.mxu1 %v1381_v7  ;;  %v1140_v35 = vunpack.c.l.bf16 %v1505_v27  ;;  %v1526_v38 = vld [vmem:[%s1493_s14 + $0x28] sm:$0xff]   ;;  %v1141_v41 = vunpack.c.h.bf16 %v1505_v27  ;;  %v1152_v43 = vunpack.c.l.bf16 %v1511_v29  ;;  %v1536_v44 = vld [vmem:[%s1493_s14 + $0x20] sm:$0xff]   ;;  %v1148_v48 = vunpack.c.l.bf16 %v1519_v33  ;;  %v1555_v55 = vld [vmem:[%s1493_s14 + $0x38] sm:$0xff]  }
  0x19   : > { %v1529_v39 = vld [vmem:[%s1493_s14 + $0x68] sm:$0xff]   ;;  %v1539_v45 = vld [vmem:[%s1493_s14 + $0x60] sm:$0xff]   ;;  %v1121_v49 = vunpack.c.h.bf16 %v1508_v28  ;;  %v1153_v50 = vunpack.c.h.bf16 %v1511_v29  ;;  %v1117_v51 = vunpack.c.h.bf16 %v1516_v32  ;;  %v1149_v52 = vunpack.c.h.bf16 %v1519_v33  ;;  %v1558_v56 = vld [vmem:[%s1493_s14 + $0x78] sm:$0xff]  }
  0x1a   : > { %v1128_v53 = vunpack.c.l.bf16 %v1526_v38  ;;  %v1160_v54 = vunpack.c.l.bf16 %v1529_v39  ;;  %v1124_v59 = vunpack.c.l.bf16 %v1536_v44  ;;  %v1156_v60 = vunpack.c.l.bf16 %v1539_v45 }
  0x1b   : > { %1315 = vmatpush3.bf16.msra.mxu0 %v1381_v7  ;;  %1365 = vmatpush3.bf16.msra.mxu1 %v1381_v7  ;;  %v1129_v61 = vunpack.c.h.bf16 %v1526_v38  ;;  %v1161_v62 = vunpack.c.h.bf16 %v1529_v39  ;;  %v1125_v3 = vunpack.c.h.bf16 %v1536_v44  ;;  %v1157_v4 = vunpack.c.h.bf16 %v1539_v45 }
  0x1c   : > { %1316 = vmatprep.subr.bf16.mxu0 %v1382_v8  ;;  %1358 = vmatprep.subr.bf16.mxu1 %v1382_v8  ;;  %v1169_v45 = vunpack.c.h.bf16 %v1558_v56 }
  0x1f   : > { %1317 = vmatpush3.bf16.msra.mxu0 %v1382_v8  ;;  %1366 = vmatpush3.bf16.msra.mxu1 %v1382_v8 }
  0x20   : > { %1318 = vmatprep.subr.bf16.mxu0 %v1383_v9  ;;  %1359 = vmatprep.subr.bf16.mxu1 %v1383_v9 }
  0x23   : > { %1319 = vmatpush3.bf16.msra.mxu0 %v1383_v9  ;;  %1367 = vmatpush3.bf16.msra.mxu1 %v1383_v9  ;;  %v1136_v9 = vunpack.c.l.bf16 %v1555_v55 }
  0x26   : > { %1321 = vmatmul.mubr.bf16.vlgmr.msra.gmra.mrb[0].mxu0 %v1386_v10  ;;  %1337 = vmatmul.mubr.bf16.vlgmr.msra.gmra.mrb[0].mxu1 %v1387_v11  ;;  %v1573_v11 = vld [vmem:[%s1493_s14 + $0x30] sm:$0xff]  }
  0x27   : > { %1324 = vmatprep.mubr.bf16.mxu0 %v1388_v12  ;;  %1340 = vmatprep.mubr.bf16.mxu1 %v1389_v13 }
  0x2e   : > { %1325 = vmatmul.mubr.bf16.gmra.mrb[4].mxu0 %v1390_v14  ;;  %1341 = vmatmul.mubr.bf16.gmra.mrb[4].mxu1 %v1391_v15 }
  0x2f   : > { %1328 = vmatprep.mubr.bf16.mxu0 %v1392_v16  ;;  %1344 = vmatprep.mubr.bf16.mxu1 %v1393_v17 }
  0x36   : > { %1329 = vmatmul.mubr.bf16.gmra.mrb[8].mxu0 %v1394_v18  ;;  %1345 = vmatmul.mubr.bf16.gmra.mrb[8].mxu1 %v1395_v19 }
  0x37   : > { %1332 = vmatprep.mubr.bf16.mxu0 %v1396_v20  ;;  %1348 = vmatprep.mubr.bf16.mxu1 %v1397_v21 }
  0x3e   : > { %1333 = vmatmul.mubr.bf16.gmra.mrb[12].mxu0 %v1398_v22  ;;  %1349 = vmatmul.mubr.bf16.gmra.mrb[12].mxu1 %v1399_v23 }
  0xf9   : > { %v1322_v57 = vpop.f32.mrb[0].mxu0  ;;  %v1338_v58 = vpop.f32.mrb[0].mxu1 }
  0xfa   : > { %v466_v63 = vadd.f32 %v1322_v57, %v1544_v46  ;;  %v530_v0 = vadd.f32 %v1338_v58, %v1544_v46  ;;  %v457_v1 = vpop.f32.mrb[1].mxu0  ;;  %v521_v2 = vpop.f32.mrb[1].mxu1  ;;  %v1132_v58 = vunpack.c.l.bf16 %v1573_v11 }
  0xfb   : > { %v458_v5 = vadd.f32 %v1544_v46, %v457_v1  ;;  %v522_v6 = vadd.f32 %v1544_v46, %v521_v2  ;;  %v1323_v7 = vpop.f32.mrb[2].mxu0  ;;  %v1339_v8 = vpop.f32.mrb[2].mxu1 }
  0xfc   : > { %vm586_vm0 = vcmp.ge.f32.partialorder %v466_v63, 0.0  ;;  %v618_v12 = vmul.f32 0.2, %v466_v63  ;;  %vm602_vm1 = vcmp.ge.f32.partialorder %v530_v0, 0.0  ;;  %v634_v13 = vmul.f32 0.2, %v530_v0 }
  0xfd   : > { %vm584_vm2 = vcmp.ge.f32.partialorder %v458_v5, 0.0  ;;  %v616_v14 = vmul.f32 0.2, %v458_v5  ;;  %vm600_vm3 = vcmp.ge.f32.partialorder %v522_v6, 0.0  ;;  %v632_v15 = vmul.f32 0.2, %v522_v6 }
  0xfe   : > { %v650_v16 = vsel %vm586_vm0, %v466_v63, %v618_v12  ;;  %v666_v17 = vsel %vm602_vm1, %v530_v0, %v634_v13  ;;  %v469_v18 = vadd.f32 %v1323_v7, %v1544_v46  ;;  %v533_v19 = vadd.f32 %v1339_v8, %v1544_v46  ;;  %v460_v20 = vpop.f32.mrb[3].mxu0  ;;  %v524_v21 = vpop.f32.mrb[3].mxu1 }
  0xff   : > { %v746_v22 = vadd.f32 %v1112_v30, %v650_v16  ;;  %v648_v23 = vsel %vm584_vm2, %v458_v5, %v616_v14  ;;  %v664_v57 = vsel %vm600_vm3, %v522_v6, %v632_v15  ;;  %v762_v1 = vadd.f32 %v1144_v31, %v666_v17 }
 0x100   : > { %v744_v2 = vadd.f32 %v1108_v34, %v648_v23  ;;  %vm587_vm4 = vcmp.ge.f32.partialorder %v469_v18, 0.0  ;;  %v619_v10 = vmul.f32 0.2, %v469_v18  ;;  %vm603_vm5 = vcmp.ge.f32.partialorder %v533_v19, 0.0  ;;  %v1597_v23 = vld [vmem:[%s1493_s14 + $0x70] sm:$0xff]  }
 0x101   : > { %v635_v63 = vmul.f32 0.2, %v533_v19  ;;  %v461_v0 = vadd.f32 %v1544_v46, %v460_v20  ;;  %v525_v7 = vadd.f32 %v1544_v46, %v524_v21  ;;  %v1326_v8 = vpop.f32.mrb[4].mxu0  ;;  %v1342_v12 = vpop.f32.mrb[4].mxu1  ;;  %v760_v30 = vadd.f32 %v1140_v35, %v664_v57 }
 0x102   : > { %v651_v5 = vsel %vm587_vm4, %v469_v18, %v619_v10  ;;  %v482_v6 = vadd.f32 %v1326_v8, %v1544_v46  ;;  %v546_v31 = vadd.f32 %v1342_v12, %v1544_v46  ;;  %v473_v34 = vpop.f32.mrb[5].mxu0  ;;  %v537_v13 = vpop.f32.mrb[5].mxu1 }
 0x103   : > { %v747_v14 = vadd.f32 %v1113_v36, %v651_v5  ;;  %v667_v15 = vsel %vm603_vm5, %v533_v19, %v635_v63  ;;  %vm585_vm6 = vcmp.ge.f32.partialorder %v461_v0, 0.0  ;;  %v617_v16 = vmul.f32 0.2, %v461_v0  ;;  %v1327_v17 = vpop.f32.mrb[6].mxu0  ;;  %v1343_v20 = vpop.f32.mrb[6].mxu1 }
 0x104   : > { %v763_v35 = vadd.f32 %v1145_v37, %v667_v15  ;;  %vm601_vm7 = vcmp.ge.f32.partialorder %v525_v7, 0.0  ;;  %v633_v10 = vmul.f32 0.2, %v525_v7  ;;  %vm590_vm8 = vcmp.ge.f32.partialorder %v482_v6, 0.0  ;;  %v476_v24 = vpop.f32.mrb[7].mxu0  ;;  %v540_v36 = vpop.f32.mrb[7].mxu1 }
 0x105   : > { %v1178_v18 = vpack.c.bf16 %v747_v14, %v746_v22  ;;  %v649_v19 = vsel %vm585_vm6, %v461_v0, %v617_v16  ;;  %v622_v21 = vmul.f32 0.2, %v482_v6  ;;  %vm606_vm9 = vcmp.ge.f32.partialorder %v546_v31, 0.0 }
 0x106   : > { %v1218_v57 = vpack.c.bf16 %v763_v35, %v762_v1  ;;  %v745_v63 = vadd.f32 %v1109_v40, %v649_v19  ;;  %v665_v8 = vsel %vm601_vm7, %v525_v7, %v633_v10  ;;  %v638_v25 = vmul.f32 0.2, %v546_v31 }
 0x107   : > { %1265 = vst [vmem:[%s1592_s20 + $0x8] sm:$0xff] %v1178_v18   ;;  %v761_v37 = vadd.f32 %v1141_v41, %v665_v8  ;;  %v654_v12 = vsel %vm590_vm8, %v482_v6, %v622_v21  ;;  %v474_v5 = vadd.f32 %v1544_v46, %v473_v34  ;;  %v538_v22 = vadd.f32 %v1544_v46, %v537_v13 }
 0x108   : > { %1273 = vst [vmem:[%s1592_s20 + $0x48] sm:$0xff] %v1218_v57   ;;  %v1173_v0 = vpack.c.bf16 %v745_v63, %v744_v2  ;;  %v750_v1 = vadd.f32 %v1120_v42, %v654_v12  ;;  %v485_v26 = vadd.f32 %v1327_v17, %v1544_v46  ;;  %v1164_v40 = vunpack.c.l.bf16 %v1597_v23 }
 0x109   : > { %v1213_v7 = vpack.c.bf16 %v761_v37, %v760_v30  ;;  %v670_v27 = vsel %vm606_vm9, %v546_v31, %v638_v25  ;;  %vm588_vm10 = vcmp.ge.f32.partialorder %v474_v5, 0.0  ;;  %v620_v41 = vmul.f32 0.2, %v474_v5  ;;  %v1330_v6 = vpop.f32.mrb[8].mxu0  ;;  %v1346_v14 = vpop.f32.mrb[8].mxu1 }
 0x10a   : > { %1174 = vst [vmem:[%s1592_s20] sm:$0xff] %v1173_v0   ;;  %vm604_vm11 = vcmp.ge.f32.partialorder %v538_v22, 0.0  ;;  %v636_v34 = vmul.f32 0.2, %v538_v22  ;;  %vm591_vm12 = vcmp.ge.f32.partialorder %v485_v26, 0.0  ;;  %v623_v13 = vmul.f32 0.2, %v485_v26 }
 0x10b   : > { %1272 = vst [vmem:[%s1592_s20 + $0x40] sm:$0xff] %v1213_v7   ;;  %v652_v2 = vsel %vm588_vm10, %v474_v5, %v620_v41  ;;  %v549_v42 = vadd.f32 %v1343_v20, %v1544_v46  ;;  %v477_v15 = vadd.f32 %v1544_v46, %v476_v24  ;;  %v541_v16 = vadd.f32 %v1544_v46, %v540_v36  ;;  %v489_v30 = vpop.f32.mrb[9].mxu0  ;;  %v553_v17 = vpop.f32.mrb[9].mxu1 }
 0x10c   : > { %v766_v31 = vadd.f32 %v1152_v43, %v670_v27  ;;  %v748_v35 = vadd.f32 %v1116_v47, %v652_v2  ;;  %v655_v10 = vsel %vm591_vm12, %v485_v26, %v623_v13  ;;  %v498_v18 = vadd.f32 %v1330_v6, %v1544_v46  ;;  %v1331_v19 = vpop.f32.mrb[10].mxu0  ;;  %v1347_v21 = vpop.f32.mrb[10].mxu1 }
 0x10d   : > { %v668_v57 = vsel %vm604_vm11, %v538_v22, %v636_v34  ;;  %v751_v20 = vadd.f32 %v1121_v49, %v655_v10  ;;  %vm607_vm13 = vcmp.ge.f32.partialorder %v549_v42, 0.0  ;;  %v639_v24 = vmul.f32 0.2, %v549_v42  ;;  %v492_v36 = vpop.f32.mrb[11].mxu0  ;;  %v556_v63 = vpop.f32.mrb[11].mxu1 }
 0x10e   : > { %vm589_vm14 = vcmp.ge.f32.partialorder %v477_v15, 0.0  ;;  %v621_v43 = vmul.f32 0.2, %v477_v15  ;;  %vm605_vm15 = vcmp.ge.f32.partialorder %v541_v16, 0.0  ;;  %v637_v8 = vmul.f32 0.2, %v541_v16 }
 0x10f   : > { %v1188_v47 = vpack.c.bf16 %v751_v20, %v750_v1  ;;  %v671_v25 = vsel %vm607_vm13, %v549_v42, %v639_v24  ;;  %vm594_vm0 = vcmp.ge.f32.partialorder %v498_v18, 0.0  ;;  %v626_v37 = vmul.f32 0.2, %v498_v18 }
 0x110   : > { %v767_v12 = vadd.f32 %v1153_v50, %v671_v25  ;;  %v653_v5 = vsel %vm589_vm14, %v477_v15, %v621_v43  ;;  %v669_v22 = vsel %vm605_vm15, %v541_v16, %v637_v8  ;;  %v562_v28 = vadd.f32 %v1346_v14, %v1544_v46 }
 0x111   : > { %v764_v49 = vadd.f32 %v1148_v48, %v668_v57  ;;  %1267 = vst [vmem:[%s1592_s20 + $0x18] sm:$0xff] %v1188_v47   ;;  %v749_v0 = vadd.f32 %v1117_v51, %v653_v5  ;;  %v765_v1 = vadd.f32 %v1149_v52, %v669_v22  ;;  %v490_v26 = vadd.f32 %v1544_v46, %v489_v30  ;;  %v1334_v7 = vpop.f32.mrb[12].mxu0  ;;  %v1350_v29 = vpop.f32.mrb[12].mxu1 }
 0x112   : > { %v1228_v50 = vpack.c.bf16 %v767_v12, %v766_v31  ;;  %v658_v27 = vsel %vm594_vm0, %v498_v18, %v626_v37  ;;  %vm610_vm1 = vcmp.ge.f32.partialorder %v562_v28, 0.0  ;;  %v642_v41 = vmul.f32 0.2, %v562_v28  ;;  %v505_v6 = vpop.f32.mrb[13].mxu0  ;;  %v569_v48 = vpop.f32.mrb[13].mxu1 }
 0x113   : > { %v1183_v14 = vpack.c.bf16 %v749_v0, %v748_v35  ;;  %v1223_v34 = vpack.c.bf16 %v765_v1, %v764_v49  ;;  %vm592_vm2 = vcmp.ge.f32.partialorder %v490_v26, 0.0  ;;  %v624_v32 = vmul.f32 0.2, %v490_v26  ;;  %v1335_v51 = vpop.f32.mrb[14].mxu0  ;;  %v1351_v33 = vpop.f32.mrb[14].mxu1 }
 0x114   : > { %1275 = vst [vmem:[%s1592_s20 + $0x58] sm:$0xff] %v1228_v50   ;;  %v554_v52 = vadd.f32 %v1544_v46, %v553_v17  ;;  %v501_v13 = vadd.f32 %v1331_v19, %v1544_v46  ;;  %v565_v2 = vadd.f32 %v1347_v21, %v1544_v46  ;;  %v1137_v42 = vunpack.c.h.bf16 %v1555_v55  ;;  %v508_v15 = vpop.f32.mrb[15].mxu0  ;;  %v572_v16 = vpop.f32.mrb[15].mxu1 }
 0x115   : > { %1266 = vst [vmem:[%s1592_s20 + $0x10] sm:$0xff] %v1183_v14   ;;  %1274 = vst [vmem:[%s1592_s20 + $0x50] sm:$0xff] %v1223_v34   ;;  %v754_v30 = vadd.f32 %v1128_v53, %v658_v27  ;;  %v674_v31 = vsel %vm610_vm1, %v562_v28, %v642_v41  ;;  %v493_v35 = vadd.f32 %v1544_v46, %v492_v36  ;;  %v1165_v27 = vunpack.c.h.bf16 %v1597_v23 }
 0x116   : > { %v557_v10 = vadd.f32 %v1544_v46, %v556_v63  ;;  %v656_v17 = vsel %vm592_vm2, %v490_v26, %v624_v32  ;;  %vm608_vm3 = vcmp.ge.f32.partialorder %v554_v52, 0.0  ;;  %v640_v18 = vmul.f32 0.2, %v554_v52 }
 0x117   : > { %vm595_vm4 = vcmp.ge.f32.partialorder %v501_v13, 0.0  ;;  %v627_v19 = vmul.f32 0.2, %v501_v13  ;;  %vm611_vm5 = vcmp.ge.f32.partialorder %v565_v2, 0.0  ;;  %v643_v21 = vmul.f32 0.2, %v565_v2 }
 0x118   : > { %vm593_vm6 = vcmp.ge.f32.partialorder %v493_v35, 0.0  ;;  %v672_v57 = vsel %vm608_vm3, %v554_v52, %v640_v18  ;;  %v625_v20 = vmul.f32 0.2, %v493_v35  ;;  %vm609_vm7 = vcmp.ge.f32.partialorder %v557_v10, 0.0 }
 0x119   : > { %v641_v24 = vmul.f32 0.2, %v557_v10  ;;  %v770_v53 = vadd.f32 %v1160_v54, %v674_v31  ;;  %v659_v43 = vsel %vm595_vm4, %v501_v13, %v627_v19  ;;  %v675_v36 = vsel %vm611_vm5, %v565_v2, %v643_v21 }
 0x11a   : > { %v514_v63 = vadd.f32 %v1334_v7, %v1544_v46  ;;  %v755_v8 = vadd.f32 %v1129_v61, %v659_v43  ;;  %v771_v47 = vadd.f32 %v1161_v62, %v675_v36  ;;  %v657_v25 = vsel %vm593_vm6, %v493_v35, %v625_v20 }
 0x11b   : > { %v673_v37 = vsel %vm609_vm7, %v557_v10, %v641_v24  ;;  %v752_v12 = vadd.f32 %v1124_v59, %v656_v17  ;;  %v768_v54 = vadd.f32 %v1156_v60, %v672_v57  ;;  %v753_v5 = vadd.f32 %v1125_v3, %v657_v25 }
 0x11c   : > { %v769_v38 = vadd.f32 %v1157_v4, %v673_v37  ;;  %v1198_v39 = vpack.c.bf16 %v755_v8, %v754_v30  ;;  %v1238_v61 = vpack.c.bf16 %v771_v47, %v770_v53  ;;  %v578_v62 = vadd.f32 %v1350_v29, %v1544_v46 }
 0x11d   : > { %v506_v22 = vadd.f32 %v1544_v46, %v505_v6  ;;  %v1193_v28 = vpack.c.bf16 %v753_v5, %v752_v12  ;;  %v630_v59 = vmul.f32 0.2, %v514_v63  ;;  %v570_v0 = vadd.f32 %v1544_v46, %v569_v48 }
 0x11e   : > { %v1233_v49 = vpack.c.bf16 %v769_v38, %v768_v54  ;;  %1269 = vst [vmem:[%s1592_s20 + $0x28] sm:$0xff] %v1198_v39   ;;  %1277 = vst [vmem:[%s1592_s20 + $0x68] sm:$0xff] %v1238_v61   ;;  %vm598_vm8 = vcmp.ge.f32.partialorder %v514_v63, 0.0  ;;  %v646_v44 = vmul.f32 0.2, %v578_v62  ;;  %v1133_v60 = vunpack.c.h.bf16 %v1573_v11 }
 0x11f   : > { %1268 = vst [vmem:[%s1592_s20 + $0x20] sm:$0xff] %v1193_v28   ;;  %vm614_vm9 = vcmp.ge.f32.partialorder %v578_v62, 0.0  ;;  %vm596_vm10 = vcmp.ge.f32.partialorder %v506_v22, 0.0  ;;  %v628_v3 = vmul.f32 0.2, %v506_v22  ;;  %v517_v4 = vadd.f32 %v1335_v51, %v1544_v46 }
 0x120   : > { %1276 = vst [vmem:[%s1592_s20 + $0x60] sm:$0xff] %v1233_v49   ;;  %v644_v1 = vmul.f32 0.2, %v570_v0  ;;  %v581_v26 = vadd.f32 %v1351_v33, %v1544_v46  ;;  %v509_v7 = vadd.f32 %v1544_v46, %v508_v15  ;;  %v573_v29 = vadd.f32 %v1544_v46, %v572_v16 }
 0x121   : > { %v662_v50 = vsel %vm598_vm8, %v514_v63, %v630_v59  ;;  %vm612_vm11 = vcmp.ge.f32.partialorder %v570_v0, 0.0  ;;  %vm599_vm12 = vcmp.ge.f32.partialorder %v517_v4, 0.0  ;;  %v678_v41 = vsel %vm614_vm9, %v578_v62, %v646_v44 }
 0x122   : > { %v660_v6 = vsel %vm596_vm10, %v506_v22, %v628_v3  ;;  %v631_v48 = vmul.f32 0.2, %v517_v4  ;;  %vm615_vm13 = vcmp.ge.f32.partialorder %v581_v26, 0.0  ;;  %v647_v14 = vmul.f32 0.2, %v581_v26 }
 0x123   : > { %vm597_vm14 = vcmp.ge.f32.partialorder %v509_v7, 0.0  ;;  %v629_v34 = vmul.f32 0.2, %v509_v7  ;;  %vm613_vm15 = vcmp.ge.f32.partialorder %v573_v29, 0.0  ;;  %v758_v32 = vadd.f32 %v1136_v9, %v662_v50 }
 0x124   : > { %v676_v51 = vsel %vm612_vm11, %v570_v0, %v644_v1  ;;  %v663_v33 = vsel %vm599_vm12, %v517_v4, %v631_v48  ;;  %v645_v46 = vmul.f32 0.2, %v573_v29  ;;  %v1700_v52 = vunpack.c.l.bf16 %v1558_v56 }
 0x125   : > { %v759_v2 = vadd.f32 %v1137_v42, %v663_v33  ;;  %v679_v15 = vsel %vm615_vm13, %v581_v26, %v647_v14  ;;  %v661_v16 = vsel %vm597_vm14, %v509_v7, %v629_v34  ;;  %v756_v30 = vadd.f32 %v1132_v58, %v660_v6 }
 0x126   : > { %v774_v13 = vadd.f32 %v1700_v52, %v678_v41  ;;  %v775_v31 = vadd.f32 %v1169_v45, %v679_v15  ;;  %v757_v9 = vadd.f32 %v1133_v60, %v661_v16  ;;  %v677_v35 = vsel %vm613_vm15, %v573_v29, %v645_v46 }
 0x127   : > { %v772_v10 = vadd.f32 %v1164_v40, %v676_v51  ;;  %v1208_v17 = vpack.c.bf16 %v759_v2, %v758_v32  ;;  %v773_v56 = vadd.f32 %v1165_v27, %v677_v35 }
 0x128   : > { %v1248_v18 = vpack.c.bf16 %v775_v31, %v774_v13  ;;  %v1203_v19 = vpack.c.bf16 %v757_v9, %v756_v30 }
 0x129   : > { %1271 = vst [vmem:[%s1592_s20 + $0x38] sm:$0xff] %v1208_v17   ;;  %v1243_v55 = vpack.c.bf16 %v773_v56, %v772_v10 }
 0x12a   : > { %1279 = vst [vmem:[%s1592_s20 + $0x78] sm:$0xff] %v1248_v18   ;;  %1270 = vst [vmem:[%s1592_s20 + $0x30] sm:$0xff] %v1203_v19  }
 0x12b   : > { %1278 = vst [vmem:[%s1592_s20 + $0x70] sm:$0xff] %v1243_v55  }
 0x12c PF: > { %s14_s15 = sadd.s32 1, %s1406_s15  }
 0x12d   : > { %p11_p4 = scmp.ge.s32.totalorder %s14_s15, 4  }
 0x12f   :  { %13 = sbr.rel (!%p11_p4) target bundleno = 1 (0x1), region = 69 }

// kernel: unet_forward.60
= control target key start
LH: loop header
LB: loop body
LE: loop exit
PB: predicated region body
PF: predicated region fallthrough
CT: control target
= control target key end

     0   :  { %s807_s12 = smov 0   ;;  %s941_s0 = inlined_call_operand.vmem [shape: bf16[512,128], index: 0, kind: input, shape index: {}]   ;;  %s942_s1 = inlined_call_operand.vmem [shape: bf16[128,128], index: 1, kind: input, shape index: {}]   ;;  %s943_s2 = inlined_call_operand.vmem [shape: f32[1,128], index: 2, kind: input, shape index: {}]   ;;  %s944_s3 = inlined_call_operand.vmem [shape: f32[512,128], index: 3, kind: output, shape index: {}]  }
   0x1 LB: > { %s623_s13 = sadd.s32 4294967295, %s785_s12   ;;  %p627_p0 = scmp.ge.s32.totalorder %s785_s12, 1  ;;  %s785_s12 = sphi %s807_s12, %s13_s12  }
   0x2   : > { %p138_p1 = scmp.lt.s32.totalorder %s785_s12, 3 }
   0x4   : > { %p139_p2 = pnand %p627_p0, %p138_p1 }
   0x5   : > { %v755_v0 = vld [vmem:[%s942_s1] sm:$0xff] (!%p139_p2)   ;;  %s628_s16 = sshll.u32 (!%p139_p2), %s623_s13, 5  ;;  %v756_v1 = vld [vmem:[%s942_s1 + $0x8] sm:$0xff] (!%p139_p2)   ;;  %v757_v2 = vld [vmem:[%s942_s1 + $0x10] sm:$0xff] (!%p139_p2)  }
   0x6   : > { %142 = sbr.rel (%p139_p2) target bundleno = 280 (0x118), region = 32  ;;  %p163_p3 = scmp.lt.s32.totalorder (!%p139_p2), %s628_s16, 63  ;;  %683 = vmatprep.subr.bf16.mxu0 (!%p139_p2), %v755_v0  ;;  %731 = vmatprep.subr.bf16.mxu1 (!%p139_p2), %v755_v0  ;;  %v758_v3 = vld [vmem:[%s942_s1 + $0x18] sm:$0xff] (!%p139_p2)   ;;  %v759_v6 = vld [vmem:[%s942_s1 + $0x20] sm:$0xff] (!%p139_p2)   ;;  %v760_v7 = vld [vmem:[%s942_s1 + $0x28] sm:$0xff] (!%p139_p2)  }
   0x7   : > { %684 = vmatpush3.bf16.msra.mxu0 (!%p139_p2), %v755_v0  ;;  %739 = vmatpush3.bf16.msra.mxu1 (!%p139_p2), %v755_v0  ;;  %v761_v8 = vld [vmem:[%s942_s1 + $0x30] sm:$0xff] (!%p139_p2)   ;;  %v762_v9 = vld [vmem:[%s942_s1 + $0x38] sm:$0xff] (!%p139_p2)   ;;  %v867_v24 = vld [vmem:[%s943_s2] ss:$0 sm:$0xff] (!%p139_p2) }
   0x8   : > { %685 = vmatprep.subr.bf16.mxu0 (!%p139_p2), %v756_v1  ;;  %732 = vmatprep.subr.bf16.mxu1 (!%p139_p2), %v756_v1 }
   0xb   : > { %686 = vmatpush3.bf16.msra.mxu0 (!%p139_p2), %v756_v1  ;;  %740 = vmatpush3.bf16.msra.mxu1 (!%p139_p2), %v756_v1 }
   0xc   : > { %687 = vmatprep.subr.bf16.mxu0 (!%p139_p2), %v757_v2  ;;  %733 = vmatprep.subr.bf16.mxu1 (!%p139_p2), %v757_v2 }
   0xd   : > { %s946_s16 = smov (!%p163_p3, %s628_s16), 63 }
   0xe   : > { %s629_s21 = sshll.u32 %s946_s16, 2  ;;  %s631_s8 = sshll.u32 %s946_s16, 3 }
   0xf   : > { %s830_s24 = scalar_lea.vmem %s941_s0, %s629_s21  ;;  %688 = vmatpush3.bf16.msra.mxu0 %v757_v2  ;;  %741 = vmatpush3.bf16.msra.mxu1 %v757_v2  ;;  %s872_s14 = scalar_lea.vmem %s944_s3, %s631_s8 }
  0x10   : > { %v763_v4 = vld [vmem:[%s830_s24] sm:$0xff]   ;;  %689 = vmatprep.subr.bf16.mxu0 %v758_v3  ;;  %734 = vmatprep.subr.bf16.mxu1 %v758_v3  ;;  %v765_v10 = vld [vmem:[%s830_s24 + $0x8] sm:$0xff]   ;;  %v767_v12 = vld [vmem:[%s830_s24 + $0x10] sm:$0xff]  }
  0x11   : > { %v764_v5 = vld [vmem:[%s830_s24 + $0x40] sm:$0xff]   ;;  %699 = vmatprep.mubr.bf16.mxu0 %v763_v4  ;;  %v766_v11 = vld [vmem:[%s830_s24 + $0x48] sm:$0xff]   ;;  %v768_v13 = vld [vmem:[%s830_s24 + $0x50] sm:$0xff]  }
  0x12   : > { %715 = vmatprep.mubr.bf16.mxu1 %v764_v5  ;;  %v769_v14 = vld [vmem:[%s830_s24 + $0x18] sm:$0xff]   ;;  %v771_v16 = vld [vmem:[%s830_s24 + $0x20] sm:$0xff]   ;;  %v773_v18 = vld [vmem:[%s830_s24 + $0x28] sm:$0xff]  }
  0x13   : > { %690 = vmatpush3.bf16.msra.mxu0 %v758_v3  ;;  %742 = vmatpush3.bf16.msra.mxu1 %v758_v3  ;;  %v770_v15 = vld [vmem:[%s830_s24 + $0x58] sm:$0xff]   ;;  %v772_v17 = vld [vmem:[%s830_s24 + $0x60] sm:$0xff]   ;;  %v774_v19 = vld [vmem:[%s830_s24 + $0x68] sm:$0xff]  }
  0x14   : > { %691 = vmatprep.subr.bf16.mxu0 %v759_v6  ;;  %735 = vmatprep.subr.bf16.mxu1 %v759_v6  ;;  %v775_v20 = vld [vmem:[%s830_s24 + $0x30] sm:$0xff]   ;;  %v777_v22 = vld [vmem:[%s830_s24 + $0x38] sm:$0xff]  }
  0x15   : > { %v776_v21 = vld [vmem:[%s830_s24 + $0x70] sm:$0xff]   ;;  %v778_v23 = vld [vmem:[%s830_s24 + $0x78] sm:$0xff]  }
  0x17   : > { %692 = vmatpush3.bf16.msra.mxu0 %v759_v6  ;;  %743 = vmatpush3.bf16.msra.mxu1 %v759_v6 }
  0x18   : > { %693 = vmatprep.subr.bf16.mxu0 %v760_v7  ;;  %736 = vmatprep.subr.bf16.mxu1 %v760_v7 }
  0x1b   : > { %694 = vmatpush3.bf16.msra.mxu0 %v760_v7  ;;  %744 = vmatpush3.bf16.msra.mxu1 %v760_v7 }
  0x1c   : > { %695 = vmatprep.subr.bf16.mxu0 %v761_v8  ;;  %737 = vmatprep.subr.bf16.mxu1 %v761_v8 }
  0x1f   : > { %696 = vmatpush3.bf16.msra.mxu0 %v761_v8  ;;  %745 = vmatpush3.bf16.msra.mxu1 %v761_v8 }
  0x20   : > { %697 = vmatprep.subr.bf16.mxu0 %v762_v9  ;;  %738 = vmatprep.subr.bf16.mxu1 %v762_v9 }
  0x23   : > { %698 = vmatpush3.bf16.msra.mxu0 %v762_v9  ;;  %746 = vmatpush3.bf16.msra.mxu1 %v762_v9 }
  0x26   : > { %700 = vmatmul.mubr.bf16.vlgmr.msra.gmra.mrb[0].mxu0 %v765_v10  ;;  %716 = vmatmul.mubr.bf16.vlgmr.msra.gmra.mrb[0].mxu1 %v766_v11 }
  0x27   : > { %703 = vmatprep.mubr.bf16.mxu0 %v767_v12  ;;  %719 = vmatprep.mubr.bf16.mxu1 %v768_v13 }
  0x2e   : > { %704 = vmatmul.mubr.bf16.gmra.mrb[4].mxu0 %v769_v14  ;;  %720 = vmatmul.mubr.bf16.gmra.mrb[4].mxu1 %v770_v15 }
  0x2f   : > { %707 = vmatprep.mubr.bf16.mxu0 %v771_v16  ;;  %723 = vmatprep.mubr.bf16.mxu1 %v772_v17 }
  0x36   : > { %708 = vmatmul.mubr.bf16.gmra.mrb[8].mxu0 %v773_v18  ;;  %724 = vmatmul.mubr.bf16.gmra.mrb[8].mxu1 %v774_v19 }
  0x37   : > { %711 = vmatprep.mubr.bf16.mxu0 %v775_v20  ;;  %727 = vmatprep.mubr.bf16.mxu1 %v776_v21 }
  0x3e   : > { %712 = vmatmul.mubr.bf16.gmra.mrb[12].mxu0 %v777_v22  ;;  %728 = vmatmul.mubr.bf16.gmra.mrb[12].mxu1 %v778_v23 }
  0xf9   : > { %v701_v25 = vpop.f32.mrb[0].mxu0  ;;  %v717_v26 = vpop.f32.mrb[0].mxu1 }
  0xfa   : > { %v417_v27 = vadd.f32 %v701_v25, %v867_v24  ;;  %v481_v28 = vadd.f32 %v717_v26, %v867_v24  ;;  %v408_v29 = vpop.f32.mrb[1].mxu0  ;;  %v472_v30 = vpop.f32.mrb[1].mxu1 }
  0xfb   : > { %v409_v31 = vadd.f32 %v867_v24, %v408_v29  ;;  %v473_v32 = vadd.f32 %v867_v24, %v472_v30  ;;  %v702_v33 = vpop.f32.mrb[2].mxu0  ;;  %v718_v34 = vpop.f32.mrb[2].mxu1 }
  0xfc   : > { %537 = vst [vmem:[%s872_s14 + $0x10] sm:$0xff] %v417_v27  ;;  %553 = vst [vmem:[%s872_s14 + $0x90] sm:$0xff] %v481_v28  ;;  %v420_v35 = vadd.f32 %v702_v33, %v867_v24  ;;  %v484_v36 = vadd.f32 %v718_v34, %v867_v24  ;;  %v411_v37 = vpop.f32.mrb[3].mxu0  ;;  %v475_v38 = vpop.f32.mrb[3].mxu1 }
  0xfd   : > { %535 = vst [vmem:[%s872_s14] sm:$0xff] %v409_v31  ;;  %551 = vst [vmem:[%s872_s14 + $0x80] sm:$0xff] %v473_v32  ;;  %v412_v39 = vadd.f32 %v867_v24, %v411_v37  ;;  %v476_v40 = vadd.f32 %v867_v24, %v475_v38 }
  0xfe   : > { %538 = vst [vmem:[%s872_s14 + $0x18] sm:$0xff] %v420_v35  ;;  %554 = vst [vmem:[%s872_s14 + $0x98] sm:$0xff] %v484_v36 }
  0xff   : > { %536 = vst [vmem:[%s872_s14 + $0x8] sm:$0xff] %v412_v39  ;;  %552 = vst [vmem:[%s872_s14 + $0x88] sm:$0xff] %v476_v40 }
 0x101   : > { %v705_v41 = vpop.f32.mrb[4].mxu0  ;;  %v721_v42 = vpop.f32.mrb[4].mxu1 }
 0x102   : > { %v433_v43 = vadd.f32 %v705_v41, %v867_v24  ;;  %v497_v44 = vadd.f32 %v721_v42, %v867_v24  ;;  %v424_v45 = vpop.f32.mrb[5].mxu0  ;;  %v488_v46 = vpop.f32.mrb[5].mxu1 }
 0x103   : > { %v425_v47 = vadd.f32 %v867_v24, %v424_v45  ;;  %v489_v48 = vadd.f32 %v867_v24, %v488_v46  ;;  %v706_v49 = vpop.f32.mrb[6].mxu0  ;;  %v722_v50 = vpop.f32.mrb[6].mxu1 }
 0x104   : > { %541 = vst [vmem:[%s872_s14 + $0x30] sm:$0xff] %v433_v43  ;;  %557 = vst [vmem:[%s872_s14 + $0xb0] sm:$0xff] %v497_v44  ;;  %v436_v51 = vadd.f32 %v706_v49, %v867_v24  ;;  %v500_v52 = vadd.f32 %v722_v50, %v867_v24  ;;  %v427_v53 = vpop.f32.mrb[7].mxu0  ;;  %v491_v54 = vpop.f32.mrb[7].mxu1 }
 0x105   : > { %539 = vst [vmem:[%s872_s14 + $0x20] sm:$0xff] %v425_v47  ;;  %555 = vst [vmem:[%s872_s14 + $0xa0] sm:$0xff] %v489_v48  ;;  %v428_v55 = vadd.f32 %v867_v24, %v427_v53  ;;  %v492_v56 = vadd.f32 %v867_v24, %v491_v54 }
 0x106   : > { %542 = vst [vmem:[%s872_s14 + $0x38] sm:$0xff] %v436_v51  ;;  %558 = vst [vmem:[%s872_s14 + $0xb8] sm:$0xff] %v500_v52 }
 0x107   : > { %540 = vst [vmem:[%s872_s14 + $0x28] sm:$0xff] %v428_v55  ;;  %556 = vst [vmem:[%s872_s14 + $0xa8] sm:$0xff] %v492_v56 }
 0x109   : > { %v709_v57 = vpop.f32.mrb[8].mxu0  ;;  %v725_v58 = vpop.f32.mrb[8].mxu1 }
 0x10a   : > { %v449_v59 = vadd.f32 %v709_v57, %v867_v24  ;;  %v513_v60 = vadd.f32 %v725_v58, %v867_v24  ;;  %v440_v61 = vpop.f32.mrb[9].mxu0  ;;  %v504_v62 = vpop.f32.mrb[9].mxu1 }
 0x10b   : > { %v441_v63 = vadd.f32 %v867_v24, %v440_v61  ;;  %v505_v0 = vadd.f32 %v867_v24, %v504_v62  ;;  %v710_v1 = vpop.f32.mrb[10].mxu0  ;;  %v726_v2 = vpop.f32.mrb[10].mxu1 }
 0x10c   : > { %545 = vst [vmem:[%s872_s14 + $0x50] sm:$0xff] %v449_v59  ;;  %561 = vst [vmem:[%s872_s14 + $0xd0] sm:$0xff] %v513_v60  ;;  %v452_v3 = vadd.f32 %v710_v1, %v867_v24  ;;  %v516_v4 = vadd.f32 %v726_v2, %v867_v24  ;;  %v443_v5 = vpop.f32.mrb[11].mxu0  ;;  %v507_v6 = vpop.f32.mrb[11].mxu1 }
 0x10d   : > { %543 = vst [vmem:[%s872_s14 + $0x40] sm:$0xff] %v441_v63  ;;  %559 = vst [vmem:[%s872_s14 + $0xc0] sm:$0xff] %v505_v0  ;;  %v444_v7 = vadd.f32 %v867_v24, %v443_v5  ;;  %v508_v8 = vadd.f32 %v867_v24, %v507_v6 }
 0x10e   : > { %546 = vst [vmem:[%s872_s14 + $0x58] sm:$0xff] %v452_v3  ;;  %562 = vst [vmem:[%s872_s14 + $0xd8] sm:$0xff] %v516_v4 }
 0x10f   : > { %544 = vst [vmem:[%s872_s14 + $0x48] sm:$0xff] %v444_v7  ;;  %560 = vst [vmem:[%s872_s14 + $0xc8] sm:$0xff] %v508_v8 }
 0x111   : > { %v713_v9 = vpop.f32.mrb[12].mxu0  ;;  %v729_v10 = vpop.f32.mrb[12].mxu1 }
 0x112   : > { %v465_v11 = vadd.f32 %v713_v9, %v867_v24  ;;  %v529_v12 = vadd.f32 %v729_v10, %v867_v24  ;;  %v456_v13 = vpop.f32.mrb[13].mxu0  ;;  %v520_v14 = vpop.f32.mrb[13].mxu1 }
 0x113   : > { %v457_v15 = vadd.f32 %v867_v24, %v456_v13  ;;  %v521_v16 = vadd.f32 %v867_v24, %v520_v14  ;;  %v714_v17 = vpop.f32.mrb[14].mxu0  ;;  %v730_v18 = vpop.f32.mrb[14].mxu1 }
 0x114   : > { %549 = vst [vmem:[%s872_s14 + $0x70] sm:$0xff] %v465_v11  ;;  %565 = vst [vmem:[%s872_s14 + $0xf0] sm:$0xff] %v529_v12  ;;  %v468_v19 = vadd.f32 %v714_v17, %v867_v24  ;;  %v532_v20 = vadd.f32 %v730_v18, %v867_v24  ;;  %v459_v21 = vpop.f32.mrb[15].mxu0  ;;  %v523_v22 = vpop.f32.mrb[15].mxu1 }
 0x115   : > { %547 = vst [vmem:[%s872_s14 + $0x60] sm:$0xff] %v457_v15  ;;  %563 = vst [vmem:[%s872_s14 + $0xe0] sm:$0xff] %v521_v16  ;;  %v460_v23 = vadd.f32 %v867_v24, %v459_v21  ;;  %v524_v25 = vadd.f32 %v867_v24, %v523_v22 }
 0x116   : > { %550 = vst [vmem:[%s872_s14 + $0x78] sm:$0xff] %v468_v19  ;;  %566 = vst [vmem:[%s872_s14 + $0xf8] sm:$0xff] %v532_v20 }
 0x117   : > { %548 = vst [vmem:[%s872_s14 + $0x68] sm:$0xff] %v460_v23  ;;  %564 = vst [vmem:[%s872_s14 + $0xe8] sm:$0xff] %v524_v25 }
 0x118 PF: > { %s13_s12 = sadd.s32 1, %s785_s12  }
 0x119   : > { %p10_p4 = scmp.ge.s32.totalorder %s13_s12, 4  }
 0x11b   :  { %12 = sbr.rel (!%p10_p4) target bundleno = 1 (0x1), region = 62 }

// kernel: unet_forward.61
= control target key start
LH: loop header
LB: loop body
LE: loop exit
PB: predicated region body
PF: predicated region fallthrough
CT: control target
= control target key end

     0   :  { %v180_v0 = vmov 0.0   ;;  %vm181_vm0 = vmmov 0   ;;  %s235_s1 = inlined_call_operand.vmem [shape: bf16[128,128], index: 1, kind: input, shape index: {}]   ;;  %s236_s0 = inlined_call_operand.vmem [shape: bf16[8,128], index: 0, kind: input, shape index: {}]   ;;  %s237_s2 = inlined_call_operand.vmem [shape: f32[1,128], index: 2, kind: input, shape index: {}]   ;;  %s238_s3 = inlined_call_operand.vmem [shape: f32[8,128], index: 3, kind: output, shape index: {}]  }
   0x1   :  { %150 = vmatprep.subr.bf16.mxu0 %v180_v0  ;;  %v172_v1 = vld [vmem:[%s235_s1] sm:$0xff]   ;;  %166 = vmatprep.mubr.msk.bf16.mxu0 %vm181_vm0, %v180_v0  ;;  %v173_v2 = vld [vmem:[%s235_s1 + $0x8] sm:$0xff]   ;;  %v174_v3 = vld [vmem:[%s235_s1 + $0x10] sm:$0xff]  }
   0x2   :  { %151 = vmatpush3.bf16.msra.mxu0 %v172_v1  ;;  %v175_v4 = vld [vmem:[%s235_s1 + $0x18] sm:$0xff]   ;;  %v176_v5 = vld [vmem:[%s235_s1 + $0x20] sm:$0xff]   ;;  %v177_v6 = vld [vmem:[%s235_s1 + $0x28] sm:$0xff]  }
   0x3   :  { %152 = vmatprep.subr.bf16.mxu0 %v180_v0  ;;  %v178_v7 = vld [vmem:[%s235_s1 + $0x30] sm:$0xff]   ;;  %v179_v8 = vld [vmem:[%s235_s1 + $0x38] sm:$0xff]   ;;  %v15_v9 = vld [vmem:[%s236_s0] sm:$0xf] }
   0x4   :  { %v132_v10 = vld [vmem:[%s237_s2] ss:$0 sm:$0xff] }
   0x6   :  { %153 = vmatpush3.bf16.msra.mxu0 %v173_v2 }
   0x7   :  { %154 = vmatprep.subr.bf16.mxu0 %v180_v0 }
   0xa   :  { %155 = vmatpush3.bf16.msra.mxu0 %v174_v3 }
   0xb   :  { %156 = vmatprep.subr.bf16.mxu0 %v180_v0 }
   0xe   :  { %157 = vmatpush3.bf16.msra.mxu0 %v175_v4 }
   0xf   :  { %158 = vmatprep.subr.bf16.mxu0 %v180_v0 }
  0x12   :  { %159 = vmatpush3.bf16.msra.mxu0 %v176_v5 }
  0x13   :  { %160 = vmatprep.subr.bf16.mxu0 %v180_v0 }
  0x16   :  { %161 = vmatpush3.bf16.msra.mxu0 %v177_v6 }
  0x17   :  { %162 = vmatprep.subr.bf16.mxu0 %v180_v0 }
  0x1a   :  { %163 = vmatpush3.bf16.msra.mxu0 %v178_v7 }
  0x1b   :  { %164 = vmatprep.subr.bf16.mxu0 %v180_v0 }
  0x1e   :  { %165 = vmatpush3.bf16.msra.mxu0 %v179_v8 }
  0x21   :  { %167 = vmatmul.mubr.bf16.vlgmr.msra.gmra.mrb[0].mxu0 %v15_v9 }
  0xf4   :  { %v121_v11 = vpop.f32.mrb[0].mxu0 }
  0xf5   :  { %v122_v12 = vadd.f32 %v132_v10, %v121_v11  ;;  %v168_v13 = vpop.f32.mrb[1].mxu0 }
  0xf6   :  { %v124_v14 = vpop.f32.mrb[2].mxu0 }
  0xf7   :  { %127 = vst [vmem:[%s238_s3] sm:$0xff] %v122_v12  ;;  %v169_v15 = vpop.f32.mrb[3].mxu0 }

</bundles_post_ra>
